<compile_context>
chip_gen: v5e
topology: v5e:2x2
jax: 0.10.0
libtpu: 0.0.40
codegen_flags: <defaults>
</compile_context>

<pallas_src>
import functools

import jax
import jax.numpy as jnp
import numpy as np
from jax import lax
from jax.experimental import pallas as pl
from jax.experimental.pallas import tpu as pltpu


def _lateral_block_kernel(x_ref, w1_ref, b1_ref, w2_ref, b2_ref, o_ref,
                          xpad_ref, hpad_ref, *, bt, H, W, C):
    """Processes `bt` batch elements per grid step.

    x_ref    : (bt, H, W, C)        f32   unpadded input block
    w1_ref   : (9*C, C)             bf16  conv1 weights, im2col-ready (dy,dx,ci)
    b1_ref   : (1, C)               f32   conv1 bias
    w2_ref   : (9*C, C)             bf16  conv2 weights
    b2_ref   : (1, C)               f32   conv2 bias
    o_ref    : (bt, H, W*C)         f32   lane-dense output block
    xpad_ref : VMEM (bt,H+2,W+2,C)  f32   zero-padded input scratch
    hpad_ref : VMEM (bt,H+2,W+2,C)  f32   zero-padded hidden scratch
    """
    f32, bf16 = jnp.float32, jnp.bfloat16
    Hp, Wp = H + 2, W + 2
    HW = H * W

    # Zero both padded scratches every step (cheap aligned fills).  Only the
    # 1-px ring strictly needs it, but per-step zeroing stays correct when the
    # "parallel" batch grid is split across TensorCores (scratch is per-core,
    # so a program_id==0 gate would be wrong).
    zeros_pad = jnp.zeros((Hp, Wp, C), f32)
    for b in range(bt):
        xpad_ref[b] = zeros_pad
        hpad_ref[b] = zeros_pad
        xpad_ref[b, 1:H + 1, 1:W + 1, :] = x_ref[b]

    def build_patch(pad_ref):
        """im2col patch (bt*H*W, 9*C) bf16 built fully in-register.

        One hoisted row-block load per (b, dy); the three dx taps are sliced
        from the in-register rows and lane-concatenated, so no masked 32-lane
        patch stores/reloads are issued (the old patch_ref scratch is gone).
        """
        per_elem = []
        for b in range(bt):
            groups = []
            for dy in range(3):
                rows = pad_ref[b, dy:dy + H, :, :]            # (H, Wp, C) f32
                groups.append(jnp.concatenate(
                    [rows[:, dx:dx + W, :].reshape(HW, C).astype(bf16)
                     for dx in range(3)], axis=-1))           # (HW, 3C) bf16
            per_elem.append(jnp.concatenate(groups, axis=-1))  # (HW, 9C)
        if bt == 1:
            return per_elem[0]
        return jnp.concatenate(per_elem, axis=0)                # (bt*HW, 9C)

    # ---- conv1: single (bt*HW, 9C) x (9C, C) bf16 MXU matmul, f32 acc ----
    a1 = jnp.dot(build_patch(xpad_ref), w1_ref[...],
                 preferred_element_type=f32) + b1_ref[...]
    hid = jnp.where(a1 > 0, a1, 0.1 * a1)                     # LeakyReLU(0.1)

    # Re-pad hidden activation (interior only; ring already zero).
    for b in range(bt):
        hpad_ref[b, 1:H + 1, 1:W + 1, :] = (
            hid[b * HW:(b + 1) * HW].reshape(H, W, C))

    # ---- conv2 ----
    a2 = jnp.dot(build_patch(hpad_ref), w2_ref[...],
                 preferred_element_type=f32) + b2_ref[...]

    # ---- residual add (f32), then assemble lane-dense (H, W*C) rows so the
    #      output stores are unmasked 128-lane and the block is not lane-padded.
    for b in range(bt):
        y = a2[b * HW:(b + 1) * HW] + x_ref[b].reshape(HW, C)
        y3 = y.reshape(H, W, C)
        dense = jnp.concatenate([y3[:, w, :] for w in range(W)], axis=-1)
        o_ref[b] = dense.astype(o_ref.dtype)


def lateral_block(x_nhwc, w1, b1, w2, b2, *, batch_tile=1):
    """x_nhwc: (B,H,W,C) f32.  w*: (3,3,C,C) HWIO.  b*: (C,).  Returns (B,H,W,C)."""
    B, H, W, C = x_nhwc.shape
    bt = batch_tile
    assert B % bt == 0, "batch_tile must divide the batch size"

    # Glue only: matmul-ready weight reshape/cast + 2-D biases.  No jnp.pad —
    # padding happens inside the kernel (saves an HBM round trip of x).
    w1r = w1.reshape(9 * C, C).astype(jnp.bfloat16)   # rows ordered (dy, dx, ci)
    w2r = w2.reshape(9 * C, C).astype(jnp.bfloat16)
    b1r = b1.reshape(1, C).astype(jnp.float32)
    b2r = b2.reshape(1, C).astype(jnp.float32)

    kernel = functools.partial(_lateral_block_kernel, bt=bt, H=H, W=W, C=C)

    out = pl.pallas_call(
        kernel,
        out_shape=jax.ShapeDtypeStruct((B, H, W * C), x_nhwc.dtype),
        grid_spec=pltpu.PrefetchScalarGridSpec(
            num_scalar_prefetch=0,
            grid=(B // bt,),
            in_specs=[
                pl.BlockSpec((bt, H, W, C), lambda i: (i, 0, 0, 0)),
                # Constant index maps -> weights/biases stay resident in VMEM.
                pl.BlockSpec((9 * C, C), lambda i: (0, 0)),
                pl.BlockSpec((1, C), lambda i: (0, 0)),
                pl.BlockSpec((9 * C, C), lambda i: (0, 0)),
                pl.BlockSpec((1, C), lambda i: (0, 0)),
            ],
            out_specs=pl.BlockSpec((bt, H, W * C), lambda i: (i, 0, 0)),
            scratch_shapes=[
                pltpu.VMEM((bt, H + 2, W + 2, C), jnp.float32),  # padded x
                pltpu.VMEM((bt, H + 2, W + 2, C), jnp.float32),  # padded hidden
            ],
        ),
        # Parallel batch grid: v7x's two TensorCores each take grid steps;
        # harmless on single-TC v5e/v6e.
        compiler_params=pltpu.CompilerParams(
            dimension_semantics=("parallel",)),
    )(x_nhwc, w1r, b1r, w2r, b2r)

    # Free, contiguous un-flatten of the lane-dense (H, W*C) rows.
    return out.reshape(B, H, W, C)


def _reference(x_nhwc, w1, b1, w2, b2):
    """Pure-JAX reference (NHWC conv, HWIO weights), all f32."""
    dn = lax.conv_dimension_numbers(x_nhwc.shape, w1.shape,
                                    ("NHWC", "HWIO", "NHWC"))
    h = lax.conv_general_dilated(x_nhwc, w1, (1, 1), "SAME",
                                 dimension_numbers=dn) + b1
    h = jnp.where(h > 0, h, 0.1 * h)
    y = lax.conv_general_dilated(h, w2, (1, 1), "SAME",
                                 dimension_numbers=dn) + b2
    return y + x_nhwc


if __name__ == "__main__":
    B, C, H, W = 2, 32, 16, 16   # LateralBlock(dim=32)

    key = jax.random.PRNGKey(0)
    k_x, k_w1, k_b1, k_w2, k_b2 = jax.random.split(key, 5)

    # Input in PyTorch's NCHW convention, transposed to NHWC for the kernel.
    x_nchw = jax.random.normal(k_x, (B, C, H, W), jnp.float32)
    x_nhwc = jnp.transpose(x_nchw, (0, 2, 3, 1))

    # Deterministic synthetic Conv2d(dim, dim, 3) parameters, HWIO layout.
    fan_in = C * 3 * 3
    scale = 1.0 / np.sqrt(fan_in)
    w1 = jax.random.uniform(k_w1, (3, 3, C, C), jnp.float32, -scale, scale)
    b1 = jax.random.uniform(k_b1, (C,), jnp.float32, -scale, scale)
    w2 = jax.random.uniform(k_w2, (3, 3, C, C), jnp.float32, -scale, scale)
    b2 = jax.random.uniform(k_b2, (C,), jnp.float32, -scale, scale)

    out = jax.block_until_ready(lateral_block(x_nhwc, w1, b1, w2, b2))
    ref = jax.block_until_ready(_reference(x_nhwc, w1, b1, w2, b2))

    # bf16 MXU operands (f32 accumulation) -> looser tolerance.
    np.testing.assert_allclose(np.asarray(out), np.asarray(ref),
                               rtol=2e-2, atol=2e-2)

    print("KERNEL_OK")
</pallas_src>

<mosaic_0001>
module attributes {stable_mosaic.version = 11 : i64} {
  func.func @_lateral_block_kernel(%arg0: i32, %arg1: memref<1x16x16x32xf32, #tpu.memory_space<vmem>>, %arg2: memref<288x32xbf16, #tpu.memory_space<vmem>>, %arg3: memref<1x32xf32, #tpu.memory_space<vmem>>, %arg4: memref<288x32xbf16, #tpu.memory_space<vmem>>, %arg5: memref<1x32xf32, #tpu.memory_space<vmem>>, %arg6: memref<1x16x512xf32, #tpu.memory_space<vmem>>, %arg7: memref<1x18x18x32xf32, #tpu.memory_space<vmem>>, %arg8: memref<1x18x18x32xf32, #tpu.memory_space<vmem>>) attributes {dimension_semantics = [#tpu.dimension_semantics<parallel>], iteration_bounds = array<i64: 2>, scalar_prefetch = 0 : i64, scratch_operands = 2 : i64, tpu.core_type = #tpu.core_type<tc>, window_params = [{transform_indices = @transform_0, window_bounds = array<i64: 1, 16, 16, 32>}, {pipeline_mode = #tpu.pipeline_mode<synchronous>, transform_indices = @transform_1, window_bounds = array<i64: 288, 32>}, {pipeline_mode = #tpu.pipeline_mode<synchronous>, transform_indices = @transform_2, window_bounds = array<i64: 1, 32>}, {pipeline_mode = #tpu.pipeline_mode<synchronous>, transform_indices = @transform_3, window_bounds = array<i64: 288, 32>}, {pipeline_mode = #tpu.pipeline_mode<synchronous>, transform_indices = @transform_4, window_bounds = array<i64: 1, 32>}, {transform_indices = @transform_5, window_bounds = array<i64: 1, 16, 512>}]} {
    %cst = arith.constant 0.000000e+00 : f32
    %0 = vector.broadcast %cst : f32 to vector<18x18x32xf32>
    %c0 = arith.constant 0 : index
    %c0_0 = arith.constant 0 : index
    %c0_1 = arith.constant 0 : index
    %c0_2 = arith.constant 0 : index
    %1 = vector.load %arg7[%c0, %c0_0, %c0_1, %c0_2] : memref<1x18x18x32xf32, #tpu.memory_space<vmem>>, vector<1x18x18x32xf32>
    %2 = vector.shape_cast %1 : vector<1x18x18x32xf32> to vector<18x18x32xf32>
    %3 = vector.shape_cast %0 : vector<18x18x32xf32> to vector<1x18x18x32xf32>
    tpu.vector_store %arg7[%c0, %c0_0, %c0_1, %c0_2], %3 {strides = array<i32>} : memref<1x18x18x32xf32, #tpu.memory_space<vmem>>, vector<1x18x18x32xf32>,
    %c0_3 = arith.constant 0 : index
    %c0_4 = arith.constant 0 : index
    %c0_5 = arith.constant 0 : index
    %c0_6 = arith.constant 0 : index
    %4 = vector.load %arg8[%c0_3, %c0_4, %c0_5, %c0_6] : memref<1x18x18x32xf32, #tpu.memory_space<vmem>>, vector<1x18x18x32xf32>
    %5 = vector.shape_cast %4 : vector<1x18x18x32xf32> to vector<18x18x32xf32>
    %6 = vector.shape_cast %0 : vector<18x18x32xf32> to vector<1x18x18x32xf32>
    tpu.vector_store %arg8[%c0_3, %c0_4, %c0_5, %c0_6], %6 {strides = array<i32>} : memref<1x18x18x32xf32, #tpu.memory_space<vmem>>, vector<1x18x18x32xf32>,
    %c0_7 = arith.constant 0 : index
    %c0_8 = arith.constant 0 : index
    %c0_9 = arith.constant 0 : index
    %c0_10 = arith.constant 0 : index
    %7 = vector.load %arg1[%c0_7, %c0_8, %c0_9, %c0_10] : memref<1x16x16x32xf32, #tpu.memory_space<vmem>>, vector<1x16x16x32xf32>
    %8 = vector.shape_cast %7 : vector<1x16x16x32xf32> to vector<16x16x32xf32>
    %c0_11 = arith.constant 0 : index
    %c1 = arith.constant 1 : index
    %c1_12 = arith.constant 1 : index
    %c0_13 = arith.constant 0 : index
    %9 = vector.load %arg7[%c0_11, %c1, %c1_12, %c0_13] : memref<1x18x18x32xf32, #tpu.memory_space<vmem>>, vector<1x16x16x32xf32>
    %10 = vector.shape_cast %9 : vector<1x16x16x32xf32> to vector<16x16x32xf32>
    %11 = vector.shape_cast %8 : vector<16x16x32xf32> to vector<1x16x16x32xf32>
    tpu.vector_store %arg7[%c0_11, %c1, %c1_12, %c0_13], %11 {strides = array<i32>} : memref<1x18x18x32xf32, #tpu.memory_space<vmem>>, vector<1x16x16x32xf32>,
    %c0_14 = arith.constant 0 : index
    %c0_15 = arith.constant 0 : index
    %c0_16 = arith.constant 0 : index
    %c0_17 = arith.constant 0 : index
    %12 = vector.load %arg7[%c0_14, %c0_15, %c0_16, %c0_17] : memref<1x18x18x32xf32, #tpu.memory_space<vmem>>, vector<1x16x18x32xf32>
    %13 = vector.shape_cast %12 : vector<1x16x18x32xf32> to vector<16x18x32xf32>
    %14 = vector.extract_strided_slice %13 {offsets = [0, 0, 0], sizes = [16, 16, 32], strides = [1, 1, 1]} : vector<16x18x32xf32> to vector<16x16x32xf32>
    %15 = vector.shape_cast %14 : vector<16x16x32xf32> to vector<256x32xf32>
    %16 = arith.truncf %15 : vector<256x32xf32> to vector<256x32xbf16>
    %17 = vector.extract_strided_slice %13 {offsets = [0, 1, 0], sizes = [16, 16, 32], strides = [1, 1, 1]} : vector<16x18x32xf32> to vector<16x16x32xf32>
    %18 = vector.shape_cast %17 : vector<16x16x32xf32> to vector<256x32xf32>
    %19 = arith.truncf %18 : vector<256x32xf32> to vector<256x32xbf16>
    %20 = vector.extract_strided_slice %13 {offsets = [0, 2, 0], sizes = [16, 16, 32], strides = [1, 1, 1]} : vector<16x18x32xf32> to vector<16x16x32xf32>
    %21 = vector.shape_cast %20 : vector<16x16x32xf32> to vector<256x32xf32>
    %22 = arith.truncf %21 : vector<256x32xf32> to vector<256x32xbf16>
    %23 = tpu.concatenate %16, %19, %22 in 1 : vector<256x32xbf16>, vector<256x32xbf16>, vector<256x32xbf16> -> vector<256x96xbf16>
    %c0_18 = arith.constant 0 : index
    %c1_19 = arith.constant 1 : index
    %c0_20 = arith.constant 0 : index
    %c0_21 = arith.constant 0 : index
    %24 = vector.load %arg7[%c0_18, %c1_19, %c0_20, %c0_21] : memref<1x18x18x32xf32, #tpu.memory_space<vmem>>, vector<1x16x18x32xf32>
    %25 = vector.shape_cast %24 : vector<1x16x18x32xf32> to vector<16x18x32xf32>
    %26 = vector.extract_strided_slice %25 {offsets = [0, 0, 0], sizes = [16, 16, 32], strides = [1, 1, 1]} : vector<16x18x32xf32> to vector<16x16x32xf32>
    %27 = vector.shape_cast %26 : vector<16x16x32xf32> to vector<256x32xf32>
    %28 = arith.truncf %27 : vector<256x32xf32> to vector<256x32xbf16>
    %29 = vector.extract_strided_slice %25 {offsets = [0, 1, 0], sizes = [16, 16, 32], strides = [1, 1, 1]} : vector<16x18x32xf32> to vector<16x16x32xf32>
    %30 = vector.shape_cast %29 : vector<16x16x32xf32> to vector<256x32xf32>
    %31 = arith.truncf %30 : vector<256x32xf32> to vector<256x32xbf16>
    %32 = vector.extract_strided_slice %25 {offsets = [0, 2, 0], sizes = [16, 16, 32], strides = [1, 1, 1]} : vector<16x18x32xf32> to vector<16x16x32xf32>
    %33 = vector.shape_cast %32 : vector<16x16x32xf32> to vector<256x32xf32>
    %34 = arith.truncf %33 : vector<256x32xf32> to vector<256x32xbf16>
    %35 = tpu.concatenate %28, %31, %34 in 1 : vector<256x32xbf16>, vector<256x32xbf16>, vector<256x32xbf16> -> vector<256x96xbf16>
    %c0_22 = arith.constant 0 : index
    %c2 = arith.constant 2 : index
    %c0_23 = arith.constant 0 : index
    %c0_24 = arith.constant 0 : index
    %36 = vector.load %arg7[%c0_22, %c2, %c0_23, %c0_24] : memref<1x18x18x32xf32, #tpu.memory_space<vmem>>, vector<1x16x18x32xf32>
    %37 = vector.shape_cast %36 : vector<1x16x18x32xf32> to vector<16x18x32xf32>
    %38 = vector.extract_strided_slice %37 {offsets = [0, 0, 0], sizes = [16, 16, 32], strides = [1, 1, 1]} : vector<16x18x32xf32> to vector<16x16x32xf32>
    %39 = vector.shape_cast %38 : vector<16x16x32xf32> to vector<256x32xf32>
    %40 = arith.truncf %39 : vector<256x32xf32> to vector<256x32xbf16>
    %41 = vector.extract_strided_slice %37 {offsets = [0, 1, 0], sizes = [16, 16, 32], strides = [1, 1, 1]} : vector<16x18x32xf32> to vector<16x16x32xf32>
    %42 = vector.shape_cast %41 : vector<16x16x32xf32> to vector<256x32xf32>
    %43 = arith.truncf %42 : vector<256x32xf32> to vector<256x32xbf16>
    %44 = vector.extract_strided_slice %37 {offsets = [0, 2, 0], sizes = [16, 16, 32], strides = [1, 1, 1]} : vector<16x18x32xf32> to vector<16x16x32xf32>
    %45 = vector.shape_cast %44 : vector<16x16x32xf32> to vector<256x32xf32>
    %46 = arith.truncf %45 : vector<256x32xf32> to vector<256x32xbf16>
    %47 = tpu.concatenate %40, %43, %46 in 1 : vector<256x32xbf16>, vector<256x32xbf16>, vector<256x32xbf16> -> vector<256x96xbf16>
    %48 = tpu.concatenate %23, %35, %47 in 1 : vector<256x96xbf16>, vector<256x96xbf16>, vector<256x96xbf16> -> vector<256x288xbf16>
    %c0_25 = arith.constant 0 : index
    %c0_26 = arith.constant 0 : index
    %49 = vector.load %arg2[%c0_25, %c0_26] : memref<288x32xbf16, #tpu.memory_space<vmem>>, vector<288x32xbf16>
    %cst_27 = arith.constant dense<0.000000e+00> : vector<256x32xf32>
    %50 = tpu.matmul %48, %49, %cst_27 {dimension_numbers = #tpu.dot_dimension_numbers<[1], [0], [0], [1], [0, 0, 1, 1], [], []>} : vector<256x288xbf16>, vector<288x32xbf16>, vector<256x32xf32> -> vector<256x32xf32>
    %c0_28 = arith.constant 0 : index
    %c0_29 = arith.constant 0 : index
    %51 = vector.load %arg3[%c0_28, %c0_29] : memref<1x32xf32, #tpu.memory_space<vmem>>, vector<1x32xf32>
    %52 = vector.broadcast %51 : vector<1x32xf32> to vector<256x32xf32>
    %53 = arith.addf %50, %52 : vector<256x32xf32>
    %cst_30 = arith.constant 0.000000e+00 : f32
    %54 = vector.broadcast %cst_30 : f32 to vector<256x32xf32>
    %55 = arith.cmpf ogt, %53, %54 : vector<256x32xf32>
    %cst_31 = arith.constant 1.000000e-01 : f32
    %56 = vector.broadcast %cst_31 : f32 to vector<256x32xf32>
    %57 = arith.mulf %56, %53 : vector<256x32xf32>
    %58 = arith.select %55, %53, %57 : vector<256x32xi1>, vector<256x32xf32>
    %59 = vector.shape_cast %58 : vector<256x32xf32> to vector<16x16x32xf32>
    %c0_32 = arith.constant 0 : index
    %c1_33 = arith.constant 1 : index
    %c1_34 = arith.constant 1 : index
    %c0_35 = arith.constant 0 : index
    %60 = vector.load %arg8[%c0_32, %c1_33, %c1_34, %c0_35] : memref<1x18x18x32xf32, #tpu.memory_space<vmem>>, vector<1x16x16x32xf32>
    %61 = vector.shape_cast %60 : vector<1x16x16x32xf32> to vector<16x16x32xf32>
    %62 = vector.shape_cast %59 : vector<16x16x32xf32> to vector<1x16x16x32xf32>
    tpu.vector_store %arg8[%c0_32, %c1_33, %c1_34, %c0_35], %62 {strides = array<i32>} : memref<1x18x18x32xf32, #tpu.memory_space<vmem>>, vector<1x16x16x32xf32>,
    %c0_36 = arith.constant 0 : index
    %c0_37 = arith.constant 0 : index
    %c0_38 = arith.constant 0 : index
    %c0_39 = arith.constant 0 : index
    %63 = vector.load %arg8[%c0_36, %c0_37, %c0_38, %c0_39] : memref<1x18x18x32xf32, #tpu.memory_space<vmem>>, vector<1x16x18x32xf32>
    %64 = vector.shape_cast %63 : vector<1x16x18x32xf32> to vector<16x18x32xf32>
    %65 = vector.extract_strided_slice %64 {offsets = [0, 0, 0], sizes = [16, 16, 32], strides = [1, 1, 1]} : vector<16x18x32xf32> to vector<16x16x32xf32>
    %66 = vector.shape_cast %65 : vector<16x16x32xf32> to vector<256x32xf32>
    %67 = arith.truncf %66 : vector<256x32xf32> to vector<256x32xbf16>
    %68 = vector.extract_strided_slice %64 {offsets = [0, 1, 0], sizes = [16, 16, 32], strides = [1, 1, 1]} : vector<16x18x32xf32> to vector<16x16x32xf32>
    %69 = vector.shape_cast %68 : vector<16x16x32xf32> to vector<256x32xf32>
    %70 = arith.truncf %69 : vector<256x32xf32> to vector<256x32xbf16>
    %71 = vector.extract_strided_slice %64 {offsets = [0, 2, 0], sizes = [16, 16, 32], strides = [1, 1, 1]} : vector<16x18x32xf32> to vector<16x16x32xf32>
    %72 = vector.shape_cast %71 : vector<16x16x32xf32> to vector<256x32xf32>
    %73 = arith.truncf %72 : vector<256x32xf32> to vector<256x32xbf16>
    %74 = tpu.concatenate %67, %70, %73 in 1 : vector<256x32xbf16>, vector<256x32xbf16>, vector<256x32xbf16> -> vector<256x96xbf16>
    %c0_40 = arith.constant 0 : index
    %c1_41 = arith.constant 1 : index
    %c0_42 = arith.constant 0 : index
    %c0_43 = arith.constant 0 : index
    %75 = vector.load %arg8[%c0_40, %c1_41, %c0_42, %c0_43] : memref<1x18x18x32xf32, #tpu.memory_space<vmem>>, vector<1x16x18x32xf32>
    %76 = vector.shape_cast %75 : vector<1x16x18x32xf32> to vector<16x18x32xf32>
    %77 = vector.extract_strided_slice %76 {offsets = [0, 0, 0], sizes = [16, 16, 32], strides = [1, 1, 1]} : vector<16x18x32xf32> to vector<16x16x32xf32>
    %78 = vector.shape_cast %77 : vector<16x16x32xf32> to vector<256x32xf32>
    %79 = arith.truncf %78 : vector<256x32xf32> to vector<256x32xbf16>
    %80 = vector.extract_strided_slice %76 {offsets = [0, 1, 0], sizes = [16, 16, 32], strides = [1, 1, 1]} : vector<16x18x32xf32> to vector<16x16x32xf32>
    %81 = vector.shape_cast %80 : vector<16x16x32xf32> to vector<256x32xf32>
    %82 = arith.truncf %81 : vector<256x32xf32> to vector<256x32xbf16>
    %83 = vector.extract_strided_slice %76 {offsets = [0, 2, 0], sizes = [16, 16, 32], strides = [1, 1, 1]} : vector<16x18x32xf32> to vector<16x16x32xf32>
    %84 = vector.shape_cast %83 : vector<16x16x32xf32> to vector<256x32xf32>
    %85 = arith.truncf %84 : vector<256x32xf32> to vector<256x32xbf16>
    %86 = tpu.concatenate %79, %82, %85 in 1 : vector<256x32xbf16>, vector<256x32xbf16>, vector<256x32xbf16> -> vector<256x96xbf16>
    %c0_44 = arith.constant 0 : index
    %c2_45 = arith.constant 2 : index
    %c0_46 = arith.constant 0 : index
    %c0_47 = arith.constant 0 : index
    %87 = vector.load %arg8[%c0_44, %c2_45, %c0_46, %c0_47] : memref<1x18x18x32xf32, #tpu.memory_space<vmem>>, vector<1x16x18x32xf32>
    %88 = vector.shape_cast %87 : vector<1x16x18x32xf32> to vector<16x18x32xf32>
    %89 = vector.extract_strided_slice %88 {offsets = [0, 0, 0], sizes = [16, 16, 32], strides = [1, 1, 1]} : vector<16x18x32xf32> to vector<16x16x32xf32>
    %90 = vector.shape_cast %89 : vector<16x16x32xf32> to vector<256x32xf32>
    %91 = arith.truncf %90 : vector<256x32xf32> to vector<256x32xbf16>
    %92 = vector.extract_strided_slice %88 {offsets = [0, 1, 0], sizes = [16, 16, 32], strides = [1, 1, 1]} : vector<16x18x32xf32> to vector<16x16x32xf32>
    %93 = vector.shape_cast %92 : vector<16x16x32xf32> to vector<256x32xf32>
    %94 = arith.truncf %93 : vector<256x32xf32> to vector<256x32xbf16>
    %95 = vector.extract_strided_slice %88 {offsets = [0, 2, 0], sizes = [16, 16, 32], strides = [1, 1, 1]} : vector<16x18x32xf32> to vector<16x16x32xf32>
    %96 = vector.shape_cast %95 : vector<16x16x32xf32> to vector<256x32xf32>
    %97 = arith.truncf %96 : vector<256x32xf32> to vector<256x32xbf16>
    %98 = tpu.concatenate %91, %94, %97 in 1 : vector<256x32xbf16>, vector<256x32xbf16>, vector<256x32xbf16> -> vector<256x96xbf16>
    %99 = tpu.concatenate %74, %86, %98 in 1 : vector<256x96xbf16>, vector<256x96xbf16>, vector<256x96xbf16> -> vector<256x288xbf16>
    %c0_48 = arith.constant 0 : index
    %c0_49 = arith.constant 0 : index
    %100 = vector.load %arg4[%c0_48, %c0_49] : memref<288x32xbf16, #tpu.memory_space<vmem>>, vector<288x32xbf16>
    %cst_50 = arith.constant dense<0.000000e+00> : vector<256x32xf32>
    %101 = tpu.matmul %99, %100, %cst_50 {dimension_numbers = #tpu.dot_dimension_numbers<[1], [0], [0], [1], [0, 0, 1, 1], [], []>} : vector<256x288xbf16>, vector<288x32xbf16>, vector<256x32xf32> -> vector<256x32xf32>
    %c0_51 = arith.constant 0 : index
    %c0_52 = arith.constant 0 : index
    %102 = vector.load %arg5[%c0_51, %c0_52] : memref<1x32xf32, #tpu.memory_space<vmem>>, vector<1x32xf32>
    %103 = vector.broadcast %102 : vector<1x32xf32> to vector<256x32xf32>
    %104 = arith.addf %101, %103 : vector<256x32xf32>
    %c0_53 = arith.constant 0 : index
    %c0_54 = arith.constant 0 : index
    %c0_55 = arith.constant 0 : index
    %c0_56 = arith.constant 0 : index
    %105 = vector.load %arg1[%c0_53, %c0_54, %c0_55, %c0_56] : memref<1x16x16x32xf32, #tpu.memory_space<vmem>>, vector<1x16x16x32xf32>
    %106 = vector.shape_cast %105 : vector<1x16x16x32xf32> to vector<16x16x32xf32>
    %107 = vector.shape_cast %106 : vector<16x16x32xf32> to vector<256x32xf32>
    %108 = arith.addf %104, %107 : vector<256x32xf32>
    %109 = vector.shape_cast %108 : vector<256x32xf32> to vector<16x16x32xf32>
    %110 = vector.extract_strided_slice %109 {offsets = [0, 0, 0], sizes = [16, 1, 32], strides = [1, 1, 1]} : vector<16x16x32xf32> to vector<16x1x32xf32>
    %111 = vector.shape_cast %110 : vector<16x1x32xf32> to vector<16x32xf32>
    %112 = vector.extract_strided_slice %109 {offsets = [0, 1, 0], sizes = [16, 1, 32], strides = [1, 1, 1]} : vector<16x16x32xf32> to vector<16x1x32xf32>
    %113 = vector.shape_cast %112 : vector<16x1x32xf32> to vector<16x32xf32>
    %114 = vector.extract_strided_slice %109 {offsets = [0, 2, 0], sizes = [16, 1, 32], strides = [1, 1, 1]} : vector<16x16x32xf32> to vector<16x1x32xf32>
    %115 = vector.shape_cast %114 : vector<16x1x32xf32> to vector<16x32xf32>
    %116 = vector.extract_strided_slice %109 {offsets = [0, 3, 0], sizes = [16, 1, 32], strides = [1, 1, 1]} : vector<16x16x32xf32> to vector<16x1x32xf32>
    %117 = vector.shape_cast %116 : vector<16x1x32xf32> to vector<16x32xf32>
    %118 = vector.extract_strided_slice %109 {offsets = [0, 4, 0], sizes = [16, 1, 32], strides = [1, 1, 1]} : vector<16x16x32xf32> to vector<16x1x32xf32>
    %119 = vector.shape_cast %118 : vector<16x1x32xf32> to vector<16x32xf32>
    %120 = vector.extract_strided_slice %109 {offsets = [0, 5, 0], sizes = [16, 1, 32], strides = [1, 1, 1]} : vector<16x16x32xf32> to vector<16x1x32xf32>
    %121 = vector.shape_cast %120 : vector<16x1x32xf32> to vector<16x32xf32>
    %122 = vector.extract_strided_slice %109 {offsets = [0, 6, 0], sizes = [16, 1, 32], strides = [1, 1, 1]} : vector<16x16x32xf32> to vector<16x1x32xf32>
    %123 = vector.shape_cast %122 : vector<16x1x32xf32> to vector<16x32xf32>
    %124 = vector.extract_strided_slice %109 {offsets = [0, 7, 0], sizes = [16, 1, 32], strides = [1, 1, 1]} : vector<16x16x32xf32> to vector<16x1x32xf32>
    %125 = vector.shape_cast %124 : vector<16x1x32xf32> to vector<16x32xf32>
    %126 = vector.extract_strided_slice %109 {offsets = [0, 8, 0], sizes = [16, 1, 32], strides = [1, 1, 1]} : vector<16x16x32xf32> to vector<16x1x32xf32>
    %127 = vector.shape_cast %126 : vector<16x1x32xf32> to vector<16x32xf32>
    %128 = vector.extract_strided_slice %109 {offsets = [0, 9, 0], sizes = [16, 1, 32], strides = [1, 1, 1]} : vector<16x16x32xf32> to vector<16x1x32xf32>
    %129 = vector.shape_cast %128 : vector<16x1x32xf32> to vector<16x32xf32>
    %130 = vector.extract_strided_slice %109 {offsets = [0, 10, 0], sizes = [16, 1, 32], strides = [1, 1, 1]} : vector<16x16x32xf32> to vector<16x1x32xf32>
    %131 = vector.shape_cast %130 : vector<16x1x32xf32> to vector<16x32xf32>
    %132 = vector.extract_strided_slice %109 {offsets = [0, 11, 0], sizes = [16, 1, 32], strides = [1, 1, 1]} : vector<16x16x32xf32> to vector<16x1x32xf32>
    %133 = vector.shape_cast %132 : vector<16x1x32xf32> to vector<16x32xf32>
    %134 = vector.extract_strided_slice %109 {offsets = [0, 12, 0], sizes = [16, 1, 32], strides = [1, 1, 1]} : vector<16x16x32xf32> to vector<16x1x32xf32>
    %135 = vector.shape_cast %134 : vector<16x1x32xf32> to vector<16x32xf32>
    %136 = vector.extract_strided_slice %109 {offsets = [0, 13, 0], sizes = [16, 1, 32], strides = [1, 1, 1]} : vector<16x16x32xf32> to vector<16x1x32xf32>
    %137 = vector.shape_cast %136 : vector<16x1x32xf32> to vector<16x32xf32>
    %138 = vector.extract_strided_slice %109 {offsets = [0, 14, 0], sizes = [16, 1, 32], strides = [1, 1, 1]} : vector<16x16x32xf32> to vector<16x1x32xf32>
    %139 = vector.shape_cast %138 : vector<16x1x32xf32> to vector<16x32xf32>
    %140 = vector.extract_strided_slice %109 {offsets = [0, 15, 0], sizes = [16, 1, 32], strides = [1, 1, 1]} : vector<16x16x32xf32> to vector<16x1x32xf32>
    %141 = vector.shape_cast %140 : vector<16x1x32xf32> to vector<16x32xf32>
    %142 = tpu.concatenate %111, %113, %115, %117, %119, %121, %123, %125, %127, %129, %131, %133, %135, %137, %139, %141 in 1 : vector<16x32xf32>, vector<16x32xf32>, vector<16x32xf32>, vector<16x32xf32>, vector<16x32xf32>, vector<16x32xf32>, vector<16x32xf32>, vector<16x32xf32>, vector<16x32xf32>, vector<16x32xf32>, vector<16x32xf32>, vector<16x32xf32>, vector<16x32xf32>, vector<16x32xf32>, vector<16x32xf32>, vector<16x32xf32> -> vector<16x512xf32>
    %c0_57 = arith.constant 0 : index
    %c0_58 = arith.constant 0 : index
    %c0_59 = arith.constant 0 : index
    %143 = vector.load %arg6[%c0_57, %c0_58, %c0_59] : memref<1x16x512xf32, #tpu.memory_space<vmem>>, vector<1x16x512xf32>
    %144 = vector.shape_cast %143 : vector<1x16x512xf32> to vector<16x512xf32>
    %145 = vector.shape_cast %142 : vector<16x512xf32> to vector<1x16x512xf32>
    tpu.vector_store %arg6[%c0_57, %c0_58, %c0_59], %145 {strides = array<i32>} : memref<1x16x512xf32, #tpu.memory_space<vmem>>, vector<1x16x512xf32>,
    return
  }
  func.func @transform_0(%arg0: i32) -> (i32, i32, i32, i32) {
    %c0_i32 = arith.constant 0 : i32
    %c0_i32_0 = arith.constant 0 : i32
    %c0_i32_1 = arith.constant 0 : i32
    %c0_i32_2 = arith.constant 0 : i32
    return %arg0, %c0_i32, %c0_i32_0, %c0_i32_1 : i32, i32, i32, i32
  }
  func.func @transform_1(%arg0: i32) -> (i32, i32) {
    %c0_i32 = arith.constant 0 : i32
    %c0_i32_0 = arith.constant 0 : i32
    %c0_i32_1 = arith.constant 0 : i32
    return %c0_i32, %c0_i32_0 : i32, i32
  }
  func.func @transform_2(%arg0: i32) -> (i32, i32) {
    %c0_i32 = arith.constant 0 : i32
    %c0_i32_0 = arith.constant 0 : i32
    %c0_i32_1 = arith.constant 0 : i32
    return %c0_i32, %c0_i32_0 : i32, i32
  }
  func.func @transform_3(%arg0: i32) -> (i32, i32) {
    %c0_i32 = arith.constant 0 : i32
    %c0_i32_0 = arith.constant 0 : i32
    %c0_i32_1 = arith.constant 0 : i32
    return %c0_i32, %c0_i32_0 : i32, i32
  }
  func.func @transform_4(%arg0: i32) -> (i32, i32) {
    %c0_i32 = arith.constant 0 : i32
    %c0_i32_0 = arith.constant 0 : i32
    %c0_i32_1 = arith.constant 0 : i32
    return %c0_i32, %c0_i32_0 : i32, i32
  }
  func.func @transform_5(%arg0: i32) -> (i32, i32, i32) {
    %c0_i32 = arith.constant 0 : i32
    %c0_i32_0 = arith.constant 0 : i32
    %c0_i32_1 = arith.constant 0 : i32
    return %arg0, %c0_i32, %c0_i32_0 : i32, i32, i32
  }
}

</mosaic_0001>

<bundles_post_ra>
// kernel: tpu_custom_call.1
= control target key start
LH: loop header
LB: loop body
LE: loop exit
PB: predicated region body
PF: predicated region fallthrough
CT: control target
= control target key end

     0   :  { %10 = vsyncpa [#allocation5], 0  ;;  %s11967_s0 = inlined_call_operand.hbm [shape: f32[2,16,16,32], index: 0, kind: input, shape index: {}]   ;;  %s11968_s1 = inlined_call_operand.vmem [shape: bf16[288,32], index: 1, kind: input, shape index: {}]   ;;  %s11969_s2 = inlined_call_operand.vmem [shape: f32[1,32], index: 2, kind: input, shape index: {}]   ;;  %s11970_s3 = inlined_call_operand.vmem [shape: bf16[288,32], index: 3, kind: input, shape index: {}]   ;;  %s11971_s4 = inlined_call_operand.vmem [shape: f32[1,32], index: 4, kind: input, shape index: {}]   ;;  %s11972_s5 = inlined_call_operand.hbm [shape: f32[2,16,512], index: 5, kind: output, shape index: {}]  }
   0x1   :  { %12 = vsyncpa [#allocation5 + $0x1], 0 }
   0x2   :  { %13 = vsyncpa [#allocation6], 0 }
   0x3   :  { %15 = vsyncpa [#allocation6 + $0x1], 0  ;;  %s7821_s18 = smov 0   ;;  %s7823_s19 = smov 0  }
   0x4   :  { %s7825_s20 = smov 0   ;;  %s7827_s21 = smov 0  }
   0x5 LB: > { %s7842_s22 = sadd.s32 4294967295, %s7782_s21   ;;  %s7386_s23 = sadd.s32 4294967294, %s7782_s21   ;;  %s7782_s21 = sphi %s7827_s21, %s12021_s21   ;;  %s7778_s20 = sphi %s7825_s20, %s12020_s20   ;;  %s7774_s19 = sphi %s7823_s19, %s12019_s19   ;;  %s7770_s18 = sphi %s7821_s18, %s12018_s18  }
   0x6   : > { %s7846_s24 = sadd.s32 1, %s7782_s21   ;;  %s28_s25 = sadd.s32 1, %s7778_s20 }
   0x7   : > { %s25_s26 = ssub.s32 %s7782_s21, %s7846_s24  ;;  %p35_p0 = scmp.ne.s32.totalorder %s7778_s20, %s7774_s19 }
   0x8   : > { %p26_p1 = scmp.eq.s32.totalorder %s25_s26, 0  ;;  %p36_p2 = scmp.eq.s32.totalorder %s7782_s21, 0 }
   0x9   : > { %p41_p3 = scmp.ne.s32.totalorder %s7774_s19, %s7770_s18  ;;  %p42_p4 = scmp.eq.s32.totalorder %s7842_s22, 0 }
   0xa   : > { %s7858_s27 = scalar_select %p26_p1, %s7778_s20, %s28_s25  }
   0xb   : > { %p7860_p5 = por %p36_p2, %p35_p0  ;;  %p7864_p6 = por %p42_p4, %p41_p3 }
   0xc   : > { %p149_p7 = scmp.eq.s32.totalorder %s7842_s22, 1  ;;  %p155_p8 = scmp.eq.s32.totalorder %s7386_s23, 1 }
   0xd   : > { %p7636_p10 = scmp.lt.s32.totalorder %s7782_s21, 2  ;;  %s187_s7 = sand.u32 1, %s7778_s20  }
   0xe   : > { %p7871_p11 = por %p149_p7, %p35_p0  ;;  %p7875_p12 = por %p155_p8, %p41_p3 }
   0xf   : > { %s7576_s8 = sshll.u32 %s7782_s21, 8  ;;  %s7389_s9 = sshll.u32 %s187_s7, 8 }
  0x10   : > { %s196_s12 = scalar_lea.hbm %s11967_s0, %s7576_s8  ;;  %s191_s14 = scalar_lea.vmem [#allocation4], %s7389_s9 }
  0x11   : > { %s197_s13 = sshll.u32 %s196_s12, 4  ;;  %s199_s15 = sshll.u32 %s191_s14, 4  ;;  %s198_s13 = int_to_ptr.hbm [resolvable:$true] %s197_s13  ;;  %s200_s15 = int_to_ptr.vmem [resolvable:$true] %s199_s15 }
  0x12   : > { %p7886_p13 = pnand %p7636_p10, %p7860_p5  ;;  %p7392_p0 = scmp.ge.s32.totalorder %s7782_s21, 1 }
  0x13   : > { %p207_p1 = scmp.lt.s32.totalorder %s7782_s21, 3  ;;  %s188_s17 = scalar_lea.sflag [#allocation5], %s187_s7 }
  0x14   : > { %s7686_s23 = sshra.s32 %s198_s13, 4  ;;  %p7690_p3 = pneg %p7886_p13  ;;  %s7687_s23 = int_to_ptr.hbm [resolvable:$true] %s7686_s23 }
  0x15   : > { %s7688_s25 = scalar_lea.hbm %s7687_s23, 256  ;;  %s7693_s28 = scalar_lea.hbm %s11967_s0, 512 }
  0x16   : > { %p7689_p2 = scmp.ne.s32.totalorder %s7687_s23, %s7688_s25  ;;  %p7694_p5 = scmp.lt.s32.totalorder %s7687_s23, %s11967_s0 }
  0x17   : > { %p7695_p8 = scmp.lt.s32.totalorder %s7693_s28, %s7688_s25 }
  0x18   : > { %p7691_p4 = pnand %p7690_p3, %p7689_p2 }
  0x19   : > { %p7696_p10 = por %p7695_p8, %p7694_p5 }
  0x1a   : > { %p7692_p7 = pneg %p7691_p4 }
  0x1c   : > { %p7697_p9 = pnand %p7696_p10, %p7692_p7 }
  0x1e   : > { %7700 = shalt.err (!%p7697_p9)
}
  0x1f   : > { %s7784_s7 = smov 128   ;;  %s7785_s11 = smov 8  }
  0x20   : > { %7631 = dma.hbm_to_vmem [thread:$0]  (!%p7886_p13), %s198_s13, 4096, %s200_s15, %s188_s17, %s7784_s7, %s7784_s7, %s7785_s11  }
  0x21   : > { %p208_p2 = pnand %p7392_p0, %p207_p1 }
  0x23   : > { %211 = sbr.rel (%p208_p2) target bundleno = 1776 (0x6f0), region = 40 }
  0x28   : > { %s7907_s12 = sand.u32 1, %s7774_s19  }
  0x29   : > { %s7393_s14 = sshll.u32 %s7907_s12, 8  ;;  %s214_s23 = scalar_lea.sflag [#allocation5], %s7907_s12 }
  0x2a   : > { %s7911_s25 = scalar_lea.vmem [#allocation4], %s7393_s14 }
  0x2b   : > { %7761 = dma.done.wait (%p7864_p6), %s214_s23, 4096  }
  0x2c   : > { %7763 = vsyncadd (%p7864_p6), %s214_s23, 4294963200  ;;  %vm246_vm0 = vcmask 261120   ;;  %vm249_vm1 = vcmask 254976   ;;  %v7786_v0 = vmov 0.0   ;;  %v376_v1 = vld [vmem:[%s7911_s25 + $0xa0] sm:$0xff]  ;;  %v377_v2 = vld [vmem:[%s7911_s25 + $0xa8] sm:$0xff] }
  0x2d   : > { %281 = vst.msk [vmem:[#allocation2 + $0x108] sm:$0xff] %vm246_vm0, %v7786_v0  ;;  %vm549_vm2 = vcmask 1046528   ;;  %s7787_s29 = smov 32   ;;  %vm694_vm3 = vcmask 1045504   ;;  %s7788_s13 = smov 64   ;;  %v374_v26 = vld [vmem:[%s7911_s25 + $0x90] sm:$0xff] }
  0x2e   : > { %282 = vst.msk [vmem:[#allocation2 + $0x110] sm:$0xff] %vm246_vm0, %v7786_v0  ;;  %v375_v27 = vld [vmem:[%s7911_s25 + $0x98] sm:$0xff]  ;;  %v372_v28 = vld [vmem:[%s7911_s25 + $0x80] sm:$0xff]  ;;  %v373_v29 = vld [vmem:[%s7911_s25 + $0x88] sm:$0xff]  ;;  %vm1191_vm4 = vcmask 523264   ;;  %s7789_s15 = smov 96  }
  0x2f   : > { %283 = vst.msk [vmem:[#allocation2 + $0x118] sm:$0x3] %vm249_vm1, %v7786_v0  ;;  %v370_v30 = vld [vmem:[%s7911_s25 + $0x70] sm:$0xff]  ;;  %v371_v31 = vld [vmem:[%s7911_s25 + $0x78] sm:$0xff]  ;;  %vm2921_vm5 = vcmask 785408   ;;  %s7394_s9 = sshll.u32 %s7907_s12, 6 }
  0x30   : > { %247 = vst.msk [vmem:[#allocation2] sm:$0xff] %vm246_vm0, %v7786_v0  ;;  %v378_v32 = vld [vmem:[%s7911_s25 + $0xb0] sm:$0xff]  ;;  %v379_v33 = vld [vmem:[%s7911_s25 + $0xb8] sm:$0xff]  ;;  %s11661_s10 = scalar_lea.vmem [#allocation7], %s7394_s9  ;;  %s7736_s8 = scalar_lea.hbm %s11972_s5, 128 }
  0x31   : > { %248 = vst.msk [vmem:[#allocation2 + $0x8] sm:$0xff] %vm246_vm0, %v7786_v0  ;;  %v382_v48 = vld [vmem:[%s7911_s25 + $0xd0] sm:$0xff]  ;;  %v383_v53 = vld [vmem:[%s7911_s25 + $0xd8] sm:$0xff]  ;;  %s7310_s11 = sshll.u32 %s11661_s10, 4  ;;  %s7311_s11 = int_to_ptr.vmem [resolvable:$true] %s7310_s11 }
  0x32   : > { %250 = vst.msk [vmem:[#allocation2 + $0x10] sm:$0x3] %vm249_vm1, %v7786_v0 }
  0x33   : > { %251 = vst.msk [vmem:[#allocation2 + $0x18] sm:$0xff] %vm246_vm0, %v7786_v0 }
  0x34   : > { %409 = vst.msk [vmem:[#allocation2 + $0x109] sm:$0xff] %vm246_vm0, %v376_v1 }
  0x35   : > { %410 = vst.msk [vmem:[#allocation2 + $0x111] sm:$0xff] %vm246_vm0, %v377_v2 }
  0x36   : > { %252 = vst.msk [vmem:[#allocation2 + $0x20] sm:$0xff] %vm246_vm0, %v7786_v0 }
  0x37   : > { %253 = vst.msk [vmem:[#allocation2 + $0x28] sm:$0x3] %vm249_vm1, %v7786_v0 }
  0x38   : > { %254 = vst.msk [vmem:[#allocation2 + $0x30] sm:$0xff] %vm246_vm0, %v7786_v0 }
  0x39   : > { %255 = vst.msk [vmem:[#allocation2 + $0x38] sm:$0xff] %vm246_vm0, %v7786_v0 }
  0x3a   : > { %256 = vst.msk [vmem:[#allocation2 + $0x40] sm:$0x3] %vm249_vm1, %v7786_v0 }
  0x3b   : > { %v7945_v3 = vld [vmem:[#allocation2 + $0x108] sm:$0xff]  ;;  %257 = vst.msk [vmem:[#allocation2 + $0x48] sm:$0xff] %vm246_vm0, %v7786_v0 }
  0x3c   : > { %v7949_v4 = vld [vmem:[#allocation2 + $0x110] sm:$0xff]  ;;  %v7951_v5 = vld [vmem:[#allocation2 + $0x118] sm:$0x3]  ;;  %v1402_v6 = vrot.slane %v7945_v3, 1  ;;  %258 = vst.msk [vmem:[#allocation2 + $0x50] sm:$0xff] %vm246_vm0, %v7786_v0  ;;  %v1546_v17 = vrot.slane %v7945_v3, 2 }
  0x3d   : > { %v7957_v7 = vrot.slane %v7949_v4, 1  ;;  %v1405_v8 = vrot.slane %v7951_v5, 1  ;;  %259 = vst.msk [vmem:[#allocation2 + $0x58] sm:$0x3] %vm249_vm1, %v7786_v0  ;;  %v1549_v16 = vrot.slane %v7951_v5, 2  ;;  %v8135_v18 = vrot.slane %v7949_v4, 2 }
  0x3e   : > { %260 = vst.msk [vmem:[#allocation2 + $0x60] sm:$0xff] %vm246_vm0, %v7786_v0 }
  0x3f   : > { %v1404_v9 = vsel %vm549_vm2, %v1402_v6, %v7957_v7  ;;  %v1406_v10 = vsel %vm549_vm2, %v7957_v7, %v1405_v8  ;;  %261 = vst.msk [vmem:[#allocation2 + $0x68] sm:$0xff] %vm246_vm0, %v7786_v0  ;;  %v1548_v19 = vsel %vm694_vm3, %v1546_v17, %v8135_v18  ;;  %v1550_v20 = vsel %vm694_vm3, %v8135_v18, %v1549_v16 }
  0x40   : > { %v1484_v11 = vpack.c.bf16 %v1404_v9, %v1404_v9  ;;  %v1485_v12 = vpack.c.bf16 %v1406_v10, %v1406_v10  ;;  %262 = vst.msk [vmem:[#allocation2 + $0x70] sm:$0x3] %vm249_vm1, %v7786_v0  ;;  %v1628_v21 = vpack.c.bf16 %v1548_v19, %v1548_v19  ;;  %v1629_v22 = vpack.c.bf16 %v1550_v20, %v1550_v20 }
  0x41   : > { %263 = vst.msk [vmem:[#allocation2 + $0x78] sm:$0xff] %vm246_vm0, %v7786_v0 }
  0x42   : > { %v7974_v13 = vunpack.c.l.b16 %v1484_v11  ;;  %v1773_v14 = vunpack.c.l.b16 %v1485_v12  ;;  %264 = vst.msk [vmem:[#allocation2 + $0x80] sm:$0xff] %vm246_vm0, %v7786_v0  ;;  %v8151_v23 = vunpack.c.l.b16 %v1628_v21  ;;  %v1885_v24 = vunpack.c.l.b16 %v1629_v22  ;;  %v380_v12 = vld [vmem:[%s7911_s25 + $0xc0] sm:$0xff] }
  0x43   : > { %265 = vst.msk [vmem:[#allocation2 + $0x88] sm:$0x3] %vm249_vm1, %v7786_v0 }
  0x44   : > { %v1794_v15 = vpack.c.b16 %v1773_v14, %v7974_v13  ;;  %266 = vst.msk [vmem:[#allocation2 + $0x90] sm:$0xff] %vm246_vm0, %v7786_v0  ;;  %v1906_v25 = vpack.c.b16 %v1885_v24, %v8151_v23  ;;  %v381_v14 = vld [vmem:[%s7911_s25 + $0xc8] sm:$0xff] }
  0x45   : > { %267 = vst.msk [vmem:[#allocation2 + $0x98] sm:$0xff] %vm246_vm0, %v7786_v0 }
  0x46   : > { %1820 = vrot.lane.b32.xlu2 %v1794_v15, %s7787_s29  ;;  %268 = vst.msk [vmem:[#allocation2 + $0xa0] sm:$0x3] %vm249_vm1, %v7786_v0 }
  0x47   : > { %269 = vst.msk [vmem:[#allocation2 + $0xa8] sm:$0xff] %vm246_vm0, %v7786_v0 }
  0x48   : > { %270 = vst.msk [vmem:[#allocation2 + $0xb0] sm:$0xff] %vm246_vm0, %v7786_v0 }
  0x49   : > { %271 = vst.msk [vmem:[#allocation2 + $0xb8] sm:$0x3] %vm249_vm1, %v7786_v0 }
  0x4a   : > { %272 = vst.msk [vmem:[#allocation2 + $0xc0] sm:$0xff] %vm246_vm0, %v7786_v0 }
  0x4b   : > { %273 = vst.msk [vmem:[#allocation2 + $0xc8] sm:$0xff] %vm246_vm0, %v7786_v0 }
  0x4c   : > { %274 = vst.msk [vmem:[#allocation2 + $0xd0] sm:$0x3] %vm249_vm1, %v7786_v0 }
  0x4d   : > { %275 = vst.msk [vmem:[#allocation2 + $0xd8] sm:$0xff] %vm246_vm0, %v7786_v0 }
  0x4e   : > { %276 = vst.msk [vmem:[#allocation2 + $0xe0] sm:$0xff] %vm246_vm0, %v7786_v0  ;;  %1932 = vrot.lane.b32.xlu2 %v1906_v25, %s7788_s13 }
  0x4f   : > { %277 = vst.msk [vmem:[#allocation2 + $0xe8] sm:$0x3] %vm249_vm1, %v7786_v0 }
  0x50   : > { %278 = vst.msk [vmem:[#allocation2 + $0xf0] sm:$0xff] %vm246_vm0, %v7786_v0 }
  0x51   : > { %279 = vst.msk [vmem:[#allocation2 + $0xf8] sm:$0xff] %vm246_vm0, %v7786_v0 }
  0x52   : > { %280 = vst.msk [vmem:[#allocation2 + $0x100] sm:$0x3] %vm249_vm1, %v7786_v0 }
  0x53   : > { %284 = vst.msk [vmem:[#allocation2 + $0x120] sm:$0xff] %vm246_vm0, %v7786_v0 }
  0x54   : > { %285 = vst.msk [vmem:[#allocation2 + $0x128] sm:$0xff] %vm246_vm0, %v7786_v0 }
  0x55   : > { %286 = vst.msk [vmem:[#allocation2 + $0x130] sm:$0x3] %vm249_vm1, %v7786_v0 }
  0x56   : > { %287 = vst.msk [vmem:[#allocation2 + $0x138] sm:$0xff] %vm246_vm0, %v7786_v0 }
  0x57   : > { %288 = vst.msk [vmem:[#allocation2 + $0x140] sm:$0xff] %vm246_vm0, %v7786_v0 }
  0x58   : > { %289 = vst.msk [vmem:[#allocation2 + $0x148] sm:$0x3] %vm249_vm1, %v7786_v0 }
  0x59   : > { %290 = vst.msk [vmem:[#allocation2 + $0x150] sm:$0xff] %vm246_vm0, %v7786_v0 }
  0x5a   : > { %291 = vst.msk [vmem:[#allocation2 + $0x158] sm:$0xff] %vm246_vm0, %v7786_v0 }
  0x5b   : > { %292 = vst.msk [vmem:[#allocation2 + $0x160] sm:$0x3] %vm249_vm1, %v7786_v0 }
  0x5c   : > { %293 = vst.msk [vmem:[#allocation2 + $0x168] sm:$0xff] %vm246_vm0, %v7786_v0 }
  0x5d   : > { %294 = vst.msk [vmem:[#allocation2 + $0x170] sm:$0xff] %vm246_vm0, %v7786_v0 }
  0x5e   : > { %295 = vst.msk [vmem:[#allocation2 + $0x178] sm:$0x3] %vm249_vm1, %v7786_v0 }
  0x5f   : > { %296 = vst.msk [vmem:[#allocation2 + $0x180] sm:$0xff] %vm246_vm0, %v7786_v0 }
  0x60   : > { %297 = vst.msk [vmem:[#allocation2 + $0x188] sm:$0xff] %vm246_vm0, %v7786_v0 }
  0x61   : > { %298 = vst.msk [vmem:[#allocation2 + $0x190] sm:$0x3] %vm249_vm1, %v7786_v0 }
  0x62   : > { %299 = vst.msk [vmem:[#allocation2 + $0x198] sm:$0xff] %vm246_vm0, %v7786_v0 }
  0x63   : > { %300 = vst.msk [vmem:[#allocation2 + $0x1a0] sm:$0xff] %vm246_vm0, %v7786_v0 }
  0x64   : > { %301 = vst.msk [vmem:[#allocation2 + $0x1a8] sm:$0x3] %vm249_vm1, %v7786_v0 }
  0x65   : > { %302 = vst.msk [vmem:[#allocation3] sm:$0xff] %vm246_vm0, %v7786_v0 }
  0x66   : > { %303 = vst.msk [vmem:[#allocation3 + $0x8] sm:$0xff] %vm246_vm0, %v7786_v0 }
  0x67   : > { %304 = vst.msk [vmem:[#allocation3 + $0x10] sm:$0x3] %vm249_vm1, %v7786_v0 }
  0x68   : > { %305 = vst.msk [vmem:[#allocation3 + $0x18] sm:$0xff] %vm246_vm0, %v7786_v0 }
  0x69   : > { %306 = vst.msk [vmem:[#allocation3 + $0x20] sm:$0xff] %vm246_vm0, %v7786_v0 }
  0x6a   : > { %307 = vst.msk [vmem:[#allocation3 + $0x28] sm:$0x3] %vm249_vm1, %v7786_v0 }
  0x6b   : > { %308 = vst.msk [vmem:[#allocation3 + $0x30] sm:$0xff] %vm246_vm0, %v7786_v0 }
  0x6c   : > { %309 = vst.msk [vmem:[#allocation3 + $0x38] sm:$0xff] %vm246_vm0, %v7786_v0 }
  0x6d   : > { %310 = vst.msk [vmem:[#allocation3 + $0x40] sm:$0x3] %vm249_vm1, %v7786_v0 }
  0x6e   : > { %311 = vst.msk [vmem:[#allocation3 + $0x48] sm:$0xff] %vm246_vm0, %v7786_v0 }
  0x6f   : > { %312 = vst.msk [vmem:[#allocation3 + $0x50] sm:$0xff] %vm246_vm0, %v7786_v0 }
  0x70   : > { %313 = vst.msk [vmem:[#allocation3 + $0x58] sm:$0x3] %vm249_vm1, %v7786_v0 }
  0x71   : > { %314 = vst.msk [vmem:[#allocation3 + $0x60] sm:$0xff] %vm246_vm0, %v7786_v0 }
  0x72   : > { %315 = vst.msk [vmem:[#allocation3 + $0x68] sm:$0xff] %vm246_vm0, %v7786_v0 }
  0x73   : > { %316 = vst.msk [vmem:[#allocation3 + $0x70] sm:$0x3] %vm249_vm1, %v7786_v0 }
  0x74   : > { %317 = vst.msk [vmem:[#allocation3 + $0x78] sm:$0xff] %vm246_vm0, %v7786_v0 }
  0x75   : > { %318 = vst.msk [vmem:[#allocation3 + $0x80] sm:$0xff] %vm246_vm0, %v7786_v0 }
  0x76   : > { %319 = vst.msk [vmem:[#allocation3 + $0x88] sm:$0x3] %vm249_vm1, %v7786_v0 }
  0x77   : > { %320 = vst.msk [vmem:[#allocation3 + $0x90] sm:$0xff] %vm246_vm0, %v7786_v0 }
  0x78   : > { %321 = vst.msk [vmem:[#allocation3 + $0x98] sm:$0xff] %vm246_vm0, %v7786_v0 }
  0x79   : > { %322 = vst.msk [vmem:[#allocation3 + $0xa0] sm:$0x3] %vm249_vm1, %v7786_v0 }
  0x7a   : > { %323 = vst.msk [vmem:[#allocation3 + $0xa8] sm:$0xff] %vm246_vm0, %v7786_v0 }
  0x7b   : > { %324 = vst.msk [vmem:[#allocation3 + $0xb0] sm:$0xff] %vm246_vm0, %v7786_v0 }
  0x7c   : > { %325 = vst.msk [vmem:[#allocation3 + $0xb8] sm:$0x3] %vm249_vm1, %v7786_v0 }
  0x7d   : > { %326 = vst.msk [vmem:[#allocation3 + $0xc0] sm:$0xff] %vm246_vm0, %v7786_v0 }
  0x7e   : > { %327 = vst.msk [vmem:[#allocation3 + $0xc8] sm:$0xff] %vm246_vm0, %v7786_v0 }
  0x7f   : > { %328 = vst.msk [vmem:[#allocation3 + $0xd0] sm:$0x3] %vm249_vm1, %v7786_v0 }
  0x80   : > { %329 = vst.msk [vmem:[#allocation3 + $0xd8] sm:$0xff] %vm246_vm0, %v7786_v0 }
  0x81   : > { %330 = vst.msk [vmem:[#allocation3 + $0xe0] sm:$0xff] %vm246_vm0, %v7786_v0 }
  0x82   : > { %331 = vst.msk [vmem:[#allocation3 + $0xe8] sm:$0x3] %vm249_vm1, %v7786_v0 }
  0x83   : > { %332 = vst.msk [vmem:[#allocation3 + $0xf0] sm:$0xff] %vm246_vm0, %v7786_v0 }
  0x84   : > { %333 = vst.msk [vmem:[#allocation3 + $0xf8] sm:$0xff] %vm246_vm0, %v7786_v0 }
  0x85   : > { %334 = vst.msk [vmem:[#allocation3 + $0x100] sm:$0x3] %vm249_vm1, %v7786_v0 }
  0x86   : > { %335 = vst.msk [vmem:[#allocation3 + $0x108] sm:$0xff] %vm246_vm0, %v7786_v0 }
  0x87   : > { %336 = vst.msk [vmem:[#allocation3 + $0x110] sm:$0xff] %vm246_vm0, %v7786_v0 }
  0x88   : > { %337 = vst.msk [vmem:[#allocation3 + $0x118] sm:$0x3] %vm249_vm1, %v7786_v0 }
  0x89   : > { %338 = vst.msk [vmem:[#allocation3 + $0x120] sm:$0xff] %vm246_vm0, %v7786_v0 }
  0x8a   : > { %339 = vst.msk [vmem:[#allocation3 + $0x128] sm:$0xff] %vm246_vm0, %v7786_v0 }
  0x8b   : > { %340 = vst.msk [vmem:[#allocation3 + $0x130] sm:$0x3] %vm249_vm1, %v7786_v0 }
  0x8c   : > { %341 = vst.msk [vmem:[#allocation3 + $0x138] sm:$0xff] %vm246_vm0, %v7786_v0 }
  0x8d   : > { %342 = vst.msk [vmem:[#allocation3 + $0x140] sm:$0xff] %vm246_vm0, %v7786_v0 }
  0x8e   : > { %343 = vst.msk [vmem:[#allocation3 + $0x148] sm:$0x3] %vm249_vm1, %v7786_v0 }
  0x8f   : > { %344 = vst.msk [vmem:[#allocation3 + $0x150] sm:$0xff] %vm246_vm0, %v7786_v0 }
  0x90   : > { %345 = vst.msk [vmem:[#allocation3 + $0x158] sm:$0xff] %vm246_vm0, %v7786_v0 }
  0x91   : > { %346 = vst.msk [vmem:[#allocation3 + $0x160] sm:$0x3] %vm249_vm1, %v7786_v0 }
  0x92   : > { %347 = vst.msk [vmem:[#allocation3 + $0x168] sm:$0xff] %vm246_vm0, %v7786_v0 }
  0x93   : > { %348 = vst.msk [vmem:[#allocation3 + $0x170] sm:$0xff] %vm246_vm0, %v7786_v0 }
  0x94   : > { %349 = vst.msk [vmem:[#allocation3 + $0x178] sm:$0x3] %vm249_vm1, %v7786_v0 }
  0x95   : > { %350 = vst.msk [vmem:[#allocation3 + $0x180] sm:$0xff] %vm246_vm0, %v7786_v0 }
  0x96   : > { %351 = vst.msk [vmem:[#allocation3 + $0x188] sm:$0xff] %vm246_vm0, %v7786_v0 }
  0x97   : > { %352 = vst.msk [vmem:[#allocation3 + $0x190] sm:$0x3] %vm249_vm1, %v7786_v0 }
  0x98   : > { %353 = vst.msk [vmem:[#allocation3 + $0x198] sm:$0xff] %vm246_vm0, %v7786_v0 }
  0x99   : > { %354 = vst.msk [vmem:[#allocation3 + $0x1a0] sm:$0xff] %vm246_vm0, %v7786_v0 }
  0x9a   : > { %355 = vst.msk [vmem:[#allocation3 + $0x1a8] sm:$0x3] %vm249_vm1, %v7786_v0 }
  0x9b   : > { %407 = vst.msk [vmem:[#allocation2 + $0xf1] sm:$0xff] %vm246_vm0, %v374_v26 }
  0x9c   : > { %408 = vst.msk [vmem:[#allocation2 + $0xf9] sm:$0xff] %vm246_vm0, %v375_v27 }
  0x9d   : > { %405 = vst.msk [vmem:[#allocation2 + $0xd9] sm:$0xff] %vm246_vm0, %v372_v28 }
  0x9e   : > { %406 = vst.msk [vmem:[#allocation2 + $0xe1] sm:$0xff] %vm246_vm0, %v373_v29 }
  0x9f   : > { %403 = vst.msk [vmem:[#allocation2 + $0xc1] sm:$0xff] %vm246_vm0, %v370_v30 }
  0xa0   : > { %404 = vst.msk [vmem:[#allocation2 + $0xc9] sm:$0xff] %vm246_vm0, %v371_v31 }
  0xa1   : > { %411 = vst.msk [vmem:[#allocation2 + $0x121] sm:$0xff] %vm246_vm0, %v378_v32 }
  0xa2   : > { %v8184_v34 = vld [vmem:[#allocation2 + $0xf0] sm:$0xff]  ;;  %412 = vst.msk [vmem:[#allocation2 + $0x129] sm:$0xff] %vm246_vm0, %v379_v33 }
  0xa3   : > { %v8187_v35 = vld [vmem:[#allocation2 + $0xf8] sm:$0xff]  ;;  %v1253_v36 = vld [vmem:[#allocation2 + $0x100] sm:$0x3]  ;;  %v1397_v37 = vrot.slane %v8184_v34, 1  ;;  %v1541_v38 = vrot.slane %v8184_v34, 2  ;;  %415 = vst.msk [vmem:[#allocation2 + $0x151] sm:$0xff] %vm246_vm0, %v382_v48 }
  0xa4   : > { %v8192_v39 = vrot.slane %v8187_v35, 1  ;;  %v1400_v40 = vrot.slane %v1253_v36, 1  ;;  %v1544_v41 = vrot.slane %v1253_v36, 2  ;;  %v8194_v42 = vld [vmem:[#allocation2 + $0xd8] sm:$0xff]  ;;  %v8197_v43 = vrot.slane %v8187_v35, 2  ;;  %416 = vst.msk [vmem:[#allocation2 + $0x159] sm:$0xff] %vm246_vm0, %v383_v53 }
  0xa5   : > { %v8199_v44 = vld [vmem:[#allocation2 + $0xe0] sm:$0xff]  ;;  %v1250_v45 = vld [vmem:[#allocation2 + $0xe8] sm:$0x3]  ;;  %v1392_v46 = vrot.slane %v8194_v42, 1  ;;  %v1536_v47 = vrot.slane %v8194_v42, 2  ;;  %413 = vst.msk [vmem:[#allocation2 + $0x139] sm:$0xff] %vm246_vm0, %v380_v12 }
  0xa6   : > { %v1399_v49 = vsel %vm549_vm2, %v1397_v37, %v8192_v39  ;;  %v1401_v50 = vsel %vm549_vm2, %v8192_v39, %v1400_v40  ;;  %v8209_v51 = vrot.slane %v8199_v44, 1  ;;  %v1395_v52 = vrot.slane %v1250_v45, 1  ;;  %v445_v58 = vld [vmem:[#allocation2 + $0xc0] sm:$0xff]  ;;  %414 = vst.msk [vmem:[#allocation2 + $0x141] sm:$0xff] %vm246_vm0, %v381_v14 }
  0xa7   : > { %v1482_v54 = vpack.c.bf16 %v1399_v49, %v1399_v49  ;;  %v1483_v55 = vpack.c.bf16 %v1401_v50, %v1401_v50  ;;  %v1539_v56 = vrot.slane %v1250_v45, 2  ;;  %v1543_v57 = vsel %vm694_vm3, %v1541_v38, %v8197_v43  ;;  %v446_v63 = vld [vmem:[#allocation2 + $0xc8] sm:$0xff]  ;;  %v447_v6 = vld [vmem:[#allocation2 + $0xd0] sm:$0x3] }
  0xa8   : > { %v1394_v59 = vsel %vm549_vm2, %v1392_v46, %v8209_v51  ;;  %v1396_v60 = vsel %vm549_vm2, %v8209_v51, %v1395_v52  ;;  %v1545_v61 = vsel %vm694_vm3, %v8197_v43, %v1544_v41  ;;  %v1626_v62 = vpack.c.bf16 %v1543_v57, %v1543_v57  ;;  %v8244_v31 = vld [vmem:[#allocation2 + $0x120] sm:$0xff] }
  0xa9   : > { %v8222_v0 = vunpack.c.l.b16 %v1482_v54  ;;  %v1771_v1 = vunpack.c.l.b16 %v1483_v55  ;;  %v1480_v2 = vpack.c.bf16 %v1394_v59, %v1394_v59  ;;  %v1481_v5 = vpack.c.bf16 %v1396_v60, %v1396_v60  ;;  %v8246_v32 = vld [vmem:[#allocation2 + $0x128] sm:$0xff]  ;;  %v1259_v33 = vld [vmem:[#allocation2 + $0x130] sm:$0x3] }
  0xaa   : > { %v1627_v8 = vpack.c.bf16 %v1545_v61, %v1545_v61  ;;  %v8224_v9 = vunpack.c.l.b16 %v1626_v62  ;;  %v8227_v10 = vrot.slane %v8199_v44, 2  ;;  %v735_v11 = vrot.slane %v445_v58, 2 }
  0xab   : > { %v1793_v15 = vpack.c.b16 %v1771_v1, %v8222_v0  ;;  %v8232_v16 = vunpack.c.l.b16 %v1480_v2  ;;  %v1769_v17 = vunpack.c.l.b16 %v1481_v5  ;;  %v736_v19 = vrot.slane %v446_v63, 2  ;;  %v450_v5 = vld [vmem:[#allocation2 + $0xe8] sm:$0x3] }
  0xac   : > { %v1883_v20 = vunpack.c.l.b16 %v1627_v8  ;;  %v1538_v21 = vsel %vm694_vm3, %v1536_v47, %v8227_v10  ;;  %v1540_v22 = vsel %vm694_vm3, %v8227_v10, %v1539_v56  ;;  %v738_v24 = vrot.slane %v447_v6, 2 }
  0xad   : > { %1818 = vrot.lane.b32.xlu1 %v1793_v15, %s7787_s29  ;;  %v1792_v25 = vpack.c.b16 %v1769_v17, %v8232_v16  ;;  %v1624_v26 = vpack.c.bf16 %v1538_v21, %v1538_v21  ;;  %v1625_v27 = vpack.c.bf16 %v1540_v22, %v1540_v22  ;;  %v737_v28 = vsel %vm694_vm3, %v735_v11, %v736_v19  ;;  %v384_v17 = vld [vmem:[%s7911_s25 + $0xe0] sm:$0xff] }
  0xae   : > { %v739_v29 = vsel %vm694_vm3, %v736_v19, %v738_v24  ;;  %v590_v30 = vrot.slane %v445_v58, 1  ;;  %v591_v38 = vrot.slane %v446_v63, 1  ;;  %v1905_v40 = vpack.c.b16 %v1883_v20, %v8224_v9  ;;  %v8268_v63 = vld [vmem:[#allocation2 + $0x100] sm:$0x3]  ;;  %v385_v19 = vld [vmem:[%s7911_s25 + $0xe8] sm:$0xff]  ;;  %417 = vst.msk [vmem:[#allocation2 + $0x169] sm:$0xff] %vm246_vm0, %v384_v17 }
  0xaf   : > { %1816 = vrot.lane.b32.xlu0 %v1792_v25, %s7787_s29  ;;  %v8249_v36 = vunpack.c.l.b16 %v1624_v26  ;;  %v1881_v37 = vunpack.c.l.b16 %v1625_v27  ;;  %v823_v41 = vpack.c.bf16 %v737_v28, %v737_v28  ;;  %v824_v45 = vpack.c.bf16 %v739_v29, %v739_v29  ;;  %v8279_v26 = vld [vmem:[#allocation2 + $0x150] sm:$0xff]  ;;  %418 = vst.msk [vmem:[#allocation2 + $0x171] sm:$0xff] %vm246_vm0, %v385_v19 }
  0xb0   : > { %v593_v46 = vrot.slane %v447_v6, 1  ;;  %v592_v47 = vsel %vm549_vm2, %v590_v30, %v591_v38  ;;  %v1551_v48 = vrot.slane %v8244_v31, 2  ;;  %v8255_v49 = vrot.slane %v8246_v32, 2 }
  0xb1   : > { %v1554_v50 = vrot.slane %v1259_v33, 2  ;;  %v1904_v53 = vpack.c.b16 %v1881_v37, %v8249_v36  ;;  %v678_v54 = vpack.c.bf16 %v592_v47, %v592_v47  ;;  %v1407_v56 = vrot.slane %v8244_v31, 1 }
  0xb2   : > { %v594_v52 = vsel %vm549_vm2, %v591_v38, %v593_v46  ;;  %v8261_v57 = vrot.slane %v8246_v32, 1  ;;  %v1410_v58 = vrot.slane %v1259_v33, 1  ;;  %v1079_v59 = vunpack.c.l.b16 %v823_v41  ;;  %v8289_v33 = vld [vmem:[#allocation2 + $0x158] sm:$0xff]  ;;  %v1262_v46 = vld [vmem:[#allocation2 + $0x148] sm:$0x3] }
  0xb3   : > { %v679_v55 = vpack.c.bf16 %v594_v52, %v594_v52  ;;  %v1080_v60 = vunpack.c.l.b16 %v824_v45  ;;  %v1553_v61 = vsel %vm694_vm3, %v1551_v48, %v8255_v49  ;;  %v1555_v62 = vsel %vm694_vm3, %v8255_v49, %v1554_v50  ;;  %v8291_v38 = vld [vmem:[#allocation2 + $0x138] sm:$0xff]  ;;  %v1265_v50 = vld [vmem:[#allocation2 + $0x160] sm:$0x3] }
  0xb4   : > { %v967_v1 = vunpack.c.l.b16 %v678_v54  ;;  %v1630_v6 = vpack.c.bf16 %v1553_v61, %v1553_v61  ;;  %v1631_v8 = vpack.c.bf16 %v1555_v62, %v1555_v62  ;;  %v1409_v11 = vsel %vm549_vm2, %v1407_v56, %v8261_v57  ;;  %v456_v62 = vld [vmem:[#allocation2 + $0x118] sm:$0x3] }
  0xb5   : > { %1930 = vrot.lane.b32.xlu1 %v1905_v40, %s7788_s13  ;;  %v968_v2 = vunpack.c.l.b16 %v679_v55  ;;  %v1411_v12 = vsel %vm549_vm2, %v8261_v57, %v1410_v58  ;;  %v1103_v14 = vpack.c.b16 %v1080_v60, %v1079_v59  ;;  %v603_v15 = vrot.slane %v8268_v63, 1  ;;  %v8293_v40 = vld [vmem:[#allocation2 + $0x140] sm:$0xff] }
  0xb6   : > { %v743_v20 = vrot.slane %v450_v5, 2  ;;  %v598_v21 = vrot.slane %v450_v5, 1  ;;  %v1486_v24 = vpack.c.bf16 %v1409_v11, %v1409_v11  ;;  %v1487_v25 = vpack.c.bf16 %v1411_v12, %v1411_v12 }
  0xb7   : > { %1928 = vrot.lane.b32.xlu0 %v1904_v53, %s7788_s13  ;;  %v991_v22 = vpack.c.b16 %v968_v2, %v967_v1  ;;  %v8282_v27 = vunpack.c.l.b16 %v1630_v6  ;;  %v1887_v28 = vunpack.c.l.b16 %v1631_v8  ;;  %v604_v30 = vsel %vm549_vm2, %v8192_v39, %v603_v15 }
  0xb8   : > { %v599_v29 = vsel %vm549_vm2, %v8209_v51, %v598_v21  ;;  %v744_v41 = vsel %vm694_vm3, %v8227_v10, %v743_v20  ;;  %v1417_v45 = vrot.slane %v8279_v26, 1  ;;  %v1412_v51 = vrot.slane %v8291_v38, 1 }
  0xb9   : > { %v681_v37 = vpack.c.bf16 %v599_v29, %v599_v29  ;;  %v8300_v47 = vrot.slane %v8293_v40, 1  ;;  %v8303_v39 = vunpack.c.l.b16 %v1486_v24  ;;  %v1775_v48 = vunpack.c.l.b16 %v1487_v25 }
  0xba   : > { %v1415_v53 = vrot.slane %v1262_v46, 1  ;;  %v1907_v54 = vpack.c.b16 %v1887_v28, %v8282_v27  ;;  %v683_v55 = vpack.c.bf16 %v604_v30, %v604_v30  ;;  %v8307_v10 = vrot.slane %v8289_v33, 1 }
  0xbb   : > { %v970_v52 = vunpack.c.l.b16 %v681_v37  ;;  %v1414_v56 = vsel %vm549_vm2, %v1412_v51, %v8300_v47  ;;  %v826_v58 = vpack.c.bf16 %v744_v41, %v744_v41  ;;  %v1420_v1 = vrot.slane %v1265_v50, 1 }
  0xbc   : > { %v1416_v60 = vsel %vm549_vm2, %v8300_v47, %v1415_v53  ;;  %v1488_v61 = vpack.c.bf16 %v1414_v56, %v1414_v56  ;;  %v1556_v2 = vrot.slane %v8291_v38, 2  ;;  %v753_v6 = vrot.slane %v456_v62, 2 }
  0xbd   : > { %1127 = vrot.lane.b32.xlu1 %v1103_v14, %s7788_s13  ;;  %v992_v59 = vpack.c.b16 %v970_v52, %v8232_v16  ;;  %v1489_v5 = vpack.c.bf16 %v1416_v60, %v1416_v60  ;;  %v1795_v8 = vpack.c.b16 %v1775_v48, %v8303_v39  ;;  %v8318_v11 = vrot.slane %v8293_v40, 2  ;;  %v386_v48 = vld [vmem:[%s7911_s25 + $0xf0] sm:$0xff]  ;;  %v387_v52 = vld [vmem:[%s7911_s25 + $0xf8] sm:$0xff] }
  0xbe   : > { %v8320_v12 = vunpack.c.l.b16 %v1488_v61  ;;  %v748_v16 = vrot.slane %v8268_v63, 2  ;;  %v972_v14 = vunpack.c.l.b16 %v683_v55  ;;  %v1559_v15 = vrot.slane %v1262_v46, 2  ;;  %419 = vst.msk [vmem:[#allocation2 + $0x181] sm:$0xff] %vm246_vm0, %v386_v48 }
  0xbf   : > { %1015 = vrot.lane.b32.xlu0 %v991_v22, %s7787_s29  ;;  %1017 = vrot.lane.b32.xlu2 %v992_v59, %s7787_s29  ;;  %v1777_v17 = vunpack.c.l.b16 %v1489_v5  ;;  %v754_v19 = vsel %vm694_vm3, %v8135_v18, %v753_v6  ;;  %v1419_v20 = vsel %vm549_vm2, %v1417_v45, %v8307_v10  ;;  %v1082_v24 = vunpack.c.l.b16 %v826_v58  ;;  %420 = vst.msk [vmem:[#allocation2 + $0x189] sm:$0xff] %vm246_vm0, %v387_v52  ;;  %v8366_v6 = vld [vmem:[#allocation2 + $0x168] sm:$0xff] }
  0xc0   : > { %v830_v21 = vpack.c.bf16 %v754_v19, %v754_v19  ;;  %v749_v22 = vsel %vm694_vm3, %v8197_v43, %v748_v16  ;;  %v1421_v63 = vsel %vm549_vm2, %v8307_v10, %v1420_v1  ;;  %v1558_v18 = vsel %vm694_vm3, %v1556_v2, %v8318_v11 }
  0xc1   : > { %v1796_v25 = vpack.c.b16 %v1777_v17, %v8320_v12  ;;  %v828_v29 = vpack.c.bf16 %v749_v22, %v749_v22  ;;  %v993_v30 = vpack.c.b16 %v972_v14, %v8222_v0  ;;  %v1490_v37 = vpack.c.bf16 %v1419_v20, %v1419_v20  ;;  %v1268_v14 = vld [vmem:[#allocation2 + $0x178] sm:$0x3] }
  0xc2   : > { %v8336_v28 = vunpack.c.l.b16 %v830_v21  ;;  %v1560_v43 = vsel %vm694_vm3, %v8318_v11, %v1559_v15  ;;  %v1491_v41 = vpack.c.bf16 %v1421_v63, %v1421_v63  ;;  %v1561_v46 = vrot.slane %v8279_v26, 2  ;;  %v358_v15 = vld [vmem:[%s7911_s25 + $0x10] sm:$0xff]  ;;  %v359_v17 = vld [vmem:[%s7911_s25 + $0x18] sm:$0xff] }
  0xc3   : > { %v8345_v51 = vrot.slane %v8289_v33, 2  ;;  %v1632_v53 = vpack.c.bf16 %v1558_v18, %v1558_v18  ;;  %v1104_v0 = vpack.c.b16 %v1082_v24, %v8249_v36  ;;  %v1084_v55 = vunpack.c.l.b16 %v828_v29  ;;  %391 = vst.msk [vmem:[#allocation2 + $0x31] sm:$0xff] %vm246_vm0, %v358_v15 }
  0xc4   : > { %v1106_v45 = vpack.c.b16 %v8336_v28, %v8151_v23  ;;  %v1564_v56 = vrot.slane %v1265_v50, 2  ;;  %v608_v23 = vrot.slane %v456_v62, 1  ;;  %v8356_v59 = vunpack.c.l.b16 %v1490_v37  ;;  %392 = vst.msk [vmem:[#allocation2 + $0x39] sm:$0xff] %vm246_vm0, %v359_v17 }
  0xc5   : > { %1934 = vrot.lane.b32.xlu1 %v1907_v54, %s7788_s13  ;;  %v1633_v54 = vpack.c.bf16 %v1560_v43, %v1560_v43  ;;  %v1563_v58 = vsel %vm694_vm3, %v1561_v46, %v8345_v51  ;;  %v1779_v60 = vunpack.c.l.b16 %v1491_v41  ;;  %v8360_v61 = vunpack.c.l.b16 %v1632_v53  ;;  %v8394_v43 = vld [vmem:[#allocation2 + $0x148] sm:$0x3]  ;;  %v8400_v53 = vld [vmem:[#allocation2 + $0x130] sm:$0x3] }
  0xc6   : > { %v1565_v36 = vsel %vm694_vm3, %v8345_v51, %v1564_v56  ;;  %v1105_v62 = vpack.c.b16 %v1084_v55, %v8224_v9  ;;  %v1634_v1 = vpack.c.bf16 %v1563_v58, %v1563_v58  ;;  %v609_v5 = vsel %vm549_vm2, %v7957_v7, %v608_v23 }
  0xc7   : > { %1822 = vrot.lane.b32.xlu0 %v1795_v8, %s7787_s29  ;;  %1824 = vrot.lane.b32.xlu2 %v1796_v25, %s7787_s29  ;;  %v1889_v50 = vunpack.c.l.b16 %v1633_v54  ;;  %v1635_v2 = vpack.c.bf16 %v1565_v36, %v1565_v36  ;;  %v8368_v8 = vld [vmem:[#allocation2 + $0x170] sm:$0xff]  ;;  %v1797_v16 = vpack.c.b16 %v1779_v60, %v8356_v59  ;;  %v1566_v19 = vrot.slane %v8366_v6, 2 }
  0xc8   : > { %v8375_v20 = vrot.slane %v8368_v8, 2  ;;  %v1569_v9 = vrot.slane %v1268_v14, 2  ;;  %v685_v7 = vpack.c.bf16 %v609_v5, %v609_v5  ;;  %v8380_v22 = vunpack.c.l.b16 %v1634_v1  ;;  %v8416_v1 = vld [vmem:[#allocation2 + $0x180] sm:$0xff]  ;;  %v8420_v5 = vld [vmem:[#allocation2 + $0x190] sm:$0x3] }
  0xc9   : > { %v1908_v21 = vpack.c.b16 %v1889_v50, %v8360_v61  ;;  %v1891_v24 = vunpack.c.l.b16 %v1635_v2  ;;  %v1422_v63 = vrot.slane %v8366_v6, 1  ;;  %v8385_v18 = vrot.slane %v8368_v8, 1  ;;  %v8418_v2 = vld [vmem:[#allocation2 + $0x188] sm:$0xff] }
  0xca   : > { %v1425_v25 = vrot.slane %v1268_v14, 1  ;;  %v1568_v28 = vsel %vm694_vm3, %v1566_v19, %v8375_v20  ;;  %v1570_v29 = vsel %vm694_vm3, %v8375_v20, %v1569_v9  ;;  %v758_v23 = vrot.slane %v8400_v53, 2  ;;  %v8423_v14 = vld [vmem:[#allocation2 + $0x30] sm:$0xff] }
  0xcb   : > { %v1909_v37 = vpack.c.b16 %v1891_v24, %v8380_v22  ;;  %v1424_v41 = vsel %vm549_vm2, %v1422_v63, %v8385_v18  ;;  %v1636_v48 = vpack.c.bf16 %v1568_v28, %v1568_v28  ;;  %v1637_v52 = vpack.c.bf16 %v1570_v29, %v1570_v29  ;;  %v2027_v15 = vld [vmem:[#allocation2 + $0x40] sm:$0x3] }
  0xcc   : > { %v1426_v46 = vsel %vm549_vm2, %v8385_v18, %v1425_v25  ;;  %v1492_v55 = vpack.c.bf16 %v1424_v41, %v1424_v41  ;;  %v2153_v17 = vrot.slane %v8423_v14, 1  ;;  %v1572_v24 = vrot.slane %v8418_v2, 2 }
  0xcd   : > { %1019 = vrot.lane.b32.xlu1 %v993_v30, %s7787_s29  ;;  %v974_v30 = vunpack.c.l.b16 %v685_v7  ;;  %v1493_v56 = vpack.c.bf16 %v1426_v46, %v1426_v46  ;;  %v8407_v58 = vunpack.c.l.b16 %v1636_v48  ;;  %v1893_v60 = vunpack.c.l.b16 %v1637_v52 }
  0xce   : > { %v8412_v50 = vunpack.c.l.b16 %v1492_v55  ;;  %v1571_v7 = vrot.slane %v8416_v1, 2  ;;  %v1574_v63 = vrot.slane %v8420_v5, 2 }
  0xcf   : > { %1129 = vrot.lane.b32.xlu0 %v1104_v0, %s7788_s13  ;;  %1131 = vrot.lane.b32.xlu2 %v1105_v62, %s7788_s13  ;;  %v618_v0 = vrot.slane %v8394_v43, 1  ;;  %v994_v54 = vpack.c.b16 %v974_v30, %v7974_v13  ;;  %v1781_v62 = vunpack.c.l.b16 %v1493_v56  ;;  %v759_v13 = vsel %vm694_vm3, %v8255_v49, %v758_v23 }
  0xd0   : > { %v2156_v49 = vrot.slane %v2027_v15, 1  ;;  %v1575_v41 = vsel %vm694_vm3, %v1572_v24, %v1574_v63  ;;  %v2297_v56 = vrot.slane %v8423_v14, 2 }
  0xd1   : > { %v619_v36 = vsel %vm549_vm2, %v8300_v47, %v618_v0  ;;  %v8425_v47 = vld [vmem:[#allocation2 + $0x38] sm:$0xff]  ;;  %v1798_v9 = vpack.c.b16 %v1781_v62, %v8412_v50  ;;  %v1639_v55 = vpack.c.bf16 %v1575_v41, %v1575_v41  ;;  %v1292_v41 = vpack.c.bf16 %v7945_v3, %v7945_v3 }
  0xd2   : > { %v8429_v19 = vrot.slane %v8425_v47, 1  ;;  %v8447_v23 = vrot.slane %v8425_v47, 2 }
  0xd4   : > { %v2155_v28 = vsel %vm549_vm2, %v2153_v17, %v8429_v19  ;;  %v2157_v29 = vsel %vm549_vm2, %v8429_v19, %v2156_v49  ;;  %v8458_v17 = vld [vmem:[#allocation2 + $0x160] sm:$0x3] }
  0xd5   : > { %1826 = vrot.lane.b32.xlu1 %v1797_v16, %s7787_s29  ;;  %v689_v16 = vpack.c.bf16 %v619_v36, %v619_v36  ;;  %v2265_v48 = vpack.c.bf16 %v2155_v28, %v2155_v28  ;;  %v2266_v52 = vpack.c.bf16 %v2157_v29, %v2157_v29 }
  0xd7   : > { %1936 = vrot.lane.b32.xlu0 %v1908_v21, %s7788_s13  ;;  %1938 = vrot.lane.b32.xlu2 %v1909_v37, %s7788_s13  ;;  %v832_v21 = vpack.c.bf16 %v759_v13, %v759_v13  ;;  %v978_v25 = vunpack.c.l.b16 %v689_v16  ;;  %v1573_v37 = vsel %vm694_vm3, %v1571_v7, %v1572_v24  ;;  %v8450_v36 = vunpack.c.l.b16 %v2265_v48  ;;  %v1821_v48 = vpop.permute.xlu2 %1820 }
  0xd8   : > { %v2554_v62 = vunpack.c.l.b16 %v2266_v52  ;;  %v1895_v13 = vunpack.c.l.b16 %v1639_v55  ;;  %v356_v55 = vld [vmem:[%s7911_s25] sm:$0xff] }
  0xd9   : > { %v1088_v30 = vunpack.c.l.b16 %v832_v21  ;;  %v996_v46 = vpack.c.b16 %v978_v25, %v8320_v12  ;;  %v768_v21 = vrot.slane %v8458_v17, 2  ;;  %v613_v25 = vrot.slane %v8400_v53, 1  ;;  %389 = vst.msk [vmem:[#allocation2 + $0x19] sm:$0xff] %vm246_vm0, %v356_v55 }
  0xda   : > { %v2585_v16 = vpack.c.b16 %v2554_v62, %v8450_v36  ;;  %v1692_v53 = vunpack.c.l.b16 %v1292_v41 }
  0xdb   : > { %v1107_v0 = vpack.c.b16 %v1088_v30, %v8282_v27  ;;  %v2299_v27 = vsel %vm694_vm3, %v2297_v56, %v8447_v23  ;;  %v769_v63 = vsel %vm694_vm3, %v8345_v51, %v768_v21  ;;  %v614_v30 = vsel %vm549_vm2, %v8261_v57, %v613_v25  ;;  %v357_v57 = vld [vmem:[%s7911_s25 + $0x8] sm:$0xff]  ;;  %v8479_v56 = vld [vmem:[#allocation2 + $0x40] sm:$0x3] }
  0xdc   : > { %v2409_v49 = vpack.c.bf16 %v2299_v27, %v2299_v27  ;;  %v836_v29 = vpack.c.bf16 %v769_v63, %v769_v63  ;;  %390 = vst.msk [vmem:[#allocation2 + $0x21] sm:$0xff] %vm246_vm0, %v357_v57 }
  0xdd   : > { %1133 = vrot.lane.b32.xlu1 %v1106_v45, %s7788_s13  ;;  %v1910_v45 = vpack.c.b16 %v1893_v60, %v8407_v58  ;;  %v2300_v60 = vrot.slane %v2027_v15, 2 }
  0xde   : > { %v8463_v7 = vunpack.c.l.b16 %v2409_v49  ;;  %v1092_v51 = vunpack.c.l.b16 %v836_v29  ;;  %v362_v49 = vld [vmem:[%s7911_s25 + $0x30] sm:$0xff] }
  0xdf   : > { %1021 = vrot.lane.b32.xlu0 %v994_v54, %s7787_s29  ;;  %v1638_v54 = vpack.c.bf16 %v1573_v37, %v1573_v37  ;;  %v1293_v37 = vpack.c.bf16 %v7949_v4, %v7949_v4  ;;  %v1360_v4 = vrot.slane %v8479_v56, 1  ;;  %395 = vst.msk [vmem:[#allocation2 + $0x61] sm:$0xff] %vm246_vm0, %v362_v49 }
  0xe0   : > { %v1109_v3 = vpack.c.b16 %v1092_v51, %v8380_v22  ;;  %v360_v22 = vld [vmem:[%s7911_s25 + $0x20] sm:$0xff] }
  0xe1   : > { %v1894_v12 = vunpack.c.l.b16 %v1638_v54  ;;  %393 = vst.msk [vmem:[#allocation2 + $0x49] sm:$0xff] %vm246_vm0, %v360_v22 }
  0xe3   : > { %v1911_v15 = vpack.c.b16 %v1895_v13, %v1894_v12  ;;  %v1933_v12 = vpop.permute.xlu2 %1932  ;;  %v361_v13 = vld [vmem:[%s7911_s25 + $0x28] sm:$0xff] }
  0xe4   : > { %394 = vst.msk [vmem:[#allocation2 + $0x51] sm:$0xff] %vm246_vm0, %v361_v13 }
  0xe5   : > { %1940 = vrot.lane.b32.xlu1 %v1910_v45, %s7788_s13  ;;  %v2301_v45 = vsel %vm694_vm3, %v8447_v23, %v2300_v60 }
  0xe6   : > { %v8509_v25 = vld [vmem:[#allocation2 + $0x60] sm:$0xff] }
  0xe7   : > { %1828 = vrot.lane.b32.xlu0 %v1798_v9, %s7787_s29  ;;  %v2410_v9 = vpack.c.bf16 %v2301_v45, %v2301_v45  ;;  %v8495_v45 = vld [vmem:[#allocation2 + $0x178] sm:$0x3] }
  0xe8   : > { %v8540_v55 = vld [vmem:[#allocation2 + $0x48] sm:$0xff] }
  0xe9   : > { %v2666_v24 = vunpack.c.l.b16 %v2410_v9 }
  0xeb   : > { %v2697_v28 = vpack.c.b16 %v2666_v24, %v8463_v7  ;;  %v8542_v57 = vld [vmem:[#allocation2 + $0x50] sm:$0xff] }
  0xed   : > { %1025 = vrot.lane.b32.xlu1 %v996_v46, %s7787_s29  ;;  %v687_v46 = vpack.c.bf16 %v614_v30, %v614_v30  ;;  %v2163_v30 = vrot.slane %v8509_v25, 1 }
  0xef   : > { %1135 = vrot.lane.b32.xlu0 %v1107_v0, %s7788_s13  ;;  %v976_v52 = vunpack.c.l.b16 %v687_v46  ;;  %v1693_v0 = vunpack.c.l.b16 %v1293_v37 }
  0xf1   : > { %v995_v54 = vpack.c.b16 %v976_v52, %v8303_v39  ;;  %v8486_v60 = vpack.c.b16 %v1693_v0, %v1692_v53  ;;  %v1361_v39 = vsel %vm549_vm2, %v8429_v19, %v1360_v4  ;;  %v363_v19 = vld [vmem:[%s7911_s25 + $0x38] sm:$0xff]  ;;  %v1289_v52 = vpack.c.bf16 %v8199_v44, %v8199_v44 }
  0xf2   : > { %v1467_v27 = vpack.c.bf16 %v1361_v39, %v1361_v39  ;;  %396 = vst.msk [vmem:[#allocation2 + $0x69] sm:$0xff] %vm246_vm0, %v363_v19  ;;  %v1288_v0 = vpack.c.bf16 %v8194_v42, %v8194_v42  ;;  %v8533_v53 = vld [vmem:[#allocation2 + $0x18] sm:$0xff]  ;;  %v1427_v19 = vrot.slane %v8416_v1, 1 }
  0xf3   : > { %1023 = vrot.lane.b32.xlu2 %v995_v54, %s7787_s29  ;;  %v1976_v62 = vsel %vm246_vm0, %v8486_v60, %v1821_v48  ;;  %v8535_v54 = vld [vmem:[#allocation2 + $0x20] sm:$0xff]  ;;  %v8544_v39 = vld [vmem:[#allocation2 + $0x58] sm:$0x3]  ;;  %v1496_v22 = vrot.slane %v8533_v53, 2 }
  0xf4   : > { %v1755_v9 = vunpack.c.l.b16 %v1467_v27  ;;  %v1688_v42 = vunpack.c.l.b16 %v1288_v0  ;;  %v8548_v13 = vrot.slane %v8535_v54, 2  ;;  %v8571_v0 = vld [vmem:[#allocation2 + $0x58] sm:$0x3] }
  0xf5   : > { %2601 = vrot.lane.b32.xlu1 %v2585_v16, %s7787_s29  ;;  %v2013_v16 = vsel %vm1191_vm4, %v1976_v62, %v1933_v12  ;;  %v1689_v12 = vunpack.c.l.b16 %v1289_v52 }
  0xf6   : > { %v1785_v24 = vpack.c.b16 %v1755_v9, %v8450_v36  ;;  %v1290_v36 = vpack.c.bf16 %v8184_v34, %v8184_v34  ;;  %v1428_v9 = vrot.slane %v8418_v2, 1 }
  0xf7   : > { %1942 = vrot.lane.b32.xlu0 %v1911_v15, %s7788_s13  ;;  %v628_v15 = vrot.slane %v8495_v45, 1 }
  0xf8   : > { %v1690_v62 = vunpack.c.l.b16 %v1290_v36  ;;  %v1429_v52 = vsel %vm549_vm2, %v1427_v19, %v1428_v9 }
  0xf9   : > { %v629_v21 = vsel %vm549_vm2, %v8385_v18, %v628_v15  ;;  %v8513_v29 = vld [vmem:[#allocation2 + $0x70] sm:$0x3]  ;;  %v1291_v18 = vpack.c.bf16 %v8187_v35, %v8187_v35  ;;  %v8537_v35 = vld [vmem:[#allocation2 + $0x28] sm:$0x3]  ;;  %v1509_v15 = vrot.slane %v8544_v39, 2 }
  0xfa   : > { %v693_v63 = vpack.c.bf16 %v629_v21, %v629_v21  ;;  %v2166_v41 = vrot.slane %v8513_v29, 1  ;;  %v1499_v27 = vrot.slane %v8537_v35, 2 }
  0xfb   : > { %v1691_v44 = vunpack.c.l.b16 %v1291_v18  ;;  %v1498_v18 = vsel %vm694_vm3, %v1496_v22, %v8548_v13  ;;  %v1494_v22 = vpack.c.bf16 %v1429_v52, %v1429_v52 }
  0xfc   : > { %v982_v46 = vunpack.c.l.b16 %v693_v63  ;;  %v1430_v63 = vrot.slane %v8420_v5, 1  ;;  %v1500_v36 = vsel %vm694_vm3, %v8548_v13, %v1499_v27 }
  0xfd   : > { %v1782_v52 = vunpack.c.l.b16 %v1494_v22  ;;  %v8600_v22 = vrot.slane %v8535_v54, 1 }
  0xfe   : > { %v998_v34 = vpack.c.b16 %v982_v46, %v8412_v50  ;;  %v2302_v50 = vrot.slane %v8540_v55, 2  ;;  %v8561_v46 = vpack.c.b16 %v1691_v44, %v1690_v62  ;;  %v1609_v44 = vpack.c.bf16 %v1500_v36, %v1500_v36 }
  0xff   : > { %2713 = vrot.lane.b32.xlu0 %v2697_v28, %s7788_s13  ;;  %v8511_v28 = vld [vmem:[#allocation2 + $0x68] sm:$0xff] }
 0x100   : > { %v8517_v37 = vrot.slane %v8511_v28, 1 }
 0x102   : > { %v2165_v48 = vsel %vm549_vm2, %v2163_v30, %v8517_v37  ;;  %v2167_v51 = vsel %vm549_vm2, %v8517_v37, %v2166_v41 }
 0x103   : > { %v2270_v4 = vpack.c.bf16 %v2167_v51, %v2167_v51  ;;  %v8568_v51 = vpack.c.b16 %v1689_v12, %v1688_v42 }
 0x107   : > { %1139 = vrot.lane.b32.xlu0 %v1109_v3, %s7788_s13  ;;  %v2269_v3 = vpack.c.bf16 %v2165_v48, %v2165_v48 }
 0x109   : > { %v8557_v21 = vunpack.c.l.b16 %v2269_v3  ;;  %v1431_v3 = vsel %vm549_vm2, %v1428_v9, %v1430_v63  ;;  %v763_v63 = vrot.slane %v8394_v43, 2 }
 0x10f   : > { %2861 = vrot.lane.b32.xlu0 %v2013_v16, %s7789_s15  ;;  %v2303_v16 = vrot.slane %v8542_v57, 2 }
 0x111   : > { %v1510_v30 = vsel %vm694_vm3, %v2303_v16, %v1509_v15  ;;  %v2304_v48 = vsel %vm694_vm3, %v2302_v50, %v2303_v16  ;;  %v2305_v15 = vrot.slane %v8571_v0, 2  ;;  %v1495_v50 = vpack.c.bf16 %v1431_v3, %v1431_v3 }
 0x112   : > { %v2411_v62 = vpack.c.bf16 %v2304_v48, %v2304_v48  ;;  %v764_v3 = vsel %vm694_vm3, %v8318_v11, %v763_v63 }
 0x113   : > { %v2306_v48 = vsel %vm694_vm3, %v2303_v16, %v2305_v15  ;;  %v1352_v16 = vrot.slane %v8533_v53, 1  ;;  %v1355_v15 = vrot.slane %v8537_v35, 1 }
 0x114   : > { %v2667_v36 = vunpack.c.l.b16 %v2411_v62  ;;  %v834_v62 = vpack.c.bf16 %v764_v3, %v764_v3  ;;  %v623_v3 = vrot.slane %v8458_v17, 1 }
 0x115   : > { %v1356_v63 = vsel %vm549_vm2, %v8600_v22, %v1355_v15  ;;  %v1298_v15 = vpack.c.bf16 %v8279_v26, %v8279_v26 }
 0x117   : > { %1802 = vrot.lane.b32.xlu0 %v1785_v24, %s7787_s29  ;;  %v2558_v24 = vunpack.c.l.b16 %v2270_v4  ;;  %v1608_v4 = vpack.c.bf16 %v1498_v18, %v1498_v18 }
 0x119   : > { %v2587_v5 = vpack.c.b16 %v2558_v24, %v8557_v21  ;;  %v8582_v9 = vpop.permute.xlu2 %1017  ;;  %v8586_v18 = vunpack.c.l.b16 %v1608_v4  ;;  %v773_v4 = vrot.slane %v8495_v45, 2 }
 0x11b   : > { %v774_v45 = vsel %vm694_vm3, %v8375_v20, %v773_v4 }
 0x11f   : > { %v1819_v49 = vpop.permute.xlu1 %1818  ;;  %1029 = vrot.lane.b32.xlu0 %v998_v34, %s7787_s29  ;;  %v1613_v34 = vpack.c.bf16 %v1510_v30, %v1510_v30 }
 0x120   : > { %v1973_v27 = vsel %vm246_vm0, %v8561_v46, %v1819_v49  ;;  %v1865_v49 = vunpack.c.l.b16 %v1609_v44 }
 0x121   : > { %v1817_v41 = vpop.permute.xlu0 %1816  ;;  %v1869_v19 = vunpack.c.l.b16 %v1613_v34 }
 0x122   : > { %v1970_v12 = vsel %vm246_vm0, %v8568_v51, %v1817_v41  ;;  %v1896_v43 = vpack.c.b16 %v1865_v49, %v8586_v18  ;;  %v1362_v49 = vrot.slane %v8540_v55, 1 }
 0x123   : > { %v1898_v34 = vpack.c.b16 %v1869_v19, %v2667_v36  ;;  %v1090_v19 = vunpack.c.l.b16 %v834_v62  ;;  %v8630_v62 = vld [vmem:[#allocation2] sm:$0xff] }
 0x125   : > { %v1108_v20 = vpack.c.b16 %v1090_v19, %v8360_v61  ;;  %v8632_v61 = vld [vmem:[#allocation2 + $0x8] sm:$0xff] }
 0x127   : > { %v1931_v42 = vpop.permute.xlu1 %1930  ;;  %2605 = vrot.lane.b32.xlu0 %v2587_v5, %s7787_s29  ;;  %v1783_v5 = vunpack.c.l.b16 %v1495_v50  ;;  %v8606_v50 = vpop.permute.xlu2 %1824 }
 0x128   : > { %v2011_v24 = vsel %vm1191_vm4, %v1973_v27, %v1931_v42  ;;  %v2412_v27 = vpack.c.bf16 %v2306_v48, %v2306_v48  ;;  %v1365_v48 = vrot.slane %v8544_v39, 1 }
 0x129   : > { %v1929_v30 = vpop.permute.xlu0 %1928  ;;  %2859 = vrot.lane.b32.xlu1 %v2011_v24, %s7789_s15  ;;  %v1799_v44 = vpack.c.b16 %v1783_v5, %v1782_v52  ;;  %v1354_v24 = vsel %vm549_vm2, %v1352_v16, %v8600_v22  ;;  %v8634_v16 = vld [vmem:[#allocation2 + $0x10] sm:$0x3] }
 0x12a   : > { %v2009_v41 = vsel %vm1191_vm4, %v1970_v12, %v1929_v30  ;;  %v2668_v12 = vunpack.c.l.b16 %v2412_v27  ;;  %v838_v30 = vpack.c.bf16 %v774_v45, %v774_v45  ;;  %v1464_v5 = vpack.c.bf16 %v1354_v24, %v1354_v24 }
 0x12b   : > { %2857 = vrot.lane.b32.xlu2 %v2009_v41, %s7789_s15  ;;  %v1363_v41 = vrot.slane %v8542_v57, 1  ;;  %v624_v45 = vsel %vm549_vm2, %v8307_v10, %v623_v3 }
 0x12c   : > { %v2698_v35 = vpack.c.b16 %v2668_v12, %v2667_v36  ;;  %v1094_v36 = vunpack.c.l.b16 %v838_v30  ;;  %v8628_v39 = vunpack.c.l.b16 %v1464_v5  ;;  %v1299_v12 = vpack.c.bf16 %v8289_v33, %v8289_v33 }
 0x12d   : > { %v1364_v27 = vsel %vm549_vm2, %v1362_v49, %v1363_v41  ;;  %v1366_v4 = vsel %vm549_vm2, %v1363_v41, %v1365_v48  ;;  %v551_v30 = vrot.slane %v8632_v61, 1  ;;  %v553_v49 = vrot.slane %v8634_v16, 1 }
 0x12e   : > { %v1110_v19 = vpack.c.b16 %v1094_v36, %v8407_v58  ;;  %v1468_v24 = vpack.c.bf16 %v1364_v27, %v1364_v27  ;;  %v1698_v5 = vunpack.c.l.b16 %v1298_v15  ;;  %v1699_v33 = vunpack.c.l.b16 %v1299_v12 }
 0x12f   : > { %v8595_v42 = vpop.permute.xlu1 %1127  ;;  %1916 = vrot.lane.b32.xlu0 %v1898_v34, %s7788_s13  ;;  %v1465_v34 = vpack.c.bf16 %v1356_v63, %v1356_v63  ;;  %v8636_v17 = vpop.permute.xlu2 %1131  ;;  %v1469_v63 = vpack.c.bf16 %v1366_v4, %v1366_v4  ;;  %v554_v27 = vsel %vm549_vm2, %v551_v30, %v553_v49 }
 0x130   : > { %v1756_v58 = vunpack.c.l.b16 %v1468_v24  ;;  %v8661_v15 = vpack.c.b16 %v1699_v33, %v1698_v5  ;;  %v7583_v24 = vld [vmem:[%s11968_s1 + $0x30] sm:$0xff]  ;;  %v1295_v33 = vpack.c.bf16 %v8246_v32, %v8246_v32 }
 0x131   : > { %1912 = vrot.lane.b32.xlu1 %v1896_v43, %s7788_s13  ;;  %v8604_v11 = vpop.permute.xlu0 %1015  ;;  %v1757_v3 = vunpack.c.l.b16 %v1469_v63 }
 0x133   : > { %1830 = vrot.lane.b32.xlu2 %v1799_v44, %s7787_s29  ;;  %v1753_v44 = vunpack.c.l.b16 %v1465_v34  ;;  %v2161_v34 = vrot.slane %v8571_v0, 1  ;;  %v1786_v12 = vpack.c.b16 %v1757_v3, %v1756_v58 }
 0x135   : > { %v1784_v26 = vpack.c.b16 %v1753_v44, %v8628_v39  ;;  %v7584_v44 = vld [vmem:[%s11968_s1 + $0x38] sm:$0xff]  ;;  %v2162_v0 = vsel %vm549_vm2, %v1363_v41, %v2161_v34 }
 0x136   : > { %7614 = vmatpush.bf16.msra.mxu1 %v7584_v44  ;;  %3198 = vmatpush.bf16.msra.mxu0 %v7584_v44  ;;  %v2268_v41 = vpack.c.bf16 %v2162_v0, %v2162_v0  ;;  %v7581_v0 = vld [vmem:[%s11968_s1 + $0x20] sm:$0xff] }
 0x137   : > { %v8618_v52 = vpop.permute.xlu1 %1934  ;;  %v1939_v63 = vpop.permute.xlu2 %1938 }
 0x138   : > { %v2556_v32 = vunpack.c.l.b16 %v2268_v41 }
 0x139   : > { %2715 = vrot.lane.b32.xlu1 %v2698_v35, %s7788_s13  ;;  %v8623_v43 = vpop.permute.xlu0 %1822  ;;  %v550_v35 = vrot.slane %v8630_v62, 1 }
 0x13a   : > { %7615 = vmatpush.bf16.msra.mxu1 %v7583_v24  ;;  %3199 = vmatpush.bf16.msra.mxu0 %v7583_v24  ;;  %v1301_v24 = vpack.c.bf16 %v8368_v8, %v8368_v8 }
 0x13b   : > { %1137 = vrot.lane.b32.xlu2 %v1108_v20, %s7788_s13  ;;  %v691_v20 = vpack.c.bf16 %v624_v45, %v624_v45  ;;  %v552_v36 = vsel %vm549_vm2, %v550_v35, %v551_v30  ;;  %v1296_v35 = vpack.c.bf16 %v8291_v38, %v8291_v38  ;;  %v1297_v30 = vpack.c.bf16 %v8293_v40, %v8293_v40 }
 0x13c   : > { %v662_v45 = vpack.c.bf16 %v552_v36, %v552_v36 }
 0x13d   : > { %v980_v4 = vunpack.c.l.b16 %v691_v20  ;;  %v1294_v20 = vpack.c.bf16 %v8244_v31, %v8244_v31  ;;  %v1696_v31 = vunpack.c.l.b16 %v1296_v35  ;;  %v1697_v36 = vunpack.c.l.b16 %v1297_v30 }
 0x13e   : > { %v951_v3 = vunpack.c.l.b16 %v662_v45  ;;  %v2586_v45 = vpack.c.b16 %v2556_v32, %v1756_v58  ;;  %v1504_v35 = vrot.slane %v8479_v56, 2  ;;  %v7580_v58 = vld [vmem:[%s11968_s1 + $0x18] sm:$0xff]  ;;  %v1701_v56 = vunpack.c.l.b16 %v1301_v24  ;;  %v7577_v32 = vld [vmem:[%s11968_s1] sm:$0xff] }
 0x13f   : > { %v8648_v48 = vpop.permute.xlu1 %1019  ;;  %v698_v24 = vrot.slane %v8634_v16, 2  ;;  %v2073_v16 = vpack.c.bf16 %v8423_v14, %v8423_v14 }
 0x141   : > { %1141 = vrot.lane.b32.xlu1 %v1110_v19, %s7788_s13  ;;  %v8653_v10 = vpop.permute.xlu0 %1129  ;;  %v663_v19 = vpack.c.bf16 %v554_v27, %v554_v27  ;;  %v1694_v27 = vunpack.c.l.b16 %v1294_v20  ;;  %v7579_v20 = vld [vmem:[%s11968_s1 + $0x10] sm:$0xff] }
 0x143   : > { %1800 = vrot.lane.b32.xlu2 %v1784_v26, %s7787_s29  ;;  %v997_v26 = vpack.c.b16 %v980_v4, %v8356_v59  ;;  %v952_v40 = vunpack.c.l.b16 %v663_v19  ;;  %v7582_v59 = vld [vmem:[%s11968_s1 + $0x28] sm:$0xff]  ;;  %v1695_v4 = vunpack.c.l.b16 %v1295_v33  ;;  %v1300_v19 = vpack.c.bf16 %v8366_v6, %v8366_v6 }
 0x144   : > { %7616 = vmatpush.bf16.msra.mxu1 %v7582_v59  ;;  %3200 = vmatpush.bf16.msra.mxu0 %v7582_v59 }
 0x145   : > { %v983_v44 = vpack.c.b16 %v952_v40, %v951_v3  ;;  %v8697_v30 = vpack.c.b16 %v1695_v4, %v1694_v27  ;;  %v1700_v8 = vunpack.c.l.b16 %v1300_v19  ;;  %v8724_v3 = vrot.slane %v8511_v28, 2 }
 0x146   : > { %v696_v19 = vrot.slane %v8632_v61, 2 }
 0x147   : > { %v1827_v49 = vpop.permute.xlu1 %1826  ;;  %v1979_v41 = vsel %vm246_vm0, %v8697_v30, %v8623_v43  ;;  %v2310_v43 = vrot.slane %v8513_v29, 2 }
 0x148   : > { %v1985_v5 = vsel %vm246_vm0, %v8661_v15, %v1827_v49  ;;  %7617 = vmatpush.bf16.msra.mxu1 %v7581_v0  ;;  %3201 = vmatpush.bf16.msra.mxu0 %v7581_v0 }
 0x149   : > { %1804 = vrot.lane.b32.xlu1 %v1786_v12, %s7787_s29  ;;  %v2019_v38 = vsel %vm1191_vm4, %v1985_v5, %v1939_v63  ;;  %v1937_v34 = vpop.permute.xlu0 %1936  ;;  %v8688_v12 = vpack.c.b16 %v1697_v36, %v1696_v31  ;;  %v2311_v29 = vsel %vm694_vm3, %v8724_v3, %v2310_v43 }
 0x14a   : > { %2867 = vrot.lane.b32.xlu0 %v2019_v38, %s7789_s15  ;;  %v2015_v38 = vsel %vm1191_vm4, %v1979_v41, %v8618_v52  ;;  %v2414_v0 = vpack.c.bf16 %v2311_v29, %v2311_v29  ;;  %v8760_v41 = vld [vmem:[#allocation2 + $0x70] sm:$0x3] }
 0x14b   : > { %1027 = vrot.lane.b32.xlu2 %v997_v26, %s7787_s29  ;;  %v1982_v6 = vsel %vm246_vm0, %v8688_v12, %v8606_v50  ;;  %v1505_v26 = vsel %vm694_vm3, %v8447_v23, %v1504_v35  ;;  %v8718_v50 = vpack.c.b16 %v1701_v56, %v1700_v8  ;;  %v2307_v23 = vrot.slane %v8509_v25, 2 }
 0x14c   : > { %7618 = vmatpush.bf16.msra.mxu1 %v7580_v58  ;;  %v2017_v5 = vsel %vm1191_vm4, %v1982_v6, %v1937_v34  ;;  %3202 = vmatpush.bf16.msra.mxu0 %v7580_v58  ;;  %v1611_v33 = vpack.c.bf16 %v1505_v26, %v1505_v26  ;;  %v7578_v34 = vld [vmem:[%s11968_s1 + $0x8] sm:$0xff]  ;;  %v2670_v8 = vunpack.c.l.b16 %v2414_v0  ;;  %v699_v26 = vsel %vm694_vm3, %v696_v19, %v698_v24  ;;  %v7680_v24 = vld [vmem:[#allocation2 + $0xc0] sm:$0xff] }
 0x14d   : > { %v2309_v36 = vsel %vm694_vm3, %v2307_v23, %v8724_v3  ;;  %v808_v43 = vpack.c.bf16 %v699_v26, %v699_v26 }
 0x14e   : > { %v1867_v31 = vunpack.c.l.b16 %v1611_v33  ;;  %v365_v33 = vld [vmem:[%s7911_s25 + $0x48] sm:$0xff] }
 0x14f   : > { %v8694_v63 = vpop.permute.xlu1 %1133  ;;  %398 = vst.msk [vmem:[#allocation2 + $0x81] sm:$0xff] %vm246_vm0, %v365_v33  ;;  %v1303_v33 = vpack.c.bf16 %v8418_v2, %v8418_v2 }
 0x150   : > { %7619 = vmatpush.bf16.msra.mxu1 %v7579_v20  ;;  %3203 = vmatpush.bf16.msra.mxu0 %v7579_v20  ;;  %v1897_v4 = vpack.c.b16 %v1867_v31, %v8463_v7  ;;  %v2074_v7 = vpack.c.bf16 %v8425_v47, %v8425_v47 }
 0x151   : > { %999 = vrot.lane.b32.xlu1 %v983_v44, %s7787_s29  ;;  %v8700_v49 = vpop.permute.xlu0 %1021  ;;  %v2413_v44 = vpack.c.bf16 %v2309_v36, %v2309_v36 }
 0x152   : > { %v2474_v20 = vunpack.c.l.b16 %v2074_v7  ;;  %v485_v7 = vpack.c.bf16 %v7680_v24, %v7680_v24 }
 0x153   : > { %2603 = vrot.lane.b32.xlu2 %v2586_v45, %s7787_s29  ;;  %v695_v45 = vrot.slane %v8630_v62, 2  ;;  %v8754_v6 = vunpack.c.l.b16 %v2413_v44 }
 0x154   : > { %7620 = vmatpush.bf16.msra.mxu1 %v7578_v34  ;;  %3204 = vmatpush.bf16.msra.mxu0 %v7578_v34 }
 0x155   : > { %v697_v56 = vsel %vm694_vm3, %v695_v45, %v696_v19  ;;  %v2699_v47 = vpack.c.b16 %v2670_v8, %v8754_v6  ;;  %v7679_v45 = vld [vmem:[#allocation2 + $0xc8] sm:$0xff] }
 0x156   : > { %v807_v23 = vpack.c.bf16 %v697_v56, %v697_v56  ;;  %v486_v19 = vpack.c.bf16 %v7679_v45, %v7679_v45  ;;  %v8779_v56 = vpop.permute.xlu2 %1023  ;;  %v366_v45 = vld [vmem:[%s7911_s25 + $0x50] sm:$0xff] }
 0x157   : > { %v1941_v59 = vpop.permute.xlu1 %1940  ;;  %399 = vst.msk [vmem:[#allocation2 + $0x91] sm:$0xff] %vm246_vm0, %v366_v45  ;;  %v2076_v45 = vpack.c.bf16 %v8542_v57, %v8542_v57 }
 0x158   : > { %7621 = vmatpush.bf16.msra.mxu1 %v7577_v32  ;;  %3205 = vmatpush.bf16.msra.mxu0 %v7577_v32 }
 0x159   : > { %2865 = vrot.lane.b32.xlu1 %v2017_v5, %s7789_s15  ;;  %v1829_v40 = vpop.permute.xlu0 %1828  ;;  %v364_v5 = vld [vmem:[%s7911_s25 + $0x40] sm:$0xff] }
 0x15a   : > { %v1988_v52 = vsel %vm246_vm0, %v8718_v50, %v1829_v40  ;;  %397 = vst.msk [vmem:[#allocation2 + $0x79] sm:$0xff] %vm246_vm0, %v364_v5  ;;  %v1370_v40 = vrot.slane %v8760_v41, 1  ;;  %v1302_v5 = vpack.c.bf16 %v8416_v1, %v8416_v1 }
 0x15b   : > { %2863 = vrot.lane.b32.xlu2 %v2015_v38, %s7789_s15  ;;  %v2021_v27 = vsel %vm1191_vm4, %v1988_v52, %v1941_v59  ;;  %v2473_v38 = vunpack.c.l.b16 %v2073_v16  ;;  %v1063_v59 = vunpack.c.l.b16 %v807_v23  ;;  %v1064_v52 = vunpack.c.l.b16 %v808_v43 }
 0x15c   : > { %v1371_v36 = vsel %vm549_vm2, %v8517_v37, %v1370_v40  ;;  %v888_v37 = vunpack.c.l.b16 %v486_v19  ;;  %v887_v16 = vunpack.c.l.b16 %v485_v7  ;;  %v367_v19 = vld [vmem:[%s7911_s25 + $0x58] sm:$0xff] }
 0x15d   : > { %v8769_v34 = vpack.c.b16 %v2474_v20, %v2473_v38  ;;  %v1471_v32 = vpack.c.bf16 %v1371_v36, %v1371_v36  ;;  %400 = vst.msk [vmem:[#allocation2 + $0x99] sm:$0xff] %vm246_vm0, %v367_v19 }
 0x15e   : > { %v911_v26 = vpack.c.b16 %v888_v37, %v887_v16 }
 0x15f   : > { %v8749_v58 = vpop.permute.xlu1 %1025  ;;  %v1759_v0 = vunpack.c.l.b16 %v1471_v32 }
 0x160   : > { %v1169_v20 = vsel %vm246_vm0, %v911_v26, %v8604_v11 }
 0x161   : > { %2869 = vrot.lane.b32.xlu1 %v2021_v27, %s7789_s15  ;;  %v8747_v35 = vpop.permute.xlu0 %1135  ;;  %v1095_v27 = vpack.c.b16 %v1064_v52, %v1063_v59  ;;  %v1787_v8 = vpack.c.b16 %v1759_v0, %v8557_v21  ;;  %v8790_v38 = vld [vmem:[#allocation2 + $0x80] sm:$0xff]  ;;  %v2036_v21 = vld [vmem:[#allocation2 + $0x88] sm:$0x3]  ;;  %v1209_v43 = vsel %vm1191_vm4, %v1169_v20, %v8595_v42  ;;  %v1702_v59 = vunpack.c.l.b16 %v1302_v5 }
 0x162   : > { %v8798_v11 = vrot.slane %v8790_v38, 1  ;;  %v2171_v1 = vrot.slane %v2036_v21, 1  ;;  %v1703_v52 = vunpack.c.l.b16 %v1303_v33 }
 0x163   : > { %1914 = vrot.lane.b32.xlu2 %v1897_v4, %s7788_s13 }
 0x164   : > { %v2172_v42 = vsel %vm549_vm2, %v8798_v11, %v2171_v1  ;;  %v1719_v36 = vpack.c.b16 %v1703_v52, %v1702_v59  ;;  %v1272_v1 = vpack.c.bf16 %v8533_v53, %v8533_v53 }
 0x165   : > { %v2272_v32 = vpack.c.bf16 %v2172_v42, %v2172_v42 }
 0x166   : > { %v1672_v52 = vunpack.c.l.b16 %v1272_v1  ;;  %v1175_v1 = vsel %vm246_vm0, %v8561_v46, %v8648_v48 }
 0x167   : > { %v2602_v31 = vpop.permute.xlu1 %2601 }
 0x168   : > { %v2747_v29 = vsel %vm246_vm0, %v8769_v34, %v2602_v31 }
 0x169   : > { %v1943_v14 = vpop.permute.xlu0 %1942 }
 0x16b   : > { %2717 = vrot.lane.b32.xlu2 %v2699_v47, %s7788_s13  ;;  %v8788_v47 = vld [vmem:[#allocation2 + $0x78] sm:$0xff] }
 0x16c   : > { %v2168_v40 = vrot.slane %v8788_v47, 1 }
 0x16e   : > { %v2170_v31 = vsel %vm549_vm2, %v2168_v40, %v8798_v11  ;;  %v1273_v40 = vpack.c.bf16 %v8535_v54, %v8535_v54  ;;  %v2315_v54 = vrot.slane %v2036_v21, 2 }
 0x170   : > { %v1673_v59 = vunpack.c.l.b16 %v1273_v40  ;;  %v369_v40 = vld [vmem:[%s7911_s25 + $0x68] sm:$0xff] }
 0x171   : > { %v2714_v4 = vpop.permute.xlu0 %2713  ;;  %402 = vst.msk [vmem:[#allocation2 + $0xb1] sm:$0xff] %vm246_vm0, %v369_v40 }
 0x172   : > { %v2794_v44 = vsel %vm1191_vm4, %v2747_v29, %v2714_v4  ;;  %v2271_v29 = vpack.c.bf16 %v2170_v31, %v2170_v31  ;;  %v8840_v31 = vrot.slane %v8790_v38, 2 }
 0x173   : > { %2889 = vrot.lane.b32.xlu0 %v2794_v44, %s7788_s13  ;;  %1111 = vrot.lane.b32.xlu2 %v1095_v27, %s7788_s13  ;;  %v8806_v27 = vld [vmem:[#allocation2 + $0x28] sm:$0x3]  ;;  %v1514_v44 = vrot.slane %v8760_v41, 2  ;;  %v2560_v41 = vunpack.c.l.b16 %v2272_v32 }
 0x174   : > { %v558_v0 = vrot.slane %v8806_v27, 1  ;;  %v8819_v37 = vunpack.c.l.b16 %v2271_v29  ;;  %v8849_v29 = vpack.c.b16 %v1673_v59, %v1672_v52  ;;  %v2316_v21 = vsel %vm694_vm3, %v8840_v31, %v2315_v54 }
 0x175   : > { %v1515_v26 = vsel %vm694_vm3, %v8724_v3, %v1514_v44  ;;  %v1172_v3 = vsel %vm246_vm0, %v8568_v51, %v8582_v9  ;;  %v703_v19 = vrot.slane %v8806_v27, 2  ;;  %v1213_v54 = vsel %vm1191_vm4, %v1175_v1, %v8636_v17 }
 0x176   : > { %v2588_v33 = vpack.c.b16 %v2560_v41, %v8819_v37  ;;  %v1211_v53 = vsel %vm1191_vm4, %v1172_v3, %v8653_v10 }
 0x177   : > { %v704_v27 = vsel %vm694_vm3, %v8548_v13, %v703_v19 }
 0x179   : > { %v8823_v5 = vpop.permute.xlu0 %1139 }
 0x17b   : > { %1806 = vrot.lane.b32.xlu0 %v1787_v8, %s7787_s29  ;;  %v559_v8 = vsel %vm549_vm2, %v8600_v22, %v558_v0  ;;  %v2416_v0 = vpack.c.bf16 %v2316_v21, %v2316_v21  ;;  %v1238_v21 = vld [vmem:[#allocation2 + $0x88] sm:$0x3] }
 0x17c   : > { %v665_v16 = vpack.c.bf16 %v559_v8, %v559_v8 }
 0x17e   : > { %v954_v20 = vunpack.c.l.b16 %v665_v16  ;;  %v2672_v16 = vunpack.c.l.b16 %v2416_v0  ;;  %v1375_v0 = vrot.slane %v1238_v21, 1 }
 0x180   : > { %v1376_v19 = vsel %vm549_vm2, %v8798_v11, %v1375_v0 }
 0x181   : > { %v8851_v32 = vpop.permute.xlu0 %2861 }
 0x182   : > { %v2953_v46 = vsel %vm2921_vm5, %v1213_v54, %v8851_v32 }
 0x185   : > { %v8792_v23 = vpop.permute.xlu2 %2857 }
 0x186   : > { %v2947_v2 = vsel %vm2921_vm5, %v1209_v43, %v8792_v23  ;;  %v984_v43 = vpack.c.b16 %v954_v20, %v8628_v39  ;;  %v2312_v39 = vrot.slane %v8788_v47, 2  ;;  %v2039_v20 = vld [vmem:[#allocation2 + $0xa0] sm:$0x3] }
 0x187   : > { %3246 = vmatmul.bf16.vlgmr.msra.gmra.mxu1 %v2947_v2  ;;  %v2176_v59 = vrot.slane %v2039_v20, 1  ;;  %v2320_v40 = vrot.slane %v2039_v20, 2  ;;  %v2077_v20 = vpack.c.bf16 %v8509_v25, %v8509_v25 }
 0x188   : > { %1001 = vrot.lane.b32.xlu0 %v984_v43, %s7787_s29  ;;  %v368_v43 = vld [vmem:[%s7911_s25 + $0x60] sm:$0xff] }
 0x189   : > { %401 = vst.msk [vmem:[#allocation2 + $0xa9] sm:$0xff] %vm246_vm0, %v368_v43 }
 0x18d   : > { %v1831_v4 = vpop.permute.xlu2 %1830 }
 0x18e   : > { %v1991_v24 = vsel %vm246_vm0, %v1719_v36, %v1831_v4  ;;  %v2314_v4 = vsel %vm694_vm3, %v2312_v39, %v8840_v31  ;;  %v810_v39 = vpack.c.bf16 %v704_v27, %v704_v27 }
 0x18f   : > { %v2023_v7 = vsel %vm1191_vm4, %v1991_v24, %v1943_v14  ;;  %v1615_v14 = vpack.c.bf16 %v1515_v26, %v1515_v26  ;;  %v2415_v44 = vpack.c.bf16 %v2314_v4, %v2314_v4  ;;  %v8871_v26 = vld [vmem:[#allocation2 + $0x90] sm:$0xff] }
 0x190   : > { %2871 = vrot.lane.b32.xlu2 %v2023_v7, %s7789_s15  ;;  %v2173_v3 = vrot.slane %v8871_v26, 1  ;;  %v2317_v27 = vrot.slane %v8871_v26, 2 }
 0x191   : > { %v1871_v2 = vunpack.c.l.b16 %v1615_v14  ;;  %v8869_v41 = vunpack.c.l.b16 %v2415_v44  ;;  %v2476_v14 = vunpack.c.l.b16 %v2076_v45 }
 0x193   : > { %v1899_v51 = vpack.c.b16 %v1871_v2, %v8754_v6  ;;  %v2075_v6 = vpack.c.bf16 %v8540_v55, %v8540_v55  ;;  %v8873_v55 = vld [vmem:[#allocation2 + $0x98] sm:$0xff]  ;;  %v2700_v52 = vpack.c.b16 %v2672_v16, %v8869_v41 }
 0x194   : > { %v8887_v2 = vrot.slane %v8873_v55, 1  ;;  %v8917_v43 = vrot.slane %v8873_v55, 2 }
 0x195   : > { %v8827_v22 = vpop.permute.xlu2 %1137  ;;  %v2475_v57 = vunpack.c.l.b16 %v2075_v6 }
 0x196   : > { %v2175_v48 = vsel %vm549_vm2, %v2173_v3, %v8887_v2 }
 0x197   : > { %v8891_v13 = vpack.c.b16 %v2476_v14, %v2475_v57  ;;  %v2273_v17 = vpack.c.bf16 %v2175_v48, %v2175_v48 }
 0x198   : > { %2607 = vrot.lane.b32.xlu2 %v2588_v33, %s7787_s29  ;;  %v8875_v33 = vpop.permute.xlu0 %1802 }
 0x199   : > { %v8913_v57 = vunpack.c.l.b16 %v2273_v17  ;;  %v1949_v0 = vsel %vm246_vm0, %v8769_v34, %v8875_v33 }
 0x19b   : > { %v8844_v42 = vpop.permute.xlu1 %2859 }
 0x19c   : > { %v2950_v36 = vsel %vm2921_vm5, %v1211_v53, %v8844_v42 }
 0x19d   : > { %v1801_v9 = vpop.permute.xlu2 %1800  ;;  %3251 = vmatmul.bf16.gmra.mxu1 %v2950_v36  ;;  %v2177_v36 = vsel %vm549_vm2, %v8887_v2, %v2176_v59  ;;  %v8927_v59 = vld [vmem:[#allocation2 + $0x30] sm:$0xff] }
 0x19e   : > { %v1946_v10 = vsel %vm246_vm0, %v8849_v29, %v1801_v9  ;;  %v1066_v9 = vunpack.c.l.b16 %v810_v39  ;;  %v429_v39 = vld [vmem:[#allocation2 + $0x40] sm:$0x3]  ;;  %v705_v25 = vrot.slane %v8927_v59, 2 }
 0x19f   : > { %v563_v48 = vrot.slane %v429_v39, 1 }
 0x1a0   : > { %1918 = vrot.lane.b32.xlu2 %v1899_v51, %s7788_s13  ;;  %v8905_v6 = vpop.permute.xlu0 %1029  ;;  %v1096_v45 = vpack.c.b16 %v1066_v9, %v8586_v18  ;;  %v1178_v18 = vsel %vm246_vm0, %v8486_v60, %v8700_v49  ;;  %v2078_v60 = vpack.c.bf16 %v8511_v28, %v8511_v28 }
 0x1a3   : > { %v1913_v24 = vpop.permute.xlu1 %1912 }
 0x1a4   : > { %v1993_v7 = vsel %vm1191_vm4, %v1946_v10, %v1913_v24  ;;  %v2274_v10 = vpack.c.bf16 %v2177_v36, %v2177_v36  ;;  %v1519_v24 = vrot.slane %v1238_v21, 2  ;;  %v2321_v36 = vsel %vm694_vm3, %v8917_v43, %v2320_v40 }
 0x1a5   : > { %v8866_v8 = vpop.permute.xlu2 %1027  ;;  %2841 = vrot.lane.b32.xlu1 %v1993_v7, %s7789_s15  ;;  %v1473_v7 = vpack.c.bf16 %v1376_v19, %v1376_v19  ;;  %v708_v21 = vrot.slane %v429_v39, 2  ;;  %v2477_v40 = vunpack.c.l.b16 %v2077_v20  ;;  %v8964_v20 = vld [vmem:[#allocation2 + $0xb0] sm:$0xff] }
 0x1a6   : > { %v2562_v14 = vunpack.c.l.b16 %v2274_v10  ;;  %v1520_v11 = vsel %vm694_vm3, %v8840_v31, %v1519_v24  ;;  %v2319_v31 = vsel %vm694_vm3, %v2317_v27, %v8917_v43  ;;  %v2418_v24 = vpack.c.bf16 %v2321_v36, %v2321_v36 }
 0x1a7   : > { %v1761_v1 = vunpack.c.l.b16 %v1473_v7  ;;  %v2417_v19 = vpack.c.bf16 %v2319_v31, %v2319_v31  ;;  %v2042_v31 = vld [vmem:[#allocation2 + $0xb8] sm:$0x3] }
 0x1a8   : > { %v2589_v49 = vpack.c.b16 %v2562_v14, %v8913_v57 }
 0x1a9   : > { %v1788_v54 = vpack.c.b16 %v1761_v1, %v8819_v37  ;;  %v1617_v37 = vpack.c.bf16 %v1520_v11, %v1520_v11  ;;  %v2478_v1 = vunpack.c.l.b16 %v2078_v60 }
 0x1ab   : > { %v2716_v53 = vpop.permute.xlu1 %2715  ;;  %v1873_v39 = vunpack.c.l.b16 %v1617_v37  ;;  %v8968_v36 = vpack.c.b16 %v2478_v1, %v2477_v40 }
 0x1ad   : > { %v2604_v51 = vpop.permute.xlu2 %2603  ;;  %3256 = vmatmul.bf16.gmra.mxu1 %v2953_v46  ;;  %2719 = vrot.lane.b32.xlu1 %v2700_v52, %s7788_s13  ;;  %v8929_v52 = vld [vmem:[#allocation2 + $0x38] sm:$0xff] }
 0x1ae   : > { %v2750_v4 = vsel %vm246_vm0, %v8891_v13, %v2604_v51  ;;  %v561_v46 = vrot.slane %v8929_v52, 1  ;;  %v706_v28 = vrot.slane %v8929_v52, 2 }
 0x1af   : > { %v2796_v44 = vsel %vm1191_vm4, %v2750_v4, %v2716_v53  ;;  %v560_v53 = vrot.slane %v8927_v59, 1  ;;  %v2606_v4 = vpop.permute.xlu0 %2605 }
 0x1b0   : > { %2891 = vrot.lane.b32.xlu2 %v2796_v44, %s7788_s13  ;;  %v564_v9 = vsel %vm549_vm2, %v561_v46, %v563_v48  ;;  %v1215_v44 = vsel %vm1191_vm4, %v1178_v18, %v8694_v63  ;;  %v707_v18 = vsel %vm694_vm3, %v705_v25, %v706_v28  ;;  %v709_v34 = vsel %vm694_vm3, %v706_v28, %v708_v21  ;;  %v1241_v25 = vld [vmem:[#allocation2 + $0xa0] sm:$0x3] }
 0x1b1   : > { %v562_v51 = vsel %vm549_vm2, %v560_v53, %v561_v46  ;;  %v667_v10 = vpack.c.bf16 %v564_v9, %v564_v9  ;;  %v2674_v53 = vunpack.c.l.b16 %v2418_v24  ;;  %v8962_v46 = vld [vmem:[#allocation2 + $0xa8] sm:$0xff]  ;;  %v1900_v48 = vpack.c.b16 %v1873_v39, %v8869_v41 }
 0x1b2   : > { %v666_v17 = vpack.c.bf16 %v562_v51, %v562_v51  ;;  %v811_v60 = vpack.c.bf16 %v707_v18, %v707_v18  ;;  %v2178_v28 = vrot.slane %v8962_v46, 1  ;;  %v8977_v21 = vrot.slane %v8964_v20, 1 }
 0x1b3   : > { %v8911_v16 = vpop.permute.xlu1 %1141  ;;  %v956_v27 = vunpack.c.l.b16 %v667_v10  ;;  %v2181_v10 = vrot.slane %v2042_v31, 1 }
 0x1b4   : > { %v955_v14 = vunpack.c.l.b16 %v666_v17  ;;  %v1380_v17 = vrot.slane %v1241_v25, 1 }
 0x1b5   : > { %v8919_v3 = vpop.permute.xlu2 %2863  ;;  %1113 = vrot.lane.b32.xlu1 %v1096_v45, %s7788_s13 }
 0x1b6   : > { %v2956_v7 = vsel %vm2921_vm5, %v1215_v44, %v8919_v3  ;;  %v985_v33 = vpack.c.b16 %v956_v27, %v955_v14  ;;  %v1181_v44 = vsel %vm246_vm0, %v8697_v30, %v8779_v56  ;;  %v1381_v24 = vsel %vm549_vm2, %v8887_v2, %v1380_v17 }
 0x1b7   : > { %v1917_v41 = vpop.permute.xlu0 %1916  ;;  %v2180_v14 = vsel %vm549_vm2, %v2178_v28, %v8977_v21  ;;  %v2322_v30 = vrot.slane %v8962_v46, 2  ;;  %v8993_v56 = vrot.slane %v8964_v20, 2  ;;  %v2325_v27 = vrot.slane %v2042_v31, 2 }
 0x1b8   : > { %1808 = vrot.lane.b32.xlu2 %v1788_v54, %s7787_s29  ;;  %v8960_v54 = vunpack.c.l.b16 %v2417_v19  ;;  %v2753_v19 = vsel %vm246_vm0, %v8968_v36, %v2606_v4  ;;  %v1217_v40 = vsel %vm1191_vm4, %v1181_v44, %v8747_v35  ;;  %v2182_v4 = vsel %vm549_vm2, %v8977_v21, %v2181_v10  ;;  %v9007_v35 = vld [vmem:[#allocation2 + $0x50] sm:$0xff] }
 0x1b9   : > { %v1475_v1 = vpack.c.bf16 %v1381_v24, %v1381_v24  ;;  %v2326_v39 = vsel %vm694_vm3, %v8993_v56, %v2325_v27 }
 0x1ba   : > { %v2701_v9 = vpack.c.b16 %v2674_v53, %v8960_v54  ;;  %v9005_v53 = vld [vmem:[#allocation2 + $0x48] sm:$0xff] }
 0x1bb   : > { %v1805_v45 = vpop.permute.xlu1 %1804  ;;  %v565_v31 = vrot.slane %v9005_v53, 1  ;;  %v1763_v10 = vunpack.c.l.b16 %v1475_v1 }
 0x1bc   : > { %v1952_v37 = vsel %vm246_vm0, %v8891_v13, %v1805_v45  ;;  %v1067_v13 = vunpack.c.l.b16 %v811_v60 }
 0x1bd   : > { %v1915_v11 = vpop.permute.xlu2 %1914  ;;  %3261 = vmatmul.bf16.gmra.mxu1 %v2956_v7  ;;  %2609 = vrot.lane.b32.xlu1 %v2589_v49, %s7787_s29  ;;  %v812_v49 = vpack.c.bf16 %v709_v34, %v709_v34  ;;  %v1997_v45 = vsel %vm1191_vm4, %v1952_v37, %v1917_v41  ;;  %v566_v37 = vrot.slane %v9007_v35, 1  ;;  %v1789_v24 = vpack.c.b16 %v1763_v10, %v8913_v57 }
 0x1be   : > { %v1995_v63 = vsel %vm1191_vm4, %v1949_v0, %v1915_v11  ;;  %v2324_v11 = vsel %vm694_vm3, %v2322_v30, %v8993_v56  ;;  %v1524_v30 = vrot.slane %v1241_v25, 2  ;;  %v1184_v57 = vsel %vm246_vm0, %v8688_v12, %v8749_v58  ;;  %v7592_v25 = vld [vmem:[%s11968_s1 + $0x78] sm:$0xff]  ;;  %v7591_v12 = vld [vmem:[%s11968_s1 + $0x70] sm:$0xff]  ;;  %v7593_v58 = vld [vmem:[%s11968_s1 + $0x80] sm:$0xff] }
 0x1bf   : > { %2843 = vrot.lane.b32.xlu0 %v1995_v63, %s7789_s15  ;;  %v1068_v0 = vunpack.c.l.b16 %v812_v49  ;;  %v2275_v63 = vpack.c.bf16 %v2180_v14, %v2180_v14  ;;  %v2419_v34 = vpack.c.bf16 %v2324_v11, %v2324_v11  ;;  %v2276_v49 = vpack.c.bf16 %v2182_v4, %v2182_v4  ;;  %3287 = vmatpush.bf16.msrb.mxu1 %v7592_v25 }
 0x1c0   : > { %1003 = vrot.lane.b32.xlu2 %v985_v33, %s7787_s29  ;;  %v2420_v33 = vpack.c.bf16 %v2326_v39, %v2326_v39  ;;  %v9034_v39 = vpop.permute.xlu0 %2867  ;;  %v710_v10 = vrot.slane %v9005_v53, 2 }
 0x1c1   : > { %v1097_v2 = vpack.c.b16 %v1068_v0, %v1067_v13  ;;  %v9018_v17 = vunpack.c.l.b16 %v2419_v34  ;;  %v567_v13 = vsel %vm549_vm2, %v565_v31, %v566_v37  ;;  %v7589_v31 = vld [vmem:[%s11968_s1 + $0x60] sm:$0xff] }
 0x1c2   : > { %v2676_v41 = vunpack.c.l.b16 %v2420_v33 }
 0x1c3   : > { %v8972_v51 = vpop.permute.xlu1 %999  ;;  %3288 = vmatpush.bf16.msrb.mxu1 %v7591_v12 }
 0x1c4   : > { %v2702_v44 = vpack.c.b16 %v2676_v41, %v9018_v17  ;;  %v7588_v41 = vld [vmem:[%s11968_s1 + $0x58] sm:$0xff] }
 0x1c5   : > { %1920 = vrot.lane.b32.xlu1 %v1900_v48, %s7788_s13  ;;  %v2718_v7 = vpop.permute.xlu2 %2717  ;;  %v9009_v48 = vld [vmem:[#allocation2 + $0x58] sm:$0x3] }
 0x1c6   : > { %v2798_v18 = vsel %vm1191_vm4, %v2753_v19, %v2718_v7  ;;  %v2564_v19 = vunpack.c.l.b16 %v2276_v49  ;;  %v668_v7 = vpack.c.bf16 %v567_v13, %v567_v13  ;;  %v713_v13 = vrot.slane %v9009_v48, 2 }
 0x1c7   : > { %2721 = vrot.lane.b32.xlu0 %v2701_v9, %s7788_s13  ;;  %v568_v9 = vrot.slane %v9009_v48, 1  ;;  %v9094_v48 = vld [vmem:[#allocation2 + $0xc8] sm:$0xff] }
 0x1c8   : > { %2845 = vrot.lane.b32.xlu2 %v1997_v45, %s7789_s15  ;;  %v9025_v45 = vunpack.c.l.b16 %v2275_v63  ;;  %v957_v1 = vunpack.c.l.b16 %v668_v7 }
 0x1c9   : > { %v569_v0 = vsel %vm549_vm2, %v566_v37, %v568_v9  ;;  %v1187_v37 = vsel %vm246_vm0, %v8661_v15, %v8866_v8 }
 0x1ca   : > { %v669_v14 = vpack.c.bf16 %v569_v0, %v569_v0  ;;  %v2590_v27 = vpack.c.b16 %v2564_v19, %v9025_v45  ;;  %v1221_v0 = vsel %vm1191_vm4, %v1187_v37, %v8823_v5  ;;  %v2045_v5 = vld [vmem:[#allocation2 + $0xd0] sm:$0x3] }
 0x1cb   : > { %v9011_v60 = vpop.permute.xlu1 %2865 }
 0x1cc   : > { %v2959_v28 = vsel %vm2921_vm5, %v1217_v40, %v9011_v60  ;;  %v1525_v40 = vsel %vm694_vm3, %v8917_v43, %v1524_v30  ;;  %v7594_v43 = vld [vmem:[%s11968_s1 + $0x88] sm:$0xff]  ;;  %v9092_v30 = vld [vmem:[#allocation2 + $0xc0] sm:$0xff] }
 0x1cd   : > { %3266 = vmatmul.bf16.gmra.mxu1 %v2959_v28  ;;  %2893 = vrot.lane.b32.xlu1 %v2798_v18, %s7788_s13  ;;  %v1619_v4 = vpack.c.bf16 %v1525_v40, %v1525_v40  ;;  %v1219_v18 = vsel %vm1191_vm4, %v1184_v57, %v8827_v22  ;;  %v9058_v22 = vpop.permute.xlu2 %1111  ;;  %v2183_v25 = vrot.slane %v9092_v30, 1 }
 0x1ce   : > { %v2962_v33 = vsel %vm2921_vm5, %v1219_v18, %v9034_v39  ;;  %3382 = vmatpush.bf16.msra.mxu2 %v7594_v43  ;;  %7622 = vmatpush.bf16.msra.mxu3 %v7594_v43  ;;  %v9107_v43 = vrot.slane %v9094_v48, 1  ;;  %v2186_v18 = vrot.slane %v2045_v5, 1 }
 0x1cf   : > { %1115 = vrot.lane.b32.xlu0 %v1097_v2, %s7788_s13  ;;  %v958_v2 = vunpack.c.l.b16 %v669_v14  ;;  %v1875_v11 = vunpack.c.l.b16 %v1619_v4  ;;  %v7586_v4 = vld [vmem:[%s11968_s1 + $0x48] sm:$0xff] }
 0x1d0   : > { %2723 = vrot.lane.b32.xlu2 %v2702_v44, %s7788_s13  ;;  %v711_v44 = vrot.slane %v9007_v35, 2  ;;  %v2187_v12 = vsel %vm549_vm2, %v9107_v43, %v2186_v18 }
 0x1d1   : > { %v986_v63 = vpack.c.b16 %v958_v2, %v957_v1  ;;  %v1901_v34 = vpack.c.b16 %v1875_v11, %v8960_v54  ;;  %v7590_v54 = vld [vmem:[%s11968_s1 + $0x68] sm:$0xff]  ;;  %v2327_v1 = vrot.slane %v9092_v30, 2  ;;  %v9101_v2 = vrot.slane %v9094_v48, 2 }
 0x1d2   : > { %3383 = vmatpush.bf16.msra.mxu2 %v7593_v58  ;;  %7623 = vmatpush.bf16.msra.mxu3 %v7593_v58  ;;  %v712_v8 = vsel %vm694_vm3, %v710_v10, %v711_v44  ;;  %v714_v19 = vsel %vm694_vm3, %v711_v44, %v713_v13  ;;  %v2330_v11 = vrot.slane %v2045_v5, 2  ;;  %v1190_v10 = vsel %vm246_vm0, %v8718_v50, %v8905_v6 }
 0x1d3   : > { %3289 = vmatpush.bf16.msrb.mxu1 %v7590_v54  ;;  %v9073_v9 = vpop.permute.xlu1 %2869  ;;  %v813_v7 = vpack.c.bf16 %v712_v8, %v712_v8  ;;  %v814_v14 = vpack.c.bf16 %v714_v19, %v714_v19  ;;  %v2329_v54 = vsel %vm694_vm3, %v2327_v1, %v9101_v2  ;;  %v1223_v19 = vsel %vm1191_vm4, %v1190_v10, %v8911_v16  ;;  %v9146_v1 = vld [vmem:[#allocation2 + $0x60] sm:$0xff] }
 0x1d4   : > { %v2965_v15 = vsel %vm2921_vm5, %v1221_v0, %v9073_v9  ;;  %v470_v16 = vpack.c.bf16 %v8632_v61, %v8632_v61  ;;  %v715_v61 = vrot.slane %v9146_v1, 2 }
 0x1d5   : > { %1810 = vrot.lane.b32.xlu1 %v1789_v24, %s7787_s29  ;;  %v7587_v24 = vld [vmem:[%s11968_s1 + $0x50] sm:$0xff]  ;;  %v1070_v40 = vunpack.c.l.b16 %v814_v14 }
 0x1d7   : > { %2611 = vrot.lane.b32.xlu0 %v2590_v27, %s7787_s29  ;;  %3290 = vmatpush.bf16.msrb.mxu1 %v7589_v31  ;;  %v1069_v27 = vunpack.c.l.b16 %v813_v7  ;;  %v2331_v31 = vsel %vm694_vm3, %v9101_v2, %v2330_v11  ;;  %v9148_v11 = vld [vmem:[#allocation2 + $0x68] sm:$0xff] }
 0x1d8   : > { %v2422_v8 = vpack.c.bf16 %v2331_v31, %v2331_v31 }
 0x1db   : > { %3291 = vmatpush.bf16.msrb.mxu1 %v7588_v41  ;;  %v2278_v41 = vpack.c.bf16 %v2187_v12, %v2187_v12 }
 0x1dd   : > { %3271 = vmatmul.bf16.gmra.mxu1 %v2962_v33  ;;  %1005 = vrot.lane.b32.xlu1 %v986_v63, %s7787_s29  ;;  %v1098_v63 = vpack.c.b16 %v1070_v40, %v1069_v27  ;;  %v2185_v33 = vsel %vm549_vm2, %v2183_v25, %v9107_v43  ;;  %v2566_v13 = vunpack.c.l.b16 %v2278_v41  ;;  %v469_v27 = vpack.c.bf16 %v8630_v62, %v8630_v62 }
 0x1de   : > { %v2277_v37 = vpack.c.bf16 %v2185_v33, %v2185_v33  ;;  %v872_v33 = vunpack.c.l.b16 %v470_v16 }
 0x1df   : > { %1922 = vrot.lane.b32.xlu0 %v1901_v34, %s7788_s13  ;;  %3292 = vmatpush.bf16.msrb.mxu1 %v7587_v24  ;;  %v7585_v34 = vld [vmem:[%s11968_s1 + $0x40] sm:$0xff]  ;;  %v871_v12 = vunpack.c.l.b16 %v469_v27 }
 0x1e0   : > { %1117 = vrot.lane.b32.xlu2 %v1098_v63, %s7788_s13  ;;  %v9124_v44 = vunpack.c.l.b16 %v2277_v37  ;;  %v9150_v63 = vld [vmem:[#allocation2 + $0x70] sm:$0x3] }
 0x1e1   : > { %v718_v62 = vrot.slane %v9150_v63, 2 }
 0x1e2   : > { %v2591_v24 = vpack.c.b16 %v2566_v13, %v9124_v44  ;;  %v903_v13 = vpack.c.b16 %v872_v33, %v871_v12 }
 0x1e3   : > { %3293 = vmatpush.bf16.msrb.mxu1 %v7586_v4  ;;  %v1244_v4 = vld [vmem:[#allocation2 + $0xb8] sm:$0x3] }
 0x1e4   : > { %v1529_v18 = vrot.slane %v1244_v4, 2  ;;  %v1145_v16 = vsel %vm246_vm0, %v903_v13, %v8972_v51 }
 0x1e5   : > { %v9063_v49 = vpop.permute.xlu0 %2889  ;;  %v1193_v33 = vsel %vm1191_vm4, %v1145_v16, %v9058_v22 }
 0x1e6   : > { %7467 = vmatmul.msk.bf16.vlgmr.msra.gmra.mxu2 %vm246_vm0, %v9063_v49 }
 0x1e7   : > { %3294 = vmatpush.bf16.msrb.mxu1 %v7585_v34  ;;  %v716_v34 = vrot.slane %v9148_v11, 2 }
 0x1e8   : > { %2613 = vrot.lane.b32.xlu2 %v2591_v24, %s7787_s29 }
 0x1e9   : > { %v717_v31 = vsel %vm694_vm3, %v715_v61, %v716_v34  ;;  %v719_v41 = vsel %vm694_vm3, %v716_v34, %v718_v62  ;;  %v1385_v34 = vrot.slane %v1244_v4, 1 }
 0x1ea   : > { %v9075_v28 = vpop.permute.xlu2 %2871  ;;  %v815_v10 = vpack.c.bf16 %v717_v31, %v717_v31 }
 0x1eb   : > { %v2968_v50 = vsel %vm2921_vm5, %v1223_v19, %v9075_v28  ;;  %v2079_v19 = vpack.c.bf16 %v8788_v47, %v8788_v47 }
 0x1ed   : > { %3276 = vmatmul.bf16.gmra.mxu1 %v2965_v15  ;;  %v1807_v58 = vpop.permute.xlu0 %1806  ;;  %v2421_v15 = vpack.c.bf16 %v2329_v54, %v2329_v54  ;;  %v2479_v12 = vunpack.c.l.b16 %v2079_v19  ;;  %v570_v19 = vrot.slane %v9146_v1, 1 }
 0x1ee   : > { %v1955_v0 = vsel %vm246_vm0, %v8968_v36, %v1807_v58  ;;  %v2678_v36 = vunpack.c.l.b16 %v2422_v8  ;;  %v1530_v58 = vsel %vm694_vm3, %v8993_v56, %v1529_v18  ;;  %v1071_v8 = vunpack.c.l.b16 %v815_v10  ;;  %v9170_v56 = vld [vmem:[#allocation2 + $0xe0] sm:$0xff] }
 0x1ef   : > { %v9136_v6 = vunpack.c.l.b16 %v2421_v15  ;;  %v1621_v54 = vpack.c.bf16 %v1530_v58, %v1530_v58  ;;  %v1386_v10 = vsel %vm549_vm2, %v8977_v21, %v1385_v34 }
 0x1f1   : > { %v2703_v5 = vpack.c.b16 %v2678_v36, %v9136_v6  ;;  %v1877_v37 = vunpack.c.l.b16 %v1621_v54  ;;  %v2080_v36 = vpack.c.bf16 %v8790_v38, %v8790_v38 }
 0x1f2   : > { %v9103_v57 = vpop.permute.xlu2 %2607 }
 0x1f3   : > { %v1902_v15 = vpack.c.b16 %v1877_v37, %v9018_v17  ;;  %v2480_v58 = vunpack.c.l.b16 %v2080_v36  ;;  %v573_v36 = vrot.slane %v9150_v63, 1 }
 0x1f5   : > { %1924 = vrot.lane.b32.xlu2 %v1902_v15, %s7788_s13  ;;  %v9196_v22 = vpack.c.b16 %v2480_v58, %v2479_v12 }
 0x1fa   : > { %v1919_v7 = vpop.permute.xlu2 %1918 }
 0x1fb   : > { %v1999_v14 = vsel %vm1191_vm4, %v1955_v0, %v1919_v7  ;;  %v816_v0 = vpack.c.bf16 %v719_v41, %v719_v41 }
 0x1fc   : > { %2847 = vrot.lane.b32.xlu1 %v1999_v14, %s7789_s15  ;;  %v9168_v14 = vld [vmem:[#allocation2 + $0xd8] sm:$0xff] }
 0x1fd   : > { %3281 = vmatmul.bf16.gmra.mxu1 %v2968_v50  ;;  %v1072_v7 = vunpack.c.l.b16 %v816_v0  ;;  %v9172_v50 = vld [vmem:[#allocation2 + $0xe8] sm:$0x3]  ;;  %v2188_v17 = vrot.slane %v9168_v14, 1  ;;  %v9194_v0 = vld [vmem:[#allocation2 + $0xd0] sm:$0x3] }
 0x1fe   : > { %v2191_v47 = vrot.slane %v9172_v50, 1  ;;  %v1534_v15 = vrot.slane %v9194_v0, 2 }
 0x1ff   : > { %v1099_v27 = vpack.c.b16 %v1072_v7, %v1071_v8  ;;  %v1477_v8 = vpack.c.bf16 %v1386_v10, %v1386_v10  ;;  %v571_v7 = vrot.slane %v9148_v11, 1  ;;  %v2335_v10 = vrot.slane %v9172_v50, 2 }
 0x201   : > { %v574_v63 = vsel %vm549_vm2, %v571_v7, %v573_v36 }
 0x204   : > { %2725 = vrot.lane.b32.xlu1 %v2703_v5, %s7788_s13  ;;  %v9144_v40 = vpop.f32.mrf.mxu1  ;;  %v2189_v5 = vrot.slane %v9170_v56, 1 }
 0x206   : > { %v2190_v18 = vsel %vm549_vm2, %v2188_v17, %v2189_v5  ;;  %v2192_v61 = vsel %vm549_vm2, %v2189_v5, %v2191_v47  ;;  %v2756_v17 = vsel %vm246_vm0, %v9196_v22, %v9103_v57  ;;  %v1002_v57 = vpop.permute.xlu0 %1001 }
 0x207   : > { %v2279_v38 = vpack.c.bf16 %v2190_v18, %v2190_v18  ;;  %v2280_v62 = vpack.c.bf16 %v2192_v61, %v2192_v61  ;;  %v572_v18 = vsel %vm549_vm2, %v570_v19, %v571_v7 }
 0x209   : > { %v2567_v37 = vunpack.c.l.b16 %v2279_v38  ;;  %v2568_v41 = vunpack.c.l.b16 %v2280_v62  ;;  %v670_v38 = vpack.c.bf16 %v572_v18, %v572_v18  ;;  %v671_v62 = vpack.c.bf16 %v574_v63, %v574_v63 }
 0x20a   : > { %v9152_v25 = vpop.permute.xlu2 %2891 }
 0x20b   : > { %7468 = vmatmul.msk.bf16.gmra.mxu2 %vm246_vm0, %v9152_v25  ;;  %v2592_v13 = vpack.c.b16 %v2568_v41, %v2567_v37  ;;  %v959_v12 = vunpack.c.l.b16 %v670_v38  ;;  %v960_v58 = vunpack.c.l.b16 %v671_v62  ;;  %v2333_v37 = vrot.slane %v9170_v56, 2 }
 0x20c   : > { %v9166_v24 = vpop.f32.mrf.mxu1  ;;  %1119 = vrot.lane.b32.xlu1 %v1099_v27, %s7788_s13 }
 0x20d   : > { %v987_v41 = vpack.c.b16 %v960_v58, %v959_v12  ;;  %v2336_v50 = vsel %vm694_vm3, %v2333_v37, %v2335_v10 }
 0x20e   : > { %v2424_v63 = vpack.c.bf16 %v2336_v50, %v2336_v50 }
 0x214   : > { %2615 = vrot.lane.b32.xlu1 %v2592_v13, %s7787_s29  ;;  %v1148_v13 = vsel %vm246_vm0, %v8849_v29, %v1002_v57  ;;  %v9239_v29 = vld [vmem:[#allocation2 + $0x80] sm:$0xff]  ;;  %v1390_v57 = vrot.slane %v9194_v0, 1 }
 0x217   : > { %v2842_v54 = vpop.permute.xlu1 %2841 }
 0x218   : > { %v2923_v31 = vsel %vm2921_vm5, %v1193_v33, %v2842_v54  ;;  %v2971_v51 = vsel %vm1191_vm4, %v2842_v54, %v9063_v49  ;;  %v1535_v49 = vsel %vm694_vm3, %v9101_v2, %v1534_v15  ;;  %v1765_v2 = vunpack.c.l.b16 %v1477_v8 }
 0x219   : > { %3206 = vmatmul.bf16.vlgmr.msra.gmra.mxu0 %v2923_v31  ;;  %3295 = vmatmul.bf16.vlgmr.msrb.gmra.mxu1 %v2971_v51  ;;  %v1623_v21 = vpack.c.bf16 %v1535_v49, %v1535_v49  ;;  %v1809_v31 = vpop.permute.xlu2 %1808  ;;  %v2332_v51 = vrot.slane %v9168_v14, 2  ;;  %v473_v8 = vpack.c.bf16 %v8927_v59, %v8927_v59  ;;  %v474_v49 = vpack.c.bf16 %v8929_v52, %v8929_v52 }
 0x21a   : > { %v9190_v4 = vpop.f32.mrf.mxu1  ;;  %v1790_v34 = vpack.c.b16 %v1765_v2, %v9025_v45  ;;  %v2081_v45 = vpack.c.bf16 %v8871_v26, %v8871_v26 }
 0x21b   : > { %v1879_v16 = vunpack.c.l.b16 %v1623_v21  ;;  %v2334_v19 = vsel %vm694_vm3, %v2332_v51, %v2333_v37  ;;  %v9237_v21 = vld [vmem:[#allocation2 + $0x78] sm:$0xff]  ;;  %v1391_v51 = vsel %vm549_vm2, %v9107_v43, %v1390_v57 }
 0x21c   : > { %v2481_v36 = vunpack.c.l.b16 %v2081_v45  ;;  %v2423_v2 = vpack.c.bf16 %v2334_v19, %v2334_v19  ;;  %v2680_v45 = vunpack.c.l.b16 %v2424_v63  ;;  %v2051_v19 = vld [vmem:[#allocation2 + $0x100] sm:$0x3]  ;;  %v575_v50 = vrot.slane %v9237_v21, 1 }
 0x21d   : > { %v1903_v61 = vpack.c.b16 %v1879_v16, %v9136_v6  ;;  %v2082_v6 = vpack.c.bf16 %v8873_v55, %v8873_v55  ;;  %v876_v16 = vunpack.c.l.b16 %v474_v49  ;;  %v9267_v49 = vld [vmem:[#allocation2 + $0xf8] sm:$0xff] }
 0x21e   : > { %v2679_v58 = vunpack.c.l.b16 %v2423_v2  ;;  %v2194_v63 = vrot.slane %v9267_v49, 1 }
 0x21f   : > { %v2720_v5 = vpop.permute.xlu1 %2719  ;;  %1926 = vrot.lane.b32.xlu1 %v1903_v61, %s7788_s13  ;;  %v2482_v55 = vunpack.c.l.b16 %v2082_v6  ;;  %v720_v61 = vrot.slane %v9237_v21, 2 }
 0x220   : > { %v2800_v47 = vsel %vm1191_vm4, %v2756_v17, %v2720_v5  ;;  %v438_v5 = vld [vmem:[#allocation2 + $0x88] sm:$0x3] }
 0x221   : > { %2895 = vrot.lane.b32.xlu0 %v2800_v47, %s7788_s13  ;;  %v875_v47 = vunpack.c.l.b16 %v473_v8  ;;  %v1004_v18 = vpop.permute.xlu2 %1003  ;;  %v9248_v38 = vpack.c.b16 %v2482_v55, %v2481_v36  ;;  %v723_v62 = vrot.slane %v438_v5, 2  ;;  %v9265_v8 = vld [vmem:[#allocation2 + $0xf0] sm:$0xff]  ;;  %v2083_v55 = vpack.c.bf16 %v8962_v46, %v8962_v46 }
 0x222   : > { %v9210_v27 = vpop.f32.mrf.mxu1  ;;  %v2193_v2 = vrot.slane %v9265_v8, 1 }
 0x223   : > { %v905_v12 = vpack.c.b16 %v876_v16, %v875_v47  ;;  %v2084_v16 = vpack.c.bf16 %v8964_v20, %v8964_v20 }
 0x227   : > { %v1114_v33 = vpop.permute.xlu1 %1113 }
 0x228   : > { %v1195_v26 = vsel %vm1191_vm4, %v1148_v13, %v1114_v33 }
 0x229   : > { %1812 = vrot.lane.b32.xlu0 %v1790_v34, %s7787_s29  ;;  %v721_v34 = vrot.slane %v9239_v29, 2  ;;  %v2846_v47 = vpop.permute.xlu2 %2845 }
 0x22a   : > { %v9218_v54 = vpop.f32.mrf.mxu1 }
 0x22b   : > { %v722_v6 = vsel %vm694_vm3, %v720_v61, %v721_v34  ;;  %v724_v0 = vsel %vm694_vm3, %v721_v34, %v723_v62  ;;  %v2196_v61 = vrot.slane %v2051_v19, 1 }
 0x22c   : > { %v817_v43 = vpack.c.bf16 %v722_v6, %v722_v6  ;;  %v818_v36 = vpack.c.bf16 %v724_v0, %v724_v0 }
 0x22e   : > { %v1073_v34 = vunpack.c.l.b16 %v817_v43 }
 0x22f   : > { %v2610_v15 = vpop.permute.xlu1 %2609 }
 0x230   : > { %v2759_v10 = vsel %vm246_vm0, %v9248_v38, %v2610_v15  ;;  %v1151_v15 = vsel %vm246_vm0, %v905_v12, %v1004_v18 }
 0x231   : > { %v2844_v7 = vpop.permute.xlu0 %2843  ;;  %1007 = vrot.lane.b32.xlu0 %v987_v41, %s7787_s29  ;;  %v1479_v41 = vpack.c.bf16 %v1391_v51, %v1391_v51  ;;  %v2337_v51 = vrot.slane %v9265_v8, 2 }
 0x232   : > { %v2974_v59 = vsel %vm1191_vm4, %v2844_v7, %v9152_v25  ;;  %v2926_v52 = vsel %vm2921_vm5, %v1195_v26, %v2844_v7  ;;  %v9244_v17 = vpop.f32.mrf.mxu1  ;;  %v1958_v25 = vsel %vm246_vm0, %v9196_v22, %v1809_v31  ;;  %v2704_v7 = vpack.c.b16 %v2680_v45, %v2679_v58 }
 0x233   : > { %3300 = vmatmul.bf16.gmra.mxu1 %v2974_v59  ;;  %3211 = vmatmul.bf16.gmra.mxu0 %v2926_v52  ;;  %v1767_v26 = vunpack.c.l.b16 %v1479_v41  ;;  %v576_v59 = vrot.slane %v9239_v29, 1  ;;  %v578_v52 = vrot.slane %v438_v5, 1  ;;  %v1074_v5 = vunpack.c.l.b16 %v818_v36 }
 0x234   : > { %v2483_v58 = vunpack.c.l.b16 %v2083_v55  ;;  %v2484_v41 = vunpack.c.l.b16 %v2084_v16 }
 0x235   : > { %v577_v46 = vsel %vm549_vm2, %v575_v50, %v576_v59  ;;  %v579_v62 = vsel %vm549_vm2, %v576_v59, %v578_v52  ;;  %v2724_v59 = vpop.permute.xlu2 %2723 }
 0x236   : > { %v673_v20 = vpack.c.bf16 %v579_v62, %v579_v62  ;;  %v9295_v55 = vpack.c.b16 %v2484_v41, %v2483_v58 }
 0x237   : > { %v1921_v33 = vpop.permute.xlu1 %1920 }
 0x238   : > { %v2001_v37 = vsel %vm1191_vm4, %v1958_v25, %v1921_v33  ;;  %v1791_v25 = vpack.c.b16 %v1767_v26, %v9124_v44  ;;  %v672_v33 = vpack.c.bf16 %v577_v46, %v577_v46  ;;  %v2340_v44 = vrot.slane %v2051_v19, 2 }
 0x239   : > { %v2722_v13 = vpop.permute.xlu0 %2721  ;;  %2849 = vrot.lane.b32.xlu0 %v2001_v37, %s7789_s15  ;;  %v2338_v37 = vrot.slane %v9267_v49, 2  ;;  %v962_v43 = vunpack.c.l.b16 %v673_v20  ;;  %v1100_v26 = vpack.c.b16 %v1074_v5, %v1073_v34  ;;  %v9305_v5 = vld [vmem:[#allocation2 + $0x90] sm:$0xff] }
 0x23a   : > { %v2802_v22 = vsel %vm1191_vm4, %v2759_v10, %v2722_v13  ;;  %v9262_v31 = vpop.f32.mrf.mxu1  ;;  %v2195_v10 = vsel %vm549_vm2, %v2193_v2, %v2194_v63  ;;  %v2197_v13 = vsel %vm549_vm2, %v2194_v63, %v2196_v61 }
 0x23b   : > { %11980 = vst [vmem:[#allocation10_spill] sm:$0xff] %v9262_v31  ;;  %2897 = vrot.lane.b32.xlu2 %v2802_v22, %s7788_s13  ;;  %v961_v22 = vunpack.c.l.b16 %v672_v33  ;;  %v2282_v19 = vpack.c.bf16 %v2197_v13, %v2197_v13  ;;  %v2341_v36 = vsel %vm694_vm3, %v2338_v37, %v2340_v44  ;;  %v9309_v33 = vld [vmem:[#allocation2 + $0xa0] sm:$0x3] }
 0x23c   : > { %v2426_v16 = vpack.c.bf16 %v2341_v36, %v2341_v36 }
 0x23d   : > { %v988_v50 = vpack.c.b16 %v962_v43, %v961_v22  ;;  %v2570_v63 = vunpack.c.l.b16 %v2282_v19  ;;  %v9326_v19 = vld [vmem:[#allocation2 + $0x110] sm:$0xff] }
 0x23e   : > { %v2682_v46 = vunpack.c.l.b16 %v2426_v16 }
 0x23f   : > { %v2894_v18 = vpop.permute.xlu1 %2893 }
 0x240   : > { %7469 = vmatmul.msk.bf16.gmra.mxu2 %vm246_vm0, %v2894_v18  ;;  %v2977_v57 = vsel %vm1191_vm4, %v2846_v47, %v2894_v18 }
 0x241   : > { %v1116_v12 = vpop.permute.xlu0 %1115  ;;  %2727 = vrot.lane.b32.xlu0 %v2704_v7, %s7788_s13  ;;  %v2281_v7 = vpack.c.bf16 %v2195_v10, %v2195_v10 }
 0x242   : > { %v1197_v45 = vsel %vm1191_vm4, %v1151_v15, %v1116_v12  ;;  %v9287_v6 = vpop.f32.mrf.mxu1  ;;  %v2339_v15 = vsel %vm694_vm3, %v2337_v51, %v2338_v37  ;;  %v725_v12 = vrot.slane %v9305_v5, 2  ;;  %v728_v51 = vrot.slane %v9309_v33, 2 }
 0x243   : > { %11981 = vst [vmem:[#allocation11_spill] sm:$0xff] %v9287_v6  ;;  %v2929_v0 = vsel %vm2921_vm5, %v1197_v45, %v2846_v47  ;;  %3305 = vmatmul.bf16.gmra.mxu1 %v2977_v57  ;;  %1814 = vrot.lane.b32.xlu2 %v1791_v25, %s7787_s29  ;;  %v2425_v52 = vpack.c.bf16 %v2339_v15, %v2339_v15  ;;  %v2569_v2 = vunpack.c.l.b16 %v2281_v7  ;;  %v9307_v57 = vld [vmem:[#allocation2 + $0x98] sm:$0xff]  ;;  %v9324_v7 = vld [vmem:[#allocation2 + $0x108] sm:$0xff] }
 0x244   : > { %3216 = vmatmul.bf16.gmra.mxu0 %v2929_v0  ;;  %v726_v58 = vrot.slane %v9307_v57, 2  ;;  %v2054_v15 = vld [vmem:[#allocation2 + $0x118] sm:$0x3] }
 0x245   : > { %v2681_v25 = vunpack.c.l.b16 %v2425_v52  ;;  %v2593_v62 = vpack.c.b16 %v2570_v63, %v2569_v2  ;;  %v2201_v52 = vrot.slane %v2054_v15, 1 }
 0x246   : > { %v727_v45 = vsel %vm694_vm3, %v725_v12, %v726_v58  ;;  %v729_v10 = vsel %vm694_vm3, %v726_v58, %v728_v51 }
 0x247   : > { %v1811_v20 = vpop.permute.xlu1 %1810  ;;  %v2705_v44 = vpack.c.b16 %v2682_v46, %v2681_v25  ;;  %v819_v13 = vpack.c.bf16 %v727_v45, %v727_v45  ;;  %v820_v43 = vpack.c.bf16 %v729_v10, %v729_v10  ;;  %v475_v46 = vpack.c.bf16 %v9005_v53, %v9005_v53  ;;  %v1118_v45 = vpop.permute.xlu2 %1117 }
 0x248   : > { %v1961_v37 = vsel %vm246_vm0, %v9248_v38, %v1811_v20  ;;  %v2086_v10 = vpack.c.bf16 %v9094_v48, %v9094_v48  ;;  %v581_v48 = vrot.slane %v9307_v57, 1 }
 0x249   : > { %v2612_v47 = vpop.permute.xlu0 %2611  ;;  %1121 = vrot.lane.b32.xlu0 %v1100_v26, %s7788_s13  ;;  %v1075_v26 = vunpack.c.l.b16 %v819_v13  ;;  %v1076_v38 = vunpack.c.l.b16 %v820_v43  ;;  %v877_v12 = vunpack.c.l.b16 %v475_v46  ;;  %v2342_v43 = vrot.slane %v9324_v7, 2 }
 0x24a   : > { %v2762_v61 = vsel %vm246_vm0, %v9295_v55, %v2612_v47  ;;  %v9300_v18 = vpop.f32.mrf.mxu1 }
 0x24b   : > { %11982 = vst [vmem:[#allocation12_spill] sm:$0xff] %v9300_v18  ;;  %v2804_v34 = vsel %vm1191_vm4, %v2762_v61, %v2724_v59  ;;  %1009 = vrot.lane.b32.xlu2 %v988_v50, %s7787_s29  ;;  %v1101_v36 = vpack.c.b16 %v1076_v38, %v1075_v26  ;;  %v2198_v50 = vrot.slane %v9324_v7, 1  ;;  %v2199_v59 = vrot.slane %v9326_v19, 1 }
 0x24c   : > { %2899 = vrot.lane.b32.xlu1 %v2804_v34, %s7788_s13  ;;  %v2343_v26 = vrot.slane %v9326_v19, 2  ;;  %v2345_v38 = vrot.slane %v2054_v15, 2 }
 0x24d   : > { %v2200_v16 = vsel %vm549_vm2, %v2198_v50, %v2199_v59  ;;  %v2202_v47 = vsel %vm549_vm2, %v2199_v59, %v2201_v52  ;;  %v583_v52 = vrot.slane %v9309_v33, 1 }
 0x24e   : > { %v2283_v2 = vpack.c.bf16 %v2200_v16, %v2200_v16  ;;  %v2284_v63 = vpack.c.bf16 %v2202_v47, %v2202_v47 }
 0x24f   : > { %v1006_v51 = vpop.permute.xlu1 %1005  ;;  %v2614_v47 = vpop.permute.xlu2 %2613 }
 0x250   : > { %v2571_v61 = vunpack.c.l.b16 %v2283_v2  ;;  %v2572_v25 = vunpack.c.l.b16 %v2284_v63  ;;  %v2344_v2 = vsel %vm694_vm3, %v2342_v43, %v2343_v26  ;;  %v2346_v63 = vsel %vm694_vm3, %v2343_v26, %v2345_v38  ;;  %v9374_v43 = vld [vmem:[#allocation2 + $0xb0] sm:$0xff]  ;;  %v444_v26 = vld [vmem:[#allocation2 + $0xb8] sm:$0x3] }
 0x251   : > { %2617 = vrot.lane.b32.xlu0 %v2593_v62, %s7787_s29  ;;  %v1923_v41 = vpop.permute.xlu0 %1922  ;;  %v476_v62 = vpack.c.bf16 %v9007_v35, %v9007_v35  ;;  %v2486_v35 = vunpack.c.l.b16 %v2086_v10 }
 0x252   : > { %v9319_v0 = vpop.f32.mrf.mxu1  ;;  %v2003_v22 = vsel %vm1191_vm4, %v1961_v37, %v1923_v41  ;;  %v2594_v20 = vpack.c.b16 %v2572_v25, %v2571_v61  ;;  %v2085_v41 = vpack.c.bf16 %v9092_v30, %v9092_v30  ;;  %v580_v30 = vrot.slane %v9305_v5, 1 }
 0x253   : > { %11983 = vst [vmem:[#allocation13_spill] sm:$0xff] %v9319_v0  ;;  %2851 = vrot.lane.b32.xlu2 %v2003_v22, %s7789_s15  ;;  %v878_v58 = vunpack.c.l.b16 %v476_v62  ;;  %v584_v61 = vsel %vm549_vm2, %v581_v48, %v583_v52 }
 0x254   : > { %2729 = vrot.lane.b32.xlu1 %v2705_v44, %s7788_s13  ;;  %v2485_v13 = vunpack.c.l.b16 %v2085_v41  ;;  %v582_v15 = vsel %vm549_vm2, %v580_v30, %v581_v48  ;;  %v675_v46 = vpack.c.bf16 %v584_v61, %v584_v61  ;;  %v733_v30 = vrot.slane %v444_v26, 2 }
 0x255   : > { %v906_v37 = vpack.c.b16 %v878_v58, %v877_v12  ;;  %v674_v25 = vpack.c.bf16 %v582_v15, %v582_v15  ;;  %v2428_v12 = vpack.c.bf16 %v2346_v63, %v2346_v63 }
 0x256   : > { %v9350_v50 = vpack.c.b16 %v2486_v35, %v2485_v13  ;;  %v964_v58 = vunpack.c.l.b16 %v675_v46 }
 0x257   : > { %v1154_v53 = vsel %vm246_vm0, %v906_v37, %v1006_v51  ;;  %v963_v33 = vunpack.c.l.b16 %v674_v25  ;;  %v2684_v10 = vunpack.c.l.b16 %v2428_v12  ;;  %v1925_v12 = vpop.permute.xlu2 %1924 }
 0x258   : > { %v1199_v22 = vsel %vm1191_vm4, %v1154_v53, %v1118_v45  ;;  %v2765_v62 = vsel %vm246_vm0, %v9350_v50, %v2614_v47 }
 0x259   : > { %1123 = vrot.lane.b32.xlu0 %v1101_v36, %s7788_s13  ;;  %v989_v37 = vpack.c.b16 %v964_v58, %v963_v33 }
 0x25a   : > { %v9333_v34 = vpop.f32.mrf.mxu1 }
 0x25b   : > { %11984 = vst [vmem:[#allocation14_spill] sm:$0xff] %v9333_v34  ;;  %1011 = vrot.lane.b32.xlu2 %v989_v37, %s7787_s29  ;;  %v9389_v37 = vld [vmem:[#allocation2 + $0x128] sm:$0xff] }
 0x261   : > { %2619 = vrot.lane.b32.xlu0 %v2594_v20, %s7787_s29  ;;  %v2427_v20 = vpack.c.bf16 %v2344_v2, %v2344_v2 }
 0x262   : > { %v9340_v44 = vpop.f32.mrf.mxu1 }
 0x263   : > { %11985 = vst [vmem:[#allocation15_spill] sm:$0xff] %v9340_v44  ;;  %v2683_v41 = vunpack.c.l.b16 %v2427_v20  ;;  %v588_v20 = vrot.slane %v444_v26, 1  ;;  %v477_v44 = vpack.c.bf16 %v9146_v1, %v9146_v1 }
 0x265   : > { %v2706_v13 = vpack.c.b16 %v2684_v10, %v2683_v41  ;;  %v9396_v41 = vld [vmem:[%s11969_s2] ss:$0 sm:$0xff] }
 0x26a   : > { %v9356_v16 = vpop.f32.mrf.mxu1 }
 0x26b   : > { %11986 = vst [vmem:[#allocation16_spill] sm:$0xff] %v9356_v16 }
 0x26e   : > { %v2848_v36 = vpop.permute.xlu1 %2847 }
 0x26f   : > { %v2932_v59 = vsel %vm2921_vm5, %v1199_v22, %v2848_v36  ;;  %v9372_v22 = vld [vmem:[#allocation2 + $0xa8] sm:$0xff] }
 0x270   : > { %3221 = vmatmul.bf16.gmra.mxu0 %v2932_v59  ;;  %v730_v38 = vrot.slane %v9372_v22, 2  ;;  %v731_v59 = vrot.slane %v9374_v43, 2  ;;  %v585_v46 = vrot.slane %v9372_v22, 1 }
 0x272   : > { %v9367_v53 = vpop.f32.mrf.mxu1  ;;  %v732_v48 = vsel %vm694_vm3, %v730_v38, %v731_v59  ;;  %v734_v52 = vsel %vm694_vm3, %v731_v59, %v733_v30 }
 0x273   : > { %11987 = vst [vmem:[#allocation17_spill] sm:$0xff] %v9367_v53  ;;  %v821_v47 = vpack.c.bf16 %v732_v48, %v732_v48  ;;  %v822_v2 = vpack.c.bf16 %v734_v52, %v734_v52 }
 0x275   : > { %v1077_v63 = vunpack.c.l.b16 %v821_v47  ;;  %v1078_v15 = vunpack.c.l.b16 %v822_v2 }
 0x276   : > { %v2726_v51 = vpop.permute.xlu1 %2725 }
 0x277   : > { %v2806_v45 = vsel %vm1191_vm4, %v2765_v62, %v2726_v51  ;;  %v1102_v61 = vpack.c.b16 %v1078_v15, %v1077_v63  ;;  %v586_v62 = vrot.slane %v9374_v43, 1  ;;  %v9387_v51 = vld [vmem:[#allocation2 + $0x120] sm:$0xff]  ;;  %v3385_v63 = vpop.f32.mrf.mxu2 }
 0x278   : > { %2901 = vrot.lane.b32.xlu1 %v2806_v45, %s7788_s13  ;;  %v9391_v45 = vld [vmem:[#allocation2 + $0x130] sm:$0x3]  ;;  %v2203_v26 = vrot.slane %v9387_v51, 1 }
 0x279   : > { %1125 = vrot.lane.b32.xlu0 %v1102_v61, %s7788_s13  ;;  %v2206_v38 = vrot.slane %v9391_v45, 1  ;;  %v589_v48 = vsel %vm549_vm2, %v586_v62, %v588_v20  ;;  %v478_v20 = vpack.c.bf16 %v9148_v11, %v9148_v11 }
 0x27a   : > { %v9370_v35 = vpop.f32.mrf.mxu1 }
 0x27b   : > { %11988 = vst [vmem:[#allocation18_spill] sm:$0xff] %v9370_v35 }
 0x27e   : > { %v9398_v10 = vpop.permute.xlu1 %1119 }
 0x280   : > { %2731 = vrot.lane.b32.xlu1 %v2706_v13, %s7788_s13  ;;  %v587_v13 = vsel %vm549_vm2, %v585_v46, %v586_v62 }
 0x281   : > { %v676_v15 = vpack.c.bf16 %v587_v13, %v587_v13  ;;  %v9414_v13 = vld [vmem:[#allocation2 + $0x138] sm:$0xff] }
 0x282   : > { %v9380_v25 = vpop.f32.mrf.mxu1  ;;  %v2208_v11 = vrot.slane %v9414_v13, 1 }
 0x283   : > { %11989 = vst [vmem:[#allocation19_spill] sm:$0xff] %v9380_v25 }
 0x293   : > { %v2896_v33 = vpop.permute.xlu0 %2895 }
 0x294   : > { %7470 = vmatmul.msk.bf16.gmra.mxu2 %vm246_vm0, %v2896_v33  ;;  %v2980_v58 = vsel %vm1191_vm4, %v2848_v36, %v2896_v33  ;;  %v2204_v36 = vrot.slane %v9389_v37, 1 }
 0x295   : > { %3310 = vmatmul.bf16.gmra.mxu1 %v2980_v58  ;;  %v677_v58 = vpack.c.bf16 %v589_v48, %v589_v48 }
 0x296   : > { %v3296_v59 = vpop.f32.mrf.mxu1  ;;  %v3207_v30 = vpop.f32.mrf.mxu0  ;;  %v2205_v47 = vsel %vm549_vm2, %v2203_v26, %v2204_v36  ;;  %v2207_v2 = vsel %vm549_vm2, %v2204_v36, %v2206_v38  ;;  %v965_v26 = vunpack.c.l.b16 %v676_v15  ;;  %v9416_v38 = vld [vmem:[#allocation2 + $0x140] sm:$0xff]  ;;  %v2087_v15 = vpack.c.bf16 %v9168_v14, %v9168_v14 }
 0x297   : > { %v3208_v52 = vadd.f32 %v9396_v41, %v3207_v30  ;;  %v2285_v61 = vpack.c.bf16 %v2205_v47, %v2205_v47  ;;  %v2286_v46 = vpack.c.bf16 %v2207_v2, %v2207_v2  ;;  %v9420_v30 = vpop.permute.xlu2 %2897  ;;  %v879_v2 = vunpack.c.l.b16 %v477_v44  ;;  %v3387_v44 = vpop.f32.mrf.mxu2 }
 0x299   : > { %v3297_v33 = vadd.f32 %v3296_v59, %v3208_v52  ;;  %v2573_v25 = vunpack.c.l.b16 %v2285_v61  ;;  %v2574_v35 = vunpack.c.l.b16 %v2286_v46  ;;  %v9418_v59 = vld [vmem:[#allocation2 + $0x148] sm:$0x3]  ;;  %v966_v52 = vunpack.c.l.b16 %v677_v58  ;;  %v9432_v61 = vpop.permute.xlu1 %2615 }
 0x29b   : > { %v3386_v53 = vadd.f32 %v3385_v63, %v3297_v33  ;;  %v1813_v16 = vpop.permute.xlu0 %1812  ;;  %v2595_v36 = vpack.c.b16 %v2574_v35, %v2573_v25  ;;  %v2211_v35 = vrot.slane %v9418_v59, 1 }
 0x29c   : > { %v1964_v62 = vsel %vm246_vm0, %v9295_v55, %v1813_v16  ;;  %v2209_v16 = vrot.slane %v9416_v38, 1 }
 0x29d   : > { %vm3465_vm6 = vcmp.gt.f32.partialorder %v3386_v53, 0.0  ;;  %v3497_v48 = vmul.f32 0.1, %v3386_v53  ;;  %v2005_v1 = vsel %vm1191_vm4, %v1964_v62, %v1925_v12  ;;  %2621 = vrot.lane.b32.xlu0 %v2595_v36, %s7787_s29  ;;  %v880_v12 = vunpack.c.l.b16 %v478_v20 }
 0x29e   : > { %2853 = vrot.lane.b32.xlu2 %v2005_v1, %s7789_s15  ;;  %v3209_v55 = vpop.f32.mrf.mxu0  ;;  %v3298_v63 = vpop.f32.mrf.mxu1  ;;  %v2210_v46 = vsel %vm549_vm2, %v2208_v11, %v2209_v16  ;;  %v2212_v33 = vsel %vm549_vm2, %v2209_v16, %v2211_v35  ;;  %v990_v62 = vpack.c.b16 %v966_v52, %v965_v26  ;;  %v2348_v20 = vrot.slane %v9389_v37, 2  ;;  %v9443_v35 = vld [vmem:[#allocation2 + $0x150] sm:$0xff]  ;;  %v9447_v26 = vld [vmem:[#allocation2 + $0x160] sm:$0x3] }
 0x29f   : > { %v3529_v25 = vsel %vm3465_vm6, %v3386_v53, %v3497_v48  ;;  %v3210_v47 = vadd.f32 %v9396_v41, %v3209_v55  ;;  %v2088_v53 = vpack.c.bf16 %v9170_v56, %v9170_v56  ;;  %v2287_v36 = vpack.c.bf16 %v2210_v46, %v2210_v46  ;;  %v9445_v56 = vld [vmem:[#allocation2 + $0x158] sm:$0xff] }
 0x2a0   : > { %3562 = vst.msk [vmem:[#allocation3 + $0x19] sm:$0xff] %vm246_vm0, %v3529_v25  ;;  %v2347_v48 = vrot.slane %v9387_v51, 2  ;;  %v2350_v1 = vrot.slane %v9391_v45, 2  ;;  %v2288_v14 = vpack.c.bf16 %v2212_v33, %v2212_v33  ;;  %v907_v11 = vpack.c.b16 %v880_v12, %v879_v2  ;;  %v1815_v45 = vpop.permute.xlu2 %1814 }
 0x2a1   : > { %v3299_v58 = vadd.f32 %v3298_v63, %v3210_v47  ;;  %v2575_v34 = vunpack.c.l.b16 %v2287_v36  ;;  %v2487_v47 = vunpack.c.l.b16 %v2087_v15  ;;  %v2488_v63 = vunpack.c.l.b16 %v2088_v53 }
 0x2a2   : > { %v2576_v16 = vunpack.c.l.b16 %v2288_v14  ;;  %v2349_v46 = vsel %vm694_vm3, %v2347_v48, %v2348_v20  ;;  %v2351_v2 = vsel %vm694_vm3, %v2348_v20, %v2350_v1  ;;  %v2213_v33 = vrot.slane %v9443_v35, 1  ;;  %v1927_v14 = vpop.permute.xlu1 %1926 }
 0x2a3   : > { %v3388_v55 = vadd.f32 %v3387_v44, %v3299_v58  ;;  %v1008_v25 = vpop.permute.xlu0 %1007  ;;  %v2214_v36 = vrot.slane %v9445_v56, 1  ;;  %v2216_v44 = vrot.slane %v9447_v26, 1  ;;  %v1967_v53 = vsel %vm246_vm0, %v9350_v50, %v1815_v45 }
 0x2a4   : > { %7471 = vmatmul.msk.bf16.gmra.mxu2 %vm246_vm0, %v9420_v30  ;;  %v2596_v12 = vpack.c.b16 %v2576_v16, %v2575_v34  ;;  %v1157_v15 = vsel %vm246_vm0, %v907_v11, %v1008_v25  ;;  %v2430_v48 = vpack.c.bf16 %v2351_v2, %v2351_v2  ;;  %v2512_v1 = vpack.c.b16 %v2488_v63, %v2487_v47  ;;  %v9472_v2 = vld [vmem:[#allocation2 + $0x168] sm:$0xff] }
 0x2a5   : > { %vm3466_vm7 = vcmp.gt.f32.partialorder %v3388_v55, 0.0  ;;  %v3498_v52 = vmul.f32 0.1, %v3388_v55  ;;  %v2215_v34 = vsel %vm549_vm2, %v2213_v33, %v2214_v36  ;;  %v2217_v20 = vsel %vm549_vm2, %v2214_v36, %v2216_v44 }
 0x2a6   : > { %1013 = vrot.lane.b32.xlu2 %v990_v62, %s7787_s29  ;;  %2623 = vrot.lane.b32.xlu0 %v2596_v12, %s7787_s29  ;;  %v2429_v62 = vpack.c.bf16 %v2349_v46, %v2349_v46  ;;  %v2290_v16 = vpack.c.bf16 %v2217_v20, %v2217_v20  ;;  %v479_v25 = vpack.c.bf16 %v9237_v21, %v9237_v21  ;;  %v9474_v12 = vld [vmem:[#allocation2 + $0x170] sm:$0xff]  ;;  %v2352_v33 = vrot.slane %v9414_v13, 2 }
 0x2a7   : > { %v3530_v58 = vsel %vm3466_vm7, %v3388_v55, %v3498_v52  ;;  %v2289_v55 = vpack.c.bf16 %v2215_v34, %v2215_v34  ;;  %v1201_v52 = vsel %vm1191_vm4, %v1157_v15, %v9398_v10  ;;  %v480_v50 = vpack.c.bf16 %v9239_v29, %v9239_v29  ;;  %v9476_v10 = vld [vmem:[#allocation2 + $0x178] sm:$0x3] }
 0x2a8   : > { %3563 = vst.msk [vmem:[#allocation3 + $0x21] sm:$0xff] %vm246_vm0, %v3530_v58  ;;  %v2007_v11 = vsel %vm1191_vm4, %v1967_v53, %v1927_v14  ;;  %v2578_v46 = vunpack.c.l.b16 %v2290_v16  ;;  %v9478_v21 = vunpack.c.l.b16 %v2429_v62  ;;  %v9480_v29 = vunpack.c.l.b16 %v2430_v48  ;;  %v1010_v20 = vpop.permute.xlu2 %1009 }
 0x2a9   : > { %v2577_v63 = vunpack.c.l.b16 %v2289_v55  ;;  %v2218_v36 = vrot.slane %v9472_v2, 1  ;;  %v2219_v15 = vrot.slane %v9474_v12, 1  ;;  %v2221_v53 = vrot.slane %v9476_v10, 1 }
 0x2aa   : > { %v881_v34 = vunpack.c.l.b16 %v479_v25  ;;  %v2089_v62 = vpack.c.bf16 %v9265_v8, %v9265_v8  ;;  %v882_v55 = vunpack.c.l.b16 %v480_v50  ;;  %v2355_v16 = vrot.slane %v9418_v59, 2 }
 0x2ab   : > { %v2850_v58 = vpop.permute.xlu0 %2849  ;;  %v2597_v44 = vpack.c.b16 %v2578_v46, %v2577_v63  ;;  %v2707_v8 = vpack.c.b16 %v9480_v29, %v9478_v21  ;;  %v9510_v21 = vld [vmem:[#allocation2 + $0x190] sm:$0x3] }
 0x2ac   : > { %v2935_v45 = vsel %vm2921_vm5, %v1201_v52, %v2850_v58  ;;  %v2983_v47 = vsel %vm1191_vm4, %v2850_v58, %v9420_v30  ;;  %v2353_v30 = vrot.slane %v9416_v38, 2  ;;  %v2220_v52 = vsel %vm549_vm2, %v2218_v36, %v2219_v15 }
 0x2ad   : > { %3226 = vmatmul.bf16.gmra.mxu0 %v2935_v45  ;;  %3315 = vmatmul.bf16.gmra.mxu1 %v2983_v47  ;;  %v2222_v58 = vsel %vm549_vm2, %v2219_v15, %v2221_v53  ;;  %v2768_v45 = vsel %vm246_vm0, %v2512_v1, %v9432_v61  ;;  %v2291_v47 = vpack.c.bf16 %v2220_v52, %v2220_v52  ;;  %v9503_v61 = vunpack.c.l.b16 %v2089_v62  ;;  %v9508_v52 = vld [vmem:[#allocation2 + $0x188] sm:$0xff] }
 0x2ae   : > { %2855 = vrot.lane.b32.xlu2 %v2007_v11, %s7789_s15  ;;  %2625 = vrot.lane.b32.xlu0 %v2597_v44, %s7787_s29  ;;  %v3390_v11 = vpop.f32.mrf.mxu2  ;;  %v2292_v63 = vpack.c.bf16 %v2222_v58, %v2222_v58  ;;  %v2354_v50 = vsel %vm694_vm3, %v2352_v33, %v2353_v30  ;;  %v2090_v36 = vpack.c.bf16 %v9267_v49, %v9267_v49  ;;  %v2357_v58 = vrot.slane %v9443_v35, 2 }
 0x2af   : > { %v2579_v44 = vunpack.c.l.b16 %v2291_v47  ;;  %v908_v0 = vpack.c.b16 %v882_v55, %v881_v34  ;;  %v2356_v1 = vsel %vm694_vm3, %v2353_v30, %v2355_v16  ;;  %v2431_v33 = vpack.c.bf16 %v2354_v50, %v2354_v50 }
 0x2b0   : > { %v3212_v48 = vpop.f32.mrf.mxu0  ;;  %v3301_v14 = vpop.f32.mrf.mxu1  ;;  %v2580_v15 = vunpack.c.l.b16 %v2292_v63  ;;  %v2358_v34 = vrot.slane %v9445_v56, 2  ;;  %v2224_v62 = vrot.slane %v9508_v52, 1  ;;  %v2226_v30 = vrot.slane %v9510_v21, 1 }
 0x2b1   : > { %v3213_v25 = vadd.f32 %v9396_v41, %v3212_v48  ;;  %v9506_v48 = vld [vmem:[#allocation2 + $0x180] sm:$0xff]  ;;  %v9518_v16 = vunpack.c.l.b16 %v2090_v36  ;;  %v1160_v47 = vsel %vm246_vm0, %v908_v0, %v1010_v20  ;;  %v2360_v63 = vrot.slane %v9447_v26, 2 }
 0x2b2   : > { %v2598_v49 = vpack.c.b16 %v2580_v15, %v2579_v44  ;;  %v2687_v36 = vunpack.c.l.b16 %v2431_v33  ;;  %v2359_v18 = vsel %vm694_vm3, %v2357_v58, %v2358_v34 }
 0x2b3   : > { %v3302_v59 = vadd.f32 %v3301_v14, %v3213_v25  ;;  %v2728_v46 = vpop.permute.xlu0 %2727  ;;  %v2223_v14 = vrot.slane %v9506_v48, 1 }
 0x2b4   : > { %v2808_v53 = vsel %vm1191_vm4, %v2768_v45, %v2728_v46  ;;  %v2432_v45 = vpack.c.bf16 %v2356_v1, %v2356_v1  ;;  %v2852_v1 = vpop.permute.xlu2 %2851 }
 0x2b5   : > { %v3391_v29 = vadd.f32 %v3390_v11, %v3302_v59  ;;  %2903 = vrot.lane.b32.xlu1 %v2808_v53, %s7788_s13  ;;  %v2225_v50 = vsel %vm549_vm2, %v2223_v14, %v2224_v62  ;;  %v2227_v59 = vsel %vm549_vm2, %v2224_v62, %v2226_v30  ;;  %v2513_v14 = vpack.c.b16 %v9518_v16, %v9503_v61  ;;  %v9531_v62 = vld [vmem:[#allocation2 + $0x198] sm:$0xff]  ;;  %v9533_v30 = vld [vmem:[#allocation2 + $0x1a0] sm:$0xff] }
 0x2b6   : > { %2627 = vrot.lane.b32.xlu0 %v2598_v49, %s7787_s29  ;;  %v2293_v15 = vpack.c.bf16 %v2225_v50, %v2225_v50  ;;  %v2294_v53 = vpack.c.bf16 %v2227_v59, %v2227_v59  ;;  %v3392_v0 = vpop.f32.mrf.mxu2  ;;  %v2688_v6 = vunpack.c.l.b16 %v2432_v45  ;;  %v2361_v45 = vsel %vm694_vm3, %v2358_v34, %v2360_v63 }
 0x2b7   : > { %vm3467_vm8 = vcmp.gt.f32.partialorder %v3391_v29, 0.0  ;;  %v3499_v55 = vmul.f32 0.1, %v3391_v29  ;;  %v2433_v50 = vpack.c.bf16 %v2359_v18, %v2359_v18  ;;  %v2228_v61 = vrot.slane %v9531_v62, 1 }
 0x2b8   : > { %v3303_v11 = vpop.f32.mrf.mxu1  ;;  %v3214_v25 = vpop.f32.mrf.mxu0  ;;  %v2581_v49 = vunpack.c.l.b16 %v2293_v15  ;;  %v2582_v31 = vunpack.c.l.b16 %v2294_v53  ;;  %v2229_v16 = vrot.slane %v9533_v30, 1  ;;  %v2434_v34 = vpack.c.bf16 %v2361_v45, %v2361_v45 }
 0x2b9   : > { %v3531_v46 = vsel %vm3467_vm8, %v3391_v29, %v3499_v55  ;;  %v3215_v44 = vadd.f32 %v9396_v41, %v3214_v25  ;;  %v9535_v55 = vld [vmem:[#allocation2 + $0x1a8] sm:$0x3] }
 0x2ba   : > { %3564 = vst.msk [vmem:[#allocation3 + $0x31] sm:$0xff] %vm246_vm0, %v3531_v46  ;;  %v2708_v46 = vpack.c.b16 %v2688_v6, %v2687_v36  ;;  %v2230_v18 = vsel %vm549_vm2, %v2228_v61, %v2229_v16 }
 0x2bb   : > { %v3304_v20 = vadd.f32 %v3303_v11, %v3215_v44  ;;  %v1122_v26 = vpop.permute.xlu0 %1121  ;;  %v2599_v11 = vpack.c.b16 %v2582_v31, %v2581_v49  ;;  %v2362_v31 = vrot.slane %v9472_v2, 2  ;;  %v2295_v6 = vpack.c.bf16 %v2230_v18, %v2230_v18 }
 0x2bc   : > { %v1203_v29 = vsel %vm1191_vm4, %v1160_v47, %v1122_v26  ;;  %v2231_v47 = vrot.slane %v9535_v55, 1 }
 0x2bd   : > { %v3393_v33 = vadd.f32 %v3392_v0, %v3304_v20  ;;  %2733 = vrot.lane.b32.xlu1 %v2707_v8, %s7788_s13  ;;  %v2938_v58 = vsel %vm2921_vm5, %v1203_v29, %v2852_v1  ;;  %v2363_v0 = vrot.slane %v9474_v12, 2  ;;  %v2365_v20 = vrot.slane %v9476_v10, 2 }
 0x2be   : > { %v2900_v25 = vpop.permute.xlu1 %2899  ;;  %3231 = vmatmul.bf16.gmra.mxu0 %v2938_v58  ;;  %2629 = vrot.lane.b32.xlu0 %v2599_v11, %s7787_s29  ;;  %v2232_v63 = vsel %vm549_vm2, %v2229_v16, %v2231_v47  ;;  %v2583_v29 = vunpack.c.l.b16 %v2295_v6 }
 0x2bf   : > { %vm3468_vm9 = vcmp.gt.f32.partialorder %v3393_v33, 0.0  ;;  %v3500_v59 = vmul.f32 0.1, %v3393_v33  ;;  %7472 = vmatmul.msk.bf16.gmra.mxu2 %vm246_vm0, %v2900_v25  ;;  %v2986_v8 = vsel %vm1191_vm4, %v2852_v1, %v2900_v25  ;;  %v2296_v36 = vpack.c.bf16 %v2232_v63, %v2232_v63 }
 0x2c0   : > { %v3306_v44 = vpop.f32.mrf.mxu1  ;;  %3320 = vmatmul.bf16.gmra.mxu1 %v2986_v8  ;;  %v2689_v25 = vunpack.c.l.b16 %v2433_v50  ;;  %v2364_v61 = vsel %vm694_vm3, %v2362_v31, %v2363_v0  ;;  %v2366_v8 = vsel %vm694_vm3, %v2363_v0, %v2365_v20  ;;  %v2368_v31 = vrot.slane %v9508_v52, 2 }
 0x2c1   : > { %v3532_v15 = vsel %vm3468_vm9, %v3393_v33, %v3500_v59  ;;  %v3217_v53 = vpop.f32.mrf.mxu0  ;;  %v2584_v58 = vunpack.c.l.b16 %v2296_v36  ;;  %v2690_v33 = vunpack.c.l.b16 %v2434_v34  ;;  %v2367_v34 = vrot.slane %v9506_v48, 2 }
 0x2c2   : > { %3565 = vst.msk [vmem:[#allocation3 + $0x39] sm:$0xff] %vm246_vm0, %v3532_v15  ;;  %v3218_v1 = vadd.f32 %v9396_v41, %v3217_v53  ;;  %v2370_v15 = vrot.slane %v9510_v21, 2 }
 0x2c3   : > { %v2618_v26 = vpop.permute.xlu0 %2617  ;;  %v3395_v49 = vpop.f32.mrf.mxu2  ;;  %v2600_v16 = vpack.c.b16 %v2584_v58, %v2583_v29  ;;  %v2709_v63 = vpack.c.b16 %v2690_v33, %v2689_v25  ;;  %v2372_v25 = vrot.slane %v9531_v62, 2  ;;  %v2373_v33 = vrot.slane %v9533_v30, 2 }
 0x2c4   : > { %v2771_v45 = vsel %vm246_vm0, %v2513_v14, %v2618_v26  ;;  %v3307_v11 = vadd.f32 %v3306_v44, %v3218_v1  ;;  %v2435_v14 = vpack.c.bf16 %v2364_v61, %v2364_v61  ;;  %v2369_v26 = vsel %vm694_vm3, %v2367_v34, %v2368_v31 }
 0x2c5   : > { %2735 = vrot.lane.b32.xlu1 %v2708_v46, %s7788_s13  ;;  %v2436_v46 = vpack.c.bf16 %v2366_v8, %v2366_v8  ;;  %v2375_v61 = vrot.slane %v9535_v55, 2  ;;  %v9575_v8 = vld [vmem:[#allocation3 + $0x30] sm:$0xff]  ;;  %v2374_v55 = vsel %vm694_vm3, %v2372_v25, %v2373_v33  ;;  %v481_v25 = vpack.c.bf16 %v9305_v5, %v9305_v5 }
 0x2c6   : > { %v2730_v47 = vpop.permute.xlu1 %2729  ;;  %v3396_v59 = vadd.f32 %v3395_v49, %v3307_v11  ;;  %2631 = vrot.lane.b32.xlu0 %v2600_v16, %s7787_s29  ;;  %v2691_v1 = vunpack.c.l.b16 %v2435_v14  ;;  %v2371_v49 = vsel %vm694_vm3, %v2368_v31, %v2370_v15  ;;  %v9571_v16 = vld [vmem:[#allocation3 + $0x18] sm:$0xff]  ;;  %v2439_v15 = vpack.c.bf16 %v2374_v55, %v2374_v55 }
 0x2c7   : > { %v2810_v10 = vsel %vm1191_vm4, %v2771_v45, %v2730_v47  ;;  %v2692_v20 = vunpack.c.l.b16 %v2436_v46  ;;  %v2437_v45 = vpack.c.bf16 %v2369_v26, %v2369_v26  ;;  %v2438_v21 = vpack.c.bf16 %v2371_v49, %v2371_v49 }
 0x2c8   : > { %2905 = vrot.lane.b32.xlu2 %v2810_v10, %s7788_s13  ;;  %vm3469_vm10 = vcmp.gt.f32.partialorder %v3396_v59, 0.0  ;;  %v3501_v18 = vmul.f32 0.1, %v3396_v59  ;;  %v3308_v44 = vpop.f32.mrf.mxu1  ;;  %v3644_v14 = vpack.c.bf16 %v9571_v16, %v9571_v16  ;;  %v2695_v49 = vunpack.c.l.b16 %v2439_v15 }
 0x2c9   : > { %v3219_v50 = vpop.f32.mrf.mxu0  ;;  %v2710_v11 = vpack.c.b16 %v2692_v20, %v2691_v1  ;;  %v9578_v10 = vld [vmem:[#allocation3 + $0x38] sm:$0xff] }
 0x2ca   : > { %v3533_v53 = vsel %vm3469_vm10, %v3396_v59, %v3501_v18  ;;  %v3220_v0 = vadd.f32 %v9396_v41, %v3219_v50  ;;  %v9573_v59 = vld [vmem:[#allocation3 + $0x20] sm:$0xff]  ;;  %v2693_v18 = vunpack.c.l.b16 %v2437_v45  ;;  %v2376_v50 = vsel %vm694_vm3, %v2373_v33, %v2375_v61 }
 0x2cb   : > { %3566 = vst.msk [vmem:[#allocation3 + $0x49] sm:$0xff] %vm246_vm0, %v3533_v53  ;;  %v3397_v6 = vpop.f32.mrf.mxu2  ;;  %v3645_v46 = vpack.c.bf16 %v9573_v59, %v9573_v59  ;;  %v5244_v34 = vpack.c.bf16 %v9578_v10, %v9578_v10  ;;  %v2440_v53 = vpack.c.bf16 %v2376_v50, %v2376_v50  ;;  %v4044_v1 = vunpack.c.l.b16 %v3644_v14  ;;  %v1124_v45 = vpop.permute.xlu0 %1123 }
 0x2cc   : > { %v3309_v36 = vadd.f32 %v3308_v44, %v3220_v0  ;;  %v5243_v44 = vpack.c.bf16 %v9575_v8, %v9575_v8  ;;  %v482_v33 = vpack.c.bf16 %v9307_v57, %v9307_v57 }
 0x2cd   : > { %2737 = vrot.lane.b32.xlu1 %v2709_v63, %s7788_s13  ;;  %v2694_v63 = vunpack.c.l.b16 %v2438_v21  ;;  %v2091_v21 = vpack.c.bf16 %v9324_v7, %v9324_v7 }
 0x2ce   : > { %v3398_v29 = vadd.f32 %v3397_v6, %v3309_v36  ;;  %v5643_v0 = vunpack.c.l.b16 %v5243_v44  ;;  %v5644_v6 = vunpack.c.l.b16 %v5244_v34  ;;  %v4045_v36 = vunpack.c.l.b16 %v3645_v46  ;;  %v1012_v44 = vpop.permute.xlu2 %1011 }
 0x2cf   : > { %v2711_v31 = vpack.c.b16 %v2694_v63, %v2693_v18  ;;  %v2491_v61 = vunpack.c.l.b16 %v2091_v21  ;;  %v883_v63 = vunpack.c.l.b16 %v481_v25  ;;  %v884_v14 = vunpack.c.l.b16 %v482_v33 }
 0x2d0   : > { %vm3470_vm11 = vcmp.gt.f32.partialorder %v3398_v29, 0.0  ;;  %v3502_v58 = vmul.f32 0.1, %v3398_v29  ;;  %v9591_v20 = vpack.c.b16 %v5644_v6, %v5643_v0  ;;  %v9593_v26 = vpack.c.b16 %v4045_v36, %v4044_v1 }
 0x2d1   : > { %v909_v46 = vpack.c.b16 %v884_v14, %v883_v63 }
 0x2d2   : > { %v3534_v47 = vsel %vm3470_vm11, %v3398_v29, %v3502_v58  ;;  %v2696_v29 = vunpack.c.l.b16 %v2440_v53  ;;  %v9606_v50 = vld [vmem:[#allocation3 + $0x48] sm:$0xff] }
 0x2d3   : > { %3567 = vst.msk [vmem:[#allocation3 + $0x51] sm:$0xff] %vm246_vm0, %v3534_v47  ;;  %v2620_v7 = vpop.permute.xlu0 %2619  ;;  %v3648_v57 = vpack.c.bf16 %v9606_v50, %v9606_v50  ;;  %v1163_v0 = vsel %vm246_vm0, %v909_v46, %v1012_v44 }
 0x2d4   : > { %v2712_v58 = vpack.c.b16 %v2696_v29, %v2695_v49  ;;  %v1205_v1 = vsel %vm1191_vm4, %v1163_v0, %v1124_v45  ;;  %v483_v49 = vpack.c.bf16 %v9372_v22, %v9372_v22  ;;  %v484_v29 = vpack.c.bf16 %v9374_v43, %v9374_v43 }
 0x2d5   : > { %2739 = vrot.lane.b32.xlu1 %v2710_v11, %s7788_s13  ;;  %v2092_v11 = vpack.c.bf16 %v9326_v19, %v9326_v19  ;;  %v4048_v15 = vunpack.c.l.b16 %v3648_v57 }
 0x2d6   : > { %v885_v25 = vunpack.c.l.b16 %v483_v49  ;;  %v886_v33 = vunpack.c.l.b16 %v484_v29  ;;  %v2093_v29 = vpack.c.bf16 %v9387_v51, %v9387_v51  ;;  %v2095_v51 = vpack.c.bf16 %v9414_v13, %v9414_v13 }
 0x2d7   : > { %v2492_v47 = vunpack.c.l.b16 %v2092_v11  ;;  %v2097_v13 = vpack.c.bf16 %v9443_v35, %v9443_v35 }
 0x2d9   : > { %v2514_v55 = vpack.c.b16 %v2492_v47, %v2491_v61  ;;  %v910_v61 = vpack.c.b16 %v886_v33, %v885_v25  ;;  %v2493_v25 = vunpack.c.l.b16 %v2093_v29  ;;  %v2497_v29 = vunpack.c.l.b16 %v2097_v13 }
 0x2da   : > { %v9608_v19 = vld [vmem:[#allocation3 + $0x50] sm:$0xff] }
 0x2db   : > { %v2774_v5 = vsel %vm246_vm0, %v2514_v55, %v2620_v7  ;;  %v3649_v34 = vpack.c.bf16 %v9608_v19, %v9608_v19 }
 0x2dd   : > { %2741 = vrot.lane.b32.xlu1 %v2711_v31, %s7788_s13  ;;  %v4049_v53 = vunpack.c.l.b16 %v3649_v34 }
 0x2df   : > { %v9618_v36 = vpack.c.b16 %v4049_v53, %v4048_v15 }
 0x2e5   : > { %2743 = vrot.lane.b32.xlu1 %v2712_v58, %s7788_s13 }
 0x2ea   : > { %v2902_v18 = vpop.permute.xlu1 %2901 }
 0x2eb   : > { %7473 = vmatmul.msk.bf16.gmra.mxu2 %vm246_vm0, %v2902_v18  ;;  %v1126_v45 = vpop.permute.xlu0 %1125 }
 0x2ed   : > { %v3222_v43 = vpop.f32.mrf.mxu0 }
 0x2ee   : > { %v3223_v44 = vadd.f32 %v9396_v41, %v3222_v43 }
 0x2f2   : > { %v2732_v31 = vpop.permute.xlu1 %2731 }
 0x2f3   : > { %v2812_v6 = vsel %vm1191_vm4, %v2774_v5, %v2732_v31 }
 0x2f4   : > { %2907 = vrot.lane.b32.xlu2 %v2812_v6, %s7788_s13 }
 0x2f5   : > { %v3224_v57 = vpop.f32.mrf.mxu0 }
 0x2f6   : > { %v3225_v15 = vadd.f32 %v9396_v41, %v3224_v57 }
 0x2f8   : > { %v2854_v58 = vpop.permute.xlu2 %2853 }
 0x2f9   : > { %v2941_v21 = vsel %vm2921_vm5, %v1205_v1, %v2854_v58  ;;  %v2989_v11 = vsel %vm1191_vm4, %v2854_v58, %v2902_v18  ;;  %v2094_v58 = vpack.c.bf16 %v9389_v37, %v9389_v37  ;;  %v2096_v37 = vpack.c.bf16 %v9416_v38, %v9416_v38 }
 0x2fa   : > { %3236 = vmatmul.bf16.gmra.mxu0 %v2941_v21  ;;  %3325 = vmatmul.bf16.gmra.mxu1 %v2989_v11  ;;  %v2098_v38 = vpack.c.bf16 %v9445_v56, %v9445_v56  ;;  %v9655_v56 = vld [vmem:[#allocation3 + $0x28] sm:$0x3] }
 0x2fb   : > { %v2494_v33 = vunpack.c.l.b16 %v2094_v58 }
 0x2fc   : > { %v2498_v58 = vunpack.c.l.b16 %v2098_v38 }
 0x300   : > { %v1014_v47 = vpop.permute.xlu2 %1013 }
 0x301   : > { %v1166_v63 = vsel %vm246_vm0, %v910_v61, %v1014_v47 }
 0x302   : > { %v1207_v14 = vsel %vm1191_vm4, %v1166_v63, %v1126_v45  ;;  %v2515_v63 = vpack.c.b16 %v2494_v33, %v2493_v25  ;;  %v4667_v33 = vrot.slane %v9573_v59, 2 }
 0x308   : > { %v2856_v22 = vpop.permute.xlu2 %2855 }
 0x309   : > { %v2944_v55 = vsel %vm2921_vm5, %v1207_v14, %v2856_v22 }
 0x30a   : > { %3241 = vmatmul.bf16.gmra.mxu0 %v2944_v55 }
 0x30f   : > { %v2622_v1 = vpop.permute.xlu0 %2621 }
 0x312   : > { %v3311_v7 = vpop.f32.mrf.mxu1 }
 0x313   : > { %v3312_v18 = vadd.f32 %v3311_v7, %v3223_v44 }
 0x317   : > { %v3400_v46 = vpop.f32.mrf.mxu2 }
 0x318   : > { %v3401_v5 = vadd.f32 %v3400_v46, %v3312_v18  ;;  %v2624_v45 = vpop.permute.xlu0 %2623  ;;  %v2777_v18 = vsel %vm246_vm0, %v2515_v63, %v2622_v1  ;;  %v2495_v46 = vunpack.c.l.b16 %v2095_v51  ;;  %v4666_v63 = vrot.slane %v9571_v16, 2 }
 0x31a   : > { %vm3471_vm12 = vcmp.gt.f32.partialorder %v3401_v5, 0.0  ;;  %v3503_v34 = vmul.f32 0.1, %v3401_v5  ;;  %v3313_v31 = vpop.f32.mrf.mxu1 }
 0x31b   : > { %v3314_v0 = vadd.f32 %v3313_v31, %v3225_v15 }
 0x31c   : > { %v3535_v53 = vsel %vm3471_vm12, %v3401_v5, %v3503_v34  ;;  %v2496_v5 = vunpack.c.l.b16 %v2096_v37 }
 0x31d   : > { %3568 = vst.msk [vmem:[#allocation3 + $0x61] sm:$0xff] %vm246_vm0, %v3535_v53 }
 0x31e   : > { %v2516_v15 = vpack.c.b16 %v2496_v5, %v2495_v46  ;;  %v9675_v46 = vld [vmem:[#allocation3 + $0x28] sm:$0x3]  ;;  %v4668_v5 = vsel %vm694_vm3, %v4666_v63, %v4667_v33  ;;  %v2101_v63 = vpack.c.bf16 %v9506_v48, %v9506_v48 }
 0x31f   : > { %v3402_v6 = vpop.f32.mrf.mxu2 }
 0x320   : > { %v3403_v49 = vadd.f32 %v3402_v6, %v3314_v0  ;;  %v2626_v1 = vpop.permute.xlu0 %2625 }
 0x322   : > { %vm3472_vm13 = vcmp.gt.f32.partialorder %v3403_v49, 0.0  ;;  %v3504_v21 = vmul.f32 0.1, %v3403_v49 }
 0x324   : > { %v3536_v11 = vsel %vm3472_vm13, %v3403_v49, %v3504_v21  ;;  %v2906_v21 = vpop.permute.xlu2 %2905 }
 0x325   : > { %3569 = vst.msk [vmem:[#allocation3 + $0x69] sm:$0xff] %vm246_vm0, %v3536_v11  ;;  %v2780_v11 = vsel %vm246_vm0, %v2516_v15, %v2624_v45  ;;  %v2995_v51 = vsel %vm1191_vm4, %v8792_v23, %v2906_v21  ;;  %v9665_v45 = vld [vmem:[#allocation3 + $0x8] sm:$0xff]  ;;  %v2100_v23 = vpack.c.bf16 %v9474_v12, %v9474_v12  ;;  %v3874_v12 = vrot.slane %v9675_v46, 2 }
 0x326   : > { %v3723_v13 = vrot.slane %v9665_v45, 1 }
 0x327   : > { %v2904_v61 = vpop.permute.xlu1 %2903  ;;  %v3405_v7 = vpop.f32.mrf.mxu2 }
 0x328   : > { %7474 = vmatmul.msk.bf16.gmra.mxu2 %vm246_vm0, %v2904_v61  ;;  %v2992_v47 = vsel %vm1191_vm4, %v2856_v22, %v2904_v61 }
 0x329   : > { %3330 = vmatmul.bf16.gmra.mxu1 %v2992_v47 }
 0x32a   : > { %v3227_v14 = vpop.f32.mrf.mxu0  ;;  %v3316_v55 = vpop.f32.mrf.mxu1 }
 0x32b   : > { %v3228_v43 = vadd.f32 %v9396_v41, %v3227_v14  ;;  %v2517_v14 = vpack.c.b16 %v2498_v58, %v2497_v29  ;;  %v4778_v29 = vpack.c.bf16 %v4668_v5, %v4668_v5 }
 0x32d   : > { %v3317_v44 = vadd.f32 %v3316_v55, %v3228_v43  ;;  %v9663_v55 = vld [vmem:[#allocation3] sm:$0xff]  ;;  %v9667_v43 = vld [vmem:[#allocation3 + $0x10] sm:$0x3]  ;;  %v2783_v15 = vsel %vm246_vm0, %v2517_v14, %v2626_v1  ;;  %v2102_v1 = vpack.c.bf16 %v9508_v52, %v9508_v52 }
 0x32e   : > { %v3725_v38 = vrot.slane %v9667_v43, 1  ;;  %v9697_v14 = vld [vmem:[#allocation3 + $0x60] sm:$0xff] }
 0x32f   : > { %v3406_v22 = vadd.f32 %v3405_v7, %v3317_v44  ;;  %v2734_v57 = vpop.permute.xlu1 %2733  ;;  %v3407_v25 = vpop.f32.mrf.mxu2  ;;  %v4669_v7 = vrot.slane %v9655_v56, 2 }
 0x330   : > { %v2814_v34 = vsel %vm1191_vm4, %v2777_v18, %v2734_v57  ;;  %v2099_v18 = vpack.c.bf16 %v9472_v2, %v9472_v2 }
 0x331   : > { %vm3473_vm14 = vcmp.gt.f32.partialorder %v3406_v22, 0.0  ;;  %v3505_v31 = vmul.f32 0.1, %v3406_v22  ;;  %2909 = vrot.lane.b32.xlu2 %v2814_v34, %s7788_s13  ;;  %v3722_v34 = vrot.slane %v9663_v55, 1  ;;  %v4670_v2 = vsel %vm694_vm3, %v4667_v33, %v4669_v7 }
 0x332   : > { %v3229_v53 = vpop.f32.mrf.mxu0  ;;  %v3318_v49 = vpop.f32.mrf.mxu1 }
 0x333   : > { %v3537_v0 = vsel %vm3473_vm14, %v3406_v22, %v3505_v31  ;;  %v3230_v6 = vadd.f32 %v9396_v41, %v3229_v53  ;;  %v2499_v53 = vunpack.c.l.b16 %v2099_v18 }
 0x334   : > { %3570 = vst.msk [vmem:[#allocation3 + $0x79] sm:$0xff] %vm246_vm0, %v3537_v0  ;;  %v2500_v0 = vunpack.c.l.b16 %v2100_v23  ;;  %v9699_v23 = vunpack.c.l.b16 %v4778_v29 }
 0x335   : > { %v3319_v35 = vadd.f32 %v3318_v49, %v3230_v6  ;;  %v2628_v6 = vpop.permute.xlu0 %2627 }
 0x337   : > { %v3408_v61 = vadd.f32 %v3407_v25, %v3319_v35  ;;  %v2736_v47 = vpop.permute.xlu1 %2735  ;;  %v3724_v35 = vsel %vm549_vm2, %v3722_v34, %v3723_v13  ;;  %v4779_v25 = vpack.c.bf16 %v4670_v2, %v4670_v2 }
 0x338   : > { %7475 = vmatmul.msk.bf16.gmra.mxu2 %vm246_vm0, %v2906_v21  ;;  %v2816_v37 = vsel %vm1191_vm4, %v2780_v11, %v2736_v47  ;;  %v3726_v11 = vsel %vm549_vm2, %v3723_v13, %v3725_v38  ;;  %v2501_v13 = vunpack.c.l.b16 %v2101_v63  ;;  %v2502_v38 = vunpack.c.l.b16 %v2102_v1 }
 0x339   : > { %vm3474_vm15 = vcmp.gt.f32.partialorder %v3408_v61, 0.0  ;;  %v3506_v44 = vmul.f32 0.1, %v3408_v61  ;;  %3335 = vmatmul.bf16.gmra.mxu1 %v2995_v51  ;;  %2911 = vrot.lane.b32.xlu2 %v2816_v37, %s7788_s13  ;;  %v3875_v51 = vsel %vm694_vm3, %v4667_v33, %v3874_v12  ;;  %v2518_v37 = vpack.c.b16 %v2500_v0, %v2499_v53 }
 0x33a   : > { %v3835_v18 = vpack.c.bf16 %v3726_v11, %v3726_v11  ;;  %v3981_v52 = vpack.c.bf16 %v3875_v51, %v3875_v51  ;;  %v9706_v33 = vrot.slane %v9573_v59, 1  ;;  %v3730_v53 = vrot.slane %v9675_v46, 1 }
 0x33b   : > { %v3538_v22 = vsel %vm3474_vm15, %v3408_v61, %v3506_v44  ;;  %v3232_v57 = vpop.f32.mrf.mxu0  ;;  %v9688_v61 = vld [vmem:[#allocation3 + $0x68] sm:$0xff]  ;;  %v3834_v44 = vpack.c.bf16 %v3724_v35, %v3724_v35  ;;  %v2786_v2 = vsel %vm246_vm0, %v2518_v37, %v2628_v6  ;;  %v2103_v59 = vpack.c.bf16 %v9531_v62, %v9531_v62 }
 0x33c   : > { %3571 = vst.msk [vmem:[#allocation3 + $0x81] sm:$0xff] %vm246_vm0, %v3538_v22  ;;  %v3233_v31 = vadd.f32 %v9396_v41, %v3232_v57  ;;  %v5248_v5 = vpack.c.bf16 %v9688_v61, %v9688_v61  ;;  %v9703_v57 = vunpack.c.l.b16 %v4779_v25  ;;  %v2104_v11 = vpack.c.bf16 %v9533_v30, %v9533_v30 }
 0x33d   : > { %v3321_v49 = vpop.f32.mrf.mxu1  ;;  %v4122_v0 = vunpack.c.l.b16 %v3834_v44  ;;  %v3727_v6 = vrot.slane %v9571_v16, 1  ;;  %v2519_v46 = vpack.c.b16 %v2502_v38, %v2501_v13  ;;  %v9725_v1 = vunpack.c.l.b16 %v3981_v52  ;;  %v9738_v52 = vld [vmem:[#allocation3 + $0x40] sm:$0x3] }
 0x33e   : > { %v3322_v21 = vadd.f32 %v3321_v49, %v3233_v31  ;;  %v5247_v31 = vpack.c.bf16 %v9697_v14, %v9697_v14  ;;  %v4123_v49 = vunpack.c.l.b16 %v3835_v18  ;;  %v5648_v29 = vunpack.c.l.b16 %v5248_v5  ;;  %v5204_v18 = vld [vmem:[#allocation3 + $0x78] sm:$0xff] }
 0x33f   : > { %v2738_v58 = vpop.permute.xlu1 %2737  ;;  %v5066_v62 = vpack.c.b16 %v9703_v57, %v9699_v23  ;;  %v5323_v51 = vrot.slane %v9575_v8, 1  ;;  %v9730_v30 = vsel %vm549_vm2, %v3727_v6, %v9706_v33  ;;  %v9734_v44 = vsel %vm549_vm2, %v9706_v33, %v3730_v53 }
 0x340   : > { %v2818_v47 = vsel %vm1191_vm4, %v2783_v15, %v2738_v58  ;;  %v5647_v63 = vunpack.c.l.b16 %v5247_v31  ;;  %v4154_v37 = vpack.c.b16 %v4123_v49, %v4122_v0  ;;  %v3866_v31 = vrot.slane %v9663_v55, 2 }
 0x341   : > { %2913 = vrot.lane.b32.xlu2 %v2818_v47, %s7788_s13  ;;  %v5338_v53 = vrot.slane %v5204_v18, 1  ;;  %v5482_v0 = vrot.slane %v5204_v18, 2  ;;  %v3836_v55 = vpack.c.bf16 %v9730_v30, %v9730_v30 }
 0x342   : > { %v3410_v7 = vpop.f32.mrf.mxu2  ;;  %v9736_v5 = vpack.c.b16 %v5648_v29, %v5647_v63  ;;  %v9753_v29 = vrot.slane %v9578_v10, 1 }
 0x343   : > { %v3411_v22 = vadd.f32 %v3410_v7, %v3322_v21  ;;  %v3234_v48 = vpop.f32.mrf.mxu0  ;;  %v2630_v21 = vpop.permute.xlu0 %2629  ;;  %v9720_v47 = vld [vmem:[#allocation3 + $0x80] sm:$0xff]  ;;  %v2503_v7 = vunpack.c.l.b16 %v2103_v59  ;;  %v4267_v59 = vpack.c.b16 %v9725_v1, %v9699_v23  ;;  %v4124_v23 = vunpack.c.l.b16 %v3836_v55 }
 0x344   : > { %v3235_v34 = vadd.f32 %v9396_v41, %v3234_v48  ;;  %v2504_v48 = vunpack.c.l.b16 %v2104_v11  ;;  %v9744_v13 = vrot.slane %v9720_v47, 2  ;;  %v2789_v38 = vsel %vm246_vm0, %v2519_v46, %v2630_v21 }
 0x345   : > { %vm3475_vm1 = vcmp.gt.f32.partialorder %v3411_v22, 0.0  ;;  %v3507_v12 = vmul.f32 0.1, %v3411_v22  ;;  %v3323_v15 = vpop.f32.mrf.mxu1  ;;  %v4525_v46 = vrot.slane %v9655_v56, 1  ;;  %v5328_v55 = vrot.slane %v9606_v50, 1 }
 0x346   : > { %v3324_v35 = vadd.f32 %v3323_v15, %v3235_v34  ;;  %v9741_v34 = vrot.slane %v9720_v47, 1  ;;  %v2520_v6 = vpack.c.b16 %v2504_v48, %v2503_v7  ;;  %v5325_v7 = vsel %vm549_vm2, %v5323_v51, %v9753_v29  ;;  %v9788_v51 = vld [vmem:[#allocation3 + $0x40] sm:$0x3] }
 0x347   : > { %v2740_v58 = vpop.permute.xlu1 %2739  ;;  %v3539_v41 = vsel %vm3475_vm1, %v3411_v22, %v3507_v12  ;;  %v3869_v12 = vrot.slane %v9667_v43, 2 }
 0x348   : > { %3572 = vst.msk [vmem:[#allocation3 + $0x91] sm:$0xff] %vm246_vm0, %v3539_v41  ;;  %v2820_v25 = vsel %vm1191_vm4, %v2786_v2, %v2740_v58  ;;  %v3867_v2 = vrot.slane %v9665_v45, 2  ;;  %v5326_v58 = vrot.slane %v9738_v52, 1  ;;  %v5340_v21 = vsel %vm549_vm2, %v5338_v53, %v9741_v34 }
 0x349   : > { %2915 = vrot.lane.b32.xlu2 %v2820_v25, %s7788_s13  ;;  %v3837_v25 = vpack.c.bf16 %v9734_v44, %v9734_v44  ;;  %v5441_v44 = vpack.c.bf16 %v5340_v21, %v5340_v21 }
 0x34a   : > { %v3412_v16 = vpop.f32.mrf.mxu2  ;;  %v3868_v1 = vsel %vm694_vm3, %v3866_v31, %v3867_v2  ;;  %v3870_v30 = vsel %vm694_vm3, %v3867_v2, %v3869_v12  ;;  %v5327_v56 = vsel %vm549_vm2, %v9753_v29, %v5326_v58  ;;  %v5250_v31 = vpack.c.bf16 %v9720_v47, %v9720_v47 }
 0x34b   : > { %v3413_v22 = vadd.f32 %v3412_v16, %v3324_v35  ;;  %v5484_v35 = vsel %vm694_vm3, %v5482_v0, %v9744_v13  ;;  %v2632_v63 = vpop.permute.xlu0 %2631  ;;  %v3876_v16 = vrot.slane %v9575_v8, 2  ;;  %v3978_v8 = vpack.c.bf16 %v3868_v1, %v3868_v1 }
 0x34c   : > { %v5585_v48 = vpack.c.bf16 %v5484_v35, %v5484_v35  ;;  %v2792_v2 = vsel %vm246_vm0, %v2520_v6, %v2632_v63  ;;  %v9786_v12 = vrot.slane %v9578_v10, 2  ;;  %v5650_v58 = vunpack.c.l.b16 %v5250_v31  ;;  %v5200_v31 = vld [vmem:[#allocation3 + $0x58] sm:$0x3] }
 0x34d   : > { %vm3476_vm6 = vcmp.gt.f32.partialorder %v3413_v22, 0.0  ;;  %v3508_v15 = vmul.f32 0.1, %v3413_v22  ;;  %v5436_v10 = vpack.c.bf16 %v5327_v56, %v5327_v56  ;;  %v4526_v6 = vsel %vm549_vm2, %v9706_v33, %v4525_v46 }
 0x34e   : > { %v2908_v49 = vpop.permute.xlu2 %2907  ;;  %v9796_v47 = vunpack.c.l.b16 %v5585_v48  ;;  %v3878_v46 = vsel %vm694_vm3, %v3876_v16, %v9786_v12  ;;  %v4125_v57 = vunpack.c.l.b16 %v3837_v25  ;;  %v9833_v25 = vrot.slane %v9608_v19, 1 }
 0x34f   : > { %7476 = vmatmul.msk.bf16.vlgmr.msra.gmra.mxu3 %vm246_vm0, %v2908_v49  ;;  %v2998_v45 = vsel %vm1191_vm4, %v8844_v42, %v2908_v49  ;;  %v2742_v43 = vpop.permute.xlu1 %2741  ;;  %v3540_v41 = vsel %vm3476_vm6, %v3413_v22, %v3508_v15  ;;  %v9770_v42 = vld [vmem:[#allocation3 + $0x40] sm:$0x3]  ;;  %v5249_v22 = vpack.c.bf16 %v5204_v18, %v5204_v18  ;;  %v3979_v18 = vpack.c.bf16 %v3870_v30, %v3870_v30 }
 0x350   : > { %3340 = vmatmul.bf16.gmra.mxu1 %v2998_v45  ;;  %3573 = vst.msk [vmem:[#allocation3 + $0x99] sm:$0xff] %vm246_vm0, %v3540_v41  ;;  %v2822_v11 = vsel %vm1191_vm4, %v2789_v38, %v2742_v43  ;;  %v3611_v38 = vld [vmem:[#allocation3 + $0x88] sm:$0x3]  ;;  %v9794_v43 = vunpack.c.l.b16 %v5441_v44  ;;  %v3879_v30 = vrot.slane %v9788_v51, 2 }
 0x351   : > { %4170 = vrot.lane.b32.xlu2 %v4154_v37, %s7787_s29  ;;  %2917 = vrot.lane.b32.xlu1 %v2822_v11, %s7788_s13  ;;  %v4530_v37 = vrot.slane %v9770_v42, 1  ;;  %v3750_v15 = vrot.slane %v3611_v38, 1  ;;  %v3894_v53 = vrot.slane %v3611_v38, 2  ;;  %v5649_v49 = vunpack.c.l.b16 %v5249_v22 }
 0x352   : > { %v5435_v11 = vpack.c.bf16 %v5325_v7, %v5325_v7  ;;  %v4234_v7 = vunpack.c.l.b16 %v3978_v8  ;;  %v4235_v56 = vunpack.c.l.b16 %v3979_v18  ;;  %v3982_v8 = vpack.c.bf16 %v3878_v46, %v3878_v46 }
 0x353   : > { %v3751_v0 = vsel %vm549_vm2, %v9741_v34, %v3750_v15  ;;  %v3895_v45 = vsel %vm694_vm3, %v9744_v13, %v3894_v53  ;;  %v9800_v63 = vpack.c.b16 %v5650_v58, %v5649_v49  ;;  %v4531_v33 = vsel %vm549_vm2, %v9753_v29, %v4530_v37 }
 0x354   : > { %v3845_v41 = vpack.c.bf16 %v3751_v0, %v3751_v0  ;;  %v3989_v21 = vpack.c.bf16 %v3895_v45, %v3895_v45  ;;  %v9822_v15 = vunpack.c.l.b16 %v5435_v11  ;;  %v5724_v53 = vunpack.c.l.b16 %v5436_v10 }
 0x355   : > { %v5470_v37 = vrot.slane %v9738_v52, 2  ;;  %v4266_v16 = vpack.c.b16 %v4235_v56, %v4234_v7  ;;  %v5472_v18 = vrot.slane %v9606_v50, 2  ;;  %v9829_v0 = vrot.slane %v9608_v19, 2  ;;  %v5207_v19 = vld [vmem:[#allocation3 + $0x90] sm:$0xff] }
 0x356   : > { %v9804_v22 = vunpack.c.l.b16 %v3845_v41  ;;  %v9806_v44 = vunpack.c.l.b16 %v3989_v21  ;;  %v5475_v49 = vrot.slane %v5200_v31, 2  ;;  %v5331_v58 = vrot.slane %v5200_v31, 1 }
 0x357   : > { %v2744_v35 = vpop.permute.xlu1 %2743  ;;  %v4155_v45 = vpack.c.b16 %v4125_v57, %v4124_v23  ;;  %v5755_v21 = vpack.c.b16 %v5724_v53, %v9822_v15  ;;  %v5471_v52 = vsel %vm694_vm3, %v9786_v12, %v5470_v37  ;;  %v4674_v50 = vrot.slane %v9770_v42, 2 }
 0x358   : > { %v2824_v1 = vsel %vm1191_vm4, %v2792_v2, %v2744_v35  ;;  %v4637_v2 = vpack.c.bf16 %v4531_v33, %v4531_v33  ;;  %v4402_v35 = vld [vmem:[#allocation3 + $0x58] sm:$0x3]  ;;  %v5476_v7 = vsel %vm694_vm3, %v9829_v0, %v5475_v49  ;;  %v5330_v56 = vsel %vm549_vm2, %v5328_v55, %v9833_v25 }
 0x359   : > { %2919 = vrot.lane.b32.xlu0 %v2824_v1, %s7788_s13  ;;  %5082 = vrot.lane.b32.xlu1 %v5066_v62, %s7788_s13  ;;  %v4635_v62 = vpack.c.bf16 %v4526_v6, %v4526_v6  ;;  %v9840_v6 = vunpack.c.l.b16 %v3982_v8  ;;  %v5208_v1 = vld [vmem:[#allocation3 + $0x98] sm:$0xff]  ;;  %v5332_v33 = vsel %vm549_vm2, %v9833_v25, %v5331_v58  ;;  %v5580_v57 = vpack.c.bf16 %v5471_v52, %v5471_v52 }
 0x35a   : > { %4284 = vrot.lane.b32.xlu2 %v4267_v59, %s7788_s13  ;;  %v3880_v59 = vsel %vm694_vm3, %v9786_v12, %v3879_v30  ;;  %v4925_v10 = vunpack.c.l.b16 %v4637_v2  ;;  %v5474_v30 = vsel %vm694_vm3, %v5472_v18, %v9829_v0  ;;  %v4535_v42 = vrot.slane %v4402_v35, 1 }
 0x35b   : > { %v3983_v41 = vpack.c.bf16 %v3880_v59, %v3880_v59  ;;  %v4923_v11 = vunpack.c.l.b16 %v4635_v62  ;;  %v4679_v62 = vrot.slane %v4402_v35, 2  ;;  %v5343_v31 = vrot.slane %v5207_v19, 1 }
 0x35c   : > { %v9852_v53 = vrot.slane %v5208_v1, 1  ;;  %v5487_v2 = vrot.slane %v5207_v19, 2  ;;  %v9854_v59 = vrot.slane %v5208_v1, 2  ;;  %v5581_v37 = vpack.c.bf16 %v5474_v30, %v5474_v30 }
 0x35d   : > { %v4239_v46 = vunpack.c.l.b16 %v3983_v41  ;;  %v5437_v8 = vpack.c.bf16 %v5330_v56, %v5330_v56  ;;  %v5438_v18 = vpack.c.bf16 %v5332_v33, %v5332_v33  ;;  %v4954_v49 = vpack.c.b16 %v4923_v11, %v4124_v23 }
 0x35e   : > { %v3735_v55 = vrot.slane %v9788_v51, 1  ;;  %v5836_v41 = vunpack.c.l.b16 %v5580_v57  ;;  %v4680_v52 = vsel %vm694_vm3, %v9829_v0, %v4679_v62  ;;  %v4536_v35 = vsel %vm549_vm2, %v9833_v25, %v4535_v42 }
 0x35f   : > { %v4268_v58 = vpack.c.b16 %v4239_v46, %v9840_v6  ;;  %v5345_v30 = vsel %vm549_vm2, %v5343_v31, %v9852_v53  ;;  %v5489_v51 = vsel %vm694_vm3, %v5487_v2, %v9854_v59  ;;  %v9871_v23 = vunpack.c.l.b16 %v5581_v37 }
 0x360   : > { %v3736_v33 = vsel %vm549_vm2, %v9753_v29, %v3735_v55  ;;  %v5443_v46 = vpack.c.bf16 %v5345_v30, %v5345_v30  ;;  %v5587_v57 = vpack.c.bf16 %v5489_v51, %v5489_v51  ;;  %v5867_v62 = vpack.c.b16 %v5836_v41, %v9840_v6 }
 0x361   : > { %4282 = vrot.lane.b32.xlu0 %v4266_v16, %s7788_s13  ;;  %4172 = vrot.lane.b32.xlu1 %v4155_v45, %s7787_s29  ;;  %v5582_v16 = vpack.c.bf16 %v5476_v7, %v5476_v7  ;;  %v4955_v45 = vpack.c.b16 %v4925_v10, %v9822_v15  ;;  %v5726_v10 = vunpack.c.l.b16 %v5438_v18  ;;  %v9878_v7 = vld [vmem:[#allocation3 + $0x70] sm:$0x3]  ;;  %v4783_v42 = vpack.c.bf16 %v4680_v52, %v4680_v52 }
 0x362   : > { %5771 = vrot.lane.b32.xlu2 %v5755_v21, %s7787_s29  ;;  %v4675_v21 = vsel %vm694_vm3, %v9786_v12, %v4674_v50  ;;  %v9873_v12 = vunpack.c.l.b16 %v5437_v8  ;;  %v9875_v50 = vld [vmem:[#allocation3 + $0x58] sm:$0x3]  ;;  %v4639_v31 = vpack.c.bf16 %v4536_v35, %v4536_v35  ;;  %v5478_v8 = vrot.slane %v9688_v61, 2 }
 0x363   : > { %v5838_v11 = vunpack.c.l.b16 %v5582_v16  ;;  %v4781_v56 = vpack.c.bf16 %v4675_v21, %v4675_v21  ;;  %v3740_v2 = vrot.slane %v9875_v50, 1  ;;  %v5480_v18 = vrot.slane %v9878_v7, 2 }
 0x364   : > { %v5756_v16 = vpack.c.b16 %v5726_v10, %v9873_v12  ;;  %v9888_v21 = vunpack.c.l.b16 %v5443_v46  ;;  %v9890_v41 = vunpack.c.l.b16 %v5587_v57  ;;  %v5039_v10 = vunpack.c.l.b16 %v4783_v42 }
 0x365   : > { %v5868_v37 = vpack.c.b16 %v5838_v11, %v9871_v23  ;;  %v5037_v11 = vunpack.c.l.b16 %v4781_v56  ;;  %v5477_v46 = vrot.slane %v9697_v14, 2  ;;  %v9910_v56 = vld [vmem:[#allocation3 + $0x70] sm:$0x3] }
 0x369   : > { %4970 = vrot.lane.b32.xlu0 %v4954_v49, %s7787_s29  ;;  %4286 = vrot.lane.b32.xlu1 %v4268_v58, %s7788_s13  ;;  %v3614_v49 = vld [vmem:[#allocation3 + $0xa0] sm:$0x3]  ;;  %v5252_v58 = vpack.c.bf16 %v5208_v1, %v5208_v1 }
 0x36a   : > { %4972 = vrot.lane.b32.xlu2 %v4955_v45, %s7787_s29  ;;  %v5251_v45 = vpack.c.bf16 %v5207_v19, %v5207_v19  ;;  %v3755_v29 = vrot.slane %v3614_v49, 1  ;;  %v3899_v55 = vrot.slane %v3614_v49, 2  ;;  %v4927_v49 = vunpack.c.l.b16 %v4639_v31 }
 0x36b   : > { %v5652_v35 = vunpack.c.l.b16 %v5252_v58 }
 0x36c   : > { %v5651_v52 = vunpack.c.l.b16 %v5251_v45  ;;  %v3756_v30 = vsel %vm549_vm2, %v9852_v53, %v3755_v29  ;;  %v3900_v51 = vsel %vm694_vm3, %v9854_v59, %v3899_v55  ;;  %v5479_v29 = vsel %vm694_vm3, %v5477_v46, %v5478_v8 }
 0x36d   : > { %v3847_v19 = vpack.c.bf16 %v3756_v30, %v3756_v30  ;;  %v3991_v1 = vpack.c.bf16 %v3900_v51, %v3900_v51  ;;  %v3741_v55 = vsel %vm549_vm2, %v9833_v25, %v3740_v2  ;;  %v3884_v30 = vrot.slane %v9875_v50, 2 }
 0x36e   : > { %v9900_v57 = vpack.c.b16 %v5652_v35, %v5651_v52  ;;  %v5067_v52 = vpack.c.b16 %v5037_v11, %v9840_v6  ;;  %v3415_v35 = vpop.f32.mrf.mxu2  ;;  %v4956_v25 = vpack.c.b16 %v4927_v49, %v9873_v12  ;;  %v5583_v2 = vpack.c.bf16 %v5479_v29, %v5479_v29 }
 0x36f   : > { %v9902_v45 = vunpack.c.l.b16 %v3847_v19  ;;  %v9904_v58 = vunpack.c.l.b16 %v3991_v1  ;;  %v9923_v1 = vld [vmem:[%s11969_s2] ss:$0 sm:$0xff]  ;;  %v3841_v31 = vpack.c.bf16 %v3741_v55, %v3741_v55  ;;  %v4684_v11 = vrot.slane %v9910_v56, 2 }
 0x370   : > { %v5839_v49 = vunpack.c.l.b16 %v5583_v2 }
 0x371   : > { %5883 = vrot.lane.b32.xlu0 %v5867_v62, %s7788_s13  ;;  %5773 = vrot.lane.b32.xlu1 %v5756_v16, %s7787_s29  ;;  %v5481_v62 = vsel %vm694_vm3, %v5478_v8, %v5480_v18  ;;  %v3839_v16 = vpack.c.bf16 %v3736_v33, %v3736_v33  ;;  %v5068_v33 = vpack.c.b16 %v5039_v10, %v9871_v23  ;;  %v4129_v38 = vunpack.c.l.b16 %v3841_v31 }
 0x372   : > { %5885 = vrot.lane.b32.xlu2 %v5868_v37, %s7788_s13  ;;  %v3608_v37 = vld [vmem:[#allocation3 + $0x70] sm:$0x3]  ;;  %v5584_v19 = vpack.c.bf16 %v5481_v62, %v5481_v62  ;;  %v3885_v62 = vsel %vm694_vm3, %v9829_v0, %v3884_v30 }
 0x373   : > { %v3889_v6 = vrot.slane %v3608_v37, 2  ;;  %v4127_v50 = vunpack.c.l.b16 %v3839_v16  ;;  %v3745_v31 = vrot.slane %v3608_v37, 1 }
 0x374   : > { %v5840_v29 = vunpack.c.l.b16 %v5584_v19 }
 0x375   : > { %v3890_v55 = vsel %vm694_vm3, %v5478_v8, %v3889_v6  ;;  %v4156_v48 = vpack.c.b16 %v4127_v50, %v9822_v15  ;;  %v5333_v15 = vrot.slane %v9697_v14, 1 }
 0x376   : > { %v5869_v19 = vpack.c.b16 %v5840_v29, %v5839_v49  ;;  %v3987_v0 = vpack.c.bf16 %v3890_v55, %v3890_v55  ;;  %v5209_v55 = vld [vmem:[#allocation3 + $0xa0] sm:$0x3] }
 0x377   : > { %v3237_v51 = vpop.f32.mrf.mxu0  ;;  %v3326_v18 = vpop.f32.mrf.mxu1 }
 0x378   : > { %v3238_v46 = vadd.f32 %v9923_v1, %v3237_v51  ;;  %v4685_v51 = vsel %vm694_vm3, %v5478_v8, %v4684_v11  ;;  %v4157_v8 = vpack.c.b16 %v4129_v38, %v9873_v12  ;;  %v4243_v50 = vunpack.c.l.b16 %v3987_v0 }
 0x379   : > { %5084 = vrot.lane.b32.xlu0 %v5067_v52, %s7788_s13  ;;  %4974 = vrot.lane.b32.xlu1 %v4956_v25, %s7787_s29  ;;  %v5336_v52 = vrot.slane %v9878_v7, 1  ;;  %v9937_v25 = vld [vmem:[#allocation3 + $0x88] sm:$0x3] }
 0x37a   : > { %v3327_v10 = vadd.f32 %v3326_v18, %v3238_v46  ;;  %5086 = vrot.lane.b32.xlu2 %v5068_v33, %s7788_s13  ;;  %v3985_v18 = vpack.c.bf16 %v3885_v62, %v3885_v62  ;;  %v5334_v33 = vrot.slane %v9688_v61, 1  ;;  %v3417_v61 = vpop.f32.mrf.mxu2  ;;  %v5341_v6 = vrot.slane %v9937_v25, 1  ;;  %v4408_v62 = vld [vmem:[#allocation3 + $0x88] sm:$0x3] }
 0x37c   : > { %v3416_v42 = vadd.f32 %v3415_v35, %v3327_v10  ;;  %v4785_v35 = vpack.c.bf16 %v4685_v51, %v4685_v51  ;;  %v4241_v37 = vunpack.c.l.b16 %v3985_v18  ;;  %v5337_v14 = vsel %vm549_vm2, %v5334_v33, %v5336_v52 }
 0x37d   : > { %v3746_v12 = vsel %vm549_vm2, %v5334_v33, %v3745_v31  ;;  %v4545_v31 = vrot.slane %v4408_v62, 1 }
 0x37e   : > { %vm3477_vm7 = vcmp.gt.f32.partialorder %v3416_v42, 0.0  ;;  %v3509_v16 = vmul.f32 0.1, %v3416_v42  ;;  %v5041_v38 = vunpack.c.l.b16 %v4785_v35  ;;  %v4269_v18 = vpack.c.b16 %v4241_v37, %v9871_v23  ;;  %v4411_v37 = vld [vmem:[#allocation3 + $0xa0] sm:$0x3] }
 0x37f   : > { %v3239_v2 = vpop.f32.mrf.mxu0  ;;  %v3328_v7 = vpop.f32.mrf.mxu1  ;;  %v4540_v35 = vrot.slane %v9910_v56, 1 }
 0x380   : > { %v3541_v30 = vsel %vm3477_vm7, %v3416_v42, %v3509_v16  ;;  %v3240_v46 = vadd.f32 %v9923_v1, %v3239_v2  ;;  %v5335_v42 = vsel %vm549_vm2, %v5333_v15, %v5334_v33  ;;  %v5440_v16 = vpack.c.bf16 %v5337_v14, %v5337_v14 }
 0x381   : > { %3574 = vst.msk [vmem:[#allocation3 + $0xa9] sm:$0xff] %vm246_vm0, %v3541_v30  ;;  %4174 = vrot.lane.b32.xlu0 %v4156_v48, %s7787_s29  ;;  %5887 = vrot.lane.b32.xlu1 %v5869_v19, %s7788_s13  ;;  %v5439_v29 = vpack.c.bf16 %v5335_v42, %v5335_v42  ;;  %v5342_v48 = vsel %vm549_vm2, %v9741_v34, %v5341_v6  ;;  %v5485_v42 = vrot.slane %v9937_v25, 2 }
 0x382   : > { %v3329_v11 = vadd.f32 %v3328_v7, %v3240_v46  ;;  %4176 = vrot.lane.b32.xlu2 %v4157_v8, %s7787_s29  ;;  %v3843_v2 = vpack.c.bf16 %v3746_v12, %v3746_v12  ;;  %v4270_v19 = vpack.c.b16 %v4243_v50, %v5839_v49  ;;  %v5069_v0 = vpack.c.b16 %v5041_v38, %v5839_v49 }
 0x383   : > { %v5442_v30 = vpack.c.bf16 %v5342_v48, %v5342_v48  ;;  %v5346_v46 = vrot.slane %v5209_v55, 1  ;;  %v5727_v8 = vunpack.c.l.b16 %v5439_v29  ;;  %v5728_v15 = vunpack.c.l.b16 %v5440_v16 }
 0x384   : > { %v3418_v10 = vadd.f32 %v3417_v61, %v3329_v11  ;;  %v4131_v7 = vunpack.c.l.b16 %v3843_v2  ;;  %v4541_v49 = vsel %vm549_vm2, %v5334_v33, %v4540_v35  ;;  %v4546_v6 = vsel %vm549_vm2, %v9741_v34, %v4545_v31 }
 0x385   : > { %v5730_v61 = vunpack.c.l.b16 %v5442_v30  ;;  %v5347_v11 = vsel %vm549_vm2, %v9852_v53, %v5346_v46  ;;  %v5757_v50 = vpack.c.b16 %v5728_v15, %v5727_v8  ;;  %v4641_v14 = vpack.c.bf16 %v4541_v49, %v4541_v49 }
 0x386   : > { %vm3478_vm8 = vcmp.gt.f32.partialorder %v3418_v10, 0.0  ;;  %v3510_v51 = vmul.f32 0.1, %v3418_v10  ;;  %v4158_v38 = vpack.c.b16 %v4131_v7, %v5727_v8  ;;  %v4643_v33 = vpack.c.bf16 %v4546_v6, %v4546_v6 }
 0x387   : > { %v5444_v12 = vpack.c.bf16 %v5347_v11, %v5347_v11  ;;  %v4550_v29 = vrot.slane %v4411_v37, 1  ;;  %v5486_v34 = vsel %vm694_vm3, %v9744_v13, %v5485_v42  ;;  %v4689_v48 = vrot.slane %v4408_v62, 2 }
 0x388   : > { %v3542_v52 = vsel %vm3478_vm8, %v3418_v10, %v3510_v51  ;;  %v5490_v10 = vrot.slane %v5209_v55, 2  ;;  %v4929_v16 = vunpack.c.l.b16 %v4641_v14  ;;  %v5210_v35 = vld [vmem:[#allocation3 + $0xa8] sm:$0xff] }
 0x389   : > { %3575 = vst.msk [vmem:[#allocation3 + $0xb1] sm:$0xff] %vm246_vm0, %v3542_v52  ;;  %4288 = vrot.lane.b32.xlu0 %v4269_v18, %s7788_s13  ;;  %5088 = vrot.lane.b32.xlu1 %v5069_v0, %s7788_s13  ;;  %v4931_v18 = vunpack.c.l.b16 %v4643_v33  ;;  %v5732_v55 = vunpack.c.l.b16 %v5444_v12  ;;  %v4551_v0 = vsel %vm549_vm2, %v9852_v53, %v4550_v29  ;;  %v5586_v52 = vpack.c.bf16 %v5486_v34, %v5486_v34 }
 0x38a   : > { %4290 = vrot.lane.b32.xlu2 %v4270_v19, %s7788_s13  ;;  %v5491_v19 = vsel %vm694_vm3, %v9854_v59, %v5490_v10  ;;  %v4690_v31 = vsel %vm694_vm3, %v9744_v13, %v4689_v48  ;;  %v4645_v15 = vpack.c.bf16 %v4551_v0, %v4551_v0  ;;  %v5492_v7 = vrot.slane %v5210_v35, 2 }
 0x38b   : > { %v2910_v23 = vpop.permute.xlu2 %2909  ;;  %v5588_v46 = vpack.c.bf16 %v5491_v19, %v5491_v19  ;;  %v4957_v49 = vpack.c.b16 %v4929_v16, %v5727_v8  ;;  %v4694_v53 = vrot.slane %v4411_v37, 2  ;;  %v5842_v6 = vunpack.c.l.b16 %v5586_v52 }
 0x38c   : > { %7477 = vmatmul.msk.bf16.gmra.mxu3 %vm246_vm0, %v2910_v23  ;;  %v3001_v56 = vsel %vm1191_vm4, %v8851_v32, %v2910_v23  ;;  %v5758_v32 = vpack.c.b16 %v5730_v61, %v9794_v43  ;;  %v5759_v61 = vpack.c.b16 %v5732_v55, %v9888_v21  ;;  %v4787_v13 = vpack.c.bf16 %v4690_v31, %v4690_v31 }
 0x38d   : > { %3345 = vmatmul.bf16.gmra.mxu1 %v3001_v56  ;;  %v4958_v56 = vpack.c.b16 %v4931_v18, %v9794_v43  ;;  %v4933_v8 = vunpack.c.l.b16 %v4645_v15  ;;  %v4695_v37 = vsel %vm694_vm3, %v9854_v59, %v4694_v53  ;;  %v5870_v48 = vpack.c.b16 %v5842_v6, %v9796_v47  ;;  %v3242_v53 = vpop.f32.mrf.mxu0 }
 0x38e   : > { %v5043_v16 = vunpack.c.l.b16 %v4787_v13  ;;  %v5253_v55 = vpack.c.bf16 %v5210_v35, %v5210_v35  ;;  %v4789_v59 = vpack.c.bf16 %v4695_v37, %v4695_v37 }
 0x38f   : > { %v4959_v0 = vpack.c.b16 %v4933_v8, %v9888_v21 }
 0x390   : > { %v9972_v51 = vld [vmem:[#allocation3 + $0xb0] sm:$0xff]  ;;  %v5212_v25 = vld [vmem:[#allocation3 + $0xb8] sm:$0x3] }
 0x391   : > { %5775 = vrot.lane.b32.xlu0 %v5757_v50, %s7787_s29  ;;  %4178 = vrot.lane.b32.xlu1 %v4158_v38, %s7787_s29  ;;  %v5493_v30 = vrot.slane %v9972_v51, 2  ;;  %v5495_v62 = vrot.slane %v5212_v25, 2  ;;  %v9983_v23 = vrot.slane %v9972_v51, 1  ;;  %v5348_v50 = vrot.slane %v5210_v35, 1 }
 0x392   : > { %5777 = vrot.lane.b32.xlu2 %v5758_v32, %s7787_s29  ;;  %v5844_v38 = vunpack.c.l.b16 %v5588_v46  ;;  %v5351_v29 = vrot.slane %v5212_v25, 1  ;;  %v4414_v32 = vld [vmem:[#allocation3 + $0xb8] sm:$0x3] }
 0x393   : > { %v2912_v2 = vpop.permute.xlu2 %2911  ;;  %v5494_v11 = vsel %vm694_vm3, %v5492_v7, %v5493_v30  ;;  %v5496_v42 = vsel %vm694_vm3, %v5493_v30, %v5495_v62  ;;  %v5350_v14 = vsel %vm549_vm2, %v5348_v50, %v9983_v23  ;;  %v4699_v52 = vrot.slane %v4414_v32, 2  ;;  %v3617_v46 = vld [vmem:[#allocation3 + $0xb8] sm:$0x3] }
 0x394   : > { %v5589_v12 = vpack.c.bf16 %v5494_v11, %v5494_v11  ;;  %v5590_v10 = vpack.c.bf16 %v5496_v42, %v5496_v42  ;;  %v3004_v34 = vsel %vm1191_vm4, %v8919_v3, %v2912_v2  ;;  %v5445_v18 = vpack.c.bf16 %v5350_v14, %v5350_v14 }
 0x395   : > { %v5871_v19 = vpack.c.b16 %v5844_v38, %v9890_v41  ;;  %v5352_v31 = vsel %vm549_vm2, %v9983_v23, %v5351_v29  ;;  %v3760_v3 = vrot.slane %v3617_v46, 1  ;;  %v3904_v15 = vrot.slane %v3617_v46, 2  ;;  %v3244_v46 = vpop.f32.mrf.mxu0 }
 0x396   : > { %v10002_v62 = vunpack.c.l.b16 %v5589_v12  ;;  %v5846_v25 = vunpack.c.l.b16 %v5590_v10  ;;  %v10010_v35 = vunpack.c.l.b16 %v5445_v18  ;;  %v5653_v7 = vunpack.c.l.b16 %v5253_v55 }
 0x397   : > { %v5045_v42 = vunpack.c.l.b16 %v4789_v59  ;;  %v4700_v50 = vsel %vm694_vm3, %v5493_v30, %v4699_v52  ;;  %v3243_v14 = vadd.f32 %v9923_v1, %v3242_v53  ;;  %v5070_v12 = vpack.c.b16 %v5043_v16, %v9796_v47 }
 0x398   : > { %v5446_v10 = vpack.c.bf16 %v5352_v31, %v5352_v31  ;;  %v5872_v29 = vpack.c.b16 %v5846_v25, %v10002_v62  ;;  %v4555_v55 = vrot.slane %v4414_v32, 1 }
 0x399   : > { %4976 = vrot.lane.b32.xlu0 %v4957_v49, %s7787_s29  ;;  %5779 = vrot.lane.b32.xlu1 %v5759_v61, %s7787_s29  ;;  %v3761_v49 = vsel %vm549_vm2, %v9983_v23, %v3760_v3  ;;  %v3905_v61 = vsel %vm694_vm3, %v5493_v30, %v3904_v15  ;;  %v5071_v18 = vpack.c.b16 %v5045_v42, %v9890_v41 }
 0x39a   : > { %4978 = vrot.lane.b32.xlu2 %v4958_v56, %s7787_s29  ;;  %v3849_v11 = vpack.c.bf16 %v3761_v49, %v3761_v49  ;;  %v5734_v59 = vunpack.c.l.b16 %v5446_v10  ;;  %v4556_v32 = vsel %vm549_vm2, %v9983_v23, %v4555_v55 }
 0x39b   : > { %v2914_v33 = vpop.permute.xlu2 %2913  ;;  %v4647_v49 = vpack.c.bf16 %v4556_v32, %v4556_v32 }
 0x39c   : > { %7478 = vmatmul.msk.bf16.gmra.mxu3 %vm246_vm0, %v2912_v2  ;;  %v5254_v2 = vpack.c.bf16 %v9972_v51, %v9972_v51  ;;  %v3993_v51 = vpack.c.bf16 %v3905_v61, %v3905_v61  ;;  %v10019_v38 = vunpack.c.l.b16 %v3849_v11  ;;  %v3007_v31 = vsel %vm1191_vm4, %v9011_v60, %v2914_v33 }
 0x39d   : > { %3350 = vmatmul.bf16.gmra.mxu1 %v3004_v34  ;;  %v4791_v34 = vpack.c.bf16 %v4700_v50, %v4700_v50  ;;  %v5760_v15 = vpack.c.b16 %v5734_v59, %v10010_v35  ;;  %v3250_v59 = vadd.f32 %v9923_v1, %v9166_v24 }
 0x39e   : > { %v5654_v56 = vunpack.c.l.b16 %v5254_v2  ;;  %v10021_v8 = vunpack.c.l.b16 %v3993_v51 }
 0x39f   : > { %v5047_v52 = vunpack.c.l.b16 %v4791_v34 }
 0x3a0   : > { %v10017_v13 = vpack.c.b16 %v5654_v56, %v5653_v7  ;;  %v3245_v56 = vadd.f32 %v9923_v1, %v3244_v46 }
 0x3a1   : > { %5889 = vrot.lane.b32.xlu0 %v5870_v48, %s7788_s13  ;;  %4980 = vrot.lane.b32.xlu1 %v4959_v0, %s7787_s29  ;;  %v4161_v48 = vpack.c.b16 %v10019_v38, %v10010_v35  ;;  %v5072_v7 = vpack.c.b16 %v5047_v52, %v10002_v62 }
 0x3a2   : > { %5891 = vrot.lane.b32.xlu2 %v5871_v19, %s7788_s13 }
 0x3a3   : > { %v2916_v6 = vpop.permute.xlu2 %2915 }
 0x3a6   : > { %v3331_v37 = vpop.f32.mrf.mxu1 }
 0x3a7   : > { %v3332_v19 = vadd.f32 %v3331_v37, %v3243_v14  ;;  %v3248_v14 = vadd.f32 %v9923_v1, %v9144_v40 }
 0x3a9   : > { %5090 = vrot.lane.b32.xlu0 %v5070_v12, %s7788_s13  ;;  %5893 = vrot.lane.b32.xlu1 %v5872_v29, %s7788_s13 }
 0x3aa   : > { %5092 = vrot.lane.b32.xlu2 %v5071_v18, %s7788_s13  ;;  %v3010_v18 = vsel %vm1191_vm4, %v9034_v39, %v2916_v6 }
 0x3ab   : > { %v3420_v16 = vpop.f32.mrf.mxu2  ;;  %v10034_v0 = vpop.permute.xlu2 %4170 }
 0x3ac   : > { %v3421_v25 = vadd.f32 %v3420_v16, %v3332_v19  ;;  %7479 = vmatmul.msk.bf16.gmra.mxu3 %vm246_vm0, %v2914_v33  ;;  %v4935_v33 = vunpack.c.l.b16 %v4647_v49 }
 0x3ad   : > { %3355 = vmatmul.bf16.gmra.mxu1 %v3007_v31 }
 0x3ae   : > { %vm3479_vm9 = vcmp.gt.f32.partialorder %v3421_v25, 0.0  ;;  %v3511_v3 = vmul.f32 0.1, %v3421_v25  ;;  %v3333_v2 = vpop.f32.mrf.mxu1  ;;  %v4960_v50 = vpack.c.b16 %v4935_v33, %v10010_v35 }
 0x3af   : > { %v3334_v60 = vadd.f32 %v3333_v2, %v3245_v56 }
 0x3b0   : > { %v3543_v61 = vsel %vm3479_vm9, %v3421_v25, %v3511_v3 }
 0x3b1   : > { %3576 = vst.msk [vmem:[#allocation3 + $0xc1] sm:$0xff] %vm246_vm0, %v3543_v61  ;;  %5781 = vrot.lane.b32.xlu0 %v5760_v15, %s7787_s29  ;;  %5094 = vrot.lane.b32.xlu1 %v5072_v7, %s7788_s13 }
 0x3b3   : > { %v3422_v23 = vpop.f32.mrf.mxu2 }
 0x3b4   : > { %v3423_v53 = vadd.f32 %v3422_v23, %v3334_v60  ;;  %v10047_v11 = vpop.permute.xlu2 %4284 }
 0x3b6   : > { %vm3480_vm10 = vcmp.gt.f32.partialorder %v3423_v53, 0.0  ;;  %v3512_v51 = vmul.f32 0.1, %v3423_v53  ;;  %v3336_v42 = vpop.f32.mrf.mxu1 }
 0x3b7   : > { %v3337_v12 = vadd.f32 %v3336_v42, %v3248_v14 }
 0x3b8   : > { %v3544_v37 = vsel %vm3480_vm10, %v3423_v53, %v3512_v51  ;;  %v10059_v55 = vld [vmem:[#allocation3 + $0xc0] sm:$0xff] }
 0x3b9   : > { %3577 = vst.msk [vmem:[#allocation3 + $0xc9] sm:$0xff] %vm246_vm0, %v3544_v37  ;;  %4982 = vrot.lane.b32.xlu0 %v4960_v50, %s7787_s29  ;;  %v5497_v16 = vrot.slane %v10059_v55, 2  ;;  %v5353_v32 = vrot.slane %v10059_v55, 1 }
 0x3bb   : > { %v3425_v10 = vpop.f32.mrf.mxu2 }
 0x3bc   : > { %v3426_v29 = vadd.f32 %v3425_v10, %v3337_v12  ;;  %v10054_v34 = vpop.permute.xlu2 %5771  ;;  %7480 = vmatmul.msk.bf16.gmra.mxu3 %vm246_vm0, %v2916_v6 }
 0x3bd   : > { %3360 = vmatmul.bf16.gmra.mxu1 %v3010_v18 }
 0x3be   : > { %vm3481_vm11 = vcmp.gt.f32.partialorder %v3426_v29, 0.0  ;;  %v3513_v40 = vmul.f32 0.1, %v3426_v29  ;;  %v3338_v19 = vpop.f32.mrf.mxu1 }
 0x3bf   : > { %v3339_v15 = vadd.f32 %v3338_v19, %v3250_v59 }
 0x3c0   : > { %v3545_v52 = vsel %vm3481_vm11, %v3426_v29, %v3513_v40  ;;  %v5214_v25 = vld [vmem:[#allocation3 + $0xc8] sm:$0xff]  ;;  %v5215_v31 = vld [vmem:[#allocation3 + $0xd0] sm:$0x3] }
 0x3c1   : > { %v10065_v46 = vld [vmem:[#allocation3 + $0xd0] sm:$0x3]  ;;  %3578 = vst.msk [vmem:[#allocation3 + $0xd9] sm:$0xff] %vm246_vm0, %v3545_v52  ;;  %v5498_v39 = vrot.slane %v5214_v25, 2  ;;  %v5500_v6 = vrot.slane %v5215_v31, 2  ;;  %v10068_v3 = vrot.slane %v5214_v25, 1 }
 0x3c2   : > { %v5356_v2 = vrot.slane %v5215_v31, 1  ;;  %v4704_v7 = vrot.slane %v10065_v46, 2 }
 0x3c3   : > { %v3427_v49 = vpop.f32.mrf.mxu2  ;;  %v2918_v56 = vpop.permute.xlu1 %2917  ;;  %v5499_v24 = vsel %vm694_vm3, %v5497_v16, %v5498_v39  ;;  %v5501_v61 = vsel %vm694_vm3, %v5498_v39, %v5500_v6  ;;  %v5355_v60 = vsel %vm549_vm2, %v5353_v32, %v10068_v3 }
 0x3c4   : > { %v5357_v23 = vsel %vm549_vm2, %v10068_v3, %v5356_v2  ;;  %v3428_v33 = vadd.f32 %v3427_v49, %v3339_v15  ;;  %v10077_v53 = vpop.permute.xlu2 %4972  ;;  %v5591_v51 = vpack.c.bf16 %v5499_v24, %v5499_v24  ;;  %v5592_v42 = vpack.c.bf16 %v5501_v61, %v5501_v61 }
 0x3c5   : > { %v5447_v50 = vpack.c.bf16 %v5355_v60, %v5355_v60  ;;  %v5448_v14 = vpack.c.bf16 %v5357_v23, %v5357_v23  ;;  %v4705_v37 = vsel %vm694_vm3, %v5498_v39, %v4704_v7  ;;  %v3013_v6 = vsel %vm1191_vm4, %v9073_v9, %v2918_v56 }
 0x3c6   : > { %vm3482_vm12 = vcmp.gt.f32.partialorder %v3428_v33, 0.0  ;;  %v3514_v12 = vmul.f32 0.1, %v3428_v33  ;;  %v5847_v10 = vunpack.c.l.b16 %v5591_v51  ;;  %v5848_v29 = vunpack.c.l.b16 %v5592_v42 }
 0x3c7   : > { %v10080_v18 = vunpack.c.l.b16 %v5447_v50  ;;  %v5736_v40 = vunpack.c.l.b16 %v5448_v14  ;;  %v4793_v59 = vpack.c.bf16 %v4705_v37, %v4705_v37  ;;  %v3253_v7 = vadd.f32 %v9923_v1, %v9190_v4 }
 0x3c8   : > { %v3546_v19 = vsel %vm3482_vm12, %v3428_v33, %v3514_v12  ;;  %v5873_v16 = vpack.c.b16 %v5848_v29, %v5847_v10  ;;  %v5255_v24 = vpack.c.bf16 %v10059_v55, %v10059_v55  ;;  %v5256_v61 = vpack.c.bf16 %v5214_v25, %v5214_v25  ;;  %v5216_v55 = vld [vmem:[#allocation3 + $0xd8] sm:$0xff] }
 0x3c9   : > { %3579 = vst.msk [vmem:[#allocation3 + $0xe1] sm:$0xff] %vm246_vm0, %v3546_v19  ;;  %v5761_v52 = vpack.c.b16 %v5736_v40, %v10080_v18  ;;  %v5049_v2 = vunpack.c.l.b16 %v4793_v59  ;;  %v3255_v40 = vadd.f32 %v9923_v1, %v9210_v27 }
 0x3ca   : > { %5895 = vrot.lane.b32.xlu0 %v5873_v16, %s7788_s13  ;;  %v5656_v50 = vunpack.c.l.b16 %v5256_v61  ;;  %v5655_v25 = vunpack.c.l.b16 %v5255_v24  ;;  %v5358_v16 = vrot.slane %v5216_v55, 1  ;;  %v4560_v61 = vrot.slane %v10065_v46, 1 }
 0x3cb   : > { %5783 = vrot.lane.b32.xlu2 %v5761_v52, %s7787_s29  ;;  %v2920_v31 = vpop.permute.xlu0 %2919  ;;  %v5083_v32 = vpop.permute.xlu1 %5082  ;;  %v5073_v49 = vpack.c.b16 %v5049_v2, %v5847_v10 }
 0x3cc   : > { %v10086_v39 = vpop.permute.xlu2 %5885  ;;  %7481 = vmatmul.msk.bf16.gmra.mxu3 %vm246_vm0, %v2918_v56  ;;  %v10111_v59 = vpack.c.b16 %v5656_v50, %v5655_v25 }
 0x3cd   : > { %v3341_v15 = vpop.f32.mrf.mxu1  ;;  %3365 = vmatmul.bf16.gmra.mxu1 %v3013_v6 }
 0x3ce   : > { %v3342_v60 = vadd.f32 %v3341_v15, %v3253_v7  ;;  %v11990_v7 = vpack.c.b16 %v9804_v22, %v9794_v43 }
 0x3d0   : > { %v5217_v33 = vld [vmem:[#allocation3 + $0xe0] sm:$0xff]  ;;  %v10096_v51 = vld [vmem:[#allocation3 + $0xe8] sm:$0x3] }
 0x3d1   : > { %v10106_v12 = vrot.slane %v5217_v33, 1  ;;  %v5361_v10 = vrot.slane %v10096_v51, 1 }
 0x3d2   : > { %v3430_v23 = vpop.f32.mrf.mxu3  ;;  %5096 = vrot.lane.b32.xlu0 %v5073_v49, %s7788_s13 }
 0x3d3   : > { %v3431_v42 = vadd.f32 %v3430_v23, %v3342_v60  ;;  %v10098_v9 = vpop.permute.xlu0 %4282  ;;  %v4173_v56 = vpop.permute.xlu1 %4172  ;;  %v5360_v6 = vsel %vm549_vm2, %v5358_v16, %v10106_v12  ;;  %v5362_v2 = vsel %vm549_vm2, %v10106_v12, %v5361_v10  ;;  %v5258_v10 = vpack.c.bf16 %v5217_v33, %v5217_v33 }
 0x3d4   : > { %v10100_v14 = vpop.permute.xlu2 %5086  ;;  %v10104_v4 = vsel %vm246_vm0, %v9593_v26, %v4173_v56  ;;  %v5449_v56 = vpack.c.bf16 %v5360_v6, %v5360_v6  ;;  %v5450_v50 = vpack.c.bf16 %v5362_v2, %v5362_v2 }
 0x3d5   : > { %vm3483_vm13 = vcmp.gt.f32.partialorder %v3431_v42, 0.0  ;;  %v3515_v37 = vmul.f32 0.1, %v3431_v42  ;;  %v3343_v29 = vpop.f32.mrf.mxu1 }
 0x3d6   : > { %v3344_v52 = vadd.f32 %v3343_v29, %v3255_v40  ;;  %v10141_v29 = vld [vmem:[#allocation3 + $0xd8] sm:$0xff]  ;;  %v10143_v40 = vld [vmem:[#allocation3 + $0xe0] sm:$0xff] }
 0x3d7   : > { %v3547_v19 = vsel %vm3483_vm13, %v3431_v42, %v3515_v37  ;;  %v3016_v42 = vsel %vm1191_vm4, %v9075_v28, %v2920_v31  ;;  %v4561_v37 = vsel %vm549_vm2, %v10068_v3, %v4560_v61  ;;  %v10139_v28 = vunpack.c.l.b16 %v5449_v56 }
 0x3d8   : > { %3580 = vst.msk [vmem:[#allocation3 + $0xf1] sm:$0xff] %vm246_vm0, %v3547_v19  ;;  %v4649_v19 = vpack.c.bf16 %v4561_v37, %v4561_v37  ;;  %v5503_v3 = vrot.slane %v5217_v33, 2  ;;  %v4420_v37 = vld [vmem:[#allocation3 + $0xe8] sm:$0x3] }
 0x3da   : > { %v3432_v15 = vpop.f32.mrf.mxu3  ;;  %4180 = vrot.lane.b32.xlu0 %v11990_v7, %s7787_s29  ;;  %v3660_v7 = vpack.c.bf16 %v10141_v29, %v10141_v29  ;;  %v4937_v33 = vunpack.c.l.b16 %v4649_v19 }
 0x3db   : > { %v3433_v27 = vadd.f32 %v3432_v15, %v3344_v52  ;;  %v4971_v49 = vpop.permute.xlu0 %4970  ;;  %v10122_v24 = vpop.permute.xlu1 %4286  ;;  %v5658_v52 = vunpack.c.l.b16 %v5258_v10  ;;  %v5505_v15 = vrot.slane %v10096_v51, 2 }
 0x3dc   : > { %v5116_v60 = vsel %vm246_vm0, %v9593_v26, %v4971_v49  ;;  %v4177_v23 = vpop.permute.xlu2 %4176  ;;  %7482 = vmatmul.msk.bf16.gmra.mxu3 %vm246_vm0, %v2920_v31  ;;  %v5257_v26 = vpack.c.bf16 %v5216_v55, %v5216_v55  ;;  %v5738_v31 = vunpack.c.l.b16 %v5450_v50 }
 0x3dd   : > { %vm3484_vm14 = vcmp.gt.f32.partialorder %v3433_v27, 0.0  ;;  %v3516_v43 = vmul.f32 0.1, %v3433_v27  ;;  %v10132_v22 = vsel %vm246_vm0, %v9618_v36, %v4177_v23  ;;  %3370 = vmatmul.bf16.gmra.mxu1 %v3016_v42  ;;  %v5163_v46 = vsel %vm1191_vm4, %v5116_v60, %v5083_v32 }
 0x3de   : > { %6011 = vrot.lane.b32.xlu1 %v5163_v46, %s7789_s15  ;;  %v5917_v32 = vsel %vm246_vm0, %v9591_v20, %v10054_v34  ;;  %v5657_v16 = vunpack.c.l.b16 %v5257_v26  ;;  %v5762_v61 = vpack.c.b16 %v5738_v31, %v10139_v28  ;;  %v5502_v34 = vrot.slane %v5216_v55, 2 }
 0x3df   : > { %v3548_v25 = vsel %vm3484_vm14, %v3433_v27, %v3516_v43  ;;  %v3661_v27 = vpack.c.bf16 %v10143_v40, %v10143_v40  ;;  %v10158_v23 = vld [vmem:[#allocation3 + $0xf0] sm:$0xff]  ;;  %v5506_v42 = vsel %vm694_vm3, %v5503_v3, %v5505_v15  ;;  %v10165_v43 = vunpack.c.l.b16 %v3660_v7 }
 0x3e0   : > { %3581 = vst.msk [vmem:[#allocation3 + $0xf9] sm:$0xff] %vm246_vm0, %v3548_v25  ;;  %v10155_v60 = vpack.c.b16 %v5658_v52, %v5657_v16  ;;  %v5504_v51 = vsel %vm694_vm3, %v5502_v34, %v5503_v3  ;;  %v5363_v26 = vrot.slane %v10158_v23, 1  ;;  %v5119_v31 = vsel %vm246_vm0, %v9591_v20, %v10077_v53 }
 0x3e1   : > { %v10167_v46 = vunpack.c.l.b16 %v3661_v27  ;;  %v5594_v19 = vpack.c.bf16 %v5506_v42, %v5506_v42  ;;  %v4961_v27 = vpack.c.b16 %v4937_v33, %v10080_v18  ;;  %v4565_v42 = vrot.slane %v4420_v37, 1 }
 0x3e3   : > { %v5884_v6 = vpop.permute.xlu0 %5883  ;;  %v5774_v2 = vpop.permute.xlu1 %5773  ;;  %v5850_v33 = vunpack.c.l.b16 %v5594_v19 }
 0x3e4   : > { %v5964_v49 = vsel %vm1191_vm4, %v5917_v32, %v5884_v6  ;;  %v5593_v32 = vpack.c.bf16 %v5504_v51, %v5504_v51  ;;  %v10182_v6 = vld [vmem:[#allocation3 + $0xc0] sm:$0xff]  ;;  %v10188_v51 = vld [vmem:[#allocation3 + $0xc8] sm:$0xff] }
 0x3e5   : > { %6059 = vrot.lane.b32.xlu2 %v5964_v49, %s7788_s13 }
 0x3e6   : > { %5785 = vrot.lane.b32.xlu1 %v5762_v61, %s7787_s29  ;;  %v4709_v61 = vrot.slane %v4420_v37, 2  ;;  %v5849_v18 = vunpack.c.l.b16 %v5593_v32  ;;  %v4566_v37 = vsel %vm549_vm2, %v10106_v12, %v4565_v42 }
 0x3e7   : > { %v5220_v56 = vld [vmem:[#allocation3 + $0xf8] sm:$0xff]  ;;  %v10163_v50 = vld [vmem:[#allocation3 + $0x100] sm:$0x3]  ;;  %v4651_v42 = vpack.c.bf16 %v4566_v37, %v4566_v37 }
 0x3e8   : > { %v10170_v25 = vrot.slane %v5220_v56, 1  ;;  %v5366_v55 = vrot.slane %v10163_v50, 1 }
 0x3ea   : > { %v5365_v16 = vsel %vm549_vm2, %v5363_v26, %v10170_v25  ;;  %v5367_v52 = vsel %vm549_vm2, %v10170_v25, %v5366_v55  ;;  %v3658_v26 = vpack.c.bf16 %v10182_v6, %v10182_v6  ;;  %v11991_v55 = vpack.c.b16 %v9806_v44, %v9796_v47 }
 0x3eb   : > { %v5085_v15 = vpop.permute.xlu0 %5084  ;;  %v10184_v7 = vpop.permute.xlu1 %4974  ;;  %v5451_v49 = vpack.c.bf16 %v5365_v16, %v5365_v16  ;;  %v5452_v53 = vpack.c.bf16 %v5367_v52, %v5367_v52  ;;  %v4710_v52 = vsel %vm694_vm3, %v5503_v3, %v4709_v61  ;;  %v5920_v47 = vsel %vm246_vm0, %v9618_v36, %v5774_v2  ;;  %v10219_v2 = vld [vmem:[#allocation3 + $0xf0] sm:$0xff] }
 0x3ec   : > { %v5165_v34 = vsel %vm1191_vm4, %v5119_v31, %v5085_v15  ;;  %v3659_v15 = vpack.c.bf16 %v10188_v51, %v10188_v51  ;;  %v4795_v44 = vpack.c.bf16 %v4710_v52, %v4710_v52  ;;  %v5259_v3 = vpack.c.bf16 %v10158_v23, %v10158_v23  ;;  %v10221_v52 = vld [vmem:[#allocation3 + $0xf8] sm:$0xff] }
 0x3ed   : > { %4984 = vrot.lane.b32.xlu2 %v4961_v27, %s7787_s29  ;;  %6013 = vrot.lane.b32.xlu0 %v5165_v34, %s7789_s15  ;;  %v10198_v16 = vunpack.c.l.b16 %v5451_v49  ;;  %v5740_v31 = vunpack.c.l.b16 %v5452_v53  ;;  %v10205_v27 = vunpack.c.l.b16 %v3658_v26  ;;  %v5874_v49 = vpack.c.b16 %v5850_v33, %v5849_v18 }
 0x3ee   : > { %4292 = vrot.lane.b32.xlu1 %v11991_v55, %s7788_s13  ;;  %v10207_v34 = vunpack.c.l.b16 %v3659_v15  ;;  %v5508_v26 = vrot.slane %v5220_v56, 2  ;;  %v5510_v55 = vrot.slane %v10163_v50, 2  ;;  %v5966_v33 = vsel %vm1191_vm4, %v5920_v47, %v10086_v39 }
 0x3ef   : > { %v5763_v53 = vpack.c.b16 %v5740_v31, %v10198_v16  ;;  %v5260_v31 = vpack.c.bf16 %v5220_v56, %v5220_v56  ;;  %v5051_v15 = vunpack.c.l.b16 %v4795_v44  ;;  %v5659_v37 = vunpack.c.l.b16 %v5259_v3 }
 0x3f0   : > { %v3662_v50 = vpack.c.bf16 %v10219_v2, %v10219_v2  ;;  %v3663_v10 = vpack.c.bf16 %v10221_v52, %v10221_v52  ;;  %v5511_v61 = vsel %vm694_vm3, %v5508_v26, %v5510_v55 }
 0x3f1   : > { %v5074_v56 = vpack.c.b16 %v5051_v15, %v5849_v18 }
 0x3f2   : > { %v10237_v3 = vunpack.c.l.b16 %v3662_v50 }
 0x3f3   : > { %v4175_v32 = vpop.permute.xlu0 %4174  ;;  %v5888_v19 = vpop.permute.xlu1 %5887 }
 0x3f4   : > { %v4322_v12 = vsel %vm246_vm0, %v9591_v20, %v4175_v32  ;;  %v5507_v20 = vrot.slane %v10158_v23, 2  ;;  %v5660_v32 = vunpack.c.l.b16 %v5260_v31  ;;  %v5596_v23 = vpack.c.bf16 %v5511_v61, %v5511_v61  ;;  %11992 = vst [vmem:[#allocation20_spill] sm:$0xff] %v10237_v3  ;;  %v4423_v61 = vld [vmem:[#allocation3 + $0x100] sm:$0x3] }
 0x3f5   : > { %5897 = vrot.lane.b32.xlu2 %v5874_v49, %s7788_s13  ;;  %5787 = vrot.lane.b32.xlu0 %v5763_v53, %s7787_s29  ;;  %v4939_v49 = vunpack.c.l.b16 %v4651_v42  ;;  %v10239_v31 = vunpack.c.l.b16 %v3663_v10  ;;  %v5122_v10 = vsel %vm246_vm0, %v9618_v36, %v10184_v7  ;;  %v4714_v7 = vrot.slane %v4423_v61, 2 }
 0x3f6   : > { %6061 = vrot.lane.b32.xlu1 %v5966_v33, %s7788_s13  ;;  %v5509_v53 = vsel %vm694_vm3, %v5507_v20, %v5508_v26  ;;  %v10235_v39 = vpack.c.b16 %v5660_v32, %v5659_v37  ;;  %v5852_v15 = vunpack.c.l.b16 %v5596_v23 }
 0x3f7   : > { %v5595_v33 = vpack.c.bf16 %v5509_v53, %v5509_v53  ;;  %v4962_v42 = vpack.c.b16 %v4939_v49, %v10139_v28  ;;  %v4570_v49 = vrot.slane %v4423_v61, 1  ;;  %v10261_v53 = vsel %vm1191_vm4, %v4322_v12, %v10122_v24 }
 0x3f8   : > { %v3258_v24 = vadd.f32 %v9923_v1, %v9218_v54 }
 0x3f9   : > { %v5851_v18 = vunpack.c.l.b16 %v5595_v33 }
 0x3fb   : > { %v4289_v47 = vpop.permute.xlu0 %4288  ;;  %v5089_v44 = vpop.permute.xlu1 %5088  ;;  %v5875_v28 = vpack.c.b16 %v5852_v15, %v5851_v18  ;;  %v11993_v15 = vpack.c.b16 %v9902_v45, %v9888_v21  ;;  %v3260_v21 = vadd.f32 %v9923_v1, %v9244_v17  ;;  %v7602_v17 = vld [vmem:[%s11970_s3 + $0x38] sm:$0xff] }
 0x3fc   : > { %v10243_v30 = vsel %vm1191_vm4, %v10132_v22, %v4289_v47  ;;  %v5167_v22 = vsel %vm1191_vm4, %v5122_v10, %v10100_v14  ;;  %v4571_v14 = vsel %vm549_vm2, %v10170_v25, %v4570_v49  ;;  %v4715_v47 = vsel %vm694_vm3, %v5508_v26, %v4714_v7  ;;  %v7610_v7 = vld [vmem:[%s11970_s3 + $0x78] sm:$0xff]  ;;  %6367 = vmatpush.bf16.msrb.mxu3 %v7602_v17 }
 0x3fd   : > { %5098 = vrot.lane.b32.xlu2 %v5074_v56, %s7788_s13  ;;  %v4291_v56 = vpop.permute.xlu2 %4290  ;;  %v11994_v26 = vpack.c.b16 %v9904_v58, %v9890_v41  ;;  %6456 = vmatpush.bf16.msrb.mxu2 %v7610_v7 }
 0x3fe   : > { %4986 = vrot.lane.b32.xlu1 %v4962_v42, %s7787_s29  ;;  %v4653_v42 = vpack.c.bf16 %v4571_v14, %v4571_v14 }
 0x403   : > { %v5776_v20 = vpop.permute.xlu0 %5775  ;;  %v4179_v37 = vpop.permute.xlu1 %4178 }
 0x404   : > { %v5923_v32 = vsel %vm246_vm0, %v9736_v5, %v5776_v20  ;;  %v4328_v50 = vsel %vm246_vm0, %v9736_v5, %v4179_v37  ;;  %v4941_v20 = vunpack.c.l.b16 %v4653_v42 }
 0x405   : > { %6015 = vrot.lane.b32.xlu2 %v5167_v22, %s7789_s15  ;;  %v5968_v36 = vsel %vm1191_vm4, %v5923_v32, %v5888_v19  ;;  %v4797_v19 = vpack.c.bf16 %v4715_v47, %v4715_v47  ;;  %v5778_v54 = vpop.permute.xlu2 %5777 }
 0x406   : > { %5899 = vrot.lane.b32.xlu1 %v5875_v28, %s7788_s13  ;;  %6063 = vrot.lane.b32.xlu0 %v5968_v36, %s7788_s13  ;;  %v5926_v45 = vsel %vm246_vm0, %v9800_v63, %v5778_v54  ;;  %v4963_v41 = vpack.c.b16 %v4941_v20, %v10198_v16  ;;  %v10291_v36 = vsel %vm1191_vm4, %v4328_v50, %v4291_v56 }
 0x407   : > { %v5053_v37 = vunpack.c.l.b16 %v4797_v19  ;;  %v7612_v19 = vld [vmem:[%s11970_s3 + $0x88] sm:$0xff] }
 0x408   : > { %6551 = vmatpush.bf16.msrb.mxu0 %v7612_v19  ;;  %v7598_v19 = vld [vmem:[%s11970_s3 + $0x18] sm:$0xff] }
 0x409   : > { %v5075_v49 = vpack.c.b16 %v5053_v37, %v5851_v18  ;;  %v11996_v37 = vld [vmem:[#allocation11_spill] sm:$0xff] }
 0x40a   : > { %v3346_v33 = vpop.f32.mrf.mxu1 }
 0x40b   : > { %v4977_v23 = vpop.permute.xlu0 %4976  ;;  %v3347_v25 = vadd.f32 %v3346_v33, %v3258_v24  ;;  %v11995_v33 = vld [vmem:[#allocation10_spill] sm:$0xff]  ;;  %v7601_v24 = vld [vmem:[%s11970_s3 + $0x30] sm:$0xff] }
 0x40c   : > { %v5125_v12 = vsel %vm246_vm0, %v9736_v5, %v4977_v23  ;;  %v3263_v23 = vadd.f32 %v9923_v1, %v11995_v33  ;;  %6368 = vmatpush.bf16.msrb.mxu3 %v7601_v24 }
 0x40d   : > { %4182 = vrot.lane.b32.xlu2 %v11993_v15, %s7787_s29  ;;  %v5169_v10 = vsel %vm1191_vm4, %v5125_v12, %v5089_v44  ;;  %v10303_v56 = vpop.permute.xlu2 %4978  ;;  %v7609_v12 = vld [vmem:[%s11970_s3 + $0x70] sm:$0xff]  ;;  %v5780_v15 = vpop.permute.xlu1 %5779 }
 0x40e   : > { %4294 = vrot.lane.b32.xlu0 %v11994_v26, %s7788_s13  ;;  %6017 = vrot.lane.b32.xlu1 %v5169_v10, %s7789_s15  ;;  %v7608_v26 = vld [vmem:[%s11970_s3 + $0x68] sm:$0xff]  ;;  %v5929_v35 = vsel %vm246_vm0, %v9900_v57, %v5780_v15 }
 0x40f   : > { %v3435_v61 = vpop.f32.mrf.mxu3  ;;  %6457 = vmatpush.bf16.msrb.mxu2 %v7609_v12 }
 0x410   : > { %v3436_v5 = vadd.f32 %v3435_v61, %v3347_v25  ;;  %v7600_v25 = vld [vmem:[%s11970_s3 + $0x28] sm:$0xff]  ;;  %v7611_v61 = vld [vmem:[%s11970_s3 + $0x80] sm:$0xff] }
 0x411   : > { %6369 = vmatpush.bf16.msrb.mxu3 %v7600_v25  ;;  %6552 = vmatpush.bf16.msrb.mxu0 %v7611_v61 }
 0x412   : > { %vm3485_vm15 = vcmp.gt.f32.partialorder %v3436_v5, 0.0  ;;  %v3517_v22 = vmul.f32 0.1, %v3436_v5  ;;  %v3348_v28 = vpop.f32.mrf.mxu1 }
 0x413   : > { %v5890_v44 = vpop.permute.xlu0 %5889  ;;  %v3349_v16 = vadd.f32 %v3348_v28, %v3260_v21  ;;  %6458 = vmatpush.bf16.msrb.mxu2 %v7608_v26  ;;  %v7606_v26 = vld [vmem:[%s11970_s3 + $0x58] sm:$0xff] }
 0x414   : > { %v3549_v58 = vsel %vm3485_vm15, %v3436_v5, %v3517_v22  ;;  %v5970_v32 = vsel %vm1191_vm4, %v5926_v45, %v5890_v44  ;;  %v10337_v5 = vld [vmem:[%s11969_s2] ss:$0 sm:$0xff] }
 0x415   : > { %3582 = vst.msk [vmem:[#allocation3 + $0x109] sm:$0xff] %vm246_vm0, %v3549_v58  ;;  %6065 = vrot.lane.b32.xlu2 %v5970_v32, %s7788_s13  ;;  %v3265_v22 = vadd.f32 %v10337_v5, %v11996_v37  ;;  %v5892_v28 = vpop.permute.xlu2 %5891 }
 0x416   : > { %4988 = vrot.lane.b32.xlu0 %v4963_v41, %s7787_s29  ;;  %5100 = vrot.lane.b32.xlu1 %v5075_v49, %s7788_s13  ;;  %v5972_v45 = vsel %vm1191_vm4, %v5929_v35, %v5892_v28 }
 0x417   : > { %v3437_v18 = vpop.f32.mrf.mxu3 }
 0x418   : > { %v3438_v50 = vadd.f32 %v3437_v18, %v3349_v16  ;;  %v7599_v18 = vld [vmem:[%s11970_s3 + $0x20] sm:$0xff] }
 0x419   : > { %6370 = vmatpush.bf16.msrb.mxu3 %v7599_v18 }
 0x41a   : > { %vm3486_vm1 = vcmp.gt.f32.partialorder %v3438_v50, 0.0  ;;  %v3518_v14 = vmul.f32 0.1, %v3438_v50  ;;  %v3351_v47 = vpop.f32.mrf.mxu1 }
 0x41b   : > { %v3352_v10 = vadd.f32 %v3351_v47, %v3263_v23  ;;  %v7607_v47 = vld [vmem:[%s11970_s3 + $0x60] sm:$0xff] }
 0x41c   : > { %v3550_v42 = vsel %vm3486_vm1, %v3438_v50, %v3518_v14  ;;  %v10332_v38 = vld [vmem:[#allocation3 + $0x108] sm:$0xff]  ;;  %v10354_v50 = vpop.permute.xlu0 %5090  ;;  %6459 = vmatpush.bf16.msrb.mxu2 %v7607_v47  ;;  %v7605_v47 = vld [vmem:[%s11970_s3 + $0x50] sm:$0xff]  ;;  %vm6721_vm1 = vcmask 1043459  }
 0x41d   : > { %3583 = vst.msk [vmem:[#allocation3 + $0x111] sm:$0xff] %vm246_vm0, %v3550_v42  ;;  %v5368_v58 = vrot.slane %v10332_v38, 1  ;;  %v5512_v32 = vrot.slane %v10332_v38, 2  ;;  %6371 = vmatpush.bf16.msrb.mxu3 %v7598_v19 }
 0x41e   : > { %4184 = vrot.lane.b32.xlu1 %v4161_v48, %s7787_s29 }
 0x41f   : > { %v3440_v1 = vpop.f32.mrf.mxu3 }
 0x420   : > { %v3441_v54 = vadd.f32 %v3440_v1, %v3352_v10  ;;  %6460 = vmatpush.bf16.msrb.mxu2 %v7606_v26  ;;  %v7604_v26 = vld [vmem:[%s11970_s3 + $0x48] sm:$0xff] }
 0x422   : > { %vm3487_vm6 = vcmp.gt.f32.partialorder %v3441_v54, 0.0  ;;  %v3519_v48 = vmul.f32 0.1, %v3441_v54  ;;  %v3353_v20 = vpop.f32.mrf.mxu1 }
 0x423   : > { %v3354_v14 = vadd.f32 %v3353_v20, %v3265_v22 }
 0x424   : > { %v3551_v21 = vsel %vm3487_vm6, %v3441_v54, %v3519_v48  ;;  %v10342_v44 = vld [vmem:[#allocation3 + $0x110] sm:$0xff]  ;;  %v5224_v41 = vld [vmem:[#allocation3 + $0x118] sm:$0x3]  ;;  %6461 = vmatpush.bf16.msrb.mxu2 %v7605_v47  ;;  %vm6724_vm6 = vcmask 1044484  }
 0x425   : > { %3584 = vst.msk [vmem:[#allocation3 + $0x121] sm:$0xff] %vm246_vm0, %v3551_v21  ;;  %v5369_v49 = vrot.slane %v10342_v44, 1  ;;  %v5371_v17 = vrot.slane %v5224_v41, 1  ;;  %v10349_v7 = vrot.slane %v10342_v44, 2  ;;  %v5515_v16 = vrot.slane %v5224_v41, 2  ;;  %v11997_v21 = vld [vmem:[#allocation12_spill] sm:$0xff] }
 0x426   : > { %6067 = vrot.lane.b32.xlu1 %v5972_v45, %s7788_s13  ;;  %v4426_v61 = vld [vmem:[#allocation3 + $0x118] sm:$0x3]  ;;  %v3268_v45 = vadd.f32 %v10337_v5, %v11997_v21 }
 0x427   : > { %v3442_v33 = vpop.f32.mrf.mxu3  ;;  %v5370_v23 = vsel %vm549_vm2, %v5368_v58, %v5369_v49  ;;  %v5372_v42 = vsel %vm549_vm2, %v5369_v49, %v5371_v17  ;;  %v5514_v24 = vsel %vm694_vm3, %v5512_v32, %v10349_v7  ;;  %v5516_v12 = vsel %vm694_vm3, %v10349_v7, %v5515_v16  ;;  %v7683_v17 = vld [vmem:[#allocation3] sm:$0xff] }
 0x428   : > { %v3443_v15 = vadd.f32 %v3442_v33, %v3354_v14  ;;  %v5453_v10 = vpack.c.bf16 %v5370_v23, %v5370_v23  ;;  %v5454_v1 = vpack.c.bf16 %v5372_v42, %v5372_v42  ;;  %v5597_v25 = vpack.c.bf16 %v5514_v24, %v5514_v24  ;;  %v7597_v14 = vld [vmem:[%s11970_s3 + $0x10] sm:$0xff]  ;;  %v7684_v42 = vld [vmem:[#allocation3 + $0x8] sm:$0xff]  ;;  %6462 = vmatpush.bf16.msrb.mxu2 %v7604_v26  ;;  %v7603_v26 = vld [vmem:[%s11970_s3 + $0x40] sm:$0xff] }
 0x429   : > { %v5598_v54 = vpack.c.bf16 %v5516_v12, %v5516_v12  ;;  %v4575_v32 = vrot.slane %v4426_v61, 1  ;;  %v3642_v16 = vpack.c.bf16 %v7683_v17, %v7683_v17  ;;  %v4719_v23 = vrot.slane %v4426_v61, 2  ;;  %v10388_v12 = vpop.permute.xlu2 %5092  ;;  %6372 = vmatpush.bf16.msrb.mxu3 %v7597_v14 }
 0x42a   : > { %vm3488_vm7 = vcmp.gt.f32.partialorder %v3443_v15, 0.0  ;;  %v3520_v35 = vmul.f32 0.1, %v3443_v15  ;;  %v3356_v48 = vpop.f32.mrf.mxu1  ;;  %v10372_v20 = vunpack.c.l.b16 %v5453_v10  ;;  %v5742_v37 = vunpack.c.l.b16 %v5454_v1  ;;  %v10394_v10 = vpop.permute.xlu0 %5781 }
 0x42b   : > { %v10374_v22 = vunpack.c.l.b16 %v5597_v25  ;;  %v5854_v28 = vunpack.c.l.b16 %v5598_v54  ;;  %v3357_v33 = vadd.f32 %v3356_v48, %v3268_v45  ;;  %v3643_v24 = vpack.c.bf16 %v7684_v42, %v7684_v42  ;;  %v11998_v54 = vld [vmem:[#allocation13_spill] sm:$0xff]  ;;  %v10404_v48 = vld [vmem:[#allocation3 + $0xd0] sm:$0x3] }
 0x42c   : > { %v3552_v41 = vsel %vm3488_vm7, %v3443_v15, %v3520_v35  ;;  %v5764_v58 = vpack.c.b16 %v5742_v37, %v10372_v20  ;;  %v7596_v15 = vld [vmem:[%s11970_s3 + $0x8] sm:$0xff]  ;;  %v4576_v25 = vsel %vm549_vm2, %v5369_v49, %v4575_v32  ;;  %v3270_v61 = vadd.f32 %v10337_v5, %v11998_v54  ;;  %v10408_v45 = vld [vmem:[#allocation3 + $0x120] sm:$0xff]  ;;  %6463 = vmatpush.bf16.msrb.mxu2 %v7603_v26 }
 0x42d   : > { %3585 = vst.msk [vmem:[#allocation3 + $0x129] sm:$0xff] %vm246_vm0, %v3552_v41  ;;  %v5876_v18 = vpack.c.b16 %v5854_v28, %v10374_v22  ;;  %v10402_v35 = vunpack.c.l.b16 %v3642_v16  ;;  %v4720_v21 = vsel %vm694_vm3, %v10349_v7, %v4719_v23  ;;  %v3907_v49 = vrot.slane %v10188_v51, 2  ;;  %6373 = vmatpush.bf16.msrb.mxu3 %v7596_v15 }
 0x42e   : > { %5789 = vrot.lane.b32.xlu2 %v5764_v58, %s7787_s29  ;;  %v10411_v41 = vunpack.c.l.b16 %v3643_v24  ;;  %v4655_v58 = vpack.c.bf16 %v4576_v25, %v4576_v25  ;;  %v3906_v32 = vrot.slane %v10182_v6, 2  ;;  %v5261_v17 = vpack.c.bf16 %v10332_v38, %v10332_v38 }
 0x42f   : > { %5901 = vrot.lane.b32.xlu0 %v5876_v18, %s7788_s13  ;;  %v3445_v19 = vpop.f32.mrf.mxu3  ;;  %v5128_v16 = vsel %vm246_vm0, %v9800_v63, %v10303_v56  ;;  %v10419_v18 = vpop.permute.xlu1 %4980  ;;  %v5262_v23 = vpack.c.bf16 %v10342_v44, %v10342_v44  ;;  %v4799_v38 = vpack.c.bf16 %v4720_v21, %v4720_v21  ;;  %v5373_v42 = vrot.slane %v10408_v45, 1 }
 0x430   : > { %v3446_v1 = vadd.f32 %v3445_v19, %v3357_v33  ;;  %v3909_v33 = vrot.slane %v10404_v48, 2  ;;  %v7595_v19 = vld [vmem:[%s11970_s3] sm:$0xff]  ;;  %v5171_v15 = vsel %vm1191_vm4, %v5128_v16, %v10354_v50  ;;  %v11999_v44 = vpack.c.b16 %v10021_v8, %v10002_v62 }
 0x431   : > { %v3908_v25 = vsel %vm694_vm3, %v3906_v32, %v3907_v49  ;;  %v5662_v54 = vunpack.c.l.b16 %v5262_v23  ;;  %v5661_v8 = vunpack.c.l.b16 %v5261_v17  ;;  %6374 = vmatpush.bf16.msrb.mxu3 %v7595_v19  ;;  %v12000_v23 = vld [vmem:[#allocation14_spill] sm:$0xff]  ;;  %v5055_v55 = vunpack.c.l.b16 %v4799_v38 }
 0x432   : > { %vm3489_vm8 = vcmp.gt.f32.partialorder %v3446_v1, 0.0  ;;  %v3521_v37 = vmul.f32 0.1, %v3446_v1  ;;  %v3358_v28 = vpop.f32.mrf.mxu1  ;;  %v3910_v16 = vsel %vm694_vm3, %v3907_v49, %v3909_v33  ;;  %v3994_v33 = vpack.c.bf16 %v3908_v25, %v3908_v25 }
 0x433   : > { %v3995_v19 = vpack.c.bf16 %v3910_v16, %v3910_v16  ;;  %v5517_v25 = vrot.slane %v10408_v45, 2  ;;  %vm6727_vm7 = vcmask 1045509  }
 0x434   : > { %v3553_v7 = vsel %vm3489_vm8, %v3446_v1, %v3521_v37  ;;  %v10421_v14 = vld [vmem:[#allocation3 + $0x128] sm:$0xff]  ;;  %v10423_v47 = vld [vmem:[#allocation3 + $0x130] sm:$0x3]  ;;  %v3359_v1 = vadd.f32 %v3358_v28, %v3270_v61  ;;  %v10447_v37 = vpop.permute.xlu2 %5783  ;;  %vm6730_vm8 = vcmask 1046534  }
 0x435   : > { %3586 = vst.msk [vmem:[#allocation3 + $0x139] sm:$0xff] %vm246_vm0, %v3553_v7  ;;  %v10431_v56 = vrot.slane %v10421_v14, 1  ;;  %v5376_v24 = vrot.slane %v10423_v47, 1  ;;  %v4943_v7 = vunpack.c.l.b16 %v4655_v58  ;;  %v10459_v58 = vpop.permute.xlu0 %4982  ;;  %v10468_v26 = vrot.slane %v10421_v14, 2 }
 0x436   : > { %4296 = vrot.lane.b32.xlu2 %v11999_v44, %s7788_s13  ;;  %v3273_v44 = vadd.f32 %v10337_v5, %v12000_v23  ;;  %v12003_v23 = vld [vmem:[#allocation17_spill] sm:$0xff] }
 0x437   : > { %6019 = vrot.lane.b32.xlu0 %v5171_v15, %s7789_s15  ;;  %v3447_v21 = vpop.f32.mrf.mxu3  ;;  %v5375_v50 = vsel %vm549_vm2, %v5373_v42, %v10431_v56  ;;  %v5377_v62 = vsel %vm549_vm2, %v10431_v56, %v5376_v24  ;;  %v10457_v15 = vpack.c.b16 %v5662_v54, %v5661_v8  ;;  %v4964_v49 = vpack.c.b16 %v4943_v7, %v10372_v20  ;;  %v12001_v7 = vld [vmem:[#allocation15_spill] sm:$0xff] }
 0x438   : > { %v3448_v61 = vadd.f32 %v3447_v21, %v3359_v1  ;;  %v5455_v28 = vpack.c.bf16 %v5375_v50, %v5375_v50  ;;  %v5456_v32 = vpack.c.bf16 %v5377_v62, %v5377_v62  ;;  %v4074_v1 = vpack.c.b16 %v10411_v41, %v10402_v35  ;;  %v5894_v41 = vpop.permute.xlu1 %5893 }
 0x439   : > { %v5520_v54 = vrot.slane %v10423_v47, 2  ;;  %v5076_v50 = vpack.c.b16 %v5055_v55, %v10374_v22  ;;  %v3763_v62 = vrot.slane %v10188_v51, 1  ;;  %v3765_v35 = vrot.slane %v10404_v48, 1 }
 0x43a   : > { %vm3490_vm9 = vcmp.gt.f32.partialorder %v3448_v61, 0.0  ;;  %v3522_v42 = vmul.f32 0.1, %v3448_v61  ;;  %v3361_v3 = vpop.f32.mrf.mxu1  ;;  %v10461_v24 = vunpack.c.l.b16 %v5455_v28  ;;  %v5744_v17 = vunpack.c.l.b16 %v5456_v32 }
 0x43b   : > { %v3362_v20 = vadd.f32 %v3361_v3, %v3273_v44  ;;  %v3275_v8 = vadd.f32 %v10337_v5, %v12001_v7  ;;  %v4316_v47 = vsel %vm246_vm0, %v4074_v1, %v10034_v0  ;;  %v4250_v22 = vunpack.c.l.b16 %v3994_v33  ;;  %v12002_v0 = vld [vmem:[#allocation16_spill] sm:$0xff] }
 0x43c   : > { %v3554_v21 = vsel %vm3490_vm9, %v3448_v61, %v3522_v42  ;;  %v5765_v38 = vpack.c.b16 %v5744_v17, %v10461_v24  ;;  %v3762_v3 = vrot.slane %v10182_v6, 1  ;;  %v4251_v61 = vunpack.c.l.b16 %v3995_v19  ;;  %v10502_v17 = vld [vmem:[#allocation3 + $0x130] sm:$0x3] }
 0x43d   : > { %3587 = vst.msk [vmem:[#allocation3 + $0x141] sm:$0xff] %vm246_vm0, %v3554_v21  ;;  %v5519_v28 = vsel %vm694_vm3, %v5517_v25, %v10468_v26  ;;  %v5521_v32 = vsel %vm694_vm3, %v10468_v26, %v5520_v54  ;;  %v10494_v16 = vadd.f32 %v10337_v5, %v12002_v0  ;;  %v10498_v44 = vadd.f32 %v10337_v5, %v12003_v23  ;;  %v10510_v33 = vpop.permute.xlu0 %5895 }
 0x43e   : > { %4990 = vrot.lane.b32.xlu2 %v4964_v49, %s7787_s29  ;;  %5791 = vrot.lane.b32.xlu1 %v5765_v38, %s7787_s29  ;;  %v3764_v6 = vsel %vm549_vm2, %v3762_v3, %v3763_v62  ;;  %v3766_v42 = vsel %vm549_vm2, %v3763_v62, %v3765_v35  ;;  %v5131_v1 = vsel %vm246_vm0, %v9900_v57, %v10419_v18  ;;  %v10529_v3 = vld [vmem:[#allocation3 + $0x138] sm:$0xff]  ;;  %vm6733_vm9 = vcmask 1047559  }
 0x43f   : > { %5102 = vrot.lane.b32.xlu0 %v5076_v50, %s7788_s13  ;;  %v3450_v55 = vpop.f32.mrf.mxu3  ;;  %v10483_v51 = vpop.permute.xlu2 %6059  ;;  %v5932_v49 = vsel %vm246_vm0, %v10017_v13, %v10394_v10  ;;  %v10514_v38 = vsel %vm1191_vm4, %v4316_v47, %v10098_v9  ;;  %v5599_v54 = vpack.c.bf16 %v5519_v28, %v5519_v28  ;;  %v5600_v50 = vpack.c.bf16 %v5521_v32, %v5521_v32 }
 0x440   : > { %v3451_v48 = vadd.f32 %v3450_v55, %v3362_v20  ;;  %7555 = vmatmul.msk.bf16.vlgmr.msrb.gmra.mxu0 %vm246_vm0, %v10483_v51  ;;  %v5263_v62 = vpack.c.bf16 %v10408_v45, %v10408_v45  ;;  %v4274_v18 = vpack.c.b16 %v4251_v61, %v4250_v22  ;;  %v4580_v10 = vrot.slane %v10502_v17, 1  ;;  %v5095_v23 = vpop.permute.xlu1 %5094 }
 0x441   : > { %v5264_v7 = vpack.c.bf16 %v10421_v14, %v10421_v14  ;;  %v5173_v9 = vsel %vm1191_vm4, %v5131_v1, %v10388_v12  ;;  %v5974_v47 = vsel %vm1191_vm4, %v5932_v49, %v5894_v41  ;;  %v3850_v55 = vpack.c.bf16 %v3764_v6, %v3764_v6  ;;  %v3623_v49 = vld [vmem:[#allocation3 + $0xe8] sm:$0x3] }
 0x442   : > { %vm3491_vm10 = vcmp.gt.f32.partialorder %v3451_v48, 0.0  ;;  %v3523_v19 = vmul.f32 0.1, %v3451_v48  ;;  %v3363_v21 = vpop.f32.mrf.mxu1  ;;  %v3851_v45 = vpack.c.bf16 %v3766_v42, %v3766_v42  ;;  %v10540_v41 = vunpack.c.l.b16 %v5599_v54 }
 0x443   : > { %v3364_v22 = vadd.f32 %v3363_v21, %v3275_v8  ;;  %v5664_v61 = vunpack.c.l.b16 %v5264_v7  ;;  %v5856_v32 = vunpack.c.l.b16 %v5600_v50  ;;  %v3912_v8 = vrot.slane %v10143_v40, 2 }
 0x444   : > { %v3555_v35 = vsel %vm3491_vm10, %v3451_v48, %v3523_v19  ;;  %v10518_v20 = vld [vmem:[#allocation3 + $0x140] sm:$0xff]  ;;  %v10520_v25 = vld [vmem:[#allocation3 + $0x148] sm:$0x3]  ;;  %v5663_v0 = vunpack.c.l.b16 %v5263_v62  ;;  %v5378_v42 = vrot.slane %v10529_v3, 1  ;;  %v4581_v1 = vsel %vm549_vm2, %v10431_v56, %v4580_v10 }
 0x445   : > { %3588 = vst.msk [vmem:[#allocation3 + $0x151] sm:$0xff] %vm246_vm0, %v3555_v35  ;;  %v10534_v48 = vrot.slane %v10518_v20, 1  ;;  %v5381_v14 = vrot.slane %v10520_v25, 1  ;;  %v3911_v19 = vrot.slane %v10141_v29, 2  ;;  %v5134_v21 = vsel %vm246_vm0, %v10017_v13, %v10459_v58 }
 0x446   : > { %4298 = vrot.lane.b32.xlu1 %v4274_v18, %s7788_s13  ;;  %6021 = vrot.lane.b32.xlu2 %v5173_v9, %s7789_s15  ;;  %v4138_v54 = vunpack.c.l.b16 %v3850_v55  ;;  %v4139_v35 = vunpack.c.l.b16 %v3851_v45  ;;  %v10550_v50 = vpack.c.b16 %v5664_v61, %v5663_v0  ;;  %v5877_v10 = vpack.c.b16 %v5856_v32, %v10540_v41  ;;  %v10560_v55 = vpop.permute.xlu0 %5096 }
 0x447   : > { %6069 = vrot.lane.b32.xlu0 %v5974_v47, %s7788_s13  ;;  %v3452_v12 = vpop.f32.mrf.mxu3  ;;  %v10538_v28 = vpop.permute.xlu2 %4984  ;;  %v5380_v7 = vsel %vm549_vm2, %v5378_v42, %v10534_v48  ;;  %v5382_v56 = vsel %vm549_vm2, %v10534_v48, %v5381_v14  ;;  %v4657_v9 = vpack.c.bf16 %v4581_v1, %v4581_v1  ;;  %v10558_v47 = vsel %vm694_vm3, %v3911_v19, %v3912_v8 }
 0x448   : > { %v3453_v6 = vadd.f32 %v3452_v12, %v3364_v22  ;;  %v3914_v58 = vrot.slane %v3623_v49, 2  ;;  %v4724_v22 = vrot.slane %v10502_v17, 2  ;;  %v10564_v61 = vrot.slane %v10518_v20, 2 }
 0x449   : > { %v5525_v12 = vrot.slane %v10520_v25, 2  ;;  %v4162_v14 = vpack.c.b16 %v4139_v35, %v4138_v54  ;;  %v5175_v32 = vsel %vm1191_vm4, %v5134_v21, %v5095_v23  ;;  %v5457_v0 = vpack.c.bf16 %v5380_v7, %v5380_v7 }
 0x44a   : > { %vm3492_vm11 = vcmp.gt.f32.partialorder %v3453_v6, 0.0  ;;  %v3524_v62 = vmul.f32 0.1, %v3453_v6  ;;  %v3366_v18 = vpop.f32.mrf.mxu1  ;;  %v5458_v42 = vpack.c.bf16 %v5382_v56, %v5382_v56  ;;  %v5522_v17 = vrot.slane %v10529_v3, 2 }
 0x44b   : > { %v3367_v1 = vadd.f32 %v3366_v18, %v10494_v16  ;;  %v3768_v19 = vrot.slane %v10143_v40, 1  ;;  %v4945_v23 = vunpack.c.l.b16 %v4657_v9  ;;  %v3915_v21 = vsel %vm694_vm3, %v3912_v8, %v3914_v58  ;;  %v10594_v58 = vld [vmem:[#allocation3 + $0x110] sm:$0xff] }
 0x44c   : > { %v3556_v45 = vsel %vm3492_vm11, %v3453_v6, %v3524_v62  ;;  %v3767_v6 = vrot.slane %v10141_v29, 1  ;;  %v3996_v16 = vpack.c.bf16 %v10558_v47, %v10558_v47  ;;  %v3770_v35 = vrot.slane %v3623_v49, 1 }
 0x44d   : > { %3589 = vst.msk [vmem:[#allocation3 + $0x159] sm:$0xff] %vm246_vm0, %v3556_v45  ;;  %v4725_v7 = vsel %vm694_vm3, %v10468_v26, %v4724_v22  ;;  %v5524_v29 = vsel %vm694_vm3, %v5522_v17, %v10564_v61  ;;  %v5526_v40 = vsel %vm694_vm3, %v10564_v61, %v5525_v12  ;;  %v5746_v49 = vunpack.c.l.b16 %v5458_v42 }
 0x44e   : > { %5903 = vrot.lane.b32.xlu2 %v5877_v10, %s7788_s13  ;;  %6023 = vrot.lane.b32.xlu1 %v5175_v32, %s7789_s15  ;;  %v10591_v10 = vunpack.c.l.b16 %v5457_v0  ;;  %v3769_v26 = vsel %vm549_vm2, %v3767_v6, %v3768_v19  ;;  %v5265_v45 = vpack.c.bf16 %v10529_v3, %v10529_v3  ;;  %v4801_v22 = vpack.c.bf16 %v4725_v7, %v4725_v7  ;;  %v4181_v6 = vpop.permute.xlu0 %4180 }
 0x44f   : > { %4186 = vrot.lane.b32.xlu0 %v4162_v14, %s7787_s29  ;;  %v3455_v25 = vpop.f32.mrf.mxu3  ;;  %v10576_v54 = vpop.permute.xlu2 %5897  ;;  %v3771_v12 = vsel %vm549_vm2, %v3768_v19, %v3770_v35  ;;  %v10603_v14 = vld [vmem:[#allocation3 + $0x108] sm:$0xff]  ;;  %v5601_v0 = vpack.c.bf16 %v5524_v29, %v5524_v29  ;;  %v5602_v42 = vpack.c.bf16 %v5526_v40, %v5526_v40  ;;  %v3997_v17 = vpack.c.bf16 %v3915_v21, %v3915_v21 }
 0x450   : > { %v3456_v62 = vadd.f32 %v3455_v25, %v3367_v1  ;;  %v6012_v18 = vpop.permute.xlu1 %6011  ;;  %v5266_v1 = vpack.c.bf16 %v10518_v20, %v10518_v20  ;;  %v5665_v25 = vunpack.c.l.b16 %v5265_v45  ;;  %v5057_v21 = vunpack.c.l.b16 %v4801_v22 }
 0x451   : > { %v6092_v56 = vsel %vm2921_vm5, %v10514_v38, %v6012_v18  ;;  %v6140_v8 = vsel %vm1191_vm4, %v6012_v18, %v10483_v51  ;;  %v5935_v38 = vsel %vm246_vm0, %v10111_v59, %v10447_v37  ;;  %v4965_v51 = vpack.c.b16 %v4945_v23, %v10461_v24 }
 0x452   : > { %vm3493_vm12 = vcmp.gt.f32.partialorder %v3456_v62, 0.0  ;;  %v3525_v9 = vmul.f32 0.1, %v3456_v62  ;;  %v3368_v47 = vpop.f32.mrf.mxu1  ;;  %6375 = vmatmul.bf16.vlgmr.msrb.gmra.mxu3 %v6092_v56  ;;  %6464 = vmatmul.bf16.vlgmr.msrb.gmra.mxu2 %v6140_v8  ;;  %v5976_v3 = vsel %vm1191_vm4, %v5935_v38, %v10510_v33  ;;  %v5766_v37 = vpack.c.b16 %v5746_v49, %v10591_v10 }
 0x453   : > { %v3665_v24 = vpack.c.bf16 %v10594_v58, %v10594_v58  ;;  %v3369_v19 = vadd.f32 %v3368_v47, %v10498_v44  ;;  %v5666_v20 = vunpack.c.l.b16 %v5266_v1  ;;  %v3664_v33 = vpack.c.bf16 %v10603_v14, %v10603_v14 }
 0x454   : > { %v3557_v32 = vsel %vm3493_vm12, %v3456_v62, %v3525_v9  ;;  %v3852_v62 = vpack.c.bf16 %v3769_v26, %v3769_v26  ;;  %v3853_v18 = vpack.c.bf16 %v3771_v12, %v3771_v12  ;;  %v10621_v44 = vunpack.c.l.b16 %v5601_v0  ;;  %v4432_v9 = vld [vmem:[#allocation3 + $0x148] sm:$0x3]  ;;  %v10629_v22 = vld [vmem:[#allocation3 + $0x160] sm:$0x3]  ;;  %v12004_v12 = vld [vmem:[#allocation18_spill] sm:$0xff] }
 0x455   : > { %3590 = vst.msk [vmem:[#allocation3 + $0x169] sm:$0xff] %vm246_vm0, %v3557_v32  ;;  %v5858_v40 = vunpack.c.l.b16 %v5602_v42  ;;  %v10623_v56 = vpack.c.b16 %v5666_v20, %v5665_v25  ;;  %v4252_v8 = vunpack.c.l.b16 %v3996_v16  ;;  %v4253_v49 = vunpack.c.l.b16 %v3997_v17 }
 0x456   : > { %6071 = vrot.lane.b32.xlu2 %v5976_v3, %s7788_s13  ;;  %4992 = vrot.lane.b32.xlu1 %v4965_v51, %s7787_s29  ;;  %v10625_v47 = vunpack.c.l.b16 %v3665_v24  ;;  %v10627_v51 = vld [vmem:[#allocation3 + $0x158] sm:$0xff]  ;;  %v10631_v26 = vunpack.c.l.b16 %v3664_v33  ;;  %v3283_v32 = vadd.f32 %v10337_v5, %v12004_v12  ;;  %v4140_v0 = vunpack.c.l.b16 %v3852_v62  ;;  %v10660_v12 = vld [vmem:[#allocation3 + $0x100] sm:$0x3] }
 0x457   : > { %5793 = vrot.lane.b32.xlu0 %v5766_v37, %s7787_s29  ;;  %v3457_v23 = vpop.f32.mrf.mxu3  ;;  %v10619_v35 = vpop.permute.xlu2 %5098  ;;  %v4141_v42 = vunpack.c.l.b16 %v3853_v18  ;;  %v5077_v16 = vpack.c.b16 %v5057_v21, %v10540_v41  ;;  %v5878_v3 = vpack.c.b16 %v5858_v40, %v10621_v44  ;;  %v10637_v37 = vld [vmem:[#allocation3 + $0x150] sm:$0xff]  ;;  %v4275_v24 = vpack.c.b16 %v4253_v49, %v4252_v8 }
 0x458   : > { %v3458_v7 = vadd.f32 %v3457_v23, %v3369_v19  ;;  %v5786_v29 = vpop.permute.xlu1 %5785  ;;  %v10643_v19 = vrot.slane %v10627_v51, 1  ;;  %v5386_v25 = vrot.slane %v10629_v22, 1  ;;  %v4729_v20 = vrot.slane %v4432_v9, 2  ;;  %v12005_v23 = vld [vmem:[#allocation19_spill] sm:$0xff] }
 0x459   : > { %v4585_v41 = vrot.slane %v4432_v9, 1  ;;  %v3285_v21 = vadd.f32 %v10337_v5, %v12005_v23  ;;  %v5383_v40 = vrot.slane %v10637_v37, 1  ;;  %v4331_v8 = vsel %vm246_vm0, %v9800_v63, %v4181_v6 }
 0x45a   : > { %vm3494_vm13 = vcmp.gt.f32.partialorder %v3458_v7, 0.0  ;;  %v3526_v45 = vmul.f32 0.1, %v3458_v7  ;;  %v3371_v38 = vpop.f32.mrf.mxu1  ;;  %v4163_v5 = vpack.c.b16 %v4141_v42, %v4140_v0  ;;  %v4730_v63 = vsel %vm694_vm3, %v10564_v61, %v4729_v20 }
 0x45b   : > { %v3372_v33 = vadd.f32 %v3371_v38, %v3283_v32  ;;  %v5938_v6 = vsel %vm246_vm0, %v10155_v60, %v5786_v29  ;;  %v4586_v0 = vsel %vm549_vm2, %v10534_v48, %v4585_v41  ;;  %v5137_v42 = vsel %vm246_vm0, %v10111_v59, %v10538_v28 }
 0x45c   : > { %v3558_v1 = vsel %vm3494_vm13, %v3458_v7, %v3526_v45  ;;  %v4365_v7 = vsel %vm1191_vm4, %v10104_v4, %v10047_v11  ;;  %v5385_v11 = vsel %vm549_vm2, %v5383_v40, %v10643_v19  ;;  %v5387_v4 = vsel %vm549_vm2, %v10643_v19, %v5386_v25 }
 0x45d   : > { %3591 = vst.msk [vmem:[#allocation3 + $0x171] sm:$0xff] %vm246_vm0, %v3558_v1  ;;  %v5267_v61 = vpack.c.bf16 %v10637_v37, %v10637_v37  ;;  %v5459_v29 = vpack.c.bf16 %v5385_v11, %v5385_v11  ;;  %v5460_v20 = vpack.c.bf16 %v5387_v4, %v5387_v4  ;;  %v5978_v48 = vsel %vm1191_vm4, %v5938_v6, %v10576_v54 }
 0x45e   : > { %5104 = vrot.lane.b32.xlu2 %v5077_v16, %s7788_s13  ;;  %5905 = vrot.lane.b32.xlu1 %v5878_v3, %s7788_s13  ;;  %v3773_v3 = vrot.slane %v10221_v52, 1  ;;  %v4659_v41 = vpack.c.bf16 %v4586_v0, %v4586_v0  ;;  %v3772_v59 = vrot.slane %v10219_v2, 1  ;;  %v5268_v28 = vpack.c.bf16 %v10627_v51, %v10627_v51 }
 0x45f   : > { %4300 = vrot.lane.b32.xlu0 %v4275_v24, %s7788_s13  ;;  %v3460_v62 = vpop.f32.mrf.mxu3  ;;  %v6014_v18 = vpop.permute.xlu0 %6013  ;;  %v3775_v24 = vrot.slane %v10660_v12, 1 }
 0x460   : > { %v3461_v49 = vadd.f32 %v3460_v62, %v3372_v33  ;;  %v10657_v45 = vpop.permute.xlu2 %6015  ;;  %v4293_v9 = vpop.permute.xlu1 %4292  ;;  %v6095_v38 = vsel %vm2921_vm5, %v4365_v7, %v6014_v18  ;;  %v4803_v33 = vpack.c.bf16 %v4730_v63, %v4730_v63  ;;  %v5177_v62 = vsel %vm1191_vm4, %v5137_v42, %v10560_v55  ;;  %v10697_v63 = vld [vmem:[#allocation3 + $0x120] sm:$0xff]  ;;  %v10699_v55 = vld [vmem:[#allocation3 + $0x128] sm:$0xff] }
 0x461   : > { %v10663_v32 = vsel %vm1191_vm4, %v4331_v8, %v4293_v9  ;;  %v3774_v40 = vsel %vm549_vm2, %v3772_v59, %v3773_v3  ;;  %v3776_v54 = vsel %vm549_vm2, %v3773_v3, %v3775_v24  ;;  %v5667_v8 = vunpack.c.l.b16 %v5267_v61  ;;  %v10711_v61 = vld [vmem:[#allocation3 + $0x138] sm:$0xff] }
 0x462   : > { %vm3495_vm14 = vcmp.gt.f32.partialorder %v3461_v49, 0.0  ;;  %v3527_v1 = vmul.f32 0.1, %v3461_v49  ;;  %6380 = vmatmul.bf16.gmra.mxu3 %v6095_v38  ;;  %v3373_v16 = vpop.f32.mrf.mxu1  ;;  %v5059_v4 = vunpack.c.l.b16 %v4803_v33  ;;  %v4947_v0 = vunpack.c.l.b16 %v4659_v41 }
 0x463   : > { %v3374_v23 = vadd.f32 %v3373_v16, %v3285_v21  ;;  %v10695_v21 = vunpack.c.l.b16 %v5459_v29  ;;  %v3916_v3 = vrot.slane %v10219_v2, 2  ;;  %v3917_v24 = vrot.slane %v10221_v52, 2  ;;  %v10720_v2 = vld [vmem:[#allocation3 + $0x140] sm:$0xff] }
 0x464   : > { %v3559_v25 = vsel %vm3495_vm14, %v3461_v49, %v3527_v1  ;;  %v5668_v49 = vunpack.c.l.b16 %v5268_v28  ;;  %v3666_v29 = vpack.c.bf16 %v10697_v63, %v10697_v63  ;;  %v3855_v41 = vpack.c.bf16 %v3776_v54, %v3776_v54 }
 0x465   : > { %3592 = vst.msk [vmem:[#allocation3 + $0x181] sm:$0xff] %vm246_vm0, %v3559_v25  ;;  %v3854_v25 = vpack.c.bf16 %v3774_v40, %v3774_v40  ;;  %v4966_v52 = vpack.c.b16 %v4947_v0, %v10591_v10  ;;  %v3918_v59 = vsel %vm694_vm3, %v3916_v3, %v3917_v24  ;;  %v3669_v10 = vpack.c.bf16 %v10720_v2, %v10720_v2  ;;  %v10750_v0 = vld [vmem:[#allocation3 + $0x168] sm:$0xff] }
 0x466   : > { %4188 = vrot.lane.b32.xlu2 %v4163_v5, %s7787_s29  ;;  %6073 = vrot.lane.b32.xlu1 %v5978_v48, %s7788_s13  ;;  %v5748_v5 = vunpack.c.l.b16 %v5460_v20  ;;  %v10707_v42 = vpack.c.b16 %v5668_v49, %v5667_v8  ;;  %v5078_v48 = vpack.c.b16 %v5059_v4, %v10621_v44  ;;  %v10731_v28 = vunpack.c.l.b16 %v3666_v29 }
 0x467   : > { %6025 = vrot.lane.b32.xlu0 %v5177_v62, %s7789_s15  ;;  %v3462_v7 = vpop.f32.mrf.mxu3  ;;  %v5788_v62 = vpop.permute.xlu0 %5787  ;;  %v6098_v40 = vsel %vm2921_vm5, %v10261_v53, %v10657_v45  ;;  %v4142_v54 = vunpack.c.l.b16 %v3854_v25  ;;  %v4143_v8 = vunpack.c.l.b16 %v3855_v41  ;;  %v5528_v49 = vrot.slane %v10627_v51, 2  ;;  %v5235_v53 = vld [vmem:[#allocation3 + $0x170] sm:$0xff] }
 0x468   : > { %v3463_v9 = vadd.f32 %v3462_v7, %v3374_v23  ;;  %v4183_v38 = vpop.permute.xlu2 %4182  ;;  %v6062_v11 = vpop.permute.xlu1 %6061  ;;  %v5767_v33 = vpack.c.b16 %v5748_v5, %v10695_v21  ;;  %v10746_v5 = vunpack.c.l.b16 %v3669_v10  ;;  %v5527_v51 = vrot.slane %v10637_v37, 2  ;;  %v10757_v25 = vld [vmem:[#allocation3 + $0x150] sm:$0xff] }
 0x469   : > { %v10703_v6 = vsel %vm246_vm0, %v9900_v57, %v4183_v38  ;;  %7556 = vmatmul.msk.bf16.gmra.mxu0 %vm246_vm0, %v6062_v11  ;;  %v6143_v1 = vsel %vm1191_vm4, %v6014_v18, %v6062_v11  ;;  %v3919_v57 = vrot.slane %v10660_v12, 2  ;;  %v3667_v18 = vpack.c.bf16 %v10699_v55, %v10699_v55 }
 0x46a   : > { %vm3496_vm15 = vcmp.gt.f32.partialorder %v3463_v9, 0.0  ;;  %v3528_v16 = vmul.f32 0.1, %v3463_v9  ;;  %6469 = vmatmul.bf16.gmra.mxu2 %v6143_v1  ;;  %v3668_v12 = vpack.c.bf16 %v10711_v61, %v10711_v61  ;;  %v3998_v1 = vpack.c.bf16 %v3918_v59, %v3918_v59 }
 0x46b   : > { %v3920_v44 = vsel %vm694_vm3, %v3917_v24, %v3919_v57  ;;  %v10733_v23 = vunpack.c.l.b16 %v3667_v18  ;;  %v10753_v3 = vrot.slane %v5235_v53, 1  ;;  %v4164_v24 = vpack.c.b16 %v4143_v8, %v4142_v54  ;;  %v10759_v57 = vld [vmem:[#allocation3 + $0x158] sm:$0xff] }
 0x46c   : > { %v3560_v20 = vsel %vm3496_vm15, %v3463_v9, %v3528_v16  ;;  %v5530_v9 = vrot.slane %v10629_v22, 2  ;;  %v10744_v11 = vunpack.c.l.b16 %v3668_v12  ;;  %v3999_v16 = vpack.c.bf16 %v3920_v44, %v3920_v44  ;;  %v3641_v54 = vld [vmem:[#allocation3 + $0x178] sm:$0x3] }
 0x46d   : > { %3593 = vst.msk [vmem:[#allocation3 + $0x189] sm:$0xff] %vm246_vm0, %v3560_v20  ;;  %v5529_v29 = vsel %vm694_vm3, %v5527_v51, %v5528_v49  ;;  %v10765_v20 = vld [vmem:[#allocation3 + $0x160] sm:$0x3]  ;;  %v5388_v37 = vrot.slane %v10750_v0, 1  ;;  %v5941_v12 = vsel %vm246_vm0, %v10235_v39, %v5788_v62 }
 0x46e   : > { %5795 = vrot.lane.b32.xlu2 %v5767_v33, %s7787_s29  ;;  %5106 = vrot.lane.b32.xlu1 %v5078_v48, %s7788_s13  ;;  %v5531_v18 = vsel %vm694_vm3, %v5528_v49, %v5530_v9  ;;  %v4254_v33 = vunpack.c.l.b16 %v3998_v1  ;;  %v4255_v48 = vunpack.c.l.b16 %v3999_v16  ;;  %v5603_v10 = vpack.c.bf16 %v5529_v29, %v5529_v29 }
 0x46f   : > { %4994 = vrot.lane.b32.xlu0 %v4966_v52, %s7787_s29  ;;  %v5390_v41 = vsel %vm549_vm2, %v5388_v37, %v10753_v3  ;;  %v3671_v52 = vpack.c.bf16 %v10759_v57, %v10759_v57  ;;  %v5270_v1 = vpack.c.bf16 %v5235_v53, %v5235_v53  ;;  %v3800_v16 = vrot.slane %v3641_v54, 1 }
 0x470   : > { %v4987_v7 = vpop.permute.xlu1 %4986  ;;  %v5461_v62 = vpack.c.bf16 %v5390_v41, %v5390_v41  ;;  %v5859_v29 = vunpack.c.l.b16 %v5603_v10  ;;  %v10796_v41 = vld [vmem:[#allocation3 + $0x118] sm:$0x3] }
 0x471   : > { %v5140_v4 = vsel %vm246_vm0, %v10155_v60, %v4987_v7  ;;  %v5604_v7 = vpack.c.bf16 %v5531_v18, %v5531_v18 }
 0x472   : > { %6385 = vmatmul.bf16.gmra.mxu3 %v6098_v40  ;;  %v5179_v60 = vsel %vm1191_vm4, %v5140_v4, %v10619_v35  ;;  %v3670_v35 = vpack.c.bf16 %v10757_v25, %v10757_v25  ;;  %v4734_v40 = vrot.slane %v10765_v20, 2  ;;  %v5269_v4 = vpack.c.bf16 %v10750_v0, %v10750_v0 }
 0x473   : > { %v5860_v18 = vunpack.c.l.b16 %v5604_v7 }
 0x474   : > { %v10786_v51 = vunpack.c.l.b16 %v3670_v35  ;;  %v4735_v37 = vsel %vm694_vm3, %v5528_v49, %v4734_v40  ;;  %v10798_v35 = vunpack.c.l.b16 %v5461_v62 }
 0x475   : > { %v5879_v40 = vpack.c.b16 %v5860_v18, %v5859_v29  ;;  %v3777_v18 = vrot.slane %v10603_v14, 1 }
 0x476   : > { %4190 = vrot.lane.b32.xlu1 %v4164_v24, %s7787_s29  ;;  %6027 = vrot.lane.b32.xlu2 %v5179_v60, %s7789_s15  ;;  %12006 = vst [vmem:[#allocation10_spill] sm:$0xff] %v10786_v51  ;;  %v10788_v24 = vunpack.c.l.b16 %v3671_v52  ;;  %v4276_v60 = vpack.c.b16 %v4255_v48, %v4254_v33  ;;  %v3778_v33 = vrot.slane %v10594_v58, 1  ;;  %v10801_v48 = vld [vmem:[#allocation3 + $0x178] sm:$0x3] }
 0x478   : > { %v6064_v59 = vpop.permute.xlu0 %6063  ;;  %v5900_v44 = vpop.permute.xlu1 %5899 }
 0x479   : > { %v5980_v8 = vsel %vm1191_vm4, %v5941_v12, %v5900_v44  ;;  %7557 = vmatmul.msk.bf16.gmra.mxu0 %vm246_vm0, %v6064_v59  ;;  %v6146_v9 = vsel %vm1191_vm4, %v10657_v45, %v6064_v59  ;;  %v5669_v12 = vunpack.c.l.b16 %v5269_v4  ;;  %v5670_v45 = vunpack.c.l.b16 %v5270_v1  ;;  %v6066_v1 = vpop.permute.xlu2 %6065 }
 0x47a   : > { %6474 = vmatmul.bf16.gmra.mxu2 %v6146_v9  ;;  %6075 = vrot.lane.b32.xlu0 %v5980_v8, %s7788_s13  ;;  %v3801_v59 = vsel %vm549_vm2, %v10753_v3, %v3800_v16  ;;  %v4805_v8 = vpack.c.bf16 %v4735_v37, %v4735_v37  ;;  %v10805_v9 = vrot.slane %v5235_v53, 2  ;;  %v5391_v53 = vrot.slane %v10801_v48, 1 }
 0x47b   : > { %v3865_v52 = vpack.c.bf16 %v3801_v59, %v3801_v59  ;;  %v10803_v49 = vpack.c.b16 %v5670_v45, %v5669_v12  ;;  %v5532_v37 = vrot.slane %v10750_v0, 2  ;;  %v10825_v59 = vld [vmem:[#allocation3 + $0x180] sm:$0xff] }
 0x47c   : > { %v5061_v45 = vunpack.c.l.b16 %v4805_v8  ;;  %v5271_v8 = vpack.c.bf16 %v10825_v59, %v10825_v59 }
 0x47d   : > { %v10807_v4 = vunpack.c.l.b16 %v3865_v52 }
 0x47e   : > { %4302 = vrot.lane.b32.xlu2 %v4276_v60, %s7788_s13  ;;  %v3780_v60 = vrot.slane %v10796_v41, 1 }
 0x480   : > { %v4295_v10 = vpop.permute.xlu0 %4294  ;;  %v6018_v7 = vpop.permute.xlu1 %6017  ;;  %v3781_v52 = vsel %vm549_vm2, %v3778_v33, %v3780_v60 }
 0x481   : > { %v10811_v62 = vsel %vm1191_vm4, %v10703_v6, %v4295_v10  ;;  %v6101_v16 = vsel %vm2921_vm5, %v10243_v30, %v6018_v7  ;;  %v3779_v6 = vsel %vm549_vm2, %v3777_v18, %v3778_v33  ;;  %v5534_v30 = vsel %vm694_vm3, %v5532_v37, %v10805_v9  ;;  %v10828_v10 = vld [vmem:[#allocation3 + $0x188] sm:$0xff] }
 0x482   : > { %5907 = vrot.lane.b32.xlu0 %v5879_v40, %s7788_s13  ;;  %6390 = vmatmul.bf16.gmra.mxu3 %v6101_v16  ;;  %v3944_v40 = vrot.slane %v3641_v54, 2  ;;  %v5392_v16 = vsel %vm549_vm2, %v10753_v3, %v5391_v53  ;;  %v3856_v0 = vpack.c.bf16 %v3779_v6, %v3779_v6  ;;  %v5605_v44 = vpack.c.bf16 %v5534_v30, %v5534_v30 }
 0x483   : > { %v5079_v18 = vpack.c.b16 %v5061_v45, %v5859_v29  ;;  %v3857_v38 = vpack.c.bf16 %v3781_v52, %v3781_v52  ;;  %v5272_v37 = vpack.c.bf16 %v10828_v10, %v10828_v10  ;;  %v6149_v53 = vsel %vm1191_vm4, %v6018_v7, %v6066_v1 }
 0x484   : > { %v3945_v33 = vsel %vm694_vm3, %v10805_v9, %v3944_v40  ;;  %v5462_v6 = vpack.c.bf16 %v5392_v16, %v5392_v16  ;;  %v3922_v29 = vrot.slane %v10594_v58, 2  ;;  %v3924_v45 = vrot.slane %v10796_v41, 2 }
 0x485   : > { %v10847_v52 = vunpack.c.l.b16 %v5605_v44  ;;  %v4009_v40 = vpack.c.bf16 %v3945_v33, %v3945_v33  ;;  %v4144_v12 = vunpack.c.l.b16 %v3856_v0  ;;  %v4145_v51 = vunpack.c.l.b16 %v3857_v38 }
 0x486   : > { %v3921_v7 = vrot.slane %v10603_v14, 2  ;;  %v3925_v41 = vsel %vm694_vm3, %v3922_v29, %v3924_v45 }
 0x487   : > { %v10852_v16 = vunpack.c.l.b16 %v4009_v40  ;;  %v4001_v38 = vpack.c.bf16 %v3925_v41, %v3925_v41  ;;  %v5239_v41 = vld [vmem:[#allocation3 + $0x190] sm:$0x3] }
 0x488   : > { %v4989_v22 = vpop.permute.xlu0 %4988  ;;  %v5790_v60 = vpop.permute.xlu2 %5789  ;;  %v3923_v58 = vsel %vm694_vm3, %v3921_v7, %v3922_v29 }
 0x489   : > { %v5143_v54 = vsel %vm246_vm0, %v10235_v39, %v4989_v22  ;;  %v5101_v17 = vpop.permute.xlu1 %5100  ;;  %7558 = vmatmul.msk.bf16.gmra.mxu0 %vm246_vm0, %v6066_v1  ;;  %v5671_v39 = vunpack.c.l.b16 %v5271_v8  ;;  %v5672_v22 = vunpack.c.l.b16 %v5272_v37  ;;  %v5750_v1 = vunpack.c.l.b16 %v5462_v6 }
 0x48a   : > { %v5181_v30 = vsel %vm1191_vm4, %v5143_v54, %v5101_v17  ;;  %5108 = vrot.lane.b32.xlu0 %v5079_v18, %s7788_s13  ;;  %6479 = vmatmul.bf16.gmra.mxu2 %v6149_v53  ;;  %v4281_v44 = vpack.c.b16 %v10852_v16, %v10847_v52  ;;  %v4165_v18 = vpack.c.b16 %v4145_v51, %v4144_v12  ;;  %v4257_v53 = vunpack.c.l.b16 %v4001_v38 }
 0x48b   : > { %6029 = vrot.lane.b32.xlu1 %v5181_v30, %s7789_s15  ;;  %v10850_v17 = vpack.c.b16 %v5672_v22, %v5671_v39  ;;  %v5768_v37 = vpack.c.b16 %v5750_v1, %v10798_v35  ;;  %v4000_v0 = vpack.c.bf16 %v3923_v58, %v3923_v58  ;;  %v4590_v51 = vrot.slane %v10765_v20, 1  ;;  %v4438_v1 = vld [vmem:[#allocation3 + $0x178] sm:$0x3] }
 0x48c   : > { %v5944_v29 = vsel %vm246_vm0, %v10457_v15, %v5790_v60  ;;  %v5535_v22 = vrot.slane %v10801_v48, 2  ;;  %v4739_v60 = vrot.slane %v4438_v1, 2  ;;  %v5396_v38 = vrot.slane %v5239_v41, 1 }
 0x48d   : > { %v4256_v54 = vunpack.c.l.b16 %v4000_v0  ;;  %v10884_v0 = vrot.slane %v10828_v10, 1 }
 0x48e   : > { %v5536_v20 = vsel %vm694_vm3, %v10805_v9, %v5535_v22 }
 0x48f   : > { %v4277_v30 = vpack.c.b16 %v4257_v53, %v4256_v54  ;;  %v4595_v54 = vrot.slane %v4438_v1, 1 }
 0x490   : > { %v10864_v33 = vpop.permute.xlu2 %4296 }
 0x491   : > { %v4185_v8 = vpop.permute.xlu1 %4184 }
 0x492   : > { %v10861_v14 = vsel %vm246_vm0, %v10017_v13, %v4185_v8  ;;  %4192 = vrot.lane.b32.xlu0 %v4165_v18, %s7787_s29  ;;  %v4591_v13 = vsel %vm549_vm2, %v10643_v19, %v4590_v51  ;;  %v5606_v18 = vpack.c.bf16 %v5536_v20, %v5536_v20  ;;  %v4596_v51 = vsel %vm549_vm2, %v10753_v3, %v4595_v54 }
 0x493   : > { %5797 = vrot.lane.b32.xlu1 %v5768_v37, %s7787_s29  ;;  %v4661_v39 = vpack.c.bf16 %v4591_v13, %v4591_v13  ;;  %v5540_v3 = vrot.slane %v5239_v41, 2 }
 0x494   : > { %v5862_v53 = vunpack.c.l.b16 %v5606_v18 }
 0x495   : > { %v4949_v7 = vunpack.c.l.b16 %v4661_v39 }
 0x497   : > { %v4967_v8 = vpack.c.b16 %v4949_v7, %v10695_v21  ;;  %v4740_v21 = vsel %vm694_vm3, %v10805_v9, %v4739_v60 }
 0x498   : > { %v4991_v12 = vpop.permute.xlu2 %4990 }
 0x499   : > { %v6068_v6 = vpop.permute.xlu1 %6067  ;;  %v5146_v39 = vsel %vm246_vm0, %v10457_v15, %v4991_v12  ;;  %v10907_v15 = vrot.slane %v10828_v10, 2 }
 0x49a   : > { %7559 = vmatmul.msk.bf16.gmra.mxu0 %vm246_vm0, %v6068_v6 }
 0x49b   : > { %4304 = vrot.lane.b32.xlu1 %v4277_v30, %s7788_s13  ;;  %v5393_v30 = vrot.slane %v10825_v59, 1 }
 0x4a0   : > { %v6022_v58 = vpop.permute.xlu2 %6021 }
 0x4a1   : > { %v5902_v45 = vpop.permute.xlu0 %5901 }
 0x4a2   : > { %v5982_v40 = vsel %vm1191_vm4, %v5944_v29, %v5902_v45  ;;  %v5880_v29 = vpack.c.b16 %v5862_v53, %v10847_v52  ;;  %v4807_v45 = vpack.c.bf16 %v4740_v21, %v4740_v21  ;;  %v5541_v53 = vsel %vm694_vm3, %v10907_v15, %v5540_v3 }
 0x4a3   : > { %6077 = vrot.lane.b32.xlu2 %v5982_v40, %s7788_s13 }
 0x4a4   : > { %v5063_v12 = vunpack.c.l.b16 %v4807_v45 }
 0x4a6   : > { %v5080_v10 = vpack.c.b16 %v5063_v12, %v10847_v52 }
 0x4a8   : > { %v5904_v22 = vpop.permute.xlu2 %5903 }
 0x4a9   : > { %v6020_v19 = vpop.permute.xlu0 %6019 }
 0x4aa   : > { %v6104_v37 = vsel %vm2921_vm5, %v10291_v36, %v6020_v19  ;;  %v6152_v48 = vsel %vm1191_vm4, %v6020_v19, %v6068_v6  ;;  %v5395_v36 = vsel %vm549_vm2, %v5393_v30, %v10884_v0  ;;  %v5397_v6 = vsel %vm549_vm2, %v10884_v0, %v5396_v38 }
 0x4ab   : > { %4996 = vrot.lane.b32.xlu2 %v4967_v8, %s7787_s29  ;;  %6395 = vmatmul.bf16.gmra.mxu3 %v6104_v37  ;;  %v5463_v7 = vpack.c.bf16 %v5395_v36, %v5395_v36  ;;  %v5464_v20 = vpack.c.bf16 %v5397_v6, %v5397_v6  ;;  %v4663_v19 = vpack.c.bf16 %v4596_v51, %v4596_v51 }
 0x4ac   : > { %6484 = vmatmul.bf16.gmra.mxu2 %v6152_v48  ;;  %v5537_v48 = vrot.slane %v10825_v59, 2  ;;  %v6107_v59 = vsel %vm2921_vm5, %v10663_v32, %v6022_v58  ;;  %v5608_v51 = vpack.c.bf16 %v5541_v53, %v5541_v53  ;;  %v3782_v32 = vrot.slane %v10697_v63, 1 }
 0x4ad   : > { %v10909_v8 = vunpack.c.l.b16 %v5463_v7  ;;  %v5752_v60 = vunpack.c.l.b16 %v5464_v20  ;;  %v4951_v37 = vunpack.c.l.b16 %v4663_v19 }
 0x4ae   : > { %v5539_v54 = vsel %vm694_vm3, %v5537_v48, %v10907_v15  ;;  %v5864_v45 = vunpack.c.l.b16 %v5608_v51  ;;  %v3927_v48 = vrot.slane %v10699_v55, 2 }
 0x4af   : > { %v5769_v41 = vpack.c.b16 %v5752_v60, %v10909_v8  ;;  %v4968_v36 = vpack.c.b16 %v4951_v37, %v10798_v35  ;;  %v5607_v6 = vpack.c.bf16 %v5539_v54, %v5539_v54 }
 0x4b0   : > { %v5792_v13 = vpop.permute.xlu1 %5791 }
 0x4b1   : > { %v5103_v40 = vpop.permute.xlu0 %5102  ;;  %v5947_v9 = vsel %vm246_vm0, %v10550_v50, %v5792_v13  ;;  %v6072_v13 = vpop.permute.xlu2 %6071 }
 0x4b2   : > { %v5183_v1 = vsel %vm1191_vm4, %v5146_v39, %v5103_v40  ;;  %v5984_v18 = vsel %vm1191_vm4, %v5947_v9, %v5904_v22  ;;  %v3632_v39 = vld [vmem:[#allocation3 + $0x130] sm:$0x3]  ;;  %v3783_v9 = vrot.slane %v10699_v55, 1 }
 0x4b3   : > { %5909 = vrot.lane.b32.xlu2 %v5880_v29, %s7788_s13  ;;  %6031 = vrot.lane.b32.xlu0 %v5183_v1, %s7789_s15  ;;  %v10928_v29 = vunpack.c.l.b16 %v5607_v6  ;;  %v3785_v7 = vrot.slane %v3632_v39, 1  ;;  %v3929_v54 = vrot.slane %v3632_v39, 2 }
 0x4b4   : > { %6079 = vrot.lane.b32.xlu1 %v5984_v18, %s7788_s13 }
 0x4b5   : > { %v5881_v20 = vpack.c.b16 %v5864_v45, %v10928_v29  ;;  %v3786_v1 = vsel %vm549_vm2, %v3783_v9, %v3785_v7 }
 0x4b6   : > { %v3859_v37 = vpack.c.bf16 %v3786_v1, %v3786_v1  ;;  %v10966_v1 = vld [vmem:[#allocation3 + $0x1a0] sm:$0xff] }
 0x4b8   : > { %v10912_v38 = vpop.permute.xlu1 %4298 }
 0x4b9   : > { %v6070_v30 = vpop.permute.xlu0 %6069  ;;  %v5105_v3 = vpop.permute.xlu2 %5104 }
 0x4ba   : > { %7560 = vmatmul.msk.bf16.gmra.mxu0 %vm246_vm0, %v6070_v30  ;;  %v6155_v21 = vsel %vm1191_vm4, %v6022_v58, %v6070_v30  ;;  %v3784_v58 = vsel %vm549_vm2, %v3782_v32, %v3783_v9  ;;  %v10959_v9 = vld [vmem:[%s11971_s4] ss:$0 sm:$0xff] }
 0x4bb   : > { %5110 = vrot.lane.b32.xlu2 %v5080_v10, %s7788_s13  ;;  %5799 = vrot.lane.b32.xlu0 %v5769_v41, %s7787_s29  ;;  %v3858_v19 = vpack.c.bf16 %v3784_v58, %v3784_v58  ;;  %v3926_v41 = vrot.slane %v10697_v63, 2  ;;  %v10964_v58 = vld [vmem:[#allocation3 + $0x198] sm:$0xff] }
 0x4bc   : > { %6400 = vmatmul.bf16.gmra.mxu3 %v6107_v59  ;;  %6489 = vmatmul.bf16.gmra.mxu2 %v6155_v21  ;;  %v4147_v21 = vunpack.c.l.b16 %v3859_v37  ;;  %v4441_v59 = vld [vmem:[#allocation3 + $0x190] sm:$0x3]  ;;  %v5542_v37 = vrot.slane %v10964_v58, 2 }
 0x4bd   : > { %4998 = vrot.lane.b32.xlu1 %v4968_v36, %s7787_s29  ;;  %v3928_v55 = vsel %vm694_vm3, %v3926_v41, %v3927_v48  ;;  %v3930_v36 = vsel %vm694_vm3, %v3927_v48, %v3929_v54  ;;  %v5543_v48 = vrot.slane %v10966_v1, 2 }
 0x4be   : > { %v4003_v45 = vpack.c.bf16 %v3930_v36, %v3930_v36 }
 0x4c0   : > { %v6024_v22 = vpop.permute.xlu1 %6023  ;;  %v4259_v32 = vunpack.c.l.b16 %v4003_v45  ;;  %v4744_v45 = vrot.slane %v4441_v59, 2 }
 0x4c1   : > { %v10930_v40 = vpop.permute.xlu0 %4186  ;;  %v6110_v30 = vsel %vm2921_vm5, %v10811_v62, %v6024_v22  ;;  %v6158_v10 = vsel %vm1191_vm4, %v6024_v22, %v6072_v13  ;;  %v4002_v62 = vpack.c.bf16 %v3928_v55, %v3928_v55  ;;  %v4600_v22 = vrot.slane %v4441_v59, 1  ;;  %v10962_v7 = vpop.permute.xlu2 %4188 }
 0x4c2   : > { %v4377_v55 = vsel %vm1191_vm4, %v10861_v14, %v10864_v33 }
 0x4c5   : > { %5911 = vrot.lane.b32.xlu1 %v5881_v20, %s7788_s13  ;;  %v4258_v20 = vunpack.c.l.b16 %v4002_v62 }
 0x4c7   : > { %v4278_v41 = vpack.c.b16 %v4259_v32, %v4258_v20  ;;  %v4745_v20 = vsel %vm694_vm3, %v10907_v15, %v4744_v45  ;;  %v3788_v15 = vrot.slane %v10720_v2, 1 }
 0x4c8   : > { %v4993_v18 = vpop.permute.xlu1 %4992 }
 0x4c9   : > { %v5794_v12 = vpop.permute.xlu0 %5793  ;;  %v5149_v60 = vsel %vm246_vm0, %v10550_v50, %v4993_v18  ;;  %v4146_v50 = vunpack.c.l.b16 %v3858_v19  ;;  %v10968_v18 = vld [vmem:[#allocation3 + $0x1a8] sm:$0x3]  ;;  %v5796_v14 = vpop.permute.xlu2 %5795 }
 0x4ca   : > { %7561 = vmatmul.msk.bf16.gmra.mxu0 %vm246_vm0, %v6072_v13  ;;  %v5185_v53 = vsel %vm1191_vm4, %v5149_v60, %v5105_v3  ;;  %v5950_v6 = vsel %vm246_vm0, %v10623_v56, %v5794_v12  ;;  %v4601_v3 = vsel %vm549_vm2, %v10884_v0, %v4600_v22  ;;  %v5545_v54 = vrot.slane %v10968_v18, 2 }
 0x4cb   : > { %6033 = vrot.lane.b32.xlu2 %v5185_v53, %s7789_s15  ;;  %v4166_v63 = vpack.c.b16 %v4147_v21, %v4146_v50  ;;  %v6554_v53 = vpop.f32.mrf.mxu0  ;;  %v4665_v50 = vpack.c.bf16 %v4601_v3, %v4601_v3  ;;  %v10992_v3 = vld [vmem:[#allocation3 + $0x148] sm:$0x3] }
 0x4cc   : > { %6405 = vmatmul.bf16.gmra.mxu3 %v6110_v30  ;;  %6494 = vmatmul.bf16.gmra.mxu2 %v6158_v10  ;;  %v5546_v62 = vsel %vm694_vm3, %v5543_v48, %v5545_v54  ;;  %v4809_v54 = vpack.c.bf16 %v4745_v20, %v4745_v20 }
 0x4cd   : > { %v5610_v22 = vpack.c.bf16 %v5546_v62, %v5546_v62 }
 0x4d0   : > { %v5906_v51 = vpop.permute.xlu1 %5905 }
 0x4d1   : > { %v10952_v13 = vpop.permute.xlu0 %4300  ;;  %v5986_v39 = vsel %vm1191_vm4, %v5950_v6, %v5906_v51  ;;  %v5544_v51 = vsel %vm694_vm3, %v5542_v37, %v5543_v48  ;;  %v5866_v48 = vunpack.c.l.b16 %v5610_v22 }
 0x4d2   : > { %6081 = vrot.lane.b32.xlu0 %v5986_v39, %s7788_s13  ;;  %v4953_v39 = vunpack.c.l.b16 %v4665_v50  ;;  %v5609_v33 = vpack.c.bf16 %v5544_v51, %v5544_v51  ;;  %v6028_v51 = vpop.permute.xlu2 %6027 }
 0x4d3   : > { %4194 = vrot.lane.b32.xlu2 %v4166_v63, %s7787_s29 }
 0x4d4   : > { %v5865_v37 = vunpack.c.l.b16 %v5609_v33 }
 0x4d5   : > { %v6376_v19 = vpop.f32.mrf.mxu3  ;;  %v6465_v60 = vpop.f32.mrf.mxu2 }
 0x4d6   : > { %v6377_v12 = vadd.f32 %v10959_v9, %v6376_v19  ;;  %v4969_v19 = vpack.c.b16 %v4953_v39, %v10909_v8  ;;  %v5882_v50 = vpack.c.b16 %v5866_v48, %v5865_v37 }
 0x4d8   : > { %v6466_v30 = vadd.f32 %v6465_v60, %v6377_v12  ;;  %v6074_v10 = vpop.permute.xlu1 %6073  ;;  %v10994_v60 = vpop.f32.mrf.mxu0 }
 0x4d9   : > { %v6026_v21 = vpop.permute.xlu0 %6025 }
 0x4da   : > { %v10979_v0 = vadd.f32 %v6554_v53, %v6466_v30  ;;  %7562 = vmatmul.msk.bf16.gmra.mxu0 %vm246_vm0, %v6074_v10  ;;  %4306 = vrot.lane.b32.xlu0 %v4278_v41, %s7788_s13  ;;  %v6113_v36 = vsel %vm2921_vm5, %v4377_v55, %v6026_v21  ;;  %v6161_v6 = vsel %vm1191_vm4, %v6026_v21, %v6074_v10  ;;  %v3790_v30 = vrot.slane %v10992_v3, 1 }
 0x4db   : > { %v3787_v41 = vrot.slane %v10711_v61, 1  ;;  %v12007_v21 = vpack.c.b16 %v10207_v34, %v10205_v27  ;;  %v5398_v27 = vrot.slane %v10964_v58, 1  ;;  %v5399_v34 = vrot.slane %v10966_v1, 1 }
 0x4dc   : > { %6410 = vmatmul.bf16.gmra.mxu3 %v6113_v36  ;;  %6499 = vmatmul.bf16.gmra.mxu2 %v6161_v6  ;;  %v3791_v6 = vsel %vm549_vm2, %v3788_v15, %v3790_v30 }
 0x4dd   : > { %v10987_v63 = vpop.f32.mrf.mxu3  ;;  %v11003_v8 = vpop.f32.mrf.mxu2  ;;  %v4340_v55 = vsel %vm246_vm0, %v12007_v21, %v10930_v40  ;;  %v3789_v36 = vsel %vm549_vm2, %v3787_v41, %v3788_v15  ;;  %v3861_v22 = vpack.c.bf16 %v3791_v6, %v3791_v6  ;;  %v5401_v40 = vrot.slane %v10968_v18, 1 }
 0x4de   : > { %v4379_v45 = vsel %vm1191_vm4, %v4340_v55, %v10912_v38  ;;  %v3860_v33 = vpack.c.bf16 %v3789_v36, %v3789_v36  ;;  %v5953_v41 = vsel %vm246_vm0, %v10707_v42, %v5796_v14  ;;  %v11036_v21 = vpop.permute.xlu2 %4302  ;;  %v3932_v6 = vrot.slane %v10720_v2, 2 }
 0x4df   : > { %v6116_v20 = vsel %vm2921_vm5, %v4379_v45, %v6028_v51  ;;  %v4149_v37 = vunpack.c.l.b16 %v3861_v22  ;;  %v5402_v18 = vsel %vm549_vm2, %v5399_v34, %v5401_v40 }
 0x4e0   : > { %v5107_v32 = vpop.permute.xlu1 %5106 }
 0x4e1   : > { %v4995_v12 = vpop.permute.xlu0 %4994 }
 0x4e2   : > { %v5152_v59 = vsel %vm246_vm0, %v10623_v56, %v4995_v12  ;;  %5000 = vrot.lane.b32.xlu0 %v4969_v19, %s7787_s29  ;;  %v5065_v56 = vunpack.c.l.b16 %v4809_v54  ;;  %v5400_v54 = vsel %vm549_vm2, %v5398_v27, %v5399_v34  ;;  %v3638_v34 = vld [vmem:[#allocation3 + $0x160] sm:$0x3] }
 0x4e3   : > { %v5187_v53 = vsel %vm1191_vm4, %v5152_v59, %v5107_v32  ;;  %v4148_v59 = vunpack.c.l.b16 %v3860_v33  ;;  %v5465_v30 = vpack.c.bf16 %v5400_v54, %v5400_v54 }
 0x4e4   : > { %6035 = vrot.lane.b32.xlu1 %v5187_v53, %s7789_s15  ;;  %v5081_v39 = vpack.c.b16 %v5065_v56, %v10928_v29 }
 0x4e5   : > { %v6381_v10 = vpop.f32.mrf.mxu3  ;;  %v4167_v15 = vpack.c.b16 %v4149_v37, %v4148_v59  ;;  %v5753_v14 = vunpack.c.l.b16 %v5465_v30  ;;  %v3939_v30 = vrot.slane %v3638_v34, 2 }
 0x4e6   : > { %v6559_v62 = vpop.f32.mrf.mxu0  ;;  %v6382_v32 = vadd.f32 %v10959_v9, %v6381_v10  ;;  %v5466_v10 = vpack.c.bf16 %v5402_v18, %v5402_v18 }
 0x4e8   : > { %v5754_v45 = vunpack.c.l.b16 %v5466_v10 }
 0x4ea   : > { %5913 = vrot.lane.b32.xlu0 %v5882_v50, %s7788_s13  ;;  %v5770_v27 = vpack.c.b16 %v5754_v45, %v5753_v14 }
 0x4ec   : > { %6415 = vmatmul.bf16.gmra.mxu3 %v6116_v20  ;;  %5112 = vrot.lane.b32.xlu1 %v5081_v39, %s7788_s13  ;;  %v6076_v19 = vpop.permute.xlu0 %6075  ;;  %v3931_v39 = vrot.slane %v10711_v61, 2  ;;  %v3793_v61 = vrot.slane %v10759_v57, 1 }
 0x4ed   : > { %v6470_v12 = vpop.f32.mrf.mxu2  ;;  %7563 = vmatmul.msk.bf16.gmra.mxu0 %vm246_vm0, %v6076_v19  ;;  %v6164_v38 = vsel %vm1191_vm4, %v6028_v51, %v6076_v19  ;;  %v11025_v48 = vpop.f32.mrf.mxu3  ;;  %v3934_v51 = vrot.slane %v10992_v3, 2  ;;  %v12008_v3 = vpack.c.b16 %v10167_v46, %v10165_v43 }
 0x4ee   : > { %v6471_v29 = vadd.f32 %v6470_v12, %v6382_v32  ;;  %6504 = vmatmul.bf16.gmra.mxu2 %v6164_v38  ;;  %v11033_v50 = vpop.f32.mrf.mxu0  ;;  %v3933_v22 = vsel %vm694_vm3, %v3931_v39, %v3932_v6 }
 0x4ef   : > { %v3935_v20 = vsel %vm694_vm3, %v3932_v6, %v3934_v51  ;;  %v4004_v2 = vpack.c.bf16 %v3933_v22, %v3933_v22  ;;  %v4343_v19 = vsel %vm246_vm0, %v12008_v3, %v10962_v7  ;;  %v3937_v7 = vrot.slane %v10759_v57, 2 }
 0x4f0   : > { %v11029_v53 = vadd.f32 %v6559_v62, %v6471_v29  ;;  %v11043_v62 = vpop.permute.xlu1 %4190  ;;  %v4005_v32 = vpack.c.bf16 %v3935_v20, %v3935_v20  ;;  %v3795_v29 = vrot.slane %v3638_v34, 1  ;;  %v4381_v59 = vsel %vm1191_vm4, %v4343_v19, %v10952_v13  ;;  %v6634_v19 = vld [vmem:[%s7911_s25] sm:$0xff] }
 0x4f1   : > { %v4260_v13 = vunpack.c.l.b16 %v4004_v2  ;;  %v3936_v6 = vrot.slane %v10757_v25, 2  ;;  %v3940_v14 = vsel %vm694_vm3, %v3937_v7, %v3939_v30 }
 0x4f2   : > { %v4007_v34 = vpack.c.bf16 %v3940_v14, %v3940_v14 }
 0x4f3   : > { %v3938_v51 = vsel %vm694_vm3, %v3936_v6, %v3937_v7  ;;  %vm6718_vm3 = vcmask 1042434  }
 0x4f4   : > { %4196 = vrot.lane.b32.xlu1 %v4167_v15, %s7787_s29  ;;  %v5908_v56 = vpop.permute.xlu0 %5907  ;;  %v3792_v15 = vrot.slane %v10757_v25, 1 }
 0x4f5   : > { %v5988_v55 = vsel %vm1191_vm4, %v5953_v41, %v5908_v56  ;;  %v11039_v36 = vpop.f32.mrf.mxu2  ;;  %v6386_v33 = vpop.f32.mrf.mxu3  ;;  %v4261_v41 = vunpack.c.l.b16 %v4005_v32 }
 0x4f6   : > { %6083 = vrot.lane.b32.xlu2 %v5988_v55, %s7788_s13  ;;  %v6387_v40 = vadd.f32 %v10959_v9, %v6386_v33  ;;  %v6564_v37 = vpop.f32.mrf.mxu0  ;;  %v3794_v56 = vsel %vm549_vm2, %v3792_v15, %v3793_v61  ;;  %v3796_v55 = vsel %vm549_vm2, %v3793_v61, %v3795_v29  ;;  %v6384_v61 = vadd.f32 %v10959_v9, %v11025_v48 }
 0x4f7   : > { %v4279_v45 = vpack.c.b16 %v4261_v41, %v4260_v13  ;;  %v3862_v57 = vpack.c.bf16 %v3794_v56, %v3794_v56  ;;  %v3863_v39 = vpack.c.bf16 %v3796_v55, %v3796_v55  ;;  %vm6715_vm2 = vcmask 1041409  }
 0x4f9   : > { %v4150_v32 = vunpack.c.l.b16 %v3862_v57  ;;  %v4151_v3 = vunpack.c.l.b16 %v3863_v39  ;;  %v6635_v57 = vld [vmem:[%s7911_s25 + $0x8] sm:$0xff] }
 0x4fc   : > { %v5109_v22 = vpop.permute.xlu0 %5108 }
 0x4fd   : > { %v6078_v12 = vpop.permute.xlu2 %6077  ;;  %v6475_v38 = vpop.f32.mrf.mxu2 }
 0x4fe   : > { %v6476_v54 = vadd.f32 %v6475_v38, %v6387_v40  ;;  %7564 = vmatmul.msk.bf16.gmra.mxu0 %vm246_vm0, %v6078_v12  ;;  %v6030_v18 = vpop.permute.xlu1 %6029  ;;  %5801 = vrot.lane.b32.xlu2 %v5770_v27, %s7787_s29  ;;  %v4006_v27 = vpack.c.bf16 %v3938_v51, %v3938_v51  ;;  %v6379_v40 = vadd.f32 %v10959_v9, %v10987_v63  ;;  %v11077_v2 = vpop.f32.mrf.mxu0 }
 0x4ff   : > { %v6119_v43 = vsel %vm2921_vm5, %v4381_v59, %v6030_v18  ;;  %v6167_v46 = vsel %vm1191_vm4, %v6030_v18, %v6078_v12  ;;  %v6636_v59 = vld [vmem:[%s7911_s25 + $0x10] sm:$0xff]  ;;  %v6473_v63 = vadd.f32 %v11039_v36, %v6384_v61  ;;  %v6388_v48 = vpop.f32.mrf.mxu3  ;;  %v12009_v61 = vpack.c.b16 %v10807_v4, %v10798_v35 }
 0x500   : > { %v11064_v10 = vadd.f32 %v6564_v37, %v6476_v54  ;;  %6420 = vmatmul.bf16.gmra.mxu3 %v6119_v43  ;;  %6509 = vmatmul.bf16.gmra.mxu2 %v6167_v46  ;;  %v4262_v38 = vunpack.c.l.b16 %v4006_v27  ;;  %v6468_v29 = vadd.f32 %v11003_v8, %v6379_v40  ;;  %v4168_v37 = vpack.c.b16 %v4151_v3, %v4150_v32 }
 0x501   : > { %v6666_v54 = vadd.f32 %v6634_v19, %v10979_v0  ;;  %v6668_v7 = vadd.f32 %v6636_v59, %v11029_v53  ;;  %v6562_v0 = vadd.f32 %v11033_v50, %v6473_v63  ;;  %v6638_v63 = vld [vmem:[%s7911_s25 + $0x20] sm:$0xff] }
 0x502   : > { %v6557_v8 = vadd.f32 %v10994_v60, %v6468_v29  ;;  %v6389_v29 = vadd.f32 %v10959_v9, %v6388_v48 }
 0x503   : > { %v6951_v36 = vrot.slane %v6666_v54, 7  ;;  %v6819_v30 = vrot.slane %v6666_v54, 3  ;;  %v6751_v13 = vrot.slane %v6666_v54, 1  ;;  %v6785_v56 = vrot.slane %v6666_v54, 2 }
 0x504   : > { %v6917_v55 = vrot.slane %v6666_v54, 6  ;;  %v6883_v53 = vrot.slane %v6666_v54, 5  ;;  %v6952_v51 = vrot.slane %v6668_v7, 6  ;;  %v6820_v14 = vrot.slane %v6668_v7, 2 }
 0x505   : > { %v4997_v33 = vpop.permute.xlu2 %4996  ;;  %v6477_v6 = vpop.f32.mrf.mxu2  ;;  %v6786_v60 = vrot.slane %v6668_v7, 1  ;;  %v6918_v39 = vrot.slane %v6668_v7, 5  ;;  %v6884_v50 = vrot.slane %v6668_v7, 4  ;;  %v6853_v40 = vrot.slane %v6666_v54, 4 }
 0x506   : > { %v5155_v20 = vsel %vm246_vm0, %v10707_v42, %v4997_v33  ;;  %4308 = vrot.lane.b32.xlu2 %v4279_v45, %s7788_s13  ;;  %v5798_v12 = vpop.permute.xlu1 %5797  ;;  %v4263_v42 = vunpack.c.l.b16 %v4007_v34  ;;  %v11096_v41 = vpop.f32.mrf.mxu0  ;;  %v6752_v45 = vsel %vm6715_vm2, %v6668_v7, %v6751_v13  ;;  %v6714_v33 = vrot.slane %v6668_v7, 7  ;;  %v12010_v13 = vld [vmem:[#allocation20_spill] sm:$0xff] }
 0x507   : > { %v5189_v25 = vsel %vm1191_vm4, %v5155_v20, %v5109_v22  ;;  %v5956_v18 = vsel %vm246_vm0, %v10803_v49, %v5798_v12  ;;  %v6854_v22 = vrot.slane %v6668_v7, 3  ;;  %v6637_v20 = vld [vmem:[%s7911_s25 + $0x18] sm:$0xff]  ;;  %v6953_v27 = vsel %vm6715_vm2, %v6952_v51, %v6951_v36  ;;  %v6391_v59 = vpop.f32.mrf.mxu3  ;;  %v4193_v7 = vpop.permute.xlu0 %4192 }
 0x508   : > { %6037 = vrot.lane.b32.xlu0 %v5189_v25, %s7789_s15  ;;  %v4280_v46 = vpack.c.b16 %v4263_v42, %v4262_v38  ;;  %v6821_v34 = vsel %vm6715_vm2, %v6820_v14, %v6819_v30  ;;  %v6787_v25 = vsel %vm6715_vm2, %v6786_v60, %v6785_v56  ;;  %v6919_v32 = vsel %vm6715_vm2, %v6918_v39, %v6917_v55 }
 0x509   : > { %v6885_v3 = vsel %vm6715_vm2, %v6884_v50, %v6883_v53  ;;  %v6716_v19 = vsel %vm6715_vm2, %v6714_v33, %v6666_v54  ;;  %v11107_v12 = vadd.f32 %v6635_v57, %v6557_v8  ;;  %v6855_v38 = vsel %vm6715_vm2, %v6854_v22, %v6853_v40 }
 0x50a   : > { %v11110_v42 = vadd.f32 %v6637_v20, %v6562_v0  ;;  %v6478_v35 = vadd.f32 %v6477_v6, %v6389_v29  ;;  %v6670_v30 = vadd.f32 %v6638_v63, %v11064_v10  ;;  %v12011_v56 = vpack.c.b16 %v10239_v31, %v12010_v13  ;;  %v6639_v10 = vld [vmem:[%s7911_s25 + $0x28] sm:$0xff] }
 0x50b   : > { %v6392_v40 = vadd.f32 %v10959_v9, %v6391_v59 }
 0x50c   : > { %v7001_v54 = vrot.slane %v11110_v42, 7  ;;  %v4346_v55 = vsel %vm246_vm0, %v12011_v56, %v11043_v62  ;;  %v6567_v53 = vadd.f32 %v11077_v2, %v6478_v35  ;;  %v6954_v6 = vrot.slane %v6670_v30, 5 }
 0x50d   : > { %v5910_v15 = vpop.permute.xlu2 %5909  ;;  %v6480_v8 = vpop.f32.mrf.mxu2  ;;  %v6822_v51 = vrot.slane %v6670_v30, 1  ;;  %v11139_v14 = vsel %vm6718_vm3, %v6670_v30, %v6787_v25  ;;  %v6753_v60 = vrot.slane %v6670_v30, 7  ;;  %v6920_v57 = vrot.slane %v6670_v30, 4 }
 0x50e   : > { %v5990_v43 = vsel %vm1191_vm4, %v5956_v18, %v5910_v15  ;;  %4198 = vrot.lane.b32.xlu2 %v4168_v37, %s7787_s29  ;;  %v7133_v37 = vrot.slane %v11107_v12, 4  ;;  %v11119_v18 = vpop.f32.mrf.mxu0  ;;  %v7134_v15 = vrot.slane %v11110_v42, 3  ;;  %v11125_v4 = vpop.permute.xlu1 %4304  ;;  %v7002_v0 = vsel %vm6715_vm2, %v7001_v54, %v11107_v12 }
 0x50f   : > { %6085 = vrot.lane.b32.xlu1 %v5990_v43, %s7788_s13  ;;  %v7231_v43 = vrot.slane %v11107_v12, 7  ;;  %v6886_v39 = vrot.slane %v6670_v30, 3  ;;  %v6717_v50 = vrot.slane %v6670_v30, 6  ;;  %v6856_v33 = vrot.slane %v6670_v30, 2  ;;  %v6393_v22 = vpop.f32.mrf.mxu3  ;;  %v6640_v30 = vld [vmem:[%s7911_s25 + $0x30] sm:$0xff] }
 0x510   : > { %4310 = vrot.lane.b32.xlu0 %v4280_v46, %s7788_s13  ;;  %v7232_v46 = vrot.slane %v11110_v42, 6  ;;  %v7135_v48 = vsel %vm6715_vm2, %v7134_v15, %v7133_v37  ;;  %v4383_v31 = vsel %vm1191_vm4, %v4346_v55, %v11036_v21  ;;  %v11145_v62 = vsel %vm6718_vm3, %v6954_v6, %v6953_v27 }
 0x511   : > { %v11148_v2 = vsel %vm6718_vm3, %v6822_v51, %v6821_v34  ;;  %v11151_v25 = vsel %vm6718_vm3, %v6753_v60, %v6752_v45  ;;  %v11158_v63 = vsel %vm6718_vm3, %v6920_v57, %v6919_v32  ;;  %v11161_v21 = vsel %vm6718_vm3, %v6886_v39, %v6885_v3 }
 0x512   : > { %v7233_v36 = vsel %vm6715_vm2, %v7232_v46, %v7231_v43  ;;  %v6719_v34 = vsel %vm6718_vm3, %v6717_v50, %v6716_v19  ;;  %v6857_v59 = vsel %vm6718_vm3, %v6856_v33, %v6855_v38  ;;  %v11167_v54 = vadd.f32 %v6639_v10, %v6567_v53 }
 0x513   : > { %v6481_v15 = vadd.f32 %v6480_v8, %v6392_v40  ;;  %v6394_v13 = vadd.f32 %v10959_v9, %v6393_v22  ;;  %v12012_v39 = vpack.c.b16 %v10625_v47, %v10631_v26  ;;  %v6641_v22 = vld [vmem:[%s7911_s25 + $0x38] sm:$0xff] }
 0x514   : > { %v7003_v3 = vrot.slane %v11167_v54, 6  ;;  %v7136_v46 = vrot.slane %v11167_v54, 2  ;;  %v7234_v35 = vrot.slane %v11167_v54, 5 }
 0x515   : > { %v6482_v27 = vpop.f32.mrf.mxu2  ;;  %v5111_v32 = vpop.permute.xlu2 %5110  ;;  %v6570_v43 = vadd.f32 %v11096_v41, %v6481_v15 }
 0x516   : > { %v7004_v19 = vsel %vm6718_vm3, %v7003_v3, %v7002_v0  ;;  %v7137_v8 = vsel %vm6718_vm3, %v7136_v46, %v7135_v48  ;;  %v7235_v53 = vsel %vm6718_vm3, %v7234_v35, %v7233_v36  ;;  %v6483_v6 = vadd.f32 %v6482_v27, %v6394_v13 }
 0x517   : > { %v11178_v41 = vadd.f32 %v6640_v30, %v6570_v43  ;;  %v4349_v48 = vsel %vm246_vm0, %v12012_v39, %v4193_v7  ;;  %v7197_v39 = vrot.slane %v11107_v12, 6 }
 0x518   : > { %4200 = vrot.lane.b32.xlu0 %v12009_v61, %s7787_s29  ;;  %v11154_v61 = vpop.f32.mrf.mxu0  ;;  %v6572_v36 = vadd.f32 %v11119_v18, %v6483_v6  ;;  %v4385_v10 = vsel %vm1191_vm4, %v4349_v48, %v11125_v4  ;;  %v7164_v48 = vrot.slane %v11110_v42, 4 }
 0x519   : > { %v6720_v33 = vrot.slane %v11178_v41, 5 }
 0x51a   : > { %v11207_v4 = vadd.f32 %v6641_v22, %v6572_v36  ;;  %v7100_v36 = vrot.slane %v11110_v42, 2 }
 0x51c   : > { %v7236_v3 = vrot.slane %v11207_v4, 4 }
 0x51e   : > { %v11229_v35 = vsel %vm6721_vm1, %v7236_v3, %v7235_v53  ;;  %v7198_v53 = vrot.slane %v11110_v42, 5 }
 0x520   : > { %v11180_v51 = vpop.f32.mrf.mxu0 }
 0x525   : > { %v6032_v20 = vpop.permute.xlu0 %6031  ;;  %v6034_v0 = vpop.permute.xlu2 %6033 }
 0x526   : > { %v6080_v29 = vpop.permute.xlu1 %6079  ;;  %v6122_v37 = vsel %vm2921_vm5, %v4383_v31, %v6032_v20  ;;  %v6125_v40 = vsel %vm2921_vm5, %v4385_v10, %v6034_v0 }
 0x527   : > { %6425 = vmatmul.bf16.gmra.mxu3 %v6122_v37  ;;  %7565 = vmatmul.msk.bf16.gmra.mxu0 %vm246_vm0, %v6080_v29  ;;  %v6170_v45 = vsel %vm1191_vm4, %v6032_v20, %v6080_v29  ;;  %v6858_v20 = vrot.slane %v11178_v41, 1  ;;  %v11198_v29 = vsel %vm6721_vm1, %v6720_v33, %v6719_v34  ;;  %v7138_v34 = vrot.slane %v11207_v4, 1 }
 0x528   : > { %6514 = vmatmul.bf16.gmra.mxu2 %v6170_v45  ;;  %v7005_v45 = vrot.slane %v11207_v4, 5  ;;  %v7163_v33 = vrot.slane %v11107_v12, 5 }
 0x529   : > { %v11205_v7 = vsel %vm6721_vm1, %v6858_v20, %v6857_v59  ;;  %v11223_v43 = vsel %vm6721_vm1, %v7138_v34, %v7137_v8 }
 0x52a   : > { %v11220_v59 = vsel %vm6721_vm1, %v7005_v45, %v7004_v19 }
 0x52d   : > { %v5800_v50 = vpop.permute.xlu0 %5799  ;;  %v4195_v13 = vpop.permute.xlu2 %4194 }
 0x52e   : > { %v6396_v56 = vpop.f32.mrf.mxu3  ;;  %v5959_v47 = vsel %vm246_vm0, %v10850_v17, %v5800_v50  ;;  %v5274_v50 = vpack.c.bf16 %v10966_v1, %v10966_v1  ;;  %v7199_v1 = vsel %vm6715_vm2, %v7198_v53, %v7197_v39  ;;  %v12013_v39 = vpack.c.b16 %v10733_v23, %v10731_v28 }
 0x52f   : > { %v6485_v38 = vpop.f32.mrf.mxu2  ;;  %v4999_v55 = vpop.permute.xlu1 %4998  ;;  %v6397_v19 = vadd.f32 %v10959_v9, %v6396_v56  ;;  %v6922_v28 = vrot.slane %v11178_v41, 3  ;;  %v6888_v23 = vrot.slane %v11178_v41, 2 }
 0x530   : > { %v5158_v60 = vsel %vm246_vm0, %v10803_v49, %v4999_v55 }
 0x531   : > { %v5191_v57 = vsel %vm1191_vm4, %v5158_v60, %v5111_v32  ;;  %v6486_v8 = vadd.f32 %v6485_v38, %v6397_v19  ;;  %v7031_v60 = vrot.slane %v11107_v12, 1  ;;  %v5273_v38 = vpack.c.bf16 %v10964_v58, %v10964_v58 }
 0x532   : > { %6039 = vrot.lane.b32.xlu1 %v5191_v57, %s7789_s15  ;;  %v7066_v57 = vrot.slane %v11110_v42, 1  ;;  %v5674_v19 = vunpack.c.l.b16 %v5274_v50  ;;  %v6755_v50 = vrot.slane %v11178_v41, 6 }
 0x533   : > { %v7032_v20 = vsel %vm6715_vm2, %v11110_v42, %v7031_v60  ;;  %v7165_v42 = vsel %vm6715_vm2, %v7164_v48, %v7163_v33 }
 0x536   : > { %v6398_v31 = vpop.f32.mrf.mxu3 }
 0x537   : > { %v11202_v26 = vpop.f32.mrf.mxu2  ;;  %v5912_v18 = vpop.permute.xlu1 %5911  ;;  %6430 = vmatmul.bf16.gmra.mxu3 %v6125_v40  ;;  %v7033_v40 = vrot.slane %v11167_v54, 7  ;;  %v6399_v58 = vadd.f32 %v10959_v9, %v6398_v31 }
 0x538   : > { %v5992_v37 = vsel %vm1191_vm4, %v5959_v47, %v5912_v18  ;;  %v11210_v27 = vpop.f32.mrf.mxu0  ;;  %v7200_v47 = vrot.slane %v11167_v54, 4  ;;  %v7099_v18 = vrot.slane %v11107_v12, 3 }
 0x539   : > { %6087 = vrot.lane.b32.xlu2 %v5992_v37, %s7788_s13  ;;  %v6575_v37 = vadd.f32 %v11154_v61, %v6486_v8  ;;  %v11271_v60 = vsel %vm6718_vm3, %v7033_v40, %v7032_v20  ;;  %v6644_v40 = vld [vmem:[%s7911_s25 + $0x50] sm:$0xff] }
 0x53a   : > { %4312 = vrot.lane.b32.xlu1 %v4281_v44, %s7788_s13  ;;  %v11274_v53 = vsel %vm6718_vm3, %v7200_v47, %v7199_v1 }
 0x53f   : > { %v6401_v15 = vpop.f32.mrf.mxu3  ;;  %v6490_v32 = vpop.f32.mrf.mxu2 }
 0x540   : > { %v11226_v46 = vpop.f32.mrf.mxu0  ;;  %v6402_v56 = vadd.f32 %v10959_v9, %v6401_v15  ;;  %v6642_v15 = vld [vmem:[%s7911_s25 + $0x40] sm:$0xff] }
 0x542   : > { %v6491_v61 = vadd.f32 %v6490_v32, %v6402_v56  ;;  %v11281_v32 = vadd.f32 %v6642_v15, %v6575_v37  ;;  %v6956_v56 = vrot.slane %v11178_v41, 4 }
 0x544   : > { %v6082_v52 = vpop.permute.xlu0 %6081 }
 0x545   : > { %7566 = vmatmul.msk.bf16.gmra.mxu0 %vm246_vm0, %v6082_v52  ;;  %v6173_v16 = vsel %vm1191_vm4, %v6034_v0, %v6082_v52  ;;  %v7065_v0 = vrot.slane %v11107_v12, 2  ;;  %v7166_v52 = vrot.slane %v11167_v54, 3  ;;  %v11266_v12 = vsel %vm6715_vm2, %v7100_v36, %v7099_v18 }
 0x546   : > { %6519 = vmatmul.bf16.gmra.mxu2 %v6173_v16  ;;  %v5673_v16 = vunpack.c.l.b16 %v5273_v38  ;;  %v6789_v38 = vrot.slane %v11178_v41, 7 }
 0x547   : > { %v6403_v44 = vpop.f32.mrf.mxu3  ;;  %v6492_v30 = vpop.f32.mrf.mxu2  ;;  %v7067_v34 = vsel %vm6715_vm2, %v7066_v57, %v7065_v0  ;;  %v7102_v57 = vrot.slane %v11167_v54, 1  ;;  %v4352_v0 = vsel %vm246_vm0, %v12013_v39, %v4195_v13  ;;  %v6580_v13 = vadd.f32 %v11210_v27, %v6491_v61 }
 0x548   : > { %v11234_v55 = vpop.f32.mrf.mxu0  ;;  %v11261_v3 = vsel %vm6718_vm3, %v11167_v54, %v7067_v34  ;;  %v6404_v31 = vadd.f32 %v10959_v9, %v6403_v44  ;;  %v6488_v44 = vadd.f32 %v11202_v26, %v6399_v58  ;;  %v5690_v20 = vpack.c.b16 %v5674_v19, %v5673_v16 }
 0x549   : > { %v11298_v34 = vsel %vm6718_vm3, %v7166_v52, %v7165_v42  ;;  %v6957_v27 = vsel %vm6721_vm1, %v6956_v56, %v11145_v62  ;;  %v6790_v42 = vsel %vm6721_vm1, %v6789_v38, %v11139_v14  ;;  %v11316_v62 = vsel %vm6721_vm1, %v6922_v28, %v11158_v63 }
 0x54a   : > { %v6493_v33 = vadd.f32 %v6492_v30, %v6404_v31  ;;  %v6577_v15 = vadd.f32 %v11180_v51, %v6488_v44  ;;  %v6824_v30 = vsel %vm6721_vm1, %v11178_v41, %v11148_v2  ;;  %v11312_v51 = vsel %vm6721_vm1, %v6755_v50, %v11151_v25  ;;  %v6645_v31 = vld [vmem:[%s7911_s25 + $0x58] sm:$0xff] }
 0x54b   : > { %v11318_v52 = vadd.f32 %v6644_v40, %v6580_v13  ;;  %v11324_v61 = vsel %vm6721_vm1, %v6888_v23, %v11161_v21  ;;  %v7035_v25 = vrot.slane %v11207_v4, 6  ;;  %v7202_v16 = vrot.slane %v11207_v4, 3 }
 0x54c   : > { %v4307_v6 = vpop.permute.xlu0 %4306  ;;  %v6582_v2 = vadd.f32 %v11226_v46, %v6493_v33  ;;  %v7069_v63 = vrot.slane %v11207_v4, 7  ;;  %v7168_v46 = vrot.slane %v11207_v4, 2  ;;  %v6860_v21 = vsel %vm6724_vm6, %v11281_v32, %v11205_v7 }
 0x54d   : > { %v4387_v26 = vsel %vm1191_vm4, %v4352_v0, %v4307_v6  ;;  %v6723_v6 = vrot.slane %v11281_v32, 4  ;;  %v6958_v56 = vrot.slane %v11281_v32, 3  ;;  %v6825_v38 = vrot.slane %v11281_v32, 7 }
 0x54e   : > { %v11344_v50 = vadd.f32 %v6645_v31, %v6582_v2  ;;  %v6791_v40 = vrot.slane %v11281_v32, 6  ;;  %v6648_v2 = vld [vmem:[%s7911_s25 + $0x70] sm:$0xff] }
 0x54f   : > { %v6406_v10 = vpop.f32.mrf.mxu3  ;;  %v6495_v22 = vpop.f32.mrf.mxu2  ;;  %v6725_v0 = vsel %vm6724_vm6, %v6723_v6, %v11198_v29  ;;  %v6960_v29 = vrot.slane %v11318_v52, 2 }
 0x550   : > { %v6084_v45 = vpop.permute.xlu2 %6083  ;;  %v6407_v8 = vadd.f32 %v10959_v9, %v6406_v10  ;;  %v11284_v48 = vpop.f32.mrf.mxu0 }
 0x552   : > { %v6496_v47 = vadd.f32 %v6495_v22, %v6407_v8  ;;  %v6643_v22 = vld [vmem:[%s7911_s25 + $0x48] sm:$0xff]  ;;  %v6646_v8 = vld [vmem:[%s7911_s25 + $0x60] sm:$0xff] }
 0x553   : > { %v11331_v19 = vadd.f32 %v6643_v22, %v6577_v15  ;;  %v6759_v22 = vrot.slane %v11318_v52, 4 }
 0x554   : > { %v5001_v36 = vpop.permute.xlu0 %5000  ;;  %v6585_v14 = vadd.f32 %v11234_v55, %v6496_v47 }
 0x555   : > { %7567 = vmatmul.msk.bf16.gmra.mxu0 %vm246_vm0, %v6084_v45  ;;  %v5161_v28 = vsel %vm246_vm0, %v10850_v17, %v5001_v36  ;;  %v6793_v36 = vrot.slane %v11318_v52, 5 }
 0x556   : > { %v6036_v10 = vpop.permute.xlu1 %6035  ;;  %v11350_v7 = vadd.f32 %v6646_v8, %v6585_v14 }
 0x557   : > { %v6497_v18 = vpop.f32.mrf.mxu2  ;;  %v6408_v37 = vpop.f32.mrf.mxu3  ;;  %v6128_v58 = vsel %vm2921_vm5, %v4387_v26, %v6036_v10  ;;  %v6176_v1 = vsel %vm1191_vm4, %v6036_v10, %v6084_v45 }
 0x558   : > { %6435 = vmatmul.bf16.gmra.mxu3 %v6128_v58  ;;  %6524 = vmatmul.bf16.gmra.mxu2 %v6176_v1  ;;  %v5802_v45 = vpop.permute.xlu2 %5801  ;;  %v6409_v55 = vadd.f32 %v10959_v9, %v6408_v37  ;;  %v6589_v23 = vpop.f32.mrf.mxu0  ;;  %v6959_v37 = vsel %vm6724_vm6, %v6958_v56, %v6957_v27  ;;  %v6826_v58 = vsel %vm6724_vm6, %v6825_v38, %v6824_v30  ;;  %v6757_v1 = vrot.slane %v11281_v32, 5 }
 0x559   : > { %v5962_v41 = vsel %vm246_vm0, %v5690_v20, %v5802_v45  ;;  %v6827_v20 = vrot.slane %v11318_v52, 6  ;;  %v6961_v6 = vsel %vm6727_vm7, %v6960_v29, %v6959_v37  ;;  %v7007_v45 = vrot.slane %v11331_v19, 4 }
 0x55a   : > { %v6498_v47 = vadd.f32 %v6497_v18, %v6409_v55  ;;  %v6829_v18 = vrot.slane %v11350_v7, 5  ;;  %v6792_v27 = vsel %vm6724_vm6, %v6791_v40, %v6790_v42  ;;  %v6795_v14 = vrot.slane %v11350_v7, 4 }
 0x55b   : > { %v6828_v31 = vsel %vm6727_vm7, %v6827_v20, %v6826_v58  ;;  %v7008_v8 = vsel %vm6724_vm6, %v7007_v45, %v11220_v59  ;;  %v6861_v56 = vrot.slane %v11318_v52, 7  ;;  %v7238_v38 = vrot.slane %v11331_v19, 3 }
 0x55c   : > { %v5914_v39 = vpop.permute.xlu0 %5913  ;;  %v6587_v55 = vadd.f32 %v11284_v48, %v6498_v47  ;;  %v6758_v59 = vsel %vm6724_vm6, %v6757_v1, %v11312_v51  ;;  %v7037_v47 = vrot.slane %v11331_v19, 5 }
 0x55d   : > { %v5994_v44 = vsel %vm1191_vm4, %v5962_v41, %v5914_v39  ;;  %v6962_v41 = vrot.slane %v11350_v7, 1  ;;  %v7140_v39 = vsel %vm6724_vm6, %v11331_v19, %v11223_v43  ;;  %v6760_v45 = vsel %vm6727_vm7, %v6759_v22, %v6758_v59 }
 0x55e   : > { %v5113_v13 = vpop.permute.xlu1 %5112  ;;  %6089 = vrot.lane.b32.xlu0 %v5994_v44, %s7788_s13  ;;  %v6726_v44 = vrot.slane %v11318_v52, 3  ;;  %v7009_v22 = vrot.slane %v11344_v50, 3 }
 0x55f   : > { %v6500_v33 = vpop.f32.mrf.mxu2  ;;  %v5193_v26 = vsel %vm1191_vm4, %v5161_v28, %v5113_v13  ;;  %v6411_v10 = vpop.f32.mrf.mxu3  ;;  %v6647_v28 = vld [vmem:[%s7911_s25 + $0x68] sm:$0xff]  ;;  %v6924_v13 = vrot.slane %v11281_v32, 2  ;;  %v6963_v43 = vsel %vm6730_vm8, %v6962_v41, %v6961_v6  ;;  %v6649_v6 = vld [vmem:[%s7911_s25 + $0x78] sm:$0xff]  ;;  %v7036_v41 = vsel %vm6721_vm1, %v7035_v25, %v11271_v60 }
 0x560   : > { %v6412_v17 = vadd.f32 %v10959_v9, %v6411_v10  ;;  %6041 = vrot.lane.b32.xlu2 %v5193_v26, %s7789_s15  ;;  %v11388_v48 = vsel %vm6727_vm7, %v6726_v44, %v6725_v0  ;;  %v7239_v26 = vsel %vm6724_vm6, %v7238_v38, %v11229_v35  ;;  %v6591_v0 = vpop.f32.mrf.mxu0  ;;  %v7141_v44 = vrot.slane %v11344_v50, 7 }
 0x561   : > { %v7038_v60 = vsel %vm6724_vm6, %v7037_v47, %v7036_v41  ;;  %v6863_v41 = vrot.slane %v11350_v7, 6 }
 0x562   : > { %v6501_v15 = vadd.f32 %v6500_v33, %v6412_v17  ;;  %v11391_v33 = vsel %vm6727_vm7, %v6861_v56, %v6860_v21  ;;  %v11400_v17 = vadd.f32 %v6647_v28, %v6587_v55  ;;  %v6830_v21 = vsel %vm6730_vm8, %v6829_v18, %v6828_v31 }
 0x563   : > { %v6890_v31 = vrot.slane %v11281_v32, 1  ;;  %v7240_v56 = vrot.slane %v11344_v50, 2  ;;  %v11437_v59 = vsel %vm6727_vm7, %v7141_v44, %v7140_v39  ;;  %v11494_v44 = vld [vmem:[%s11971_s4] ss:$0 sm:$0xff] }
 0x564   : > { %v6590_v30 = vadd.f32 %v6589_v23, %v6501_v15  ;;  %v6794_v23 = vsel %vm6727_vm7, %v6793_v36, %v6792_v27  ;;  %v6926_v15 = vrot.slane %v11318_v52, 1  ;;  %v7041_v55 = vrot.slane %v11400_v17, 3 }
 0x565   : > { %v6796_v35 = vsel %vm6730_vm8, %v6795_v14, %v6794_v23  ;;  %v6925_v14 = vsel %vm6724_vm6, %v6924_v13, %v11316_v62  ;;  %v11434_v62 = vsel %vm6727_vm7, %v7009_v22, %v7008_v8  ;;  %v11440_v13 = vsel %vm6727_vm7, %v7240_v56, %v7239_v26 }
 0x566   : > { %v11380_v42 = vadd.f32 %v6648_v2, %v6590_v30  ;;  %v6761_v2 = vrot.slane %v11350_v7, 3  ;;  %v7039_v30 = vrot.slane %v11344_v50, 4  ;;  %v6927_v32 = vsel %vm6727_vm7, %v6926_v15, %v6925_v14 }
 0x567   : > { %v6413_v29 = vpop.f32.mrf.mxu3  ;;  %v6502_v36 = vpop.f32.mrf.mxu2  ;;  %v6928_v39 = vsel %vm6730_vm8, %v11350_v7, %v6927_v32  ;;  %v6891_v26 = vsel %vm6724_vm6, %v6890_v31, %v11324_v61  ;;  %v7203_v61 = vsel %vm6721_vm1, %v7202_v16, %v11274_v53  ;;  %v7170_v53 = vrot.slane %v11331_v19, 1 }
 0x568   : > { %v6414_v10 = vadd.f32 %v10959_v9, %v6413_v29  ;;  %v6964_v51 = vsel %vm6733_vm9, %v11380_v42, %v6963_v43  ;;  %v6831_v20 = vrot.slane %v11380_v42, 4  ;;  %v6797_v40 = vrot.slane %v11380_v42, 3  ;;  %v4309_v32 = vpop.permute.xlu2 %4308 }
 0x569   : > { %6979 = vrot.lane.b32.xlu1 %v6964_v51, %s7789_s15  ;;  %v6763_v27 = vrot.slane %v11380_v42, 2  ;;  %v6929_v25 = vrot.slane %v11380_v42, 7  ;;  %v6762_v23 = vsel %vm6730_vm8, %v6761_v2, %v6760_v45  ;;  %v6892_v47 = vsel %vm6727_vm7, %v11318_v52, %v6891_v26 }
 0x56a   : > { %v6503_v37 = vadd.f32 %v6502_v36, %v6414_v10  ;;  %v6832_v58 = vsel %vm6733_vm9, %v6831_v20, %v6830_v21  ;;  %v6798_v1 = vsel %vm6733_vm9, %v6797_v40, %v6796_v35  ;;  %v7040_v10 = vsel %vm6727_vm7, %v7039_v30, %v7038_v60  ;;  %v6594_v20 = vpop.f32.mrf.mxu0 }
 0x56b   : > { %6847 = vrot.lane.b32.xlu2 %v6832_v58, %s7789_s15  ;;  %6813 = vrot.lane.b32.xlu0 %v6798_v1, %s7788_s13  ;;  %v6764_v43 = vsel %vm6733_vm9, %v6763_v27, %v6762_v23  ;;  %v7042_v8 = vsel %vm6730_vm8, %v7041_v55, %v7040_v10  ;;  %v6930_v21 = vsel %vm6733_vm9, %v6929_v25, %v6928_v39  ;;  %v7204_v35 = vrot.slane %v11331_v19, 2  ;;  %v4197_v1 = vpop.permute.xlu1 %4196 }
 0x56c   : > { %v6592_v18 = vadd.f32 %v6591_v0, %v6503_v37  ;;  %v7070_v37 = vsel %vm6721_vm1, %v7069_v63, %v11261_v3  ;;  %v7071_v58 = vrot.slane %v11331_v19, 6  ;;  %v7206_v45 = vrot.slane %v11344_v50, 1 }
 0x56d   : > { %v7073_v52 = vrot.slane %v11344_v50, 5  ;;  %v7075_v2 = vrot.slane %v11400_v17, 4  ;;  %v6729_v16 = vrot.slane %v11350_v7, 2  ;;  %v7205_v63 = vsel %vm6724_vm6, %v7204_v35, %v7203_v61 }
 0x56e   : > { %v11427_v38 = vadd.f32 %v6649_v6, %v6592_v18  ;;  %v6895_v6 = vrot.slane %v11380_v42, 6  ;;  %v12014_v27 = vpack.c.b16 %v10746_v5, %v10744_v11  ;;  %v7072_v55 = vsel %vm6724_vm6, %v7071_v58, %v7070_v37 }
 0x56f   : > { %v6416_v28 = vpop.f32.mrf.mxu3  ;;  %v6731_v22 = vsel %vm6730_vm8, %v6729_v16, %v11388_v48  ;;  %v7207_v5 = vsel %vm6727_vm7, %v7206_v45, %v7205_v63  ;;  %v7074_v60 = vsel %vm6727_vm7, %v7073_v52, %v7072_v55  ;;  %v7173_v23 = vrot.slane %v11400_v17, 7 }
 0x570   : > { %v6417_v29 = vadd.f32 %v10959_v9, %v6416_v28  ;;  %v7043_v51 = vrot.slane %v11427_v38, 2  ;;  %v6893_v9 = vrot.slane %v11350_v7, 7  ;;  %v7209_v31 = vrot.slane %v11427_v38, 7 }
 0x571   : > { %6779 = vrot.lane.b32.xlu1 %v6764_v43, %s7787_s29  ;;  %v6505_v40 = vpop.f32.mrf.mxu2  ;;  %v7077_v18 = vrot.slane %v11427_v38, 3  ;;  %v4355_v30 = vsel %vm246_vm0, %v12014_v27, %v4197_v1  ;;  %v6864_v7 = vsel %vm6730_vm8, %v6863_v41, %v11391_v33  ;;  %v7208_v33 = vsel %vm6730_vm8, %v11400_v17, %v7207_v5 }
 0x572   : > { %v6506_v0 = vadd.f32 %v6505_v40, %v6417_v29  ;;  %v7044_v36 = vsel %vm6733_vm9, %v7043_v51, %v7042_v8  ;;  %v6894_v3 = vsel %vm6730_vm8, %v6893_v9, %v6892_v47  ;;  %v7076_v25 = vsel %vm6730_vm8, %v7075_v2, %v7074_v60  ;;  %v6596_v40 = vpop.f32.mrf.mxu0 }
 0x573   : > { %7059 = vrot.lane.b32.xlu2 %v7044_v36, %s7787_s29  ;;  %6945 = vrot.lane.b32.xlu0 %v6930_v21, %s7788_s13  ;;  %v6896_v11 = vsel %vm6733_vm9, %v6895_v6, %v6894_v3  ;;  %v7169_v28 = vsel %vm6721_vm1, %v7168_v46, %v11298_v34  ;;  %v7210_v10 = vsel %vm6733_vm9, %v7209_v31, %v7208_v33  ;;  %v7105_v46 = vrot.slane %v11331_v19, 7 }
 0x574   : > { %v11469_v15 = vadd.f32 %v6594_v20, %v6506_v0  ;;  %v7078_v51 = vsel %vm6733_vm9, %v7077_v18, %v7076_v25  ;;  %v4389_v20 = vsel %vm1191_vm4, %v4355_v30, %v4309_v32  ;;  %v7171_v39 = vsel %vm6724_vm6, %v7170_v53, %v7169_v28  ;;  %v4199_v18 = vpop.permute.xlu2 %4198  ;;  %v12015_v25 = vld [vmem:[#allocation10_spill] sm:$0xff] }
 0x575   : > { %v7103_v34 = vsel %vm6718_vm3, %v7102_v57, %v11266_v12  ;;  %v7172_v9 = vsel %vm6727_vm7, %v11344_v50, %v7171_v39  ;;  %v7175_v0 = vrot.slane %v11427_v38, 6  ;;  %v7107_v36 = vrot.slane %v11344_v50, 6 }
 0x576   : > { %v7109_v21 = vrot.slane %v11400_v17, 5  ;;  %v7011_v35 = vrot.slane %v11400_v17, 2  ;;  %v7143_v54 = vrot.slane %v11400_v17, 6  ;;  %v7242_v12 = vrot.slane %v11400_v17, 1 }
 0x577   : > { %v6418_v14 = vpop.f32.mrf.mxu3  ;;  %v7174_v57 = vsel %vm6730_vm8, %v7173_v23, %v7172_v9  ;;  %v7104_v19 = vsel %vm6721_vm1, %v11207_v4, %v7103_v34  ;;  %v7111_v47 = vrot.slane %v11427_v38, 4  ;;  %v6732_v53 = vrot.slane %v11380_v42, 1  ;;  %v6652_v23 = vld [vmem:[%s7911_s25 + $0x90] sm:$0xff] }
 0x578   : > { %v6419_v56 = vadd.f32 %v11494_v44, %v6418_v14  ;;  %v7106_v61 = vsel %vm6724_vm6, %v7105_v46, %v7104_v19  ;;  %v7012_v50 = vsel %vm6730_vm8, %v7011_v35, %v11434_v62  ;;  %v7144_v37 = vsel %vm6730_vm8, %v7143_v54, %v11437_v59  ;;  %v6653_v19 = vld [vmem:[%s7911_s25 + $0x98] sm:$0xff] }
 0x579   : > { %6911 = vrot.lane.b32.xlu1 %v6896_v11, %s7787_s29  ;;  %v6507_v48 = vpop.f32.mrf.mxu2  ;;  %v7243_v58 = vsel %vm6730_vm8, %v7242_v12, %v11440_v13  ;;  %v7176_v17 = vsel %vm6733_vm9, %v7175_v0, %v7174_v57  ;;  %v7108_v1 = vsel %vm6727_vm7, %v7107_v36, %v7106_v61  ;;  %v6865_v16 = vrot.slane %v11380_v42, 5 }
 0x57a   : > { %v6038_v29 = vpop.permute.xlu0 %6037  ;;  %v6508_v43 = vadd.f32 %v6507_v48, %v6419_v56  ;;  %v7110_v6 = vsel %vm6730_vm8, %v7109_v21, %v7108_v1  ;;  %v11554_v3 = vsel %vm6733_vm9, %v6732_v53, %v6731_v22  ;;  %v7013_v55 = vrot.slane %v11427_v38, 1  ;;  %v6650_v48 = vld [vmem:[%s7911_s25 + $0x80] sm:$0xff] }
 0x57b   : > { %7225 = vrot.lane.b32.xlu2 %v7210_v10, %s7788_s13  ;;  %7093 = vrot.lane.b32.xlu0 %v7078_v51, %s7788_s13  ;;  %v6131_v8 = vsel %vm2921_vm5, %v4389_v20, %v6038_v29  ;;  %v7112_v45 = vsel %vm6733_vm9, %v7111_v47, %v7110_v6  ;;  %v6599_v2 = vpop.f32.mrf.mxu0  ;;  %v11557_v63 = vsel %vm6733_vm9, %v6865_v16, %v6864_v7  ;;  %v7145_v56 = vrot.slane %v11427_v38, 5  ;;  %v6651_v51 = vld [vmem:[%s7911_s25 + $0x88] sm:$0xff] }
 0x57c   : > { %v11521_v26 = vadd.f32 %v6596_v40, %v6508_v43  ;;  %6440 = vmatmul.bf16.gmra.mxu3 %v6131_v8  ;;  %v11564_v42 = vsel %vm6733_vm9, %v11427_v38, %v7243_v58  ;;  %v11567_v11 = vsel %vm6733_vm9, %v7013_v55, %v7012_v50  ;;  %v12016_v28 = vpack.c.b16 %v10788_v24, %v12015_v25 }
 0x57d   : > { %v11570_v5 = vsel %vm6733_vm9, %v7145_v56, %v7144_v37 }
 0x57e   : > { %v4358_v38 = vsel %vm246_vm0, %v12016_v28, %v4199_v18  ;;  %v6683_v39 = vadd.f32 %v6651_v51, %v11521_v26 }
 0x580   : > { %v7045_v16 = vrot.slane %v6683_v39, 1  ;;  %v7177_v18 = vrot.slane %v6683_v39, 5 }
 0x581   : > { %7191 = vrot.lane.b32.xlu1 %v7176_v17, %s7787_s29  ;;  %v6086_v4 = vpop.permute.xlu1 %6085 }
 0x582   : > { %7568 = vmatmul.msk.bf16.gmra.mxu0 %vm246_vm0, %v6086_v4  ;;  %v6179_v62 = vsel %vm1191_vm4, %v6038_v29, %v6086_v4  ;;  %v4311_v33 = vpop.permute.xlu0 %4310  ;;  %v6682_v29 = vadd.f32 %v6650_v48, %v11469_v15 }
 0x583   : > { %7127 = vrot.lane.b32.xlu0 %v7112_v45, %s7789_s15  ;;  %v6421_v59 = vpop.f32.mrf.mxu3  ;;  %v6510_v52 = vpop.f32.mrf.mxu2  ;;  %6529 = vmatmul.bf16.gmra.mxu2 %v6179_v62  ;;  %v4391_v43 = vsel %vm1191_vm4, %v4358_v38, %v4311_v33 }
 0x584   : > { %v6422_v13 = vadd.f32 %v11494_v44, %v6421_v59  ;;  %v6601_v7 = vpop.f32.mrf.mxu0  ;;  %v6965_v24 = vrot.slane %v6682_v29, 7  ;;  %v6833_v34 = vrot.slane %v6682_v29, 3  ;;  %v6765_v46 = vrot.slane %v6682_v29, 1 }
 0x585   : > { %v6799_v9 = vrot.slane %v6682_v29, 2  ;;  %v6931_v0 = vrot.slane %v6682_v29, 6  ;;  %v6897_v15 = vrot.slane %v6682_v29, 5  ;;  %v6867_v36 = vrot.slane %v6682_v29, 4 }
 0x586   : > { %v6511_v41 = vadd.f32 %v6510_v52, %v6422_v13 }
 0x588   : > { %v6600_v31 = vadd.f32 %v6599_v2, %v6511_v41  ;;  %v7211_v41 = vrot.slane %v6683_v39, 6 }
 0x58a   : > { %v6684_v8 = vadd.f32 %v6652_v23, %v6600_v31  ;;  %v7079_v31 = vrot.slane %v6683_v39, 2 }
 0x58b   : > { %v6423_v27 = vpop.f32.mrf.mxu3  ;;  %v6512_v14 = vpop.f32.mrf.mxu2 }
 0x58c   : > { %v6424_v30 = vadd.f32 %v11494_v44, %v6423_v27  ;;  %v6966_v35 = vrot.slane %v6684_v8, 6  ;;  %v6834_v54 = vrot.slane %v6684_v8, 2  ;;  %v6800_v12 = vrot.slane %v6684_v8, 1 }
 0x58d   : > { %v11586_v57 = vsel %vm6715_vm2, %v6684_v8, %v6765_v46  ;;  %v6932_v50 = vrot.slane %v6684_v8, 5  ;;  %v6898_v26 = vrot.slane %v6684_v8, 4  ;;  %v6735_v37 = vrot.slane %v6684_v8, 7 }
 0x58e   : > { %v6513_v22 = vadd.f32 %v6512_v14, %v6424_v30  ;;  %v6967_v17 = vsel %vm6715_vm2, %v6966_v35, %v6965_v24  ;;  %v6835_v1 = vsel %vm6715_vm2, %v6834_v54, %v6833_v34  ;;  %v6801_v4 = vsel %vm6715_vm2, %v6800_v12, %v6799_v9  ;;  %v6654_v35 = vld [vmem:[%s7911_s25 + $0xa0] sm:$0xff] }
 0x58f   : > { %v6868_v6 = vrot.slane %v6684_v8, 3  ;;  %v6933_v62 = vsel %vm6715_vm2, %v6932_v50, %v6931_v0  ;;  %v6899_v59 = vsel %vm6715_vm2, %v6898_v26, %v6897_v15  ;;  %v6736_v13 = vsel %vm6715_vm2, %v6735_v37, %v6682_v29  ;;  %v4201_v8 = vpop.permute.xlu0 %4200  ;;  %v6655_v50 = vld [vmem:[%s7911_s25 + $0xa8] sm:$0xff] }
 0x590   : > { %v6602_v60 = vadd.f32 %v6601_v7, %v6513_v22  ;;  %v7245_v27 = vrot.slane %v6683_v39, 7  ;;  %v7113_v30 = vrot.slane %v6683_v39, 3  ;;  %v7147_v14 = vrot.slane %v6683_v39, 4 }
 0x591   : > { %v6869_v2 = vsel %vm6715_vm2, %v6868_v6, %v6867_v36  ;;  %v4361_v0 = vsel %vm246_vm0, %v10803_v49, %v4201_v8 }
 0x592   : > { %v6685_v52 = vadd.f32 %v6653_v19, %v6602_v60 }
 0x593   : > { %v6088_v32 = vpop.permute.xlu2 %6087 }
 0x594   : > { %7569 = vmatmul.msk.bf16.gmra.mxu0 %vm246_vm0, %v6088_v32  ;;  %v7046_v56 = vsel %vm6715_vm2, %v6685_v52, %v7045_v16  ;;  %v7212_v22 = vrot.slane %v6685_v52, 5  ;;  %v7080_v7 = vrot.slane %v6685_v52, 1  ;;  %v7246_v33 = vrot.slane %v6685_v52, 6 }
 0x595   : > { %v7114_v25 = vrot.slane %v6685_v52, 2  ;;  %v7148_v28 = vrot.slane %v6685_v52, 3 }
 0x596   : > { %v7213_v38 = vsel %vm6715_vm2, %v7212_v22, %v7211_v41  ;;  %v7081_v23 = vsel %vm6715_vm2, %v7080_v7, %v7079_v31  ;;  %v7247_v51 = vsel %vm6715_vm2, %v7246_v33, %v7245_v27 }
 0x5a4   : > { %v6040_v10 = vpop.permute.xlu1 %6039  ;;  %v6604_v58 = vpop.f32.mrf.mxu0 }
 0x5a5   : > { %v6134_v20 = vsel %vm2921_vm5, %v4391_v43, %v6040_v10  ;;  %v6182_v40 = vsel %vm1191_vm4, %v6040_v10, %v6088_v32  ;;  %v7178_v32 = vrot.slane %v6685_v52, 4  ;;  %v7015_v43 = vrot.slane %v6685_v52, 7 }
 0x5a6   : > { %6445 = vmatmul.bf16.gmra.mxu3 %v6134_v20  ;;  %6534 = vmatmul.bf16.gmra.mxu2 %v6182_v40  ;;  %v7115_v20 = vsel %vm6715_vm2, %v7114_v25, %v7113_v30  ;;  %v7149_v40 = vsel %vm6715_vm2, %v7148_v28, %v7147_v14 }
 0x5a7   : > { %v7179_v29 = vsel %vm6715_vm2, %v7178_v32, %v7177_v18  ;;  %v7016_v34 = vsel %vm6715_vm2, %v7015_v43, %v6683_v39 }
 0x5aa   : > { %v6426_v21 = vpop.f32.mrf.mxu3 }
 0x5ab   : > { %v6427_v47 = vadd.f32 %v11494_v44, %v6426_v21  ;;  %v6515_v61 = vpop.f32.mrf.mxu2 }
 0x5ac   : > { %v6606_v24 = vpop.f32.mrf.mxu0  ;;  %v4313_v46 = vpop.permute.xlu1 %4312 }
 0x5ad   : > { %v6516_v45 = vadd.f32 %v6515_v61, %v6427_v47  ;;  %v4393_v15 = vsel %vm1191_vm4, %v4361_v0, %v4313_v46 }
 0x5af   : > { %v6605_v53 = vadd.f32 %v6604_v58, %v6516_v45 }
 0x5b1   : > { %v6686_v54 = vadd.f32 %v6654_v35, %v6605_v53 }
 0x5b2   : > { %v6428_v55 = vpop.f32.mrf.mxu3 }
 0x5b3   : > { %v6429_v60 = vadd.f32 %v11494_v44, %v6428_v55  ;;  %v6517_v48 = vpop.f32.mrf.mxu2  ;;  %v6968_v39 = vrot.slane %v6686_v54, 5  ;;  %v6836_v47 = vrot.slane %v6686_v54, 1  ;;  %v11614_v61 = vsel %vm6718_vm3, %v6686_v54, %v6801_v4 }
 0x5b4   : > { %v6767_v49 = vrot.slane %v6686_v54, 7  ;;  %v6934_v26 = vrot.slane %v6686_v54, 4  ;;  %v6900_v37 = vrot.slane %v6686_v54, 3  ;;  %v6737_v45 = vrot.slane %v6686_v54, 6 }
 0x5b5   : > { %v6518_v10 = vadd.f32 %v6517_v48, %v6429_v60  ;;  %v11618_v58 = vsel %vm6718_vm3, %v6968_v39, %v6967_v17  ;;  %v11621_v6 = vsel %vm6718_vm3, %v6836_v47, %v6835_v1  ;;  %v6870_v52 = vrot.slane %v6686_v54, 2 }
 0x5b6   : > { %v11625_v53 = vsel %vm6718_vm3, %v6767_v49, %v11586_v57  ;;  %v11628_v4 = vsel %vm6718_vm3, %v6934_v26, %v6933_v62  ;;  %v11631_v16 = vsel %vm6718_vm3, %v6900_v37, %v6899_v59  ;;  %v6738_v31 = vsel %vm6718_vm3, %v6737_v45, %v6736_v13  ;;  %v6657_v26 = vld [vmem:[%s7911_s25 + $0xb8] sm:$0xff] }
 0x5b7   : > { %v6607_v9 = vadd.f32 %v6606_v24, %v6518_v10  ;;  %v6871_v17 = vsel %vm6718_vm3, %v6870_v52, %v6869_v2 }
 0x5b9   : > { %v6687_v41 = vadd.f32 %v6655_v50, %v6607_v9 }
 0x5ba   : > { %v6042_v36 = vpop.permute.xlu2 %6041  ;;  %v6431_v2 = vpop.f32.mrf.mxu3 }
 0x5bb   : > { %v6137_v21 = vsel %vm2921_vm5, %v4393_v15, %v6042_v36  ;;  %v7047_v18 = vrot.slane %v6687_v41, 7  ;;  %v7214_v1 = vrot.slane %v6687_v41, 4  ;;  %v11636_v27 = vsel %vm6718_vm3, %v6687_v41, %v7081_v23 }
 0x5bc   : > { %6450 = vmatmul.bf16.gmra.mxu3 %v6137_v21  ;;  %v7180_v30 = vrot.slane %v6687_v41, 3  ;;  %v7248_v57 = vrot.slane %v6687_v41, 5  ;;  %v7116_v14 = vrot.slane %v6687_v41, 1  ;;  %v7150_v55 = vrot.slane %v6687_v41, 2 }
 0x5bd   : > { %v7017_v62 = vrot.slane %v6687_v41, 6  ;;  %v11639_v59 = vsel %vm6718_vm3, %v7047_v18, %v7046_v56  ;;  %v11642_v7 = vsel %vm6718_vm3, %v7214_v1, %v7213_v38  ;;  %v6432_v28 = vadd.f32 %v11494_v44, %v6431_v2 }
 0x5be   : > { %v11645_v13 = vsel %vm6718_vm3, %v7180_v30, %v7179_v29  ;;  %v11648_v32 = vsel %vm6718_vm3, %v7248_v57, %v7247_v51  ;;  %v11651_v60 = vsel %vm6718_vm3, %v7116_v14, %v7115_v20  ;;  %v7151_v48 = vsel %vm6718_vm3, %v7150_v55, %v7149_v40 }
 0x5bf   : > { %v7018_v25 = vsel %vm6718_vm3, %v7017_v62, %v7016_v34  ;;  %v6656_v34 = vld [vmem:[%s7911_s25 + $0xb0] sm:$0xff] }
 0x5c2   : > { %v6609_v23 = vpop.f32.mrf.mxu0  ;;  %v6433_v8 = vpop.f32.mrf.mxu3 }
 0x5c3   : > { %v6434_v9 = vadd.f32 %v11494_v44, %v6433_v8 }
 0x5c5   : > { %v6848_v10 = vpop.permute.xlu2 %6847 }
 0x5c9   : > { %v6520_v56 = vpop.f32.mrf.mxu2 }
 0x5ca   : > { %v6521_v29 = vadd.f32 %v6520_v56, %v6432_v28  ;;  %v6611_v54 = vpop.f32.mrf.mxu0  ;;  %v6658_v56 = vld [vmem:[%s7911_s25 + $0xc0] sm:$0xff] }
 0x5cc   : > { %v6610_v24 = vadd.f32 %v6609_v23, %v6521_v29 }
 0x5cd   : > { %v7060_v49 = vpop.permute.xlu2 %7059 }
 0x5ce   : > { %v7277_v52 = vsel %vm246_vm0, %v11567_v11, %v7060_v49 }
 0x5d0   : > { %v6090_v12 = vpop.permute.xlu0 %6089 }
 0x5d1   : > { %7570 = vmatmul.msk.bf16.gmra.mxu0 %vm246_vm0, %v6090_v12  ;;  %v6185_v19 = vsel %vm1191_vm4, %v6042_v36, %v6090_v12  ;;  %v6522_v46 = vpop.f32.mrf.mxu2 }
 0x5d2   : > { %6539 = vmatmul.bf16.gmra.mxu2 %v6185_v19  ;;  %v6523_v15 = vadd.f32 %v6522_v46, %v6434_v9  ;;  %v6614_v55 = vpop.f32.mrf.mxu0 }
 0x5d4   : > { %v6612_v39 = vadd.f32 %v6611_v54, %v6523_v15 }
 0x5d6   : > { %v11681_v41 = vadd.f32 %v6657_v26, %v6612_v39  ;;  %v6661_v26 = vld [vmem:[%s7911_s25 + $0xd8] sm:$0xff] }
 0x5d8   : > { %v7019_v62 = vrot.slane %v11681_v41, 5 }
 0x5da   : > { %v6616_v29 = vpop.f32.mrf.mxu0 }
 0x5db   : > { %v6980_v22 = vpop.permute.xlu1 %6979  ;;  %v6436_v12 = vpop.f32.mrf.mxu3 }
 0x5dc   : > { %v6437_v45 = vadd.f32 %v11494_v44, %v6436_v12  ;;  %v6525_v18 = vpop.f32.mrf.mxu2 }
 0x5dd   : > { %v6814_v33 = vpop.permute.xlu0 %6813 }
 0x5de   : > { %v6526_v14 = vadd.f32 %v6525_v18, %v6437_v45 }
 0x5e0   : > { %v6615_v2 = vadd.f32 %v6614_v55, %v6526_v14 }
 0x5e3   : > { %v6780_v38 = vpop.permute.xlu1 %6779 }
 0x5e4   : > { %v7265_v43 = vsel %vm246_vm0, %v11554_v3, %v6780_v38  ;;  %v11666_v3 = vadd.f32 %v6656_v34, %v6610_v24  ;;  %v6527_v28 = vpop.f32.mrf.mxu2  ;;  %v11692_v38 = vadd.f32 %v6658_v56, %v6615_v2 }
 0x5e5   : > { %v7267_v51 = vsel %vm1191_vm4, %v7265_v43, %v6814_v33  ;;  %v6946_v20 = vpop.permute.xlu0 %6945 }
 0x5e6   : > { %v7269_v40 = vsel %vm2921_vm5, %v7267_v51, %v6848_v10  ;;  %v6739_v47 = vrot.slane %v11666_v3, 5  ;;  %v6872_v50 = vrot.slane %v11666_v3, 1  ;;  %v6741_v10 = vrot.slane %v11692_v38, 4 }
 0x5e7   : > { %7289 = vst [vmem:[%s11661_s10] sm:$0xff] %v7269_v40 }
 0x5e8   : > { %v6740_v37 = vsel %vm6721_vm1, %v6739_v47, %v6738_v31  ;;  %v6438_v31 = vpop.f32.mrf.mxu3 }
 0x5e9   : > { %v6439_v33 = vadd.f32 %v11494_v44, %v6438_v31 }
 0x5eb   : > { %v6912_v0 = vpop.permute.xlu1 %6911  ;;  %v6528_v23 = vadd.f32 %v6527_v28, %v6439_v33  ;;  %v6662_v33 = vld [vmem:[%s7911_s25 + $0xe0] sm:$0xff] }
 0x5ec   : > { %v7271_v36 = vsel %vm246_vm0, %v11557_v63, %v6912_v0  ;;  %v6873_v63 = vsel %vm6721_vm1, %v6872_v50, %v6871_v17  ;;  %v7152_v17 = vrot.slane %v11681_v41, 1 }
 0x5ed   : > { %v7273_v21 = vsel %vm1191_vm4, %v7271_v36, %v6946_v20  ;;  %v7094_v35 = vpop.permute.xlu0 %7093  ;;  %v6617_v43 = vadd.f32 %v6616_v29, %v6528_v23  ;;  %v6874_v51 = vsel %vm6724_vm6, %v11692_v38, %v6873_v63  ;;  %v6659_v20 = vld [vmem:[%s7911_s25 + $0xc8] sm:$0xff] }
 0x5ee   : > { %v7275_v19 = vsel %vm2921_vm5, %v7273_v21, %v6980_v22  ;;  %v7279_v1 = vsel %vm1191_vm4, %v7277_v52, %v7094_v35  ;;  %v7153_v11 = vsel %vm6721_vm1, %v7152_v17, %v7151_v48  ;;  %v7020_v22 = vsel %vm6721_vm1, %v7019_v62, %v7018_v25  ;;  %v6660_v35 = vld [vmem:[%s7911_s25 + $0xd0] sm:$0xff] }
 0x5ef   : > { %7290 = vst [vmem:[%s11661_s10 + $0x8] sm:$0xff] %v7275_v19  ;;  %v6742_v48 = vsel %vm6724_vm6, %v6741_v10, %v6740_v37  ;;  %v11699_v25 = vadd.f32 %v6659_v20, %v6617_v43 }
 0x5f1   : > { %v7154_v8 = vsel %vm6724_vm6, %v11699_v25, %v7153_v11  ;;  %v7021_v40 = vrot.slane %v11699_v25, 4 }
 0x5f3   : > { %v7022_v24 = vsel %vm6724_vm6, %v7021_v40, %v7020_v22 }
 0x5f5   : > { %v7128_v30 = vpop.permute.xlu0 %7127 }
 0x5f6   : > { %v7281_v57 = vsel %vm2921_vm5, %v7279_v1, %v7128_v30 }
 0x5f7   : > { %7291 = vst [vmem:[%s11661_s10 + $0x10] sm:$0xff] %v7281_v57 }
 0x5ff   : > { %v6441_v34 = vpop.f32.mrf.mxu3  ;;  %v6619_v15 = vpop.f32.mrf.mxu0 }
 0x600   : > { %v6442_v9 = vadd.f32 %v11494_v44, %v6441_v34 }
 0x606   : > { %v6530_v46 = vpop.f32.mrf.mxu2 }
 0x607   : > { %v6531_v0 = vadd.f32 %v6530_v46, %v6442_v9  ;;  %v6443_v36 = vpop.f32.mrf.mxu3  ;;  %v6621_v47 = vpop.f32.mrf.mxu0  ;;  %v6972_v9 = vrot.slane %v11692_v38, 3 }
 0x608   : > { %v6444_v12 = vadd.f32 %v11494_v44, %v6443_v36 }
 0x609   : > { %v6620_v21 = vadd.f32 %v6619_v15, %v6531_v0  ;;  %v6803_v0 = vrot.slane %v11666_v3, 7 }
 0x60b   : > { %v11708_v19 = vadd.f32 %v6660_v35, %v6620_v21  ;;  %v6838_v35 = vsel %vm6721_vm1, %v11666_v3, %v11621_v6 }
 0x60d   : > { %v6743_v49 = vrot.slane %v11708_v19, 3  ;;  %v6875_v63 = vrot.slane %v11708_v19, 7 }
 0x60e   : > { %v6532_v54 = vpop.f32.mrf.mxu2 }
 0x60f   : > { %v6533_v39 = vadd.f32 %v6532_v54, %v6444_v12  ;;  %v6744_v37 = vsel %vm6727_vm7, %v6743_v49, %v6742_v48  ;;  %v6876_v52 = vsel %vm6727_vm7, %v6875_v63, %v6874_v51  ;;  %v6663_v48 = vld [vmem:[%s7911_s25 + $0xe8] sm:$0xff]  ;;  %v6839_v54 = vrot.slane %v11692_v38, 7  ;;  %v6664_v49 = vld [vmem:[%s7911_s25 + $0xf0] sm:$0xff] }
 0x611   : > { %v6622_v50 = vadd.f32 %v6621_v47, %v6533_v39  ;;  %v6624_v17 = vpop.f32.mrf.mxu0  ;;  %v6974_v39 = vrot.slane %v11708_v19, 2  ;;  %v6841_v47 = vrot.slane %v11708_v19, 6 }
 0x613   : > { %v11714_v45 = vadd.f32 %v6661_v26, %v6622_v50  ;;  %v6805_v50 = vrot.slane %v11692_v38, 6 }
 0x615   : > { %v7155_v18 = vrot.slane %v11714_v45, 7  ;;  %v7023_v1 = vrot.slane %v11714_v45, 3 }
 0x617   : > { %v7156_v30 = vsel %vm6727_vm7, %v7155_v18, %v7154_v8  ;;  %v7024_v57 = vsel %vm6727_vm7, %v7023_v1, %v7022_v24  ;;  %v6970_v8 = vrot.slane %v11666_v3, 4  ;;  %v6804_v18 = vsel %vm6721_vm1, %v6803_v0, %v11614_v61 }
 0x618   : > { %v6769_v1 = vrot.slane %v11666_v3, 6  ;;  %v6806_v61 = vsel %vm6724_vm6, %v6805_v50, %v6804_v18 }
 0x619   : > { %v6626_v29 = vpop.f32.mrf.mxu0  ;;  %v6971_v21 = vsel %vm6721_vm1, %v6970_v8, %v11618_v58  ;;  %v6771_v8 = vrot.slane %v11692_v38, 5 }
 0x61a   : > { %v6973_v6 = vsel %vm6724_vm6, %v6972_v9, %v6971_v21  ;;  %v6665_v21 = vld [vmem:[%s7911_s25 + $0xf8] sm:$0xff]  ;;  %s7613_s25 = sshll.u32 %s7842_s22, 6  ;;  %s7298_s22 = scalar_lea.sflag [#allocation6], %s7907_s12 }
 0x61b   : > { %s7309_s7 = scalar_lea.hbm %s11972_s5, %s7613_s25 }
 0x61c   : > { %s7312_s14 = sshll.u32 %s7309_s7, 4  ;;  %s7313_s14 = int_to_ptr.hbm [resolvable:$true] %s7312_s14 }
 0x61d   : > { %s7730_s23 = sshra.s32 %s7313_s14, 4  ;;  %s7731_s23 = int_to_ptr.hbm [resolvable:$true] %s7730_s23 }
 0x61e   : > { %s7732_s16 = scalar_lea.hbm %s7731_s23, 64  ;;  %p7737_p0 = scmp.lt.s32.totalorder %s7731_s23, %s11972_s5 }
 0x61f   : > { %p7733_p6 = scmp.ne.s32.totalorder %s7731_s23, %s7732_s16  ;;  %p7738_p1 = scmp.lt.s32.totalorder %s7736_s8, %s7732_s16 }
 0x621   : > { %p7734_p9 = pnand %p7733_p6, %p7871_p11  ;;  %p7739_p3 = por %p7738_p1, %p7737_p0 }
 0x623   : > { %p7735_p13 = pneg %p7734_p9 }
 0x625   : > { %p7740_p4 = pnand %p7739_p3, %p7735_p13 }
 0x629   : > { %v6446_v14 = vpop.f32.mrf.mxu3  ;;  %v6535_v31 = vpop.f32.mrf.mxu2 }
 0x62a   : > { %v6447_v55 = vadd.f32 %v11494_v44, %v6446_v14 }
 0x62c   : > { %v6536_v62 = vadd.f32 %v6535_v31, %v6447_v55 }
 0x62e   : > { %v6625_v22 = vadd.f32 %v6624_v17, %v6536_v62 }
 0x630   : > { %v11724_v28 = vadd.f32 %v6662_v33, %v6625_v22  ;;  %v6975_v22 = vsel %vm6727_vm7, %v6974_v39, %v6973_v6  ;;  %v6938_v39 = vrot.slane %v11692_v38, 2 }
 0x631   : > { %v6448_v11 = vpop.f32.mrf.mxu3  ;;  %v6537_v56 = vpop.f32.mrf.mxu2 }
 0x632   : > { %v6449_v2 = vadd.f32 %v11494_v44, %v6448_v11  ;;  %v6745_v51 = vrot.slane %v11724_v28, 2  ;;  %v6877_v20 = vrot.slane %v11724_v28, 6  ;;  %v6976_v26 = vrot.slane %v11724_v28, 1 }
 0x633   : > { %v6843_v55 = vrot.slane %v11724_v28, 5  ;;  %v6809_v31 = vrot.slane %v11724_v28, 4 }
 0x634   : > { %v6538_v23 = vadd.f32 %v6537_v56, %v6449_v2  ;;  %v11731_v40 = vsel %vm6730_vm8, %v6745_v51, %v6744_v37  ;;  %v11734_v24 = vsel %vm6730_vm8, %v6877_v20, %v6876_v52  ;;  %v6807_v37 = vrot.slane %v11708_v19, 5 }
 0x635   : > { %v6840_v2 = vsel %vm6724_vm6, %v6839_v54, %v6838_v35  ;;  %v6977_v33 = vsel %vm6730_vm8, %v6976_v26, %v6975_v22  ;;  %v6770_v35 = vsel %vm6721_vm1, %v6769_v1, %v11625_v53  ;;  %v6775_v54 = vrot.slane %v11724_v28, 3 }
 0x636   : > { %v6627_v43 = vadd.f32 %v6626_v29, %v6538_v23  ;;  %v6842_v56 = vsel %vm6727_vm7, %v6841_v47, %v6840_v2  ;;  %v6808_v23 = vsel %vm6727_vm7, %v6807_v37, %v6806_v61  ;;  %v6940_v26 = vrot.slane %v11708_v19, 1 }
 0x637   : > { %v6844_v20 = vsel %vm6730_vm8, %v6843_v55, %v6842_v56  ;;  %v6772_v37 = vsel %vm6724_vm6, %v6771_v8, %v6770_v35  ;;  %v6904_v56 = vrot.slane %v11692_v38, 1 }
 0x638   : > { %v11736_v34 = vadd.f32 %v6663_v48, %v6627_v43  ;;  %v6810_v48 = vsel %vm6730_vm8, %v6809_v31, %v6808_v23  ;;  %v6902_v31 = vrot.slane %v11666_v3, 2  ;;  %v7216_v23 = vrot.slane %v11681_v41, 3 }
 0x63a   : > { %v7157_v58 = vrot.slane %v11736_v34, 6  ;;  %v7025_v63 = vrot.slane %v11736_v34, 2  ;;  %v6903_v38 = vsel %vm6721_vm1, %v6902_v31, %v11631_v16 }
 0x63b   : > { %v6905_v8 = vsel %vm6724_vm6, %v6904_v56, %v6903_v38 }
 0x63c   : > { %v11762_v17 = vsel %vm6730_vm8, %v7157_v58, %v7156_v30  ;;  %v11765_v62 = vsel %vm6730_vm8, %v7025_v63, %v7024_v57  ;;  %v6936_v30 = vrot.slane %v11666_v3, 3  ;;  %v7055_v58 = vrot.slane %v11736_v34, 3 }
 0x63e   : > { %v6937_v53 = vsel %vm6721_vm1, %v6936_v30, %v11628_v4 }
 0x63f   : > { %v6451_v10 = vpop.f32.mrf.mxu3  ;;  %v6939_v55 = vsel %vm6724_vm6, %v6938_v39, %v6937_v53  ;;  %v7184_v39 = vrot.slane %v11699_v25, 1 }
 0x640   : > { %v6452_v46 = vadd.f32 %v11494_v44, %v6451_v10  ;;  %v6941_v61 = vsel %vm6727_vm7, %v6940_v26, %v6939_v55  ;;  %v7187_v26 = vrot.slane %v11736_v34, 7  ;;  %v7123_v55 = vrot.slane %v11736_v34, 5 }
 0x647   : > { %v6453_v14 = vpop.f32.mrf.mxu3 }
 0x648   : > { %v6454_v57 = vadd.f32 %v11494_v44, %v6453_v14 }
 0x64e   : > { %v6629_v15 = vpop.f32.mrf.mxu0 }
 0x655   : > { %v6540_v36 = vpop.f32.mrf.mxu2 }
 0x656   : > { %v6541_v12 = vadd.f32 %v6540_v36, %v6452_v46  ;;  %v7049_v46 = vrot.slane %v11681_v41, 6  ;;  %v6631_v36 = vpop.f32.mrf.mxu0 }
 0x658   : > { %v6630_v52 = vadd.f32 %v6629_v15, %v6541_v12  ;;  %v6773_v15 = vrot.slane %v11708_v19, 4  ;;  %v7051_v12 = vrot.slane %v11699_v25, 5  ;;  %v7050_v6 = vsel %vm6721_vm1, %v7049_v46, %v11639_v59 }
 0x659   : > { %v7217_v46 = vsel %vm6721_vm1, %v7216_v23, %v11642_v7 }
 0x65a   : > { %v11767_v11 = vadd.f32 %v6664_v49, %v6630_v52  ;;  %v7053_v49 = vrot.slane %v11714_v45, 4  ;;  %v6774_v52 = vsel %vm6727_vm7, %v6773_v15, %v6772_v37  ;;  %v7052_v14 = vsel %vm6724_vm6, %v7051_v12, %v7050_v6 }
 0x65b   : > { %v6776_v1 = vsel %vm6730_vm8, %v6775_v54, %v6774_v52  ;;  %v7252_v37 = vrot.slane %v11699_v25, 3  ;;  %v7254_v6 = vrot.slane %v11714_v45, 2 }
 0x65c   : > { %v6978_v29 = vsel %vm6733_vm9, %v11767_v11, %v6977_v33  ;;  %v6845_v43 = vrot.slane %v11767_v11, 4  ;;  %v6811_v10 = vrot.slane %v11767_v11, 3  ;;  %v6777_v50 = vrot.slane %v11767_v11, 2 }
 0x65d   : > { %v6542_v51 = vpop.f32.mrf.mxu2  ;;  %6981 = vrot.lane.b32.xlu2 %v6978_v29, %s7789_s15  ;;  %v6943_v18 = vrot.slane %v11767_v11, 7  ;;  %v7054_v4 = vsel %vm6727_vm7, %v7053_v49, %v7052_v14  ;;  %v6942_v33 = vsel %vm6730_vm8, %v11724_v28, %v6941_v61  ;;  %v6907_v29 = vrot.slane %v11724_v28, 7 }
 0x65e   : > { %v6543_v9 = vadd.f32 %v6542_v51, %v6454_v57  ;;  %v6846_v44 = vsel %vm6733_vm9, %v6845_v43, %v6844_v20  ;;  %v6812_v0 = vsel %vm6733_vm9, %v6811_v10, %v6810_v48  ;;  %v6778_v22 = vsel %vm6733_vm9, %v6777_v50, %v6776_v1 }
 0x65f   : > { %6849 = vrot.lane.b32.xlu0 %v6846_v44, %s7789_s15  ;;  %6815 = vrot.lane.b32.xlu1 %v6812_v0, %s7788_s13  ;;  %v7056_v59 = vsel %vm6730_vm8, %v7055_v58, %v7054_v4  ;;  %v6944_v30 = vsel %vm6733_vm9, %v6943_v18, %v6942_v33  ;;  %v7083_v57 = vrot.slane %v11681_v41, 7  ;;  %v7218_v43 = vrot.slane %v11699_v25, 2 }
 0x660   : > { %v6632_v47 = vadd.f32 %v6631_v36, %v6543_v9  ;;  %v7085_v10 = vrot.slane %v11699_v25, 6  ;;  %v6909_v51 = vrot.slane %v11767_v11, 6  ;;  %v7220_v20 = vrot.slane %v11714_v45, 1 }
 0x661   : > { %v7087_v48 = vrot.slane %v11714_v45, 5  ;;  %v7089_v28 = vrot.slane %v11736_v34, 4  ;;  %v6906_v9 = vsel %vm6727_vm7, %v11708_v19, %v6905_v8  ;;  %v7084_v16 = vsel %vm6721_vm1, %v7083_v57, %v11636_v27 }
 0x662   : > { %v11804_v63 = vadd.f32 %v6665_v21, %v6632_v47  ;;  %v6908_v15 = vsel %vm6730_vm8, %v6907_v29, %v6906_v9  ;;  %v7219_v36 = vsel %vm6724_vm6, %v7218_v43, %v7217_v46  ;;  %v7086_v21 = vsel %vm6724_vm6, %v7085_v10, %v7084_v16  ;;  %v7226_v10 = vpop.permute.xlu2 %7225 }
 0x663   : > { %v6910_v7 = vsel %vm6733_vm9, %v6909_v51, %v6908_v15  ;;  %v7221_v35 = vsel %vm6727_vm7, %v7220_v20, %v7219_v36  ;;  %v7088_v54 = vsel %vm6727_vm7, %v7087_v48, %v7086_v21  ;;  %v7182_v19 = vrot.slane %v11681_v41, 2 }
 0x664   : > { %v7057_v2 = vrot.slane %v11804_v63, 2  ;;  %v7223_v44 = vrot.slane %v11804_v63, 7  ;;  %v7091_v0 = vrot.slane %v11804_v63, 3  ;;  %v7222_v27 = vsel %vm6730_vm8, %v11736_v34, %v7221_v35 }
 0x665   : > { %6781 = vrot.lane.b32.xlu2 %v6778_v22, %s7787_s29  ;;  %v7090_v12 = vsel %vm6730_vm8, %v7089_v28, %v7088_v54  ;;  %v7250_v49 = vrot.slane %v11681_v41, 4  ;;  %v7119_v58 = vrot.slane %v11699_v25, 7  ;;  %v7183_v53 = vsel %vm6721_vm1, %v7182_v19, %v11645_v13 }
 0x666   : > { %v7058_v3 = vsel %vm6733_vm9, %v7057_v2, %v7056_v59  ;;  %v7224_v47 = vsel %vm6733_vm9, %v7223_v44, %v7222_v27  ;;  %v7092_v50 = vsel %vm6733_vm9, %v7091_v0, %v7090_v12  ;;  %v7189_v52 = vrot.slane %v11804_v63, 6 }
 0x667   : > { %7061 = vrot.lane.b32.xlu0 %v7058_v3, %s7787_s29  ;;  %6947 = vrot.lane.b32.xlu1 %v6944_v30, %s7788_s13  ;;  %v7121_v18 = vrot.slane %v11714_v45, 6  ;;  %v7185_v1 = vsel %vm6724_vm6, %v7184_v39, %v7183_v53  ;;  %v7256_v14 = vrot.slane %v11736_v34, 1  ;;  %v7251_v25 = vsel %vm6721_vm1, %v7250_v49, %v11648_v32 }
 0x668   : > { %v7186_v31 = vsel %vm6727_vm7, %v11714_v45, %v7185_v1  ;;  %v7118_v13 = vsel %vm6721_vm1, %v11681_v41, %v11651_v60  ;;  %v7125_v22 = vrot.slane %v11804_v63, 4  ;;  %v7253_v2 = vsel %vm6724_vm6, %v7252_v37, %v7251_v25 }
 0x669   : > { %v7188_v4 = vsel %vm6730_vm8, %v7187_v26, %v7186_v31  ;;  %v7120_v61 = vsel %vm6724_vm6, %v7119_v58, %v7118_v13  ;;  %v7255_v59 = vsel %vm6727_vm7, %v7254_v6, %v7253_v2  ;;  %v6747_v56 = vrot.slane %v11767_v11, 1 }
 0x66a   : > { %v7190_v34 = vsel %vm6733_vm9, %v7189_v52, %v7188_v4  ;;  %v7122_v45 = vsel %vm6727_vm7, %v7121_v18, %v7120_v61  ;;  %v7257_v32 = vsel %vm6730_vm8, %v7256_v14, %v7255_v59  ;;  %v6879_v23 = vrot.slane %v11767_v11, 5 }
 0x66b   : > { %v7124_v60 = vsel %vm6730_vm8, %v7123_v55, %v7122_v45  ;;  %v7258_v41 = vsel %vm6733_vm9, %v11804_v63, %v7257_v32  ;;  %v6748_v3 = vsel %vm6733_vm9, %v6747_v56, %v11731_v40  ;;  %v7159_v57 = vrot.slane %v11804_v63, 5  ;;  %v7192_v40 = vpop.permute.xlu1 %7191 }
 0x66c   : > { %v7126_v33 = vsel %vm6733_vm9, %v7125_v22, %v7124_v60  ;;  %v6880_v30 = vsel %vm6733_vm9, %v6879_v23, %v11734_v24  ;;  %v7027_v29 = vrot.slane %v11804_v63, 1 }
 0x66d   : > { %6913 = vrot.lane.b32.xlu2 %v6910_v7, %s7787_s29  ;;  %v7160_v43 = vsel %vm6733_vm9, %v7159_v57, %v11762_v17 }
 0x66e   : > { %v7028_v11 = vsel %vm6733_vm9, %v7027_v29, %v11765_v62  ;;  %v7283_v62 = vsel %vm246_vm0, %v11570_v5, %v7192_v40 }
 0x66f   : > { %7227 = vrot.lane.b32.xlu0 %v7224_v47, %s7788_s13  ;;  %7095 = vrot.lane.b32.xlu1 %v7092_v50, %s7788_s13  ;;  %v7285_v28 = vsel %vm1191_vm4, %v7283_v62, %v7226_v10 }
 0x675   : > { %7193 = vrot.lane.b32.xlu2 %v7190_v34, %s7787_s29 }
 0x677   : > { %7261 = vrot.lane.b32.xlu0 %v7258_v41, %s7789_s15  ;;  %7129 = vrot.lane.b32.xlu1 %v7126_v33, %s7789_s15 }
 0x67d   : > { %7259 = vrot.lane.b32.xlu2 %v11564_v42, %s7789_s15 }
 0x6b7   : > { %v6982_v38 = vpop.permute.xlu2 %6981 }
 0x6bf   : > { %v6782_v42 = vpop.permute.xlu2 %6781 }
 0x6c0   : > { %v7266_v24 = vsel %vm246_vm0, %v6748_v3, %v6782_v42 }
 0x6c7   : > { %v6914_v51 = vpop.permute.xlu2 %6913 }
 0x6c8   : > { %v7272_v44 = vsel %vm246_vm0, %v6880_v30, %v6914_v51 }
 0x6cf   : > { %v7194_v20 = vpop.permute.xlu2 %7193 }
 0x6d0   : > { %v7284_v7 = vsel %vm246_vm0, %v7160_v43, %v7194_v20 }
 0x6d1   : > { %v6850_v48 = vpop.permute.xlu0 %6849  ;;  %v6816_v8 = vpop.permute.xlu1 %6815 }
 0x6d2   : > { %v7268_v63 = vsel %vm1191_vm4, %v7266_v24, %v6816_v8 }
 0x6d3   : > { %v7270_v17 = vsel %vm2921_vm5, %v7268_v63, %v6850_v48 }
 0x6d4   : > { %7293 = vst [vmem:[%s11661_s10 + $0x20] sm:$0xff] %v7270_v17 }
 0x6d7   : > { %v7260_v46 = vpop.permute.xlu2 %7259 }
 0x6d8   : > { %v7287_v9 = vsel %vm2921_vm5, %v7285_v28, %v7260_v46 }
 0x6d9   : > { %7292 = vst [vmem:[%s11661_s10 + $0x18] sm:$0xff] %v7287_v9  ;;  %v7062_v16 = vpop.permute.xlu0 %7061  ;;  %v6948_v0 = vpop.permute.xlu1 %6947 }
 0x6da   : > { %v7274_v15 = vsel %vm1191_vm4, %v7272_v44, %v6948_v0  ;;  %v7278_v35 = vsel %vm246_vm0, %v7028_v11, %v7062_v16 }
 0x6db   : > { %v7276_v36 = vsel %vm2921_vm5, %v7274_v15, %v6982_v38 }
 0x6dc   : > { %7294 = vst [vmem:[%s11661_s10 + $0x28] sm:$0xff] %v7276_v36 }
 0x6e1   : > { %v7228_v21 = vpop.permute.xlu0 %7227  ;;  %v7096_v5 = vpop.permute.xlu1 %7095 }
 0x6e2   : > { %v7286_v54 = vsel %vm1191_vm4, %v7284_v7, %v7228_v21  ;;  %v7280_v19 = vsel %vm1191_vm4, %v7278_v35, %v7096_v5 }
 0x6e9   : > { %v7262_v27 = vpop.permute.xlu0 %7261  ;;  %v7130_v12 = vpop.permute.xlu1 %7129 }
 0x6ea   : > { %v7288_v39 = vsel %vm2921_vm5, %v7286_v54, %v7262_v27  ;;  %v7282_v47 = vsel %vm2921_vm5, %v7280_v19, %v7130_v12 }
 0x6eb   : > { %7296 = vst [vmem:[%s11661_s10 + $0x38] sm:$0xff] %v7288_v39 }
 0x6ec   : > { %7295 = vst [vmem:[%s11661_s10 + $0x30] sm:$0xff] %v7282_v47 }
 0x6ed   : > { %7743 = shalt.err (!%p7740_p4)
}
 0x6ee   : > { %s7790_s12 = smov 512  }
 0x6ef   : > { %7626 = dma.vmem_to_hbm [thread:$0]  (%p7871_p11), %s7311_s11, 1024, %s7313_s14, %s7298_s22, %s7790_s12, %s7790_s12, %s7787_s29  }
 0x6f0 PF: > { %s7327_s10 = sand.u32 1, %s7770_s18   ;;  %p12017_p7 = scmp.ge.s32.totalorder %s7782_s21, 2 }
 0x6f1   : > { %s7328_s25 = scalar_lea.sflag [#allocation6], %s7327_s10 }
 0x6f2   : > { %p7633_p5 = pnand %p12017_p7, %p7875_p12 }
 0x6f4   : > { %p7634_p8 = pneg %p7633_p5 }
 0x6f6   : > { %7765 = dma.done.wait (%p7634_p8), %s7328_s25, 1024  }
 0x6f7   : > { %7767 = vsyncadd (%p7634_p8), %s7328_s25, 4294966272  ;;  %p18_p10 = scmp.ge.s32.totalorder %s7846_s24, 4   ;;  %s12018_s18 = smov %s7774_s19 }
 0x6f8   : > { %s12019_s19 = smov %s7778_s20  ;;  %s12020_s20 = smov %s7858_s27 }
 0x6f9   : > { %s12021_s21 = smov %s7846_s24  ;;  %20 = sbr.rel (!%p18_p10) target bundleno = 5 (0x5), region = 89 }
 0x6fe   :  { %7334 = vsyncpa [#allocation5], 1 }
 0x6ff   :  { %7336 = vsyncpa [#allocation5 + $0x1], 1 }
 0x700   :  { %7337 = vsyncpa [#allocation6], 1 }
 0x701   :  { %7339 = vsyncpa [#allocation6 + $0x1], 1 }

</bundles_post_ra>
